<compile_context>
chip_gen: v7x
topology: tpu7x:2x2x1
jax: 0.10.0
libtpu: 0.0.40
codegen_flags: <defaults>
</compile_context>

<pallas_src>
import functools

import jax
import jax.numpy as jnp
from jax import lax
from jax.experimental import pallas as pl
from jax.experimental.pallas import tpu as pltpu


def _repvggdw_kernel(w_ref, b_ref, x_ref, o_ref, xp_ref, *, H, W, c_tile, rh,
                     acc_dtype):
    """Fused depthwise 7x7 conv (3x3 branch pre-folded), stride 1, pad 3.

    Channels-on-lanes layout:
      w_ref : (49, c_tile)  VMEM  folded weights, row t = dy*7 + dx
      b_ref : (1, c_tile)   VMEM  folded bias (f32)
      x_ref : (H, W, c_tile)      input block (batch dim squeezed)
      o_ref : (H, W, c_tile)      output block
      xp_ref: (H+6, W+6, c_tile)  VMEM scratch: zero-padded input (halo = 3)
    """
    # ---- build the padded input: zero only the halo bands, copy interior ----
    xp_ref[:3, :, :] = jnp.zeros((3, W + 6, c_tile), acc_dtype)
    xp_ref[H + 3:, :, :] = jnp.zeros((3, W + 6, c_tile), acc_dtype)
    xp_ref[3:H + 3, :3, :] = jnp.zeros((H, 3, c_tile), acc_dtype)
    xp_ref[3:H + 3, W + 3:, :] = jnp.zeros((H, 3, c_tile), acc_dtype)
    xp_ref[3:H + 3, 3:W + 3, :] = x_ref[...].astype(acc_dtype)

    bias = b_ref[...].astype(jnp.float32).reshape(1, 1, c_tile)

    def compute_rows(h0):
        # Two independent accumulator chains over the 49 taps so the serial
        # add dependence does not starve the 4 VALU slots.  Each chain is
        # sized (via rh) to stay register-resident.
        acc0 = jnp.zeros((rh, W, c_tile), acc_dtype)
        acc1 = jnp.zeros((rh, W, c_tile), acc_dtype)
        for t in range(49):                       # 49 taps (3x3 folded into 7x7)
            dy, dx = t // 7, t % 7
            tap = xp_ref[pl.ds(h0 + dy, rh), dx:dx + W, :]   # ref slice -> vld
            wt = w_ref[t, :]                                  # (c_tile,) lane vec
            if t % 2 == 0:
                acc0 = acc0 + tap * wt
            else:
                acc1 = acc1 + tap * wt
        res = (acc0 + acc1).astype(jnp.float32) + bias
        o_ref[pl.ds(h0, rh), :, :] = res.astype(o_ref.dtype)

    n_chunks = H // rh
    if n_chunks == 1:
        compute_rows(0)                                       # fully static path
    else:
        def chunk_body(ci, carry):
            compute_rows(pl.multiple_of(ci * rh, rh))
            return carry
        lax.fori_loop(0, n_chunks, chunk_body, 0)


def _vmem_limit_bytes():
    """Generation-aware scoped-VMEM limit (headroom for compiler scratch)."""
    try:
        info = pltpu.get_tpu_info()
        cap = int(getattr(info, "vmem_capacity_bytes", 0)) or 64 * 1024 * 1024
    except Exception:
        cap = 64 * 1024 * 1024          # conservative: v7x has 64 MiB per core
    return min(int(cap * 3 // 4), 96 * 1024 * 1024)


def _pick_c_tile(C, H, W, x_itemsize, acc_itemsize, budget_bytes):
    """Largest valid channel tile whose per-step VMEM footprint fits budget.

    Valid tiles are either C itself, or a multiple of 128 dividing C (so the
    BlockSpec lane dim is 128-aligned or the full array dim).
    """
    def footprint(ct):
        io_blocks = 2 * 2 * H * W * ct * x_itemsize        # in+out, double-buffered
        scratch = (H + 6) * (W + 6) * ct * acc_itemsize     # padded input scratch
        wb = 2 * (49 + 1) * ct * 4                          # weight + bias blocks
        return io_blocks + scratch + wb

    if C % 128 != 0:
        # TODO(synk): channels cannot be lane-tiled when C % 128 != 0; fall
        # back to a single full-C block (fine for small-C configs).
        return C
    best = 128
    for ct in range(128, C + 1, 128):
        if C % ct == 0 and footprint(ct) <= budget_bytes:
            best = ct
    return best


def _pick_rh(H, W, c_tile, acc_itemsize, max_chain_bytes=32 * 1024):
    """Largest divisor of H keeping one accumulator chain within ~8 vregs."""
    best = 1
    for rh in range(1, H + 1):
        if H % rh == 0 and rh * W * c_tile * acc_itemsize <= max_chain_bytes:
            best = rh
    return best


def repvggdw_forward(x_nchw, params, eps=1e-5, c_tile=None, compute_dtype=None):
    """RepVGGDW forward: conv7x7_BN(x) + conv3x3_BN(x) (BN in eval mode)."""
    (w7, g7, b7, m7, v7, w3, g3, b3, m3, v3) = params
    N, C, H, W = x_nchw.shape

    # ---- fold BN (eval mode / running stats) into conv weights + bias ----
    s7 = g7 / jnp.sqrt(v7 + eps)                       # (C,)
    w7_eff = w7[:, 0] * s7[:, None, None]              # (C, 7, 7)
    bias7 = b7 - m7 * s7
    s3 = g3 / jnp.sqrt(v3 + eps)
    w3_eff = w3[:, 0] * s3[:, None, None]              # (C, 3, 3)
    bias3 = b3 - m3 * s3

    # ---- RepVGG re-parameterization: fold the 3x3 branch into the 7x7 ----
    w_comb = w7_eff.at[:, 2:5, 2:5].add(w3_eff)        # (C, 7, 7)
    bias = (bias7 + bias3).astype(jnp.float32).reshape(1, C)

    if compute_dtype is None:
        # bf16 VPU path for bf16 inputs (v6e/v7x); f32 otherwise (and on v5e).
        compute_dtype = (jnp.bfloat16 if x_nchw.dtype == jnp.bfloat16
                         else jnp.float32)
    acc_itemsize = jnp.dtype(compute_dtype).itemsize
    x_itemsize = jnp.dtype(x_nchw.dtype).itemsize

    # tap-major, channel-on-lanes weight layout: (49, C)
    w_taps = jnp.transpose(w_comb.reshape(C, 49), (1, 0)).astype(compute_dtype)

    vmem_limit = _vmem_limit_bytes()
    if c_tile is None:
        c_tile = _pick_c_tile(C, H, W, x_itemsize, acc_itemsize,
                              budget_bytes=vmem_limit - 4 * 1024 * 1024)
    assert C % c_tile == 0 and (c_tile == C or c_tile % 128 == 0)
    n_cblocks = C // c_tile
    rh = _pick_rh(H, W, c_tile, acc_itemsize)

    # channels-on-lanes compute layout
    x_nhwc = jnp.transpose(x_nchw, (0, 2, 3, 1))       # (N, H, W, C)

    kernel = functools.partial(_repvggdw_kernel, H=H, W=W, c_tile=c_tile,
                               rh=rh, acc_dtype=compute_dtype)

    out_nhwc = pl.pallas_call(
        kernel,
        out_shape=jax.ShapeDtypeStruct((N, H, W, C), x_nchw.dtype),
        grid_spec=pltpu.PrefetchScalarGridSpec(
            num_scalar_prefetch=0,
            grid=(N, n_cblocks),
            in_specs=[
                pl.BlockSpec((49, c_tile), lambda n, cb: (0, cb)),
                pl.BlockSpec((1, c_tile), lambda n, cb: (0, cb)),
                pl.BlockSpec((None, H, W, c_tile), lambda n, cb: (n, 0, 0, cb)),
            ],
            out_specs=pl.BlockSpec((None, H, W, c_tile),
                                   lambda n, cb: (n, 0, 0, cb)),
            scratch_shapes=[pltpu.VMEM((H + 6, W + 6, c_tile), compute_dtype)],
        ),
        compiler_params=pltpu.CompilerParams(
            dimension_semantics=("parallel", "parallel"),
            vmem_limit_bytes=vmem_limit,
        ),
    )(w_taps, bias, x_nhwc)

    return jnp.transpose(out_nhwc, (0, 3, 1, 2))       # back to NCHW


def _reference_forward(x_nchw, params, eps=1e-5):
    """Pure-JAX reference (lax depthwise convs, unfused) for correctness."""
    (w7, g7, b7, m7, v7, w3, g3, b3, m3, v3) = params
    C = x_nchw.shape[1]

    def branch(w, g, b, m, v, pad):
        y = lax.conv_general_dilated(
            x_nchw, w, window_strides=(1, 1),
            padding=[(pad, pad), (pad, pad)],
            feature_group_count=C,
            dimension_numbers=("NCHW", "OIHW", "NCHW"))
        scale = (g / jnp.sqrt(v + eps)).reshape(1, C, 1, 1)
        shift = (b - m * g / jnp.sqrt(v + eps)).reshape(1, C, 1, 1)
        return y * scale + shift

    return branch(w7, g7, b7, m7, v7, 3) + branch(w3, g3, b3, m3, v3, 1)


def init_params(key, in_dim):
    """Deterministic parameter init matching the module's shapes.

    conv : depthwise Conv2d(in_dim, in_dim, 7, groups=in_dim) + BN
    conv1: depthwise Conv2d(in_dim, in_dim, 3, groups=in_dim) + BN
    """
    k7, k3, km7, kv7, km3, kv3 = jax.random.split(key, 6)
    C = in_dim
    w7 = jax.random.normal(k7, (C, 1, 7, 7), jnp.float32) * 0.1
    w3 = jax.random.normal(k3, (C, 1, 3, 3), jnp.float32) * 0.1
    # BN params per Conv2d_BN init: weight=1, bias=0; running stats are given
    # non-trivial deterministic values so the BN fold is actually exercised.
    g7 = jnp.ones((C,), jnp.float32)
    b7 = jnp.zeros((C,), jnp.float32)
    m7 = jax.random.normal(km7, (C,), jnp.float32) * 0.05
    v7 = jnp.abs(jax.random.normal(kv7, (C,), jnp.float32)) * 0.1 + 1.0
    g3 = jnp.ones((C,), jnp.float32)
    b3 = jnp.zeros((C,), jnp.float32)
    m3 = jax.random.normal(km3, (C,), jnp.float32) * 0.05
    v3 = jnp.abs(jax.random.normal(kv3, (C,), jnp.float32)) * 0.1 + 1.0
    return (w7, g7, b7, m7, v7, w3, g3, b3, m3, v3)


if __name__ == "__main__":
    key = jax.random.PRNGKey(0)
    kx, kp, kx2, kp2 = jax.random.split(key, 4)

    # Small config (module at toy size: in_dim = out_dim = 4).
    N, C, H, W = 2, 4, 16, 16
    x = jax.random.normal(kx, (N, C, H, W), jnp.float32)
    params = init_params(kp, C)
    out = jax.block_until_ready(repvggdw_forward(x, params))
    ref = jax.block_until_ready(_reference_forward(x, params))
    assert out.shape == (N, C, H, W)
    assert jnp.max(jnp.abs(out - ref)) < 1e-4, "mismatch vs reference (small)"

    # Lane-dense config (C multiple of 128) exercising the chunked row loop.
    N2, C2, H2, W2 = 1, 256, 16, 16
    x2 = jax.random.normal(kx2, (N2, C2, H2, W2), jnp.float32)
    params2 = init_params(kp2, C2)
    out2 = jax.block_until_ready(repvggdw_forward(x2, params2))
    ref2 = jax.block_until_ready(_reference_forward(x2, params2))
    assert jnp.max(jnp.abs(out2 - ref2)) < 1e-4, "mismatch vs reference (lane-dense)"

    print("KERNEL_OK")
</pallas_src>

<mosaic_0001>
module attributes {stable_mosaic.version = 11 : i64} {
  func.func @_repvggdw_kernel(%arg0: i32, %arg1: i32, %arg2: memref<49x4xf32, #tpu.memory_space<vmem>>, %arg3: memref<1x4xf32, #tpu.memory_space<vmem>>, %arg4: memref<1x16x16x4xf32, #tpu.memory_space<vmem>>, %arg5: memref<1x16x16x4xf32, #tpu.memory_space<vmem>>, %arg6: memref<22x22x4xf32, #tpu.memory_space<vmem>>) attributes {dimension_semantics = [#tpu.dimension_semantics<parallel>, #tpu.dimension_semantics<parallel>], iteration_bounds = array<i64: 2, 1>, scalar_prefetch = 0 : i64, scratch_operands = 1 : i64, tpu.core_type = #tpu.core_type<tc>, window_params = [{transform_indices = @transform_0, window_bounds = array<i64: 49, 4>}, {transform_indices = @transform_1, window_bounds = array<i64: 1, 4>}, {transform_indices = @transform_2, window_bounds = array<i64: 1, 16, 16, 4>}, {transform_indices = @transform_3, window_bounds = array<i64: 1, 16, 16, 4>}]} {
    %cst = arith.constant 0.000000e+00 : f32
    %0 = vector.broadcast %cst : f32 to vector<3x22x4xf32>
    %c0 = arith.constant 0 : index
    %c0_0 = arith.constant 0 : index
    %c0_1 = arith.constant 0 : index
    %1 = vector.load %arg6[%c0, %c0_0, %c0_1] : memref<22x22x4xf32, #tpu.memory_space<vmem>>, vector<3x22x4xf32>
    tpu.vector_store %arg6[%c0, %c0_0, %c0_1], %0 {strides = array<i32>} : memref<22x22x4xf32, #tpu.memory_space<vmem>>, vector<3x22x4xf32>,
    %cst_2 = arith.constant 0.000000e+00 : f32
    %2 = vector.broadcast %cst_2 : f32 to vector<3x22x4xf32>
    %c19 = arith.constant 19 : index
    %c0_3 = arith.constant 0 : index
    %c0_4 = arith.constant 0 : index
    %3 = vector.load %arg6[%c19, %c0_3, %c0_4] : memref<22x22x4xf32, #tpu.memory_space<vmem>>, vector<3x22x4xf32>
    tpu.vector_store %arg6[%c19, %c0_3, %c0_4], %2 {strides = array<i32>} : memref<22x22x4xf32, #tpu.memory_space<vmem>>, vector<3x22x4xf32>,
    %cst_5 = arith.constant 0.000000e+00 : f32
    %4 = vector.broadcast %cst_5 : f32 to vector<16x3x4xf32>
    %c3 = arith.constant 3 : index
    %c0_6 = arith.constant 0 : index
    %c0_7 = arith.constant 0 : index
    %5 = vector.load %arg6[%c3, %c0_6, %c0_7] : memref<22x22x4xf32, #tpu.memory_space<vmem>>, vector<16x3x4xf32>
    tpu.vector_store %arg6[%c3, %c0_6, %c0_7], %4 {strides = array<i32>} : memref<22x22x4xf32, #tpu.memory_space<vmem>>, vector<16x3x4xf32>,
    %cst_8 = arith.constant 0.000000e+00 : f32
    %6 = vector.broadcast %cst_8 : f32 to vector<16x3x4xf32>
    %c3_9 = arith.constant 3 : index
    %c19_10 = arith.constant 19 : index
    %c0_11 = arith.constant 0 : index
    %7 = vector.load %arg6[%c3_9, %c19_10, %c0_11] : memref<22x22x4xf32, #tpu.memory_space<vmem>>, vector<16x3x4xf32>
    tpu.vector_store %arg6[%c3_9, %c19_10, %c0_11], %6 {strides = array<i32>} : memref<22x22x4xf32, #tpu.memory_space<vmem>>, vector<16x3x4xf32>,
    %c0_12 = arith.constant 0 : index
    %c0_13 = arith.constant 0 : index
    %c0_14 = arith.constant 0 : index
    %c0_15 = arith.constant 0 : index
    %8 = vector.load %arg4[%c0_12, %c0_13, %c0_14, %c0_15] : memref<1x16x16x4xf32, #tpu.memory_space<vmem>>, vector<1x16x16x4xf32>
    %9 = vector.shape_cast %8 : vector<1x16x16x4xf32> to vector<16x16x4xf32>
    %c3_16 = arith.constant 3 : index
    %c3_17 = arith.constant 3 : index
    %c0_18 = arith.constant 0 : index
    %10 = vector.load %arg6[%c3_16, %c3_17, %c0_18] : memref<22x22x4xf32, #tpu.memory_space<vmem>>, vector<16x16x4xf32>
    tpu.vector_store %arg6[%c3_16, %c3_17, %c0_18], %9 {strides = array<i32>} : memref<22x22x4xf32, #tpu.memory_space<vmem>>, vector<16x16x4xf32>,
    %c0_19 = arith.constant 0 : index
    %c0_20 = arith.constant 0 : index
    %11 = vector.load %arg3[%c0_19, %c0_20] : memref<1x4xf32, #tpu.memory_space<vmem>>, vector<1x4xf32>
    %12 = vector.shape_cast %11 : vector<1x4xf32> to vector<1x1x4xf32>
    %cst_21 = arith.constant 0.000000e+00 : f32
    %13 = vector.broadcast %cst_21 : f32 to vector<16x16x4xf32>
    %cst_22 = arith.constant 0.000000e+00 : f32
    %14 = vector.broadcast %cst_22 : f32 to vector<16x16x4xf32>
    %c0_23 = arith.constant 0 : index
    %c0_24 = arith.constant 0 : index
    %c0_25 = arith.constant 0 : index
    %15 = vector.load %arg6[%c0_23, %c0_24, %c0_25] : memref<22x22x4xf32, #tpu.memory_space<vmem>>, vector<16x16x4xf32>
    %c0_26 = arith.constant 0 : index
    %c0_27 = arith.constant 0 : index
    %16 = vector.load %arg2[%c0_26, %c0_27] : memref<49x4xf32, #tpu.memory_space<vmem>>, vector<1x4xf32>
    %17 = vector.shape_cast %16 : vector<1x4xf32> to vector<4xf32>
    %18 = vector.shape_cast %17 : vector<4xf32> to vector<1x1x4xf32>
    %19 = vector.broadcast %18 : vector<1x1x4xf32> to vector<16x16x4xf32>
    %20 = arith.mulf %15, %19 : vector<16x16x4xf32>
    %21 = arith.addf %13, %20 : vector<16x16x4xf32>
    %c0_28 = arith.constant 0 : index
    %c1 = arith.constant 1 : index
    %c0_29 = arith.constant 0 : index
    %22 = vector.load %arg6[%c0_28, %c1, %c0_29] : memref<22x22x4xf32, #tpu.memory_space<vmem>>, vector<16x16x4xf32>
    %c1_30 = arith.constant 1 : index
    %c0_31 = arith.constant 0 : index
    %23 = vector.load %arg2[%c1_30, %c0_31] : memref<49x4xf32, #tpu.memory_space<vmem>>, vector<1x4xf32>
    %24 = vector.shape_cast %23 : vector<1x4xf32> to vector<4xf32>
    %25 = vector.shape_cast %24 : vector<4xf32> to vector<1x1x4xf32>
    %26 = vector.broadcast %25 : vector<1x1x4xf32> to vector<16x16x4xf32>
    %27 = arith.mulf %22, %26 : vector<16x16x4xf32>
    %28 = arith.addf %14, %27 : vector<16x16x4xf32>
    %c0_32 = arith.constant 0 : index
    %c2 = arith.constant 2 : index
    %c0_33 = arith.constant 0 : index
    %29 = vector.load %arg6[%c0_32, %c2, %c0_33] : memref<22x22x4xf32, #tpu.memory_space<vmem>>, vector<16x16x4xf32>
    %c2_34 = arith.constant 2 : index
    %c0_35 = arith.constant 0 : index
    %30 = vector.load %arg2[%c2_34, %c0_35] : memref<49x4xf32, #tpu.memory_space<vmem>>, vector<1x4xf32>
    %31 = vector.shape_cast %30 : vector<1x4xf32> to vector<4xf32>
    %32 = vector.shape_cast %31 : vector<4xf32> to vector<1x1x4xf32>
    %33 = vector.broadcast %32 : vector<1x1x4xf32> to vector<16x16x4xf32>
    %34 = arith.mulf %29, %33 : vector<16x16x4xf32>
    %35 = arith.addf %21, %34 : vector<16x16x4xf32>
    %c0_36 = arith.constant 0 : index
    %c3_37 = arith.constant 3 : index
    %c0_38 = arith.constant 0 : index
    %36 = vector.load %arg6[%c0_36, %c3_37, %c0_38] : memref<22x22x4xf32, #tpu.memory_space<vmem>>, vector<16x16x4xf32>
    %c3_39 = arith.constant 3 : index
    %c0_40 = arith.constant 0 : index
    %37 = vector.load %arg2[%c3_39, %c0_40] : memref<49x4xf32, #tpu.memory_space<vmem>>, vector<1x4xf32>
    %38 = vector.shape_cast %37 : vector<1x4xf32> to vector<4xf32>
    %39 = vector.shape_cast %38 : vector<4xf32> to vector<1x1x4xf32>
    %40 = vector.broadcast %39 : vector<1x1x4xf32> to vector<16x16x4xf32>
    %41 = arith.mulf %36, %40 : vector<16x16x4xf32>
    %42 = arith.addf %28, %41 : vector<16x16x4xf32>
    %c0_41 = arith.constant 0 : index
    %c4 = arith.constant 4 : index
    %c0_42 = arith.constant 0 : index
    %43 = vector.load %arg6[%c0_41, %c4, %c0_42] : memref<22x22x4xf32, #tpu.memory_space<vmem>>, vector<16x16x4xf32>
    %c4_43 = arith.constant 4 : index
    %c0_44 = arith.constant 0 : index
    %44 = vector.load %arg2[%c4_43, %c0_44] : memref<49x4xf32, #tpu.memory_space<vmem>>, vector<1x4xf32>
    %45 = vector.shape_cast %44 : vector<1x4xf32> to vector<4xf32>
    %46 = vector.shape_cast %45 : vector<4xf32> to vector<1x1x4xf32>
    %47 = vector.broadcast %46 : vector<1x1x4xf32> to vector<16x16x4xf32>
    %48 = arith.mulf %43, %47 : vector<16x16x4xf32>
    %49 = arith.addf %35, %48 : vector<16x16x4xf32>
    %c0_45 = arith.constant 0 : index
    %c5 = arith.constant 5 : index
    %c0_46 = arith.constant 0 : index
    %50 = vector.load %arg6[%c0_45, %c5, %c0_46] : memref<22x22x4xf32, #tpu.memory_space<vmem>>, vector<16x16x4xf32>
    %c5_47 = arith.constant 5 : index
    %c0_48 = arith.constant 0 : index
    %51 = vector.load %arg2[%c5_47, %c0_48] : memref<49x4xf32, #tpu.memory_space<vmem>>, vector<1x4xf32>
    %52 = vector.shape_cast %51 : vector<1x4xf32> to vector<4xf32>
    %53 = vector.shape_cast %52 : vector<4xf32> to vector<1x1x4xf32>
    %54 = vector.broadcast %53 : vector<1x1x4xf32> to vector<16x16x4xf32>
    %55 = arith.mulf %50, %54 : vector<16x16x4xf32>
    %56 = arith.addf %42, %55 : vector<16x16x4xf32>
    %c0_49 = arith.constant 0 : index
    %c6 = arith.constant 6 : index
    %c0_50 = arith.constant 0 : index
    %57 = vector.load %arg6[%c0_49, %c6, %c0_50] : memref<22x22x4xf32, #tpu.memory_space<vmem>>, vector<16x16x4xf32>
    %c6_51 = arith.constant 6 : index
    %c0_52 = arith.constant 0 : index
    %58 = vector.load %arg2[%c6_51, %c0_52] : memref<49x4xf32, #tpu.memory_space<vmem>>, vector<1x4xf32>
    %59 = vector.shape_cast %58 : vector<1x4xf32> to vector<4xf32>
    %60 = vector.shape_cast %59 : vector<4xf32> to vector<1x1x4xf32>
    %61 = vector.broadcast %60 : vector<1x1x4xf32> to vector<16x16x4xf32>
    %62 = arith.mulf %57, %61 : vector<16x16x4xf32>
    %63 = arith.addf %49, %62 : vector<16x16x4xf32>
    %c1_53 = arith.constant 1 : index
    %c0_54 = arith.constant 0 : index
    %c0_55 = arith.constant 0 : index
    %64 = vector.load %arg6[%c1_53, %c0_54, %c0_55] : memref<22x22x4xf32, #tpu.memory_space<vmem>>, vector<16x16x4xf32>
    %c7 = arith.constant 7 : index
    %c0_56 = arith.constant 0 : index
    %65 = vector.load %arg2[%c7, %c0_56] : memref<49x4xf32, #tpu.memory_space<vmem>>, vector<1x4xf32>
    %66 = vector.shape_cast %65 : vector<1x4xf32> to vector<4xf32>
    %67 = vector.shape_cast %66 : vector<4xf32> to vector<1x1x4xf32>
    %68 = vector.broadcast %67 : vector<1x1x4xf32> to vector<16x16x4xf32>
    %69 = arith.mulf %64, %68 : vector<16x16x4xf32>
    %70 = arith.addf %56, %69 : vector<16x16x4xf32>
    %c1_57 = arith.constant 1 : index
    %c1_58 = arith.constant 1 : index
    %c0_59 = arith.constant 0 : index
    %71 = vector.load %arg6[%c1_57, %c1_58, %c0_59] : memref<22x22x4xf32, #tpu.memory_space<vmem>>, vector<16x16x4xf32>
    %c8 = arith.constant 8 : index
    %c0_60 = arith.constant 0 : index
    %72 = vector.load %arg2[%c8, %c0_60] : memref<49x4xf32, #tpu.memory_space<vmem>>, vector<1x4xf32>
    %73 = vector.shape_cast %72 : vector<1x4xf32> to vector<4xf32>
    %74 = vector.shape_cast %73 : vector<4xf32> to vector<1x1x4xf32>
    %75 = vector.broadcast %74 : vector<1x1x4xf32> to vector<16x16x4xf32>
    %76 = arith.mulf %71, %75 : vector<16x16x4xf32>
    %77 = arith.addf %63, %76 : vector<16x16x4xf32>
    %c1_61 = arith.constant 1 : index
    %c2_62 = arith.constant 2 : index
    %c0_63 = arith.constant 0 : index
    %78 = vector.load %arg6[%c1_61, %c2_62, %c0_63] : memref<22x22x4xf32, #tpu.memory_space<vmem>>, vector<16x16x4xf32>
    %c9 = arith.constant 9 : index
    %c0_64 = arith.constant 0 : index
    %79 = vector.load %arg2[%c9, %c0_64] : memref<49x4xf32, #tpu.memory_space<vmem>>, vector<1x4xf32>
    %80 = vector.shape_cast %79 : vector<1x4xf32> to vector<4xf32>
    %81 = vector.shape_cast %80 : vector<4xf32> to vector<1x1x4xf32>
    %82 = vector.broadcast %81 : vector<1x1x4xf32> to vector<16x16x4xf32>
    %83 = arith.mulf %78, %82 : vector<16x16x4xf32>
    %84 = arith.addf %70, %83 : vector<16x16x4xf32>
    %c1_65 = arith.constant 1 : index
    %c3_66 = arith.constant 3 : index
    %c0_67 = arith.constant 0 : index
    %85 = vector.load %arg6[%c1_65, %c3_66, %c0_67] : memref<22x22x4xf32, #tpu.memory_space<vmem>>, vector<16x16x4xf32>
    %c10 = arith.constant 10 : index
    %c0_68 = arith.constant 0 : index
    %86 = vector.load %arg2[%c10, %c0_68] : memref<49x4xf32, #tpu.memory_space<vmem>>, vector<1x4xf32>
    %87 = vector.shape_cast %86 : vector<1x4xf32> to vector<4xf32>
    %88 = vector.shape_cast %87 : vector<4xf32> to vector<1x1x4xf32>
    %89 = vector.broadcast %88 : vector<1x1x4xf32> to vector<16x16x4xf32>
    %90 = arith.mulf %85, %89 : vector<16x16x4xf32>
    %91 = arith.addf %77, %90 : vector<16x16x4xf32>
    %c1_69 = arith.constant 1 : index
    %c4_70 = arith.constant 4 : index
    %c0_71 = arith.constant 0 : index
    %92 = vector.load %arg6[%c1_69, %c4_70, %c0_71] : memref<22x22x4xf32, #tpu.memory_space<vmem>>, vector<16x16x4xf32>
    %c11 = arith.constant 11 : index
    %c0_72 = arith.constant 0 : index
    %93 = vector.load %arg2[%c11, %c0_72] : memref<49x4xf32, #tpu.memory_space<vmem>>, vector<1x4xf32>
    %94 = vector.shape_cast %93 : vector<1x4xf32> to vector<4xf32>
    %95 = vector.shape_cast %94 : vector<4xf32> to vector<1x1x4xf32>
    %96 = vector.broadcast %95 : vector<1x1x4xf32> to vector<16x16x4xf32>
    %97 = arith.mulf %92, %96 : vector<16x16x4xf32>
    %98 = arith.addf %84, %97 : vector<16x16x4xf32>
    %c1_73 = arith.constant 1 : index
    %c5_74 = arith.constant 5 : index
    %c0_75 = arith.constant 0 : index
    %99 = vector.load %arg6[%c1_73, %c5_74, %c0_75] : memref<22x22x4xf32, #tpu.memory_space<vmem>>, vector<16x16x4xf32>
    %c12 = arith.constant 12 : index
    %c0_76 = arith.constant 0 : index
    %100 = vector.load %arg2[%c12, %c0_76] : memref<49x4xf32, #tpu.memory_space<vmem>>, vector<1x4xf32>
    %101 = vector.shape_cast %100 : vector<1x4xf32> to vector<4xf32>
    %102 = vector.shape_cast %101 : vector<4xf32> to vector<1x1x4xf32>
    %103 = vector.broadcast %102 : vector<1x1x4xf32> to vector<16x16x4xf32>
    %104 = arith.mulf %99, %103 : vector<16x16x4xf32>
    %105 = arith.addf %91, %104 : vector<16x16x4xf32>
    %c1_77 = arith.constant 1 : index
    %c6_78 = arith.constant 6 : index
    %c0_79 = arith.constant 0 : index
    %106 = vector.load %arg6[%c1_77, %c6_78, %c0_79] : memref<22x22x4xf32, #tpu.memory_space<vmem>>, vector<16x16x4xf32>
    %c13 = arith.constant 13 : index
    %c0_80 = arith.constant 0 : index
    %107 = vector.load %arg2[%c13, %c0_80] : memref<49x4xf32, #tpu.memory_space<vmem>>, vector<1x4xf32>
    %108 = vector.shape_cast %107 : vector<1x4xf32> to vector<4xf32>
    %109 = vector.shape_cast %108 : vector<4xf32> to vector<1x1x4xf32>
    %110 = vector.broadcast %109 : vector<1x1x4xf32> to vector<16x16x4xf32>
    %111 = arith.mulf %106, %110 : vector<16x16x4xf32>
    %112 = arith.addf %98, %111 : vector<16x16x4xf32>
    %c2_81 = arith.constant 2 : index
    %c0_82 = arith.constant 0 : index
    %c0_83 = arith.constant 0 : index
    %113 = vector.load %arg6[%c2_81, %c0_82, %c0_83] : memref<22x22x4xf32, #tpu.memory_space<vmem>>, vector<16x16x4xf32>
    %c14 = arith.constant 14 : index
    %c0_84 = arith.constant 0 : index
    %114 = vector.load %arg2[%c14, %c0_84] : memref<49x4xf32, #tpu.memory_space<vmem>>, vector<1x4xf32>
    %115 = vector.shape_cast %114 : vector<1x4xf32> to vector<4xf32>
    %116 = vector.shape_cast %115 : vector<4xf32> to vector<1x1x4xf32>
    %117 = vector.broadcast %116 : vector<1x1x4xf32> to vector<16x16x4xf32>
    %118 = arith.mulf %113, %117 : vector<16x16x4xf32>
    %119 = arith.addf %105, %118 : vector<16x16x4xf32>
    %c2_85 = arith.constant 2 : index
    %c1_86 = arith.constant 1 : index
    %c0_87 = arith.constant 0 : index
    %120 = vector.load %arg6[%c2_85, %c1_86, %c0_87] : memref<22x22x4xf32, #tpu.memory_space<vmem>>, vector<16x16x4xf32>
    %c15 = arith.constant 15 : index
    %c0_88 = arith.constant 0 : index
    %121 = vector.load %arg2[%c15, %c0_88] : memref<49x4xf32, #tpu.memory_space<vmem>>, vector<1x4xf32>
    %122 = vector.shape_cast %121 : vector<1x4xf32> to vector<4xf32>
    %123 = vector.shape_cast %122 : vector<4xf32> to vector<1x1x4xf32>
    %124 = vector.broadcast %123 : vector<1x1x4xf32> to vector<16x16x4xf32>
    %125 = arith.mulf %120, %124 : vector<16x16x4xf32>
    %126 = arith.addf %112, %125 : vector<16x16x4xf32>
    %c2_89 = arith.constant 2 : index
    %c2_90 = arith.constant 2 : index
    %c0_91 = arith.constant 0 : index
    %127 = vector.load %arg6[%c2_89, %c2_90, %c0_91] : memref<22x22x4xf32, #tpu.memory_space<vmem>>, vector<16x16x4xf32>
    %c16 = arith.constant 16 : index
    %c0_92 = arith.constant 0 : index
    %128 = vector.load %arg2[%c16, %c0_92] : memref<49x4xf32, #tpu.memory_space<vmem>>, vector<1x4xf32>
    %129 = vector.shape_cast %128 : vector<1x4xf32> to vector<4xf32>
    %130 = vector.shape_cast %129 : vector<4xf32> to vector<1x1x4xf32>
    %131 = vector.broadcast %130 : vector<1x1x4xf32> to vector<16x16x4xf32>
    %132 = arith.mulf %127, %131 : vector<16x16x4xf32>
    %133 = arith.addf %119, %132 : vector<16x16x4xf32>
    %c2_93 = arith.constant 2 : index
    %c3_94 = arith.constant 3 : index
    %c0_95 = arith.constant 0 : index
    %134 = vector.load %arg6[%c2_93, %c3_94, %c0_95] : memref<22x22x4xf32, #tpu.memory_space<vmem>>, vector<16x16x4xf32>
    %c17 = arith.constant 17 : index
    %c0_96 = arith.constant 0 : index
    %135 = vector.load %arg2[%c17, %c0_96] : memref<49x4xf32, #tpu.memory_space<vmem>>, vector<1x4xf32>
    %136 = vector.shape_cast %135 : vector<1x4xf32> to vector<4xf32>
    %137 = vector.shape_cast %136 : vector<4xf32> to vector<1x1x4xf32>
    %138 = vector.broadcast %137 : vector<1x1x4xf32> to vector<16x16x4xf32>
    %139 = arith.mulf %134, %138 : vector<16x16x4xf32>
    %140 = arith.addf %126, %139 : vector<16x16x4xf32>
    %c2_97 = arith.constant 2 : index
    %c4_98 = arith.constant 4 : index
    %c0_99 = arith.constant 0 : index
    %141 = vector.load %arg6[%c2_97, %c4_98, %c0_99] : memref<22x22x4xf32, #tpu.memory_space<vmem>>, vector<16x16x4xf32>
    %c18 = arith.constant 18 : index
    %c0_100 = arith.constant 0 : index
    %142 = vector.load %arg2[%c18, %c0_100] : memref<49x4xf32, #tpu.memory_space<vmem>>, vector<1x4xf32>
    %143 = vector.shape_cast %142 : vector<1x4xf32> to vector<4xf32>
    %144 = vector.shape_cast %143 : vector<4xf32> to vector<1x1x4xf32>
    %145 = vector.broadcast %144 : vector<1x1x4xf32> to vector<16x16x4xf32>
    %146 = arith.mulf %141, %145 : vector<16x16x4xf32>
    %147 = arith.addf %133, %146 : vector<16x16x4xf32>
    %c2_101 = arith.constant 2 : index
    %c5_102 = arith.constant 5 : index
    %c0_103 = arith.constant 0 : index
    %148 = vector.load %arg6[%c2_101, %c5_102, %c0_103] : memref<22x22x4xf32, #tpu.memory_space<vmem>>, vector<16x16x4xf32>
    %c19_104 = arith.constant 19 : index
    %c0_105 = arith.constant 0 : index
    %149 = vector.load %arg2[%c19_104, %c0_105] : memref<49x4xf32, #tpu.memory_space<vmem>>, vector<1x4xf32>
    %150 = vector.shape_cast %149 : vector<1x4xf32> to vector<4xf32>
    %151 = vector.shape_cast %150 : vector<4xf32> to vector<1x1x4xf32>
    %152 = vector.broadcast %151 : vector<1x1x4xf32> to vector<16x16x4xf32>
    %153 = arith.mulf %148, %152 : vector<16x16x4xf32>
    %154 = arith.addf %140, %153 : vector<16x16x4xf32>
    %c2_106 = arith.constant 2 : index
    %c6_107 = arith.constant 6 : index
    %c0_108 = arith.constant 0 : index
    %155 = vector.load %arg6[%c2_106, %c6_107, %c0_108] : memref<22x22x4xf32, #tpu.memory_space<vmem>>, vector<16x16x4xf32>
    %c20 = arith.constant 20 : index
    %c0_109 = arith.constant 0 : index
    %156 = vector.load %arg2[%c20, %c0_109] : memref<49x4xf32, #tpu.memory_space<vmem>>, vector<1x4xf32>
    %157 = vector.shape_cast %156 : vector<1x4xf32> to vector<4xf32>
    %158 = vector.shape_cast %157 : vector<4xf32> to vector<1x1x4xf32>
    %159 = vector.broadcast %158 : vector<1x1x4xf32> to vector<16x16x4xf32>
    %160 = arith.mulf %155, %159 : vector<16x16x4xf32>
    %161 = arith.addf %147, %160 : vector<16x16x4xf32>
    %c3_110 = arith.constant 3 : index
    %c0_111 = arith.constant 0 : index
    %c0_112 = arith.constant 0 : index
    %162 = vector.load %arg6[%c3_110, %c0_111, %c0_112] : memref<22x22x4xf32, #tpu.memory_space<vmem>>, vector<16x16x4xf32>
    %c21 = arith.constant 21 : index
    %c0_113 = arith.constant 0 : index
    %163 = vector.load %arg2[%c21, %c0_113] : memref<49x4xf32, #tpu.memory_space<vmem>>, vector<1x4xf32>
    %164 = vector.shape_cast %163 : vector<1x4xf32> to vector<4xf32>
    %165 = vector.shape_cast %164 : vector<4xf32> to vector<1x1x4xf32>
    %166 = vector.broadcast %165 : vector<1x1x4xf32> to vector<16x16x4xf32>
    %167 = arith.mulf %162, %166 : vector<16x16x4xf32>
    %168 = arith.addf %154, %167 : vector<16x16x4xf32>
    %c3_114 = arith.constant 3 : index
    %c1_115 = arith.constant 1 : index
    %c0_116 = arith.constant 0 : index
    %169 = vector.load %arg6[%c3_114, %c1_115, %c0_116] : memref<22x22x4xf32, #tpu.memory_space<vmem>>, vector<16x16x4xf32>
    %c22 = arith.constant 22 : index
    %c0_117 = arith.constant 0 : index
    %170 = vector.load %arg2[%c22, %c0_117] : memref<49x4xf32, #tpu.memory_space<vmem>>, vector<1x4xf32>
    %171 = vector.shape_cast %170 : vector<1x4xf32> to vector<4xf32>
    %172 = vector.shape_cast %171 : vector<4xf32> to vector<1x1x4xf32>
    %173 = vector.broadcast %172 : vector<1x1x4xf32> to vector<16x16x4xf32>
    %174 = arith.mulf %169, %173 : vector<16x16x4xf32>
    %175 = arith.addf %161, %174 : vector<16x16x4xf32>
    %c3_118 = arith.constant 3 : index
    %c2_119 = arith.constant 2 : index
    %c0_120 = arith.constant 0 : index
    %176 = vector.load %arg6[%c3_118, %c2_119, %c0_120] : memref<22x22x4xf32, #tpu.memory_space<vmem>>, vector<16x16x4xf32>
    %c23 = arith.constant 23 : index
    %c0_121 = arith.constant 0 : index
    %177 = vector.load %arg2[%c23, %c0_121] : memref<49x4xf32, #tpu.memory_space<vmem>>, vector<1x4xf32>
    %178 = vector.shape_cast %177 : vector<1x4xf32> to vector<4xf32>
    %179 = vector.shape_cast %178 : vector<4xf32> to vector<1x1x4xf32>
    %180 = vector.broadcast %179 : vector<1x1x4xf32> to vector<16x16x4xf32>
    %181 = arith.mulf %176, %180 : vector<16x16x4xf32>
    %182 = arith.addf %168, %181 : vector<16x16x4xf32>
    %c3_122 = arith.constant 3 : index
    %c3_123 = arith.constant 3 : index
    %c0_124 = arith.constant 0 : index
    %183 = vector.load %arg6[%c3_122, %c3_123, %c0_124] : memref<22x22x4xf32, #tpu.memory_space<vmem>>, vector<16x16x4xf32>
    %c24 = arith.constant 24 : index
    %c0_125 = arith.constant 0 : index
    %184 = vector.load %arg2[%c24, %c0_125] : memref<49x4xf32, #tpu.memory_space<vmem>>, vector<1x4xf32>
    %185 = vector.shape_cast %184 : vector<1x4xf32> to vector<4xf32>
    %186 = vector.shape_cast %185 : vector<4xf32> to vector<1x1x4xf32>
    %187 = vector.broadcast %186 : vector<1x1x4xf32> to vector<16x16x4xf32>
    %188 = arith.mulf %183, %187 : vector<16x16x4xf32>
    %189 = arith.addf %175, %188 : vector<16x16x4xf32>
    %c3_126 = arith.constant 3 : index
    %c4_127 = arith.constant 4 : index
    %c0_128 = arith.constant 0 : index
    %190 = vector.load %arg6[%c3_126, %c4_127, %c0_128] : memref<22x22x4xf32, #tpu.memory_space<vmem>>, vector<16x16x4xf32>
    %c25 = arith.constant 25 : index
    %c0_129 = arith.constant 0 : index
    %191 = vector.load %arg2[%c25, %c0_129] : memref<49x4xf32, #tpu.memory_space<vmem>>, vector<1x4xf32>
    %192 = vector.shape_cast %191 : vector<1x4xf32> to vector<4xf32>
    %193 = vector.shape_cast %192 : vector<4xf32> to vector<1x1x4xf32>
    %194 = vector.broadcast %193 : vector<1x1x4xf32> to vector<16x16x4xf32>
    %195 = arith.mulf %190, %194 : vector<16x16x4xf32>
    %196 = arith.addf %182, %195 : vector<16x16x4xf32>
    %c3_130 = arith.constant 3 : index
    %c5_131 = arith.constant 5 : index
    %c0_132 = arith.constant 0 : index
    %197 = vector.load %arg6[%c3_130, %c5_131, %c0_132] : memref<22x22x4xf32, #tpu.memory_space<vmem>>, vector<16x16x4xf32>
    %c26 = arith.constant 26 : index
    %c0_133 = arith.constant 0 : index
    %198 = vector.load %arg2[%c26, %c0_133] : memref<49x4xf32, #tpu.memory_space<vmem>>, vector<1x4xf32>
    %199 = vector.shape_cast %198 : vector<1x4xf32> to vector<4xf32>
    %200 = vector.shape_cast %199 : vector<4xf32> to vector<1x1x4xf32>
    %201 = vector.broadcast %200 : vector<1x1x4xf32> to vector<16x16x4xf32>
    %202 = arith.mulf %197, %201 : vector<16x16x4xf32>
    %203 = arith.addf %189, %202 : vector<16x16x4xf32>
    %c3_134 = arith.constant 3 : index
    %c6_135 = arith.constant 6 : index
    %c0_136 = arith.constant 0 : index
    %204 = vector.load %arg6[%c3_134, %c6_135, %c0_136] : memref<22x22x4xf32, #tpu.memory_space<vmem>>, vector<16x16x4xf32>
    %c27 = arith.constant 27 : index
    %c0_137 = arith.constant 0 : index
    %205 = vector.load %arg2[%c27, %c0_137] : memref<49x4xf32, #tpu.memory_space<vmem>>, vector<1x4xf32>
    %206 = vector.shape_cast %205 : vector<1x4xf32> to vector<4xf32>
    %207 = vector.shape_cast %206 : vector<4xf32> to vector<1x1x4xf32>
    %208 = vector.broadcast %207 : vector<1x1x4xf32> to vector<16x16x4xf32>
    %209 = arith.mulf %204, %208 : vector<16x16x4xf32>
    %210 = arith.addf %196, %209 : vector<16x16x4xf32>
    %c4_138 = arith.constant 4 : index
    %c0_139 = arith.constant 0 : index
    %c0_140 = arith.constant 0 : index
    %211 = vector.load %arg6[%c4_138, %c0_139, %c0_140] : memref<22x22x4xf32, #tpu.memory_space<vmem>>, vector<16x16x4xf32>
    %c28 = arith.constant 28 : index
    %c0_141 = arith.constant 0 : index
    %212 = vector.load %arg2[%c28, %c0_141] : memref<49x4xf32, #tpu.memory_space<vmem>>, vector<1x4xf32>
    %213 = vector.shape_cast %212 : vector<1x4xf32> to vector<4xf32>
    %214 = vector.shape_cast %213 : vector<4xf32> to vector<1x1x4xf32>
    %215 = vector.broadcast %214 : vector<1x1x4xf32> to vector<16x16x4xf32>
    %216 = arith.mulf %211, %215 : vector<16x16x4xf32>
    %217 = arith.addf %203, %216 : vector<16x16x4xf32>
    %c4_142 = arith.constant 4 : index
    %c1_143 = arith.constant 1 : index
    %c0_144 = arith.constant 0 : index
    %218 = vector.load %arg6[%c4_142, %c1_143, %c0_144] : memref<22x22x4xf32, #tpu.memory_space<vmem>>, vector<16x16x4xf32>
    %c29 = arith.constant 29 : index
    %c0_145 = arith.constant 0 : index
    %219 = vector.load %arg2[%c29, %c0_145] : memref<49x4xf32, #tpu.memory_space<vmem>>, vector<1x4xf32>
    %220 = vector.shape_cast %219 : vector<1x4xf32> to vector<4xf32>
    %221 = vector.shape_cast %220 : vector<4xf32> to vector<1x1x4xf32>
    %222 = vector.broadcast %221 : vector<1x1x4xf32> to vector<16x16x4xf32>
    %223 = arith.mulf %218, %222 : vector<16x16x4xf32>
    %224 = arith.addf %210, %223 : vector<16x16x4xf32>
    %c4_146 = arith.constant 4 : index
    %c2_147 = arith.constant 2 : index
    %c0_148 = arith.constant 0 : index
    %225 = vector.load %arg6[%c4_146, %c2_147, %c0_148] : memref<22x22x4xf32, #tpu.memory_space<vmem>>, vector<16x16x4xf32>
    %c30 = arith.constant 30 : index
    %c0_149 = arith.constant 0 : index
    %226 = vector.load %arg2[%c30, %c0_149] : memref<49x4xf32, #tpu.memory_space<vmem>>, vector<1x4xf32>
    %227 = vector.shape_cast %226 : vector<1x4xf32> to vector<4xf32>
    %228 = vector.shape_cast %227 : vector<4xf32> to vector<1x1x4xf32>
    %229 = vector.broadcast %228 : vector<1x1x4xf32> to vector<16x16x4xf32>
    %230 = arith.mulf %225, %229 : vector<16x16x4xf32>
    %231 = arith.addf %217, %230 : vector<16x16x4xf32>
    %c4_150 = arith.constant 4 : index
    %c3_151 = arith.constant 3 : index
    %c0_152 = arith.constant 0 : index
    %232 = vector.load %arg6[%c4_150, %c3_151, %c0_152] : memref<22x22x4xf32, #tpu.memory_space<vmem>>, vector<16x16x4xf32>
    %c31 = arith.constant 31 : index
    %c0_153 = arith.constant 0 : index
    %233 = vector.load %arg2[%c31, %c0_153] : memref<49x4xf32, #tpu.memory_space<vmem>>, vector<1x4xf32>
    %234 = vector.shape_cast %233 : vector<1x4xf32> to vector<4xf32>
    %235 = vector.shape_cast %234 : vector<4xf32> to vector<1x1x4xf32>
    %236 = vector.broadcast %235 : vector<1x1x4xf32> to vector<16x16x4xf32>
    %237 = arith.mulf %232, %236 : vector<16x16x4xf32>
    %238 = arith.addf %224, %237 : vector<16x16x4xf32>
    %c4_154 = arith.constant 4 : index
    %c4_155 = arith.constant 4 : index
    %c0_156 = arith.constant 0 : index
    %239 = vector.load %arg6[%c4_154, %c4_155, %c0_156] : memref<22x22x4xf32, #tpu.memory_space<vmem>>, vector<16x16x4xf32>
    %c32 = arith.constant 32 : index
    %c0_157 = arith.constant 0 : index
    %240 = vector.load %arg2[%c32, %c0_157] : memref<49x4xf32, #tpu.memory_space<vmem>>, vector<1x4xf32>
    %241 = vector.shape_cast %240 : vector<1x4xf32> to vector<4xf32>
    %242 = vector.shape_cast %241 : vector<4xf32> to vector<1x1x4xf32>
    %243 = vector.broadcast %242 : vector<1x1x4xf32> to vector<16x16x4xf32>
    %244 = arith.mulf %239, %243 : vector<16x16x4xf32>
    %245 = arith.addf %231, %244 : vector<16x16x4xf32>
    %c4_158 = arith.constant 4 : index
    %c5_159 = arith.constant 5 : index
    %c0_160 = arith.constant 0 : index
    %246 = vector.load %arg6[%c4_158, %c5_159, %c0_160] : memref<22x22x4xf32, #tpu.memory_space<vmem>>, vector<16x16x4xf32>
    %c33 = arith.constant 33 : index
    %c0_161 = arith.constant 0 : index
    %247 = vector.load %arg2[%c33, %c0_161] : memref<49x4xf32, #tpu.memory_space<vmem>>, vector<1x4xf32>
    %248 = vector.shape_cast %247 : vector<1x4xf32> to vector<4xf32>
    %249 = vector.shape_cast %248 : vector<4xf32> to vector<1x1x4xf32>
    %250 = vector.broadcast %249 : vector<1x1x4xf32> to vector<16x16x4xf32>
    %251 = arith.mulf %246, %250 : vector<16x16x4xf32>
    %252 = arith.addf %238, %251 : vector<16x16x4xf32>
    %c4_162 = arith.constant 4 : index
    %c6_163 = arith.constant 6 : index
    %c0_164 = arith.constant 0 : index
    %253 = vector.load %arg6[%c4_162, %c6_163, %c0_164] : memref<22x22x4xf32, #tpu.memory_space<vmem>>, vector<16x16x4xf32>
    %c34 = arith.constant 34 : index
    %c0_165 = arith.constant 0 : index
    %254 = vector.load %arg2[%c34, %c0_165] : memref<49x4xf32, #tpu.memory_space<vmem>>, vector<1x4xf32>
    %255 = vector.shape_cast %254 : vector<1x4xf32> to vector<4xf32>
    %256 = vector.shape_cast %255 : vector<4xf32> to vector<1x1x4xf32>
    %257 = vector.broadcast %256 : vector<1x1x4xf32> to vector<16x16x4xf32>
    %258 = arith.mulf %253, %257 : vector<16x16x4xf32>
    %259 = arith.addf %245, %258 : vector<16x16x4xf32>
    %c5_166 = arith.constant 5 : index
    %c0_167 = arith.constant 0 : index
    %c0_168 = arith.constant 0 : index
    %260 = vector.load %arg6[%c5_166, %c0_167, %c0_168] : memref<22x22x4xf32, #tpu.memory_space<vmem>>, vector<16x16x4xf32>
    %c35 = arith.constant 35 : index
    %c0_169 = arith.constant 0 : index
    %261 = vector.load %arg2[%c35, %c0_169] : memref<49x4xf32, #tpu.memory_space<vmem>>, vector<1x4xf32>
    %262 = vector.shape_cast %261 : vector<1x4xf32> to vector<4xf32>
    %263 = vector.shape_cast %262 : vector<4xf32> to vector<1x1x4xf32>
    %264 = vector.broadcast %263 : vector<1x1x4xf32> to vector<16x16x4xf32>
    %265 = arith.mulf %260, %264 : vector<16x16x4xf32>
    %266 = arith.addf %252, %265 : vector<16x16x4xf32>
    %c5_170 = arith.constant 5 : index
    %c1_171 = arith.constant 1 : index
    %c0_172 = arith.constant 0 : index
    %267 = vector.load %arg6[%c5_170, %c1_171, %c0_172] : memref<22x22x4xf32, #tpu.memory_space<vmem>>, vector<16x16x4xf32>
    %c36 = arith.constant 36 : index
    %c0_173 = arith.constant 0 : index
    %268 = vector.load %arg2[%c36, %c0_173] : memref<49x4xf32, #tpu.memory_space<vmem>>, vector<1x4xf32>
    %269 = vector.shape_cast %268 : vector<1x4xf32> to vector<4xf32>
    %270 = vector.shape_cast %269 : vector<4xf32> to vector<1x1x4xf32>
    %271 = vector.broadcast %270 : vector<1x1x4xf32> to vector<16x16x4xf32>
    %272 = arith.mulf %267, %271 : vector<16x16x4xf32>
    %273 = arith.addf %259, %272 : vector<16x16x4xf32>
    %c5_174 = arith.constant 5 : index
    %c2_175 = arith.constant 2 : index
    %c0_176 = arith.constant 0 : index
    %274 = vector.load %arg6[%c5_174, %c2_175, %c0_176] : memref<22x22x4xf32, #tpu.memory_space<vmem>>, vector<16x16x4xf32>
    %c37 = arith.constant 37 : index
    %c0_177 = arith.constant 0 : index
    %275 = vector.load %arg2[%c37, %c0_177] : memref<49x4xf32, #tpu.memory_space<vmem>>, vector<1x4xf32>
    %276 = vector.shape_cast %275 : vector<1x4xf32> to vector<4xf32>
    %277 = vector.shape_cast %276 : vector<4xf32> to vector<1x1x4xf32>
    %278 = vector.broadcast %277 : vector<1x1x4xf32> to vector<16x16x4xf32>
    %279 = arith.mulf %274, %278 : vector<16x16x4xf32>
    %280 = arith.addf %266, %279 : vector<16x16x4xf32>
    %c5_178 = arith.constant 5 : index
    %c3_179 = arith.constant 3 : index
    %c0_180 = arith.constant 0 : index
    %281 = vector.load %arg6[%c5_178, %c3_179, %c0_180] : memref<22x22x4xf32, #tpu.memory_space<vmem>>, vector<16x16x4xf32>
    %c38 = arith.constant 38 : index
    %c0_181 = arith.constant 0 : index
    %282 = vector.load %arg2[%c38, %c0_181] : memref<49x4xf32, #tpu.memory_space<vmem>>, vector<1x4xf32>
    %283 = vector.shape_cast %282 : vector<1x4xf32> to vector<4xf32>
    %284 = vector.shape_cast %283 : vector<4xf32> to vector<1x1x4xf32>
    %285 = vector.broadcast %284 : vector<1x1x4xf32> to vector<16x16x4xf32>
    %286 = arith.mulf %281, %285 : vector<16x16x4xf32>
    %287 = arith.addf %273, %286 : vector<16x16x4xf32>
    %c5_182 = arith.constant 5 : index
    %c4_183 = arith.constant 4 : index
    %c0_184 = arith.constant 0 : index
    %288 = vector.load %arg6[%c5_182, %c4_183, %c0_184] : memref<22x22x4xf32, #tpu.memory_space<vmem>>, vector<16x16x4xf32>
    %c39 = arith.constant 39 : index
    %c0_185 = arith.constant 0 : index
    %289 = vector.load %arg2[%c39, %c0_185] : memref<49x4xf32, #tpu.memory_space<vmem>>, vector<1x4xf32>
    %290 = vector.shape_cast %289 : vector<1x4xf32> to vector<4xf32>
    %291 = vector.shape_cast %290 : vector<4xf32> to vector<1x1x4xf32>
    %292 = vector.broadcast %291 : vector<1x1x4xf32> to vector<16x16x4xf32>
    %293 = arith.mulf %288, %292 : vector<16x16x4xf32>
    %294 = arith.addf %280, %293 : vector<16x16x4xf32>
    %c5_186 = arith.constant 5 : index
    %c5_187 = arith.constant 5 : index
    %c0_188 = arith.constant 0 : index
    %295 = vector.load %arg6[%c5_186, %c5_187, %c0_188] : memref<22x22x4xf32, #tpu.memory_space<vmem>>, vector<16x16x4xf32>
    %c40 = arith.constant 40 : index
    %c0_189 = arith.constant 0 : index
    %296 = vector.load %arg2[%c40, %c0_189] : memref<49x4xf32, #tpu.memory_space<vmem>>, vector<1x4xf32>
    %297 = vector.shape_cast %296 : vector<1x4xf32> to vector<4xf32>
    %298 = vector.shape_cast %297 : vector<4xf32> to vector<1x1x4xf32>
    %299 = vector.broadcast %298 : vector<1x1x4xf32> to vector<16x16x4xf32>
    %300 = arith.mulf %295, %299 : vector<16x16x4xf32>
    %301 = arith.addf %287, %300 : vector<16x16x4xf32>
    %c5_190 = arith.constant 5 : index
    %c6_191 = arith.constant 6 : index
    %c0_192 = arith.constant 0 : index
    %302 = vector.load %arg6[%c5_190, %c6_191, %c0_192] : memref<22x22x4xf32, #tpu.memory_space<vmem>>, vector<16x16x4xf32>
    %c41 = arith.constant 41 : index
    %c0_193 = arith.constant 0 : index
    %303 = vector.load %arg2[%c41, %c0_193] : memref<49x4xf32, #tpu.memory_space<vmem>>, vector<1x4xf32>
    %304 = vector.shape_cast %303 : vector<1x4xf32> to vector<4xf32>
    %305 = vector.shape_cast %304 : vector<4xf32> to vector<1x1x4xf32>
    %306 = vector.broadcast %305 : vector<1x1x4xf32> to vector<16x16x4xf32>
    %307 = arith.mulf %302, %306 : vector<16x16x4xf32>
    %308 = arith.addf %294, %307 : vector<16x16x4xf32>
    %c6_194 = arith.constant 6 : index
    %c0_195 = arith.constant 0 : index
    %c0_196 = arith.constant 0 : index
    %309 = vector.load %arg6[%c6_194, %c0_195, %c0_196] : memref<22x22x4xf32, #tpu.memory_space<vmem>>, vector<16x16x4xf32>
    %c42 = arith.constant 42 : index
    %c0_197 = arith.constant 0 : index
    %310 = vector.load %arg2[%c42, %c0_197] : memref<49x4xf32, #tpu.memory_space<vmem>>, vector<1x4xf32>
    %311 = vector.shape_cast %310 : vector<1x4xf32> to vector<4xf32>
    %312 = vector.shape_cast %311 : vector<4xf32> to vector<1x1x4xf32>
    %313 = vector.broadcast %312 : vector<1x1x4xf32> to vector<16x16x4xf32>
    %314 = arith.mulf %309, %313 : vector<16x16x4xf32>
    %315 = arith.addf %301, %314 : vector<16x16x4xf32>
    %c6_198 = arith.constant 6 : index
    %c1_199 = arith.constant 1 : index
    %c0_200 = arith.constant 0 : index
    %316 = vector.load %arg6[%c6_198, %c1_199, %c0_200] : memref<22x22x4xf32, #tpu.memory_space<vmem>>, vector<16x16x4xf32>
    %c43 = arith.constant 43 : index
    %c0_201 = arith.constant 0 : index
    %317 = vector.load %arg2[%c43, %c0_201] : memref<49x4xf32, #tpu.memory_space<vmem>>, vector<1x4xf32>
    %318 = vector.shape_cast %317 : vector<1x4xf32> to vector<4xf32>
    %319 = vector.shape_cast %318 : vector<4xf32> to vector<1x1x4xf32>
    %320 = vector.broadcast %319 : vector<1x1x4xf32> to vector<16x16x4xf32>
    %321 = arith.mulf %316, %320 : vector<16x16x4xf32>
    %322 = arith.addf %308, %321 : vector<16x16x4xf32>
    %c6_202 = arith.constant 6 : index
    %c2_203 = arith.constant 2 : index
    %c0_204 = arith.constant 0 : index
    %323 = vector.load %arg6[%c6_202, %c2_203, %c0_204] : memref<22x22x4xf32, #tpu.memory_space<vmem>>, vector<16x16x4xf32>
    %c44 = arith.constant 44 : index
    %c0_205 = arith.constant 0 : index
    %324 = vector.load %arg2[%c44, %c0_205] : memref<49x4xf32, #tpu.memory_space<vmem>>, vector<1x4xf32>
    %325 = vector.shape_cast %324 : vector<1x4xf32> to vector<4xf32>
    %326 = vector.shape_cast %325 : vector<4xf32> to vector<1x1x4xf32>
    %327 = vector.broadcast %326 : vector<1x1x4xf32> to vector<16x16x4xf32>
    %328 = arith.mulf %323, %327 : vector<16x16x4xf32>
    %329 = arith.addf %315, %328 : vector<16x16x4xf32>
    %c6_206 = arith.constant 6 : index
    %c3_207 = arith.constant 3 : index
    %c0_208 = arith.constant 0 : index
    %330 = vector.load %arg6[%c6_206, %c3_207, %c0_208] : memref<22x22x4xf32, #tpu.memory_space<vmem>>, vector<16x16x4xf32>
    %c45 = arith.constant 45 : index
    %c0_209 = arith.constant 0 : index
    %331 = vector.load %arg2[%c45, %c0_209] : memref<49x4xf32, #tpu.memory_space<vmem>>, vector<1x4xf32>
    %332 = vector.shape_cast %331 : vector<1x4xf32> to vector<4xf32>
    %333 = vector.shape_cast %332 : vector<4xf32> to vector<1x1x4xf32>
    %334 = vector.broadcast %333 : vector<1x1x4xf32> to vector<16x16x4xf32>
    %335 = arith.mulf %330, %334 : vector<16x16x4xf32>
    %336 = arith.addf %322, %335 : vector<16x16x4xf32>
    %c6_210 = arith.constant 6 : index
    %c4_211 = arith.constant 4 : index
    %c0_212 = arith.constant 0 : index
    %337 = vector.load %arg6[%c6_210, %c4_211, %c0_212] : memref<22x22x4xf32, #tpu.memory_space<vmem>>, vector<16x16x4xf32>
    %c46 = arith.constant 46 : index
    %c0_213 = arith.constant 0 : index
    %338 = vector.load %arg2[%c46, %c0_213] : memref<49x4xf32, #tpu.memory_space<vmem>>, vector<1x4xf32>
    %339 = vector.shape_cast %338 : vector<1x4xf32> to vector<4xf32>
    %340 = vector.shape_cast %339 : vector<4xf32> to vector<1x1x4xf32>
    %341 = vector.broadcast %340 : vector<1x1x4xf32> to vector<16x16x4xf32>
    %342 = arith.mulf %337, %341 : vector<16x16x4xf32>
    %343 = arith.addf %329, %342 : vector<16x16x4xf32>
    %c6_214 = arith.constant 6 : index
    %c5_215 = arith.constant 5 : index
    %c0_216 = arith.constant 0 : index
    %344 = vector.load %arg6[%c6_214, %c5_215, %c0_216] : memref<22x22x4xf32, #tpu.memory_space<vmem>>, vector<16x16x4xf32>
    %c47 = arith.constant 47 : index
    %c0_217 = arith.constant 0 : index
    %345 = vector.load %arg2[%c47, %c0_217] : memref<49x4xf32, #tpu.memory_space<vmem>>, vector<1x4xf32>
    %346 = vector.shape_cast %345 : vector<1x4xf32> to vector<4xf32>
    %347 = vector.shape_cast %346 : vector<4xf32> to vector<1x1x4xf32>
    %348 = vector.broadcast %347 : vector<1x1x4xf32> to vector<16x16x4xf32>
    %349 = arith.mulf %344, %348 : vector<16x16x4xf32>
    %350 = arith.addf %336, %349 : vector<16x16x4xf32>
    %c6_218 = arith.constant 6 : index
    %c6_219 = arith.constant 6 : index
    %c0_220 = arith.constant 0 : index
    %351 = vector.load %arg6[%c6_218, %c6_219, %c0_220] : memref<22x22x4xf32, #tpu.memory_space<vmem>>, vector<16x16x4xf32>
    %c48 = arith.constant 48 : index
    %c0_221 = arith.constant 0 : index
    %352 = vector.load %arg2[%c48, %c0_221] : memref<49x4xf32, #tpu.memory_space<vmem>>, vector<1x4xf32>
    %353 = vector.shape_cast %352 : vector<1x4xf32> to vector<4xf32>
    %354 = vector.shape_cast %353 : vector<4xf32> to vector<1x1x4xf32>
    %355 = vector.broadcast %354 : vector<1x1x4xf32> to vector<16x16x4xf32>
    %356 = arith.mulf %351, %355 : vector<16x16x4xf32>
    %357 = arith.addf %343, %356 : vector<16x16x4xf32>
    %358 = arith.addf %357, %350 : vector<16x16x4xf32>
    %359 = vector.broadcast %12 : vector<1x1x4xf32> to vector<16x16x4xf32>
    %360 = arith.addf %358, %359 : vector<16x16x4xf32>
    %c0_222 = arith.constant 0 : index
    %c0_223 = arith.constant 0 : index
    %c0_224 = arith.constant 0 : index
    %c0_225 = arith.constant 0 : index
    %361 = vector.load %arg5[%c0_222, %c0_223, %c0_224, %c0_225] : memref<1x16x16x4xf32, #tpu.memory_space<vmem>>, vector<1x16x16x4xf32>
    %362 = vector.shape_cast %361 : vector<1x16x16x4xf32> to vector<16x16x4xf32>
    %363 = vector.shape_cast %360 : vector<16x16x4xf32> to vector<1x16x16x4xf32>
    tpu.vector_store %arg5[%c0_222, %c0_223, %c0_224, %c0_225], %363 {strides = array<i32>} : memref<1x16x16x4xf32, #tpu.memory_space<vmem>>, vector<1x16x16x4xf32>,
    return
  }
  func.func @transform_0(%arg0: i32, %arg1: i32) -> (i32, i32) {
    %c0_i32 = arith.constant 0 : i32
    %c0_i32_0 = arith.constant 0 : i32
    return %c0_i32, %arg1 : i32, i32
  }
  func.func @transform_1(%arg0: i32, %arg1: i32) -> (i32, i32) {
    %c0_i32 = arith.constant 0 : i32
    %c0_i32_0 = arith.constant 0 : i32
    return %c0_i32, %arg1 : i32, i32
  }
  func.func @transform_2(%arg0: i32, %arg1: i32) -> (i32, i32, i32, i32) {
    %c0_i32 = arith.constant 0 : i32
    %c0_i32_0 = arith.constant 0 : i32
    %c0_i32_1 = arith.constant 0 : i32
    return %arg0, %c0_i32, %c0_i32_0, %arg1 : i32, i32, i32, i32
  }
  func.func @transform_3(%arg0: i32, %arg1: i32) -> (i32, i32, i32, i32) {
    %c0_i32 = arith.constant 0 : i32
    %c0_i32_0 = arith.constant 0 : i32
    %c0_i32_1 = arith.constant 0 : i32
    return %arg0, %c0_i32, %c0_i32_0, %arg1 : i32, i32, i32, i32
  }
}

</mosaic_0001>

<bundles_post_ra>
// kernel: tpu_custom_call.1
= control target key start
LH: loop header
LB: loop body
LE: loop exit
PB: predicated region body
PF: predicated region fallthrough
CT: control target
= control target key end

     0   :  { %s5854_s12 = smov 0   ;;  %s5856_s13 = smov 0   ;;  %s10975_s0 = inlined_call_operand.vmem [shape: f32[49,4], index: 0, kind: input, shape index: {}]   ;;  %s10976_s1 = inlined_call_operand.vmem [shape: f32[1,4], index: 1, kind: input, shape index: {}]   ;;  %s10977_s2 = inlined_call_operand.vmem [shape: f32[2,16,16,4], index: 2, kind: input, shape index: {}]   ;;  %s10978_s3 = inlined_call_operand.vmem [shape: f32[2,16,16,4], index: 3, kind: output, shape index: {}]  }
   0x1   :  { %s5858_s14 = smov 0  }
   0x2 LB: > { %s25_s15 = sadd.s32 1, %s5827_s13  ;;  %p5526_p0 = scmp.ge.s32.totalorder %s5831_s14, 1  ;;  %s5831_s14 = sphi %s5858_s14, %s13_s14   ;;  %s5827_s13 = sphi %s5856_s13, %s12099_s13   ;;  %s5823_s12 = sphi %s5854_s12, %s12098_s12  }
   0x3   : > { %p27_p1 = scmp.ge.s32.totalorder %s25_s15, 2  ;;  %p173_p2 = scmp.lt.s32.totalorder %s5831_s14, 3 }
   0x5   : > { %s12101_s15 = smov (%p27_p1, %s25_s15), 0  ;;  %p174_p3 = pnand %p5526_p0, %p173_p2 }
   0x7   : > { %177 = sbr.rel (%p174_p3) target bundleno = 878 (0x36e), region = 32 }
   0xe   : > { %vm233_vm0 = vcmask 31744   ;;  %v5833_v0 = vmov 0.0   ;;  %v5889_v1 = vld [vmem:[%s10975_s0] ss:$0 sm:$0xff]  ;;  %v5894_v2 = vld [vmem:[%s10975_s0 + $0x1] ss:$0 sm:$0xff] }
   0xf   : > { %234 = vst.msk [vmem:[#allocation2] sm:$0xff] %vm233_vm0, %v5833_v0  ;;  %235 = vst.msk [vmem:[#allocation2 + $0x8] sm:$0xff] %vm233_vm0, %v5833_v0  ;;  %v5899_v3 = vld [vmem:[%s10975_s0 + $0x2] ss:$0 sm:$0xff]  ;;  %vm236_vm1 = vcmask 29696   ;;  %vm255_vm2 = vcmask 26624  }
  0x10   : > { %238 = vst.msk [vmem:[#allocation2 + $0x18] sm:$0xff] %vm233_vm0, %v5833_v0  ;;  %239 = vst.msk [vmem:[#allocation2 + $0x20] sm:$0xff] %vm233_vm0, %v5833_v0  ;;  %v5906_v7 = vld [vmem:[%s10975_s0 + $0x3] ss:$0 sm:$0xff]  ;;  %p217_p4 = scmp.lt.s32.totalorder %s5823_s12, 1 }
  0x11   : > { %241 = vst.msk [vmem:[#allocation2 + $0x30] sm:$0xff] %vm233_vm0, %v5833_v0  ;;  %242 = vst.msk [vmem:[#allocation2 + $0x38] sm:$0xff] %vm233_vm0, %v5833_v0  ;;  %v5946_v9 = vld [vmem:[%s10975_s0 + $0x4] ss:$0 sm:$0xff]  ;;  %v5951_v10 = vld [vmem:[%s10975_s0 + $0x7] ss:$0 sm:$0xff] }
  0x12   : > { %245 = vst.msk [vmem:[#allocation2 + $0x1c8] sm:$0xff] %vm233_vm0, %v5833_v0  ;;  %246 = vst.msk [vmem:[#allocation2 + $0x1d0] sm:$0xff] %vm233_vm0, %v5833_v0  ;;  %v5970_v23 = vld [vmem:[%s10975_s0 + $0x5] ss:$0 sm:$0xff]  ;;  %v5981_v30 = vld [vmem:[%s10975_s0 + $0x6] ss:$0 sm:$0xff] }
  0x13   : > { %248 = vst.msk [vmem:[#allocation2 + $0x1e0] sm:$0xff] %vm233_vm0, %v5833_v0  ;;  %249 = vst.msk [vmem:[#allocation2 + $0x1e8] sm:$0xff] %vm233_vm0, %v5833_v0  ;;  %s12103_s12 = smov (!%p217_p4, %s5823_s12), 1  ;;  %v6004_v45 = vld [vmem:[%s10975_s0 + $0x8] ss:$0 sm:$0xff] }
  0x14   : > { %251 = vst.msk [vmem:[#allocation2 + $0x1f8] sm:$0xff] %vm233_vm0, %v5833_v0  ;;  %252 = vst.msk [vmem:[#allocation2 + $0x200] sm:$0xff] %vm233_vm0, %v5833_v0  ;;  %s5583_s7 = sshll.u32 %s12103_s12, 8  ;;  %v6020_v62 = vld [vmem:[%s10975_s0 + $0x9] ss:$0 sm:$0xff] }
  0x15   : > { %237 = vst.msk [vmem:[#allocation2 + $0x10] sm:$0x3f] %vm236_vm1, %v5833_v0  ;;  %240 = vst.msk [vmem:[#allocation2 + $0x28] sm:$0x3f] %vm236_vm1, %v5833_v0  ;;  %s6046_s20 = scalar_lea.vmem %s10977_s2, %s5583_s7  ;;  %s8561_s5 = scalar_lea.vmem %s10978_s3, %s5583_s7 }
  0x16   : > { %v353_v4 = vld [vmem:[#allocation2] sm:$0xff]  ;;  %v354_v5 = vld [vmem:[#allocation2 + $0x8] sm:$0xff]  ;;  %243 = vst.msk [vmem:[#allocation2 + $0x40] sm:$0x3f] %vm236_vm1, %v5833_v0  ;;  %247 = vst.msk [vmem:[#allocation2 + $0x1d8] sm:$0x3f] %vm236_vm1, %v5833_v0 }
  0x17   : > { %v5901_v6 = vld [vmem:[#allocation2 + $0x18] sm:$0xff]  ;;  %250 = vst.msk [vmem:[#allocation2 + $0x1f0] sm:$0x3f] %vm236_vm1, %v5833_v0  ;;  %253 = vst.msk [vmem:[#allocation2 + $0x208] sm:$0x3f] %vm236_vm1, %v5833_v0  ;;  %v390_v11 = vmul.f32 %v5889_v1, %v353_v4  ;;  %v454_v13 = vld [vmem:[#allocation2 + $0x1] sm:$0xff]  ;;  %v5959_v16 = vmul.f32 %v5889_v1, %v354_v5 }
  0x18   : > { %256 = vst.msk [vmem:[#allocation2 + $0x48] sm:$0x7] %vm255_vm2, %v5833_v0  ;;  %257 = vst.msk [vmem:[#allocation2 + $0x60] sm:$0x7] %vm255_vm2, %v5833_v0  ;;  %v5941_v8 = vld [vmem:[#allocation2 + $0x30] sm:$0xff]  ;;  %v392_v12 = vmul.f32 %v5889_v1, %v5901_v6  ;;  %v456_v14 = vld [vmem:[#allocation2 + $0x19] sm:$0xff]  ;;  %v491_v18 = vmul.f32 %v5894_v2, %v454_v13  ;;  %v1098_v31 = vmul.f32 %v5951_v10, %v5901_v6 }
  0x19   : > { %258 = vst.msk [vmem:[#allocation2 + $0x78] sm:$0x7] %vm255_vm2, %v5833_v0  ;;  %259 = vst.msk [vmem:[#allocation2 + $0x90] sm:$0x7] %vm255_vm2, %v5833_v0  ;;  %v5956_v15 = vld [vmem:[#allocation2 + $0x31] sm:$0xff]  ;;  %v394_v17 = vmul.f32 %v5889_v1, %v5941_v8  ;;  %v493_v19 = vmul.f32 %v5894_v2, %v456_v14  ;;  %v555_v20 = vld [vmem:[#allocation2 + $0x2] sm:$0xff]  ;;  %v1100_v38 = vmul.f32 %v5951_v10, %v5941_v8 }
  0x1a   : > { %260 = vst.msk [vmem:[#allocation2 + $0xa8] sm:$0x7] %vm255_vm2, %v5833_v0  ;;  %261 = vst.msk [vmem:[#allocation2 + $0xc0] sm:$0x7] %vm255_vm2, %v5833_v0  ;;  %v557_v21 = vld [vmem:[#allocation2 + $0x1a] sm:$0xff]  ;;  %v5965_v22 = vld [vmem:[#allocation2 + $0x32] sm:$0xff]  ;;  %v592_v24 = vmul.f32 %v5899_v3, %v555_v20  ;;  %v495_v32 = vmul.f32 %v5894_v2, %v5956_v15  ;;  %v1199_v61 = vmul.f32 %v6004_v45, %v456_v14 }
  0x1b   : > { %262 = vst.msk [vmem:[#allocation2 + $0xd8] sm:$0x7] %vm255_vm2, %v5833_v0  ;;  %263 = vst.msk [vmem:[#allocation2 + $0xf0] sm:$0x7] %vm255_vm2, %v5833_v0  ;;  %v594_v25 = vmul.f32 %v5899_v3, %v557_v21  ;;  %v596_v26 = vmul.f32 %v5899_v3, %v5965_v22  ;;  %v656_v27 = vld [vmem:[#allocation2 + $0x3] sm:$0xff]  ;;  %v658_v28 = vld [vmem:[#allocation2 + $0x1b] sm:$0xff] }
  0x1c   : > { %264 = vst.msk [vmem:[#allocation2 + $0x108] sm:$0x7] %vm255_vm2, %v5833_v0  ;;  %265 = vst.msk [vmem:[#allocation2 + $0x120] sm:$0x7] %vm255_vm2, %v5833_v0  ;;  %v5976_v29 = vld [vmem:[#allocation2 + $0x33] sm:$0xff]  ;;  %v693_v33 = vmul.f32 %v5906_v7, %v656_v27  ;;  %v695_v34 = vmul.f32 %v5906_v7, %v658_v28  ;;  %v757_v35 = vld [vmem:[#allocation2 + $0x4] sm:$0xff]  ;;  %v624_v39 = vadd.f32 %v592_v24, %v390_v11 }
  0x1d   : > { %266 = vst.msk [vmem:[#allocation2 + $0x138] sm:$0x7] %vm255_vm2, %v5833_v0  ;;  %267 = vst.msk [vmem:[#allocation2 + $0x150] sm:$0x7] %vm255_vm2, %v5833_v0  ;;  %v759_v36 = vld [vmem:[#allocation2 + $0x1c] sm:$0xff]  ;;  %v5994_v37 = vld [vmem:[#allocation2 + $0x34] sm:$0xff]  ;;  %v626_v40 = vadd.f32 %v594_v25, %v392_v12  ;;  %v697_v41 = vmul.f32 %v5906_v7, %v5976_v29  ;;  %v794_v42 = vmul.f32 %v5946_v9, %v757_v35 }
  0x1e   : > { %268 = vst.msk [vmem:[#allocation2 + $0x168] sm:$0x7] %vm255_vm2, %v5833_v0  ;;  %269 = vst.msk [vmem:[#allocation2 + $0x180] sm:$0x7] %vm255_vm2, %v5833_v0  ;;  %v858_v43 = vld [vmem:[#allocation2 + $0x5] sm:$0xff]  ;;  %v860_v44 = vld [vmem:[#allocation2 + $0x1d] sm:$0xff]  ;;  %v628_v47 = vadd.f32 %v596_v26, %v394_v17  ;;  %v725_v48 = vadd.f32 %v693_v33, %v491_v18  ;;  %v727_v49 = vadd.f32 %v695_v34, %v493_v19 }
  0x1f   : > { %270 = vst.msk [vmem:[#allocation2 + $0x198] sm:$0x7] %vm255_vm2, %v5833_v0  ;;  %271 = vst.msk [vmem:[#allocation2 + $0x1b0] sm:$0x7] %vm255_vm2, %v5833_v0  ;;  %v356_v46 = vld [vmem:[#allocation2 + $0x20] sm:$0xff]  ;;  %v796_v50 = vmul.f32 %v5946_v9, %v759_v36  ;;  %v798_v53 = vmul.f32 %v5946_v9, %v5994_v37  ;;  %v826_v54 = vadd.f32 %v794_v42, %v624_v39  ;;  %v6009_v55 = vld [vmem:[#allocation2 + $0x35] sm:$0xff] }
  0x20   : > { %272 = vst.msk [vmem:[#allocation2 + $0x5b] sm:$0x7] %vm255_vm2, %v5833_v0  ;;  %273 = vst.msk [vmem:[#allocation2 + $0x73] sm:$0x7] %vm255_vm2, %v5833_v0  ;;  %v959_v51 = vld [vmem:[#allocation2 + $0x6] sm:$0xff]  ;;  %v961_v52 = vld [vmem:[#allocation2 + $0x1e] sm:$0xff]  ;;  %v895_v56 = vmul.f32 %v5970_v23, %v858_v43  ;;  %v897_v57 = vmul.f32 %v5970_v23, %v860_v44  ;;  %v6023_v63 = vmul.f32 %v5889_v1, %v356_v46 }
  0x21   : > { %274 = vst.msk [vmem:[#allocation2 + $0x8b] sm:$0x7] %vm255_vm2, %v5833_v0  ;;  %275 = vst.msk [vmem:[#allocation2 + $0xa3] sm:$0x7] %vm255_vm2, %v5833_v0  ;;  %v828_v58 = vadd.f32 %v796_v50, %v626_v40  ;;  %v996_v59 = vmul.f32 %v5981_v30, %v959_v51  ;;  %v998_v60 = vmul.f32 %v5981_v30, %v961_v52  ;;  %v6028_v6 = vld [vmem:[%s10975_s0 + $0xa] ss:$0 sm:$0xff] }
  0x22   : > { %276 = vst.msk [vmem:[#allocation2 + $0xbb] sm:$0x7] %vm255_vm2, %v5833_v0  ;;  %277 = vst.msk [vmem:[#allocation2 + $0xd3] sm:$0x7] %vm255_vm2, %v5833_v0  ;;  %v927_v4 = vadd.f32 %v895_v56, %v725_v48  ;;  %v929_v5 = vadd.f32 %v897_v57, %v727_v49  ;;  %v899_v11 = vmul.f32 %v5970_v23, %v6009_v55  ;;  %v6032_v12 = vld [vmem:[#allocation2 + $0x36] sm:$0xff]  ;;  %v455_v50 = vld [vmem:[#allocation2 + $0x9] sm:$0xff] }
  0x23   : > { %278 = vst.msk [vmem:[#allocation2 + $0xeb] sm:$0x7] %vm255_vm2, %v5833_v0  ;;  %279 = vst.msk [vmem:[#allocation2 + $0x103] sm:$0x7] %vm255_vm2, %v5833_v0  ;;  %v1028_v13 = vadd.f32 %v996_v59, %v826_v54  ;;  %v1030_v14 = vadd.f32 %v998_v60, %v828_v58  ;;  %v1201_v17 = vmul.f32 %v6004_v45, %v5956_v15  ;;  %v6039_v18 = vld [vmem:[%s10975_s0 + $0xb] ss:$0 sm:$0xff] }
  0x24   : > { %280 = vst.msk [vmem:[#allocation2 + $0x11b] sm:$0x7] %vm255_vm2, %v5833_v0  ;;  %281 = vst.msk [vmem:[#allocation2 + $0x133] sm:$0x7] %vm255_vm2, %v5833_v0  ;;  %v358_v19 = vld [vmem:[#allocation2 + $0x38] sm:$0xff]  ;;  %v830_v20 = vadd.f32 %v798_v53, %v628_v47  ;;  %v1130_v24 = vadd.f32 %v1098_v31, %v927_v4  ;;  %v1132_v25 = vadd.f32 %v1100_v38, %v929_v5  ;;  %v289_v51 = vld [vmem:[%s6046_s20 + $0x8] sm:$0xff] }
  0x25   : > { %282 = vst.msk [vmem:[#allocation2 + $0x14b] sm:$0x7] %vm255_vm2, %v5833_v0  ;;  %283 = vst.msk [vmem:[#allocation2 + $0x163] sm:$0x7] %vm255_vm2, %v5833_v0  ;;  %v1300_v26 = vmul.f32 %v6020_v62, %v557_v21  ;;  %v6052_v27 = vld [vmem:[%s10975_s0 + $0xc] ss:$0 sm:$0xff]  ;;  %v1233_v33 = vadd.f32 %v1201_v17, %v1030_v14  ;;  %v1302_v34 = vmul.f32 %v6020_v62, %v5965_v22 }
  0x26   : > { %284 = vst.msk [vmem:[#allocation2 + $0x17b] sm:$0x7] %vm255_vm2, %v5833_v0  ;;  %285 = vst.msk [vmem:[#allocation2 + $0x193] sm:$0x7] %vm255_vm2, %v5833_v0  ;;  %v1401_v35 = vmul.f32 %v6028_v6, %v658_v28  ;;  %v6060_v31 = vld [vmem:[%s10975_s0 + $0xd] ss:$0 sm:$0xff]  ;;  %v1000_v21 = vmul.f32 %v5981_v30, %v6032_v12  ;;  %v1403_v39 = vmul.f32 %v6028_v6, %v5976_v29 }
  0x27   : > { %286 = vst.msk [vmem:[#allocation2 + $0x1ab] sm:$0x7] %vm255_vm2, %v5833_v0  ;;  %287 = vst.msk [vmem:[#allocation2 + $0x1c3] sm:$0x7] %vm255_vm2, %v5833_v0  ;;  %v729_v0 = vadd.f32 %v697_v41, %v495_v32  ;;  %v1231_v32 = vadd.f32 %v1199_v61, %v1028_v13  ;;  %v1332_v38 = vadd.f32 %v1300_v26, %v1130_v24  ;;  %v6070_v41 = vld [vmem:[%s10975_s0 + $0xe] ss:$0 sm:$0xff] }
  0x28   : > { %11272 = vst [vmem:[#allocation3_spill] sm:$0xff] %v5970_v23  ;;  %11273 = vst [vmem:[#allocation4_spill] sm:$0xff] %v6060_v31  ;;  %v1502_v40 = vmul.f32 %v6039_v18, %v759_v36  ;;  %v288_v28 = vld [vmem:[%s6046_s20] sm:$0xff]  ;;  %v6074_v42 = vmul.f32 %v5889_v1, %v358_v19  ;;  %v1334_v43 = vadd.f32 %v1302_v34, %v1132_v25  ;;  %v6080_v49 = vld [vmem:[%s10975_s0 + $0xf] ss:$0 sm:$0xff] }
  0x29   : > { %11274 = vst [vmem:[#allocation5_spill] sm:$0xff] %v6070_v41  ;;  %v1433_v47 = vadd.f32 %v1401_v35, %v1231_v32  ;;  %v1603_v48 = vmul.f32 %v6052_v27, %v860_v44  ;;  %v6085_v36 = vld [vmem:[%s10975_s0 + $0x10] ss:$0 sm:$0xff]  ;;  %320 = vst.msk [vmem:[#allocation2 + $0x4b] sm:$0xff] %vm233_vm0, %v288_v28  ;;  %v6090_v53 = vmul.f32 %v5951_v10, %v356_v46  ;;  %v6096_v57 = vld [vmem:[%s10975_s0 + $0x11] ss:$0 sm:$0xff] }
  0x2a   : > { %v1435_v44 = vadd.f32 %v1403_v39, %v1233_v33  ;;  %v1534_v54 = vadd.f32 %v1502_v40, %v1332_v38  ;;  %v1704_v56 = vmul.f32 %v6060_v31, %v961_v52  ;;  %v556_v58 = vld [vmem:[#allocation2 + $0xa] sm:$0xff]  ;;  %321 = vst.msk [vmem:[#allocation2 + $0x53] sm:$0xff] %vm233_vm0, %v289_v51  ;;  %v291_v46 = vld [vmem:[%s6046_s20 + $0x18] sm:$0xff]  ;;  %v292_v4 = vld [vmem:[%s6046_s20 + $0x20] sm:$0xff]  ;;  %v6103_v5 = vmul.f32 %v5951_v10, %v358_v19 }
  0x2b   : > { %v657_v59 = vld [vmem:[#allocation2 + $0xb] sm:$0xff]  ;;  %v1504_v52 = vmul.f32 %v6039_v18, %v5994_v37  ;;  %v1605_v13 = vmul.f32 %v6052_v27, %v6009_v55  ;;  %v1635_v14 = vadd.f32 %v1603_v48, %v1433_v47  ;;  %323 = vst.msk [vmem:[#allocation2 + $0x6b] sm:$0xff] %vm233_vm0, %v291_v46  ;;  %324 = vst.msk [vmem:[#allocation2 + $0x7b] sm:$0xff] %vm233_vm0, %v292_v4  ;;  %v295_v26 = vld [vmem:[%s6046_s20 + $0x38] sm:$0xff] }
  0x2c   : > { %v758_v60 = vld [vmem:[#allocation2 + $0xc] sm:$0xff]  ;;  %v6120_v32 = vadd.f32 %v899_v11, %v729_v0  ;;  %v6122_v33 = vadd.f32 %v1000_v21, %v830_v20  ;;  %v1736_v34 = vadd.f32 %v1704_v56, %v1534_v54  ;;  %v1806_v35 = vmul.f32 %v6070_v41, %v5941_v8  ;;  %327 = vst.msk [vmem:[#allocation2 + $0x9b] sm:$0xff] %vm233_vm0, %v295_v26  ;;  %v296_v38 = vld [vmem:[%s6046_s20 + $0x40] sm:$0xff]  ;;  %v299_v47 = vld [vmem:[%s6046_s20 + $0x58] sm:$0xff] }
  0x2d   : > { %v290_v61 = vld [vmem:[%s6046_s20 + $0x10] sm:$0xff]  ;;  %v293_v24 = vld [vmem:[%s6046_s20 + $0x28] sm:$0xff]  ;;  %v6132_v28 = vadd.f32 %v1504_v52, %v1334_v43  ;;  %v6134_v0 = vadd.f32 %v1605_v13, %v1435_v44  ;;  %v6138_v11 = vmul.f32 %v6060_v31, %v6032_v12  ;;  %v6141_v8 = vmul.f32 %v6070_v41, %v358_v19  ;;  %328 = vst.msk [vmem:[#allocation2 + $0xab] sm:$0xff] %vm233_vm0, %v296_v38  ;;  %v6163_v4 = vld [vmem:[#allocation2 + $0x3a] sm:$0xff] }
  0x2e   : > { %v6112_v17 = vld [vmem:[%s10975_s0 + $0x12] ss:$0 sm:$0xff]  ;;  %322 = vst.msk [vmem:[#allocation2 + $0x63] sm:$0xff] %vm233_vm0, %v290_v61  ;;  %11275 = vst [vmem:[#allocation6_spill] sm:$0xff] %v6120_v32  ;;  %v297_v39 = vld [vmem:[%s6046_s20 + $0x48] sm:$0xff]  ;;  %v1838_v43 = vadd.f32 %v1806_v35, %v1635_v14  ;;  %v1907_v48 = vmul.f32 %v6080_v49, %v5956_v15  ;;  %v2008_v51 = vmul.f32 %v6085_v36, %v5965_v22 }
  0x2f   : > { %v294_v25 = vld [vmem:[%s6046_s20 + $0x30] sm:$0xff]  ;;  %11276 = vst [vmem:[#allocation7_spill] sm:$0xff] %v6122_v33  ;;  %325 = vst.msk [vmem:[#allocation2 + $0x83] sm:$0xff] %vm233_vm0, %v293_v24  ;;  %v457_v21 = vld [vmem:[#allocation2 + $0x21] sm:$0xff]  ;;  %v492_v44 = vmul.f32 %v5894_v2, %v455_v50  ;;  %v2109_v56 = vmul.f32 %v6096_v57, %v5976_v29  ;;  %v593_v61 = vmul.f32 %v5899_v3, %v556_v58 }
  0x30   : > { %326 = vst.msk [vmem:[#allocation2 + $0x93] sm:$0xff] %vm233_vm0, %v294_v25  ;;  %v298_v40 = vld [vmem:[%s6046_s20 + $0x50] sm:$0xff]  ;;  %11277 = vst [vmem:[#allocation8_spill] sm:$0xff] %v6134_v0  ;;  %v694_v15 = vmul.f32 %v5906_v7, %v657_v59  ;;  %v795_v46 = vmul.f32 %v5946_v9, %v758_v60  ;;  %v558_v22 = vld [vmem:[#allocation2 + $0x22] sm:$0xff]  ;;  %v1939_v13 = vadd.f32 %v1907_v48, %v1736_v34 }
  0x31   : > { %v859_v20 = vld [vmem:[#allocation2 + $0xd] sm:$0xff]  ;;  %329 = vst.msk [vmem:[#allocation2 + $0xb3] sm:$0xff] %vm233_vm0, %v297_v39  ;;  %330 = vst.msk [vmem:[#allocation2 + $0xc3] sm:$0xff] %vm233_vm0, %v298_v40  ;;  %v659_v52 = vld [vmem:[#allocation2 + $0x23] sm:$0xff]  ;;  %v2210_v50 = vmul.f32 %v6112_v17, %v5994_v37  ;;  %v494_v29 = vmul.f32 %v5894_v2, %v457_v21  ;;  %v625_v60 = vadd.f32 %v593_v61, %v5959_v16 }
  0x32   : > { %v6154_v19 = vld [vmem:[%s10975_s0 + $0x13] ss:$0 sm:$0xff]  ;;  %331 = vst.msk [vmem:[#allocation2 + $0xcb] sm:$0xff] %vm233_vm0, %v299_v47  ;;  %v896_v14 = vmul.f32 %v5970_v23, %v859_v20  ;;  %v6168_v24 = vld [vmem:[#allocation2 + $0x39] sm:$0xff]  ;;  %v6178_v59 = vld [vmem:[%s10975_s0 + $0x14] ss:$0 sm:$0xff]  ;;  %v726_v26 = vadd.f32 %v694_v15, %v492_v44  ;;  %v2040_v35 = vadd.f32 %v2008_v51, %v1838_v43  ;;  %v595_v38 = vmul.f32 %v5899_v3, %v558_v22 }
  0x33   : > { %v960_v54 = vld [vmem:[#allocation2 + $0xe] sm:$0xff]  ;;  %v6171_v25 = vld [vmem:[#allocation2 + $0x3b] sm:$0xff]  ;;  %v2311_v58 = vmul.f32 %v6154_v19, %v6009_v55  ;;  %11278 = vst [vmem:[#allocation9_spill] sm:$0xff] %v6178_v59  ;;  %v760_v34 = vld [vmem:[#allocation2 + $0x24] sm:$0xff]  ;;  %v597_v39 = vmul.f32 %v5899_v3, %v6163_v4  ;;  %v696_v40 = vmul.f32 %v5906_v7, %v659_v52  ;;  %v827_v20 = vadd.f32 %v795_v46, %v625_v60 }
  0x34   : > { %v997_v37 = vmul.f32 %v5981_v30, %v960_v54  ;;  %v6186_v55 = vld [vmem:[#allocation2 + $0x3c] sm:$0xff]  ;;  %v928_v47 = vadd.f32 %v896_v14, %v726_v26  ;;  %v496_v48 = vmul.f32 %v5894_v2, %v6168_v24  ;;  %v698_v16 = vmul.f32 %v5906_v7, %v6171_v25  ;;  %v861_v44 = vld [vmem:[#allocation2 + $0x25] sm:$0xff] }
  0x35   : > { %v962_v54 = vld [vmem:[#allocation2 + $0x26] sm:$0xff]  ;;  %v2412_v43 = vmul.f32 %v6178_v59, %v6032_v12  ;;  %v627_v51 = vadd.f32 %v595_v38, %v6023_v63  ;;  %v728_v61 = vadd.f32 %v696_v40, %v494_v29  ;;  %v797_v15 = vmul.f32 %v5946_v9, %v760_v34  ;;  %v863_v60 = vld [vmem:[#allocation2 + $0x3d] sm:$0xff] }
  0x36   : > { %v2141_v0 = vadd.f32 %v2109_v56, %v1939_v13  ;;  %v1029_v41 = vadd.f32 %v997_v37, %v827_v20  ;;  %v629_v46 = vadd.f32 %v597_v39, %v6074_v42  ;;  %v799_v14 = vmul.f32 %v5946_v9, %v6186_v55  ;;  %v964_v29 = vld [vmem:[#allocation2 + $0x3e] sm:$0xff] }
  0x37   : > { %v1131_v26 = vadd.f32 %v6090_v53, %v928_v47  ;;  %v829_v33 = vadd.f32 %v797_v15, %v627_v51  ;;  %v898_v32 = vmul.f32 %v5970_v23, %v861_v44  ;;  %v999_v12 = vmul.f32 %v5981_v30, %v962_v54 }
  0x38   : > { %v2242_v59 = vadd.f32 %v2210_v50, %v2040_v35  ;;  %v730_v63 = vadd.f32 %v698_v16, %v496_v48  ;;  %v1200_v38 = vmul.f32 %v6004_v45, %v457_v21  ;;  %v1202_v56 = vmul.f32 %v6004_v45, %v6168_v24 }
  0x39   : > { %v900_v42 = vmul.f32 %v5970_v23, %v863_v60  ;;  %v930_v13 = vadd.f32 %v898_v32, %v728_v61  ;;  %v1031_v37 = vadd.f32 %v999_v12, %v829_v33  ;;  %v1301_v39 = vmul.f32 %v6020_v62, %v558_v22 }
  0x3a   : > { %v831_v53 = vadd.f32 %v799_v14, %v629_v46  ;;  %v1232_v40 = vadd.f32 %v1200_v38, %v1029_v41  ;;  %v1303_v20 = vmul.f32 %v6020_v62, %v6163_v4  ;;  %v1402_v50 = vmul.f32 %v6028_v6, %v659_v52 }
  0x3b   : > { %v1001_v35 = vmul.f32 %v5981_v30, %v964_v29  ;;  %v1133_v21 = vadd.f32 %v6103_v5, %v930_v13  ;;  %v1234_v47 = vadd.f32 %v1202_v56, %v1031_v37  ;;  %v1333_v48 = vadd.f32 %v1301_v39, %v1131_v26 }
  0x3c   : > { %v1738_v16 = vadd.f32 %v6138_v11, %v6132_v28  ;;  %v1434_v32 = vadd.f32 %v1402_v50, %v1232_v40  ;;  %v1503_v33 = vmul.f32 %v6039_v18, %v760_v34  ;;  %v1604_v22 = vmul.f32 %v6052_v27, %v861_v44 }
  0x3d   : > { %v6216_v41 = vadd.f32 %v2311_v58, %v2141_v0  ;;  %v6218_v51 = vadd.f32 %v2412_v43, %v2242_v59  ;;  %v1335_v61 = vadd.f32 %v1303_v20, %v1133_v21  ;;  %v1404_v52 = vmul.f32 %v6028_v6, %v6171_v25  ;;  %v359_v58 = vld [vmem:[#allocation2 + $0x48] sm:$0xff] }
  0x3e   : > { %v6222_v15 = vadd.f32 %v900_v42, %v730_v63  ;;  %v1535_v5 = vadd.f32 %v1503_v33, %v1333_v48  ;;  %v1636_v46 = vadd.f32 %v1604_v22, %v1434_v32  ;;  %v1705_v14 = vmul.f32 %v6060_v31, %v962_v54  ;;  %v460_v59 = vld [vmem:[#allocation2 + $0x49] sm:$0xff]  ;;  %v11283_v22 = vld [vmem:[#allocation5_spill] sm:$0xff] }
  0x3f   : > { %11279 = vst [vmem:[#allocation10_spill] sm:$0xff] %v6216_v41  ;;  %11280 = vst [vmem:[#allocation11_spill] sm:$0xff] %v6218_v51  ;;  %v6225_v28 = vadd.f32 %v1001_v35, %v831_v53  ;;  %v1436_v11 = vadd.f32 %v1404_v52, %v1234_v47  ;;  %v1505_v34 = vmul.f32 %v6039_v18, %v6186_v55  ;;  %v561_v54 = vld [vmem:[#allocation2 + $0x4a] sm:$0xff]  ;;  %v11284_v52 = vld [vmem:[#allocation9_spill] sm:$0xff] }
  0x40   : > { %v1606_v0 = vmul.f32 %v6052_v27, %v863_v60  ;;  %v1737_v44 = vadd.f32 %v1705_v14, %v1535_v5  ;;  %v1839_v43 = vadd.f32 %v6141_v8, %v1636_v46  ;;  %v1908_v26 = vmul.f32 %v6080_v49, %v6168_v24  ;;  %v662_v63 = vld [vmem:[#allocation2 + $0x4b] sm:$0xff] }
  0x41   : > { %v2009_v12 = vmul.f32 %v6085_v36, %v6163_v4  ;;  %v1537_v38 = vadd.f32 %v1505_v34, %v1335_v61  ;;  %v1707_v56 = vmul.f32 %v6060_v31, %v964_v29  ;;  %v2110_v42 = vmul.f32 %v6096_v57, %v6171_v25  ;;  %v11281_v47 = vld [vmem:[#allocation6_spill] sm:$0xff]  ;;  %v11282_v32 = vld [vmem:[#allocation7_spill] sm:$0xff] }
  0x42   : > { %v2211_v13 = vmul.f32 %v6112_v17, %v6186_v55  ;;  %v1940_v37 = vadd.f32 %v1908_v26, %v1737_v44  ;;  %v396_v8 = vmul.f32 %v5889_v1, %v359_v58  ;;  %v497_v24 = vmul.f32 %v5894_v2, %v460_v59  ;;  %v6263_v34 = vld [vmem:[#allocation2 + $0x50] sm:$0xff] }
  0x43   : > { %v2041_v39 = vadd.f32 %v2009_v12, %v1839_v43  ;;  %v598_v53 = vmul.f32 %v5899_v3, %v561_v54  ;;  %v699_v4 = vmul.f32 %v5906_v7, %v662_v63  ;;  %v1102_v40 = vmul.f32 %v5951_v10, %v359_v58 }
  0x44   : > { %v1203_v20 = vmul.f32 %v6004_v45, %v460_v59  ;;  %v6246_v50 = vadd.f32 %v1606_v0, %v1436_v11  ;;  %v2142_v25 = vadd.f32 %v2110_v42, %v1940_v37  ;;  %v2312_v55 = vmul.f32 %v6154_v19, %v863_v60  ;;  %v6261_v60 = vld [vmem:[%s10975_s0 + $0x15] ss:$0 sm:$0xff] }
  0x45   : > { %v2243_v35 = vadd.f32 %v2211_v13, %v2041_v39  ;;  %v6249_v21 = vadd.f32 %v1707_v56, %v1537_v38  ;;  %v1134_v48 = vadd.f32 %v1102_v40, %v11281_v47  ;;  %v1808_v61 = vmul.f32 %v11283_v22, %v359_v58  ;;  %v6265_v0 = vld [vmem:[#allocation2 + $0x51] sm:$0xff] }
  0x46   : > { %v1235_v33 = vadd.f32 %v1203_v20, %v11282_v32  ;;  %v2413_v5 = vmul.f32 %v11284_v52, %v964_v29  ;;  %v1304_v46 = vmul.f32 %v6020_v62, %v561_v54  ;;  %v1405_v14 = vmul.f32 %v6028_v6, %v662_v63  ;;  %v11286_v29 = vld [vmem:[#allocation8_spill] sm:$0xff]  ;;  %v6273_v38 = vld [vmem:[%s10975_s0 + $0x16] ss:$0 sm:$0xff] }
  0x47   : > { %v1909_v11 = vmul.f32 %v6080_v49, %v460_v59  ;;  %v6267_v44 = vadd.f32 %v2312_v55, %v2142_v25  ;;  %v630_v43 = vadd.f32 %v598_v53, %v396_v8  ;;  %v731_v26 = vadd.f32 %v699_v4, %v497_v24  ;;  %v6275_v56 = vld [vmem:[#allocation2 + $0x52] sm:$0xff] }
  0x48   : > { %v1840_v12 = vadd.f32 %v1808_v61, %v11286_v29  ;;  %v6277_v42 = vld [vmem:[#allocation2 + $0x53] sm:$0xff]  ;;  %v6279_v13 = vadd.f32 %v2413_v5, %v2243_v35  ;;  %v2010_v39 = vmul.f32 %v6085_v36, %v561_v54  ;;  %v2111_v40 = vmul.f32 %v6096_v57, %v662_v63 }
  0x49   : > { %11285 = vst [vmem:[#allocation6_spill] sm:$0xff] %v6267_v44  ;;  %v1941_v37 = vadd.f32 %v1909_v11, %v1738_v16  ;;  %v6286_v8 = vld [vmem:[%s10975_s0 + $0x17] ss:$0 sm:$0xff]  ;;  %v6291_v24 = vld [vmem:[%s10975_s0 + $0x18] ss:$0 sm:$0xff]  ;;  %v763_v53 = vld [vmem:[#allocation2 + $0x4c] sm:$0xff]  ;;  %v1336_v4 = vadd.f32 %v1304_v46, %v1134_v48  ;;  %v1437_v20 = vadd.f32 %v1405_v14, %v1235_v33  ;;  %v397_v16 = vmul.f32 %v5889_v1, %v6263_v34 }
  0x4a   : > { %11287 = vst [vmem:[#allocation7_spill] sm:$0xff] %v6279_v13  ;;  %v498_v25 = vmul.f32 %v5894_v2, %v6265_v0  ;;  %v764_v35 = vld [vmem:[#allocation2 + $0x54] sm:$0xff]  ;;  %v6298_v55 = vmul.f32 %v6261_v60, %v359_v58  ;;  %v6301_v47 = vmul.f32 %v6273_v38, %v460_v59  ;;  %v599_v32 = vmul.f32 %v5899_v3, %v6275_v56 }
  0x4b   : > { %v700_v48 = vmul.f32 %v5906_v7, %v6277_v42  ;;  %v6307_v33 = vld [vmem:[#allocation2 + $0x4d] sm:$0xff]  ;;  %v2042_v61 = vadd.f32 %v2010_v39, %v1840_v12  ;;  %v6310_v5 = vmul.f32 %v6286_v8, %v561_v54  ;;  %v6313_v58 = vmul.f32 %v6291_v24, %v662_v63  ;;  %v865_v46 = vld [vmem:[#allocation2 + $0x55] sm:$0xff] }
  0x4c   : > { %11288 = vst [vmem:[#allocation5_spill] sm:$0xff] %v6298_v55  ;;  %11289 = vst [vmem:[#allocation9_spill] sm:$0xff] %v6301_v47  ;;  %v800_v59 = vmul.f32 %v5946_v9, %v763_v53  ;;  %v965_v14 = vld [vmem:[#allocation2 + $0x4e] sm:$0xff]  ;;  %v6316_v11 = vadd.f32 %v2111_v40, %v1941_v37  ;;  %v631_v29 = vadd.f32 %v599_v32, %v397_v16 }
  0x4d   : > { %11290 = vst [vmem:[#allocation8_spill] sm:$0xff] %v6310_v5  ;;  %11291 = vst [vmem:[#allocation12_spill] sm:$0xff] %v6313_v58  ;;  %v801_v13 = vmul.f32 %v5946_v9, %v764_v35  ;;  %v1103_v44 = vmul.f32 %v5951_v10, %v6263_v34  ;;  %v732_v12 = vadd.f32 %v700_v48, %v498_v25  ;;  %v966_v5 = vld [vmem:[#allocation2 + $0x56] sm:$0xff]  ;;  %v300_v58 = vld [vmem:[%s6046_s20 + $0x60] sm:$0xff] }
  0x4e   : > { %v832_v39 = vadd.f32 %v800_v59, %v630_v43  ;;  %v901_v54 = vmul.f32 %v5970_v23, %v6307_v33  ;;  %v1204_v63 = vmul.f32 %v6004_v45, %v6265_v0  ;;  %v301_v47 = vld [vmem:[%s6046_s20 + $0x68] sm:$0xff]  ;;  %v902_v37 = vmul.f32 %v5970_v23, %v865_v46  ;;  %332 = vst.msk [vmem:[#allocation2 + $0xdb] sm:$0xff] %vm233_vm0, %v300_v58 }
  0x4f   : > { %v1002_v40 = vmul.f32 %v5981_v30, %v965_v14  ;;  %v1135_v16 = vadd.f32 %v1103_v44, %v6222_v15  ;;  %v1305_v32 = vmul.f32 %v6020_v62, %v6275_v56  ;;  %333 = vst.msk [vmem:[#allocation2 + $0xe3] sm:$0xff] %vm233_vm0, %v301_v47  ;;  %v833_v43 = vadd.f32 %v801_v13, %v631_v29 }
  0x50   : > { %v1236_v25 = vadd.f32 %v1204_v63, %v6225_v28  ;;  %v1406_v48 = vmul.f32 %v6028_v6, %v6277_v42  ;;  %v1506_v59 = vmul.f32 %v6039_v18, %v763_v53  ;;  %v933_v51 = vadd.f32 %v901_v54, %v731_v26 }
  0x51   : > { %v1003_v55 = vmul.f32 %v5981_v30, %v966_v5  ;;  %v1337_v15 = vadd.f32 %v1305_v32, %v1135_v16  ;;  %v1507_v44 = vmul.f32 %v6039_v18, %v764_v35  ;;  %v6340_v41 = vadd.f32 %v902_v37, %v732_v12  ;;  %v302_v37 = vld [vmem:[%s6046_s20 + $0x70] sm:$0xff] }
  0x52   : > { %v1034_v58 = vadd.f32 %v1002_v40, %v832_v39  ;;  %v1438_v23 = vadd.f32 %v1406_v48, %v1236_v25  ;;  %v1538_v47 = vadd.f32 %v1506_v59, %v1336_v4  ;;  %v1607_v28 = vmul.f32 %v6052_v27, %v6307_v33  ;;  %334 = vst.msk [vmem:[#allocation2 + $0xf3] sm:$0xff] %vm233_vm0, %v302_v37  ;;  %v361_v59 = vld [vmem:[#allocation2 + $0x60] sm:$0xff] }
  0x53   : > { %v1539_v13 = vadd.f32 %v1507_v44, %v1337_v15  ;;  %v1809_v29 = vmul.f32 %v11283_v22, %v6263_v34  ;;  %v1910_v26 = vmul.f32 %v6080_v49, %v6265_v0  ;;  %v6348_v54 = vadd.f32 %v1003_v55, %v833_v43 }
  0x54   : > { %v1608_v63 = vmul.f32 %v6052_v27, %v865_v46  ;;  %v1708_v12 = vmul.f32 %v6060_v31, %v965_v14  ;;  %v1709_v39 = vmul.f32 %v6060_v31, %v966_v5  ;;  %v2011_v16 = vmul.f32 %v6085_v36, %v6275_v56 }
  0x55   : > { %v1841_v4 = vadd.f32 %v1809_v29, %v6246_v50  ;;  %v1942_v40 = vadd.f32 %v1910_v26, %v6249_v21  ;;  %v2212_v32 = vmul.f32 %v6112_v17, %v763_v53  ;;  %v1639_v55 = vadd.f32 %v1607_v28, %v1437_v20  ;;  %v462_v29 = vld [vmem:[#allocation2 + $0x61] sm:$0xff] }
  0x56   : > { %v6360_v43 = vadd.f32 %v1608_v63, %v1438_v23  ;;  %v1740_v25 = vadd.f32 %v1708_v12, %v1538_v47  ;;  %v2112_v48 = vmul.f32 %v6096_v57, %v6277_v42  ;;  %v6364_v15 = vadd.f32 %v1709_v39, %v1539_v13  ;;  %v563_v26 = vld [vmem:[#allocation2 + $0x62] sm:$0xff] }
  0x57   : > { %v2043_v50 = vadd.f32 %v2011_v16, %v1841_v4  ;;  %v2213_v21 = vmul.f32 %v6112_v17, %v764_v35  ;;  %v2244_v44 = vadd.f32 %v2212_v32, %v2042_v61  ;;  %v664_v53 = vld [vmem:[#allocation2 + $0x63] sm:$0xff]  ;;  %v2313_v23 = vmul.f32 %v6154_v19, %v6307_v33 }
  0x58   : > { %v2144_v31 = vadd.f32 %v2112_v48, %v1942_v40  ;;  %v2314_v20 = vmul.f32 %v6154_v19, %v865_v46  ;;  %v2414_v47 = vmul.f32 %v11284_v52, %v965_v14  ;;  %v2415_v13 = vmul.f32 %v11284_v52, %v966_v5  ;;  %v303_v46 = vld [vmem:[%s6046_s20 + $0x78] sm:$0xff] }
  0x59   : > { %v2245_v28 = vadd.f32 %v2213_v21, %v2043_v50  ;;  %v6374_v63 = vmul.f32 %v6261_v60, %v6263_v34  ;;  %v398_v35 = vmul.f32 %v5889_v1, %v361_v59  ;;  %v499_v61 = vmul.f32 %v5894_v2, %v462_v29  ;;  %335 = vst.msk [vmem:[#allocation2 + $0xfb] sm:$0xff] %vm233_vm0, %v303_v46  ;;  %v6407_v21 = vld [vmem:[#allocation2 + $0x68] sm:$0xff] }
  0x5a   : > { %v600_v12 = vmul.f32 %v5899_v3, %v563_v26  ;;  %v701_v39 = vmul.f32 %v5906_v7, %v664_v53  ;;  %v1104_v33 = vmul.f32 %v5951_v10, %v361_v59  ;;  %v6383_v14 = vadd.f32 %v2313_v23, %v6316_v11 }
  0x5b   : > { %11292 = vst [vmem:[#allocation13_spill] sm:$0xff] %v6374_v63  ;;  %v6385_v37 = vadd.f32 %v2414_v47, %v2244_v44  ;;  %v6389_v34 = vmul.f32 %v6273_v38, %v6265_v0  ;;  %v1205_v5 = vmul.f32 %v6004_v45, %v462_v29  ;;  %v6393_v4 = vadd.f32 %v2314_v20, %v2144_v31  ;;  %v6409_v31 = vld [vmem:[#allocation2 + $0x69] sm:$0xff] }
  0x5c   : > { %11293 = vst [vmem:[#allocation14_spill] sm:$0xff] %v6383_v14  ;;  %v6397_v40 = vmul.f32 %v6286_v8, %v6275_v56  ;;  %v6401_v11 = vmul.f32 %v6291_v24, %v6277_v42  ;;  %v1136_v16 = vadd.f32 %v1104_v33, %v933_v51  ;;  %v6403_v32 = vadd.f32 %v2415_v13, %v2245_v28  ;;  %v6411_v44 = vld [vmem:[#allocation2 + $0x6a] sm:$0xff] }
  0x5d   : > { %11294 = vst [vmem:[#allocation15_spill] sm:$0xff] %v6385_v37  ;;  %11295 = vst [vmem:[#allocation16_spill] sm:$0xff] %v6389_v34  ;;  %v1237_v48 = vadd.f32 %v1205_v5, %v1034_v58  ;;  %v1810_v0 = vmul.f32 %v11283_v22, %v361_v59  ;;  %v1911_v50 = vmul.f32 %v6080_v49, %v462_v29  ;;  %v6415_v51 = vld [vmem:[#allocation2 + $0x6b] sm:$0xff] }
  0x5e   : > { %11296 = vst [vmem:[#allocation17_spill] sm:$0xff] %v6393_v4  ;;  %11297 = vst [vmem:[#allocation18_spill] sm:$0xff] %v6397_v40  ;;  %v632_v56 = vadd.f32 %v600_v12, %v398_v35  ;;  %v733_v23 = vadd.f32 %v701_v39, %v499_v61  ;;  %v1306_v20 = vmul.f32 %v6020_v62, %v563_v26  ;;  %v765_v33 = vld [vmem:[#allocation2 + $0x64] sm:$0xff]  ;;  %v766_v12 = vld [vmem:[#allocation2 + $0x6c] sm:$0xff] }
  0x5f   : > { %11298 = vst [vmem:[#allocation19_spill] sm:$0xff] %v6401_v11  ;;  %11299 = vst [vmem:[#allocation20_spill] sm:$0xff] %v6403_v32  ;;  %v1407_v42 = vmul.f32 %v6028_v6, %v664_v53  ;;  %v1842_v47 = vadd.f32 %v1810_v0, %v1639_v55  ;;  %v1943_v58 = vadd.f32 %v1911_v50, %v1740_v25  ;;  %v866_v0 = vld [vmem:[#allocation2 + $0x65] sm:$0xff] }
  0x60   : > { %v2012_v28 = vmul.f32 %v6085_v36, %v563_v26  ;;  %v2113_v13 = vmul.f32 %v6096_v57, %v664_v53  ;;  %v1338_v46 = vadd.f32 %v1306_v20, %v1136_v16  ;;  %v399_v5 = vmul.f32 %v5889_v1, %v6407_v21 }
  0x61   : > { %v500_v35 = vmul.f32 %v5894_v2, %v6409_v31  ;;  %v601_v61 = vmul.f32 %v5899_v3, %v6411_v44  ;;  %v1439_v39 = vadd.f32 %v1407_v42, %v1237_v48  ;;  %v6426_v55 = vmul.f32 %v6261_v60, %v361_v59  ;;  %v867_v48 = vld [vmem:[#allocation2 + $0x6d] sm:$0xff] }
  0x62   : > { %v6429_v25 = vmul.f32 %v6273_v38, %v462_v29  ;;  %v702_v16 = vmul.f32 %v5906_v7, %v6415_v51  ;;  %v6434_v50 = vmul.f32 %v6286_v8, %v563_v26  ;;  %v6437_v20 = vmul.f32 %v6291_v24, %v664_v53  ;;  %v967_v42 = vld [vmem:[#allocation2 + $0x66] sm:$0xff]  ;;  %v11304_v26 = vld [vmem:[#allocation3_spill] sm:$0xff] }
  0x63   : > { %11300 = vst [vmem:[#allocation21_spill] sm:$0xff] %v6426_v55  ;;  %v633_v32 = vadd.f32 %v601_v61, %v399_v5  ;;  %v802_v4 = vmul.f32 %v5946_v9, %v765_v33  ;;  %v2044_v59 = vadd.f32 %v2012_v28, %v1842_v47  ;;  %v2145_v37 = vadd.f32 %v2113_v13, %v1943_v58 }
  0x64   : > { %11301 = vst [vmem:[#allocation22_spill] sm:$0xff] %v6429_v25  ;;  %11302 = vst [vmem:[#allocation23_spill] sm:$0xff] %v6434_v50  ;;  %v803_v29 = vmul.f32 %v5946_v9, %v766_v12  ;;  %v968_v25 = vld [vmem:[#allocation2 + $0x6e] sm:$0xff]  ;;  %v1105_v55 = vmul.f32 %v5951_v10, %v6407_v21  ;;  %v734_v14 = vadd.f32 %v702_v16, %v500_v35 }
  0x65   : > { %11303 = vst [vmem:[#allocation24_spill] sm:$0xff] %v6437_v20  ;;  %v834_v11 = vadd.f32 %v802_v4, %v632_v56  ;;  %v903_v50 = vmul.f32 %v11304_v26, %v866_v0  ;;  %v1206_v53 = vmul.f32 %v6004_v45, %v6409_v31  ;;  %v904_v5 = vmul.f32 %v11304_v26, %v867_v48 }
  0x66   : > { %v1004_v61 = vmul.f32 %v5981_v30, %v967_v42  ;;  %v1137_v47 = vadd.f32 %v1105_v55, %v6340_v41  ;;  %v1307_v58 = vmul.f32 %v6020_v62, %v6411_v44  ;;  %v835_v28 = vadd.f32 %v803_v29, %v633_v32 }
  0x67   : > { %v1005_v13 = vmul.f32 %v5981_v30, %v968_v25  ;;  %v1238_v35 = vadd.f32 %v1206_v53, %v6348_v54  ;;  %v1408_v4 = vmul.f32 %v6028_v6, %v6415_v51  ;;  %v935_v56 = vadd.f32 %v903_v50, %v733_v23 }
  0x68   : > { %v1339_v16 = vadd.f32 %v1307_v58, %v1137_v47  ;;  %v1508_v20 = vmul.f32 %v6039_v18, %v765_v33  ;;  %v1509_v40 = vmul.f32 %v6039_v18, %v766_v12  ;;  %v6457_v34 = vadd.f32 %v904_v5, %v734_v14 }
  0x69   : > { %v1036_v41 = vadd.f32 %v1004_v61, %v834_v11  ;;  %v1440_v55 = vadd.f32 %v1408_v4, %v1238_v35  ;;  %v1811_v32 = vmul.f32 %v11283_v22, %v6407_v21  ;;  %v1609_v54 = vmul.f32 %v6052_v27, %v866_v0  ;;  %v304_v11 = vld [vmem:[%s6046_s20 + $0x80] sm:$0xff]  ;;  %v11305_v61 = vld [vmem:[#allocation4_spill] sm:$0xff] }
  0x6a   : > { %v1540_v29 = vadd.f32 %v1508_v20, %v1338_v46  ;;  %v1541_v63 = vadd.f32 %v1509_v40, %v1339_v16  ;;  %v1912_v23 = vmul.f32 %v6080_v49, %v6409_v31  ;;  %v6464_v50 = vadd.f32 %v1005_v13, %v835_v28  ;;  %336 = vst.msk [vmem:[#allocation2 + $0x10b] sm:$0xff] %vm233_vm0, %v304_v11 }
  0x6b   : > { %v1610_v53 = vmul.f32 %v6052_v27, %v867_v48  ;;  %v1843_v47 = vadd.f32 %v1811_v32, %v6360_v43  ;;  %v2013_v14 = vmul.f32 %v6085_v36, %v6411_v44  ;;  %v1641_v5 = vadd.f32 %v1609_v54, %v1439_v39  ;;  %v363_v32 = vld [vmem:[#allocation2 + $0x78] sm:$0xff] }
  0x6c   : > { %v1710_v58 = vmul.f32 %v11305_v61, %v967_v42  ;;  %v1711_v40 = vmul.f32 %v11305_v61, %v968_v25  ;;  %v1944_v46 = vadd.f32 %v1912_v23, %v6364_v15  ;;  %v2114_v13 = vmul.f32 %v6096_v57, %v6415_v51  ;;  %v565_v15 = vld [vmem:[#allocation2 + $0x7a] sm:$0xff] }
  0x6d   : > { %v6475_v20 = vadd.f32 %v1610_v53, %v1440_v55  ;;  %v2045_v28 = vadd.f32 %v2013_v14, %v1843_v47  ;;  %v2214_v43 = vmul.f32 %v6112_v17, %v765_v33  ;;  %v2215_v39 = vmul.f32 %v6112_v17, %v766_v12  ;;  %v464_v47 = vld [vmem:[#allocation2 + $0x79] sm:$0xff] }
  0x6e   : > { %v1742_v35 = vadd.f32 %v1710_v58, %v1540_v29  ;;  %v6480_v4 = vadd.f32 %v1711_v40, %v1541_v63  ;;  %v2315_v16 = vmul.f32 %v6154_v19, %v866_v0  ;;  %v2146_v54 = vadd.f32 %v2114_v13, %v1944_v46  ;;  %v666_v14 = vld [vmem:[#allocation2 + $0x7b] sm:$0xff] }
  0x6f   : > { %v2246_v23 = vadd.f32 %v2214_v43, %v2044_v59  ;;  %v2316_v55 = vmul.f32 %v6154_v19, %v867_v48  ;;  %v2416_v53 = vmul.f32 %v11284_v52, %v967_v42  ;;  %v2247_v11 = vadd.f32 %v2215_v39, %v2045_v28  ;;  %v6521_v28 = vld [vmem:[#allocation2 + $0x80] sm:$0xff] }
  0x70   : > { %v6486_v33 = vadd.f32 %v2315_v16, %v2145_v37  ;;  %v2417_v63 = vmul.f32 %v11284_v52, %v968_v25  ;;  %v6491_v12 = vmul.f32 %v6261_v60, %v6407_v21  ;;  %v6495_v0 = vmul.f32 %v6273_v38, %v6409_v31  ;;  %v305_v37 = vld [vmem:[%s6046_s20 + $0x88] sm:$0xff] }
  0x71   : > { %v6499_v48 = vmul.f32 %v6286_v8, %v6411_v44  ;;  %v400_v42 = vmul.f32 %v5889_v1, %v363_v32  ;;  %v602_v59 = vmul.f32 %v5899_v3, %v565_v15  ;;  %v501_v29 = vmul.f32 %v5894_v2, %v464_v47  ;;  %337 = vst.msk [vmem:[#allocation2 + $0x113] sm:$0xff] %vm233_vm0, %v305_v37  ;;  %v6523_v13 = vld [vmem:[#allocation2 + $0x81] sm:$0xff] }
  0x72   : > { %11306 = vst [vmem:[#allocation3_spill] sm:$0xff] %v6486_v33  ;;  %11307 = vst [vmem:[#allocation4_spill] sm:$0xff] %v6491_v12  ;;  %v703_v25 = vmul.f32 %v5906_v7, %v666_v14  ;;  %v1106_v21 = vmul.f32 %v5951_v10, %v363_v32  ;;  %v1207_v58 = vmul.f32 %v6004_v45, %v464_v47  ;;  %v768_v37 = vld [vmem:[#allocation2 + $0x84] sm:$0xff] }
  0x73   : > { %11308 = vst [vmem:[#allocation25_spill] sm:$0xff] %v6495_v0  ;;  %11309 = vst [vmem:[#allocation26_spill] sm:$0xff] %v6499_v48  ;;  %v6509_v31 = vadd.f32 %v2316_v55, %v2146_v54  ;;  %v6511_v40 = vadd.f32 %v2416_v53, %v2246_v23  ;;  %v6515_v1 = vmul.f32 %v6291_v24, %v6415_v51  ;;  %v6527_v51 = vld [vmem:[#allocation2 + $0x82] sm:$0xff] }
  0x74   : > { %v1812_v3 = vmul.f32 %v11283_v22, %v363_v32  ;;  %v6518_v44 = vadd.f32 %v2417_v63, %v2247_v11  ;;  %v1138_v2 = vadd.f32 %v1106_v21, %v935_v56  ;;  %v1239_v7 = vadd.f32 %v1207_v58, %v1036_v41  ;;  %v6529_v23 = vld [vmem:[#allocation2 + $0x83] sm:$0xff] }
  0x75   : > { %11310 = vst [vmem:[#allocation27_spill] sm:$0xff] %v6509_v31  ;;  %11311 = vst [vmem:[#allocation28_spill] sm:$0xff] %v6511_v40  ;;  %v1913_v46 = vmul.f32 %v6080_v49, %v464_v47  ;;  %v634_v43 = vadd.f32 %v602_v59, %v400_v42  ;;  %v1308_v39 = vmul.f32 %v6020_v62, %v565_v15  ;;  %v767_v11 = vld [vmem:[#allocation2 + $0x7c] sm:$0xff] }
  0x76   : > { %11312 = vst [vmem:[#allocation29_spill] sm:$0xff] %v6515_v1  ;;  %11313 = vst [vmem:[#allocation30_spill] sm:$0xff] %v6518_v44  ;;  %v1409_v16 = vmul.f32 %v6028_v6, %v666_v14  ;;  %v1844_v54 = vadd.f32 %v1812_v3, %v1641_v5  ;;  %v735_v55 = vadd.f32 %v703_v25, %v501_v29  ;;  %v6542_v5 = vld [vmem:[%s10975_s0] ss:$0 sm:$0xff]  ;;  %v6556_v25 = vld [vmem:[%s10975_s0 + $0x2] ss:$0 sm:$0xff] }
  0x77   : > { %v1945_v53 = vadd.f32 %v1913_v46, %v1742_v35  ;;  %v2014_v56 = vmul.f32 %v6085_v36, %v565_v15  ;;  %v2115_v41 = vmul.f32 %v6096_v57, %v666_v14  ;;  %v6534_v63 = vmul.f32 %v6261_v60, %v363_v32  ;;  %v6549_v35 = vld [vmem:[%s10975_s0 + $0x1] ss:$0 sm:$0xff]  ;;  %v6563_v58 = vld [vmem:[%s10975_s0 + $0x3] ss:$0 sm:$0xff] }
  0x78   : > { %v6537_v42 = vmul.f32 %v6273_v38, %v464_v47  ;;  %v401_v59 = vmul.f32 %v6542_v5, %v6521_v28  ;;  %v502_v32 = vmul.f32 %v6549_v35, %v6523_v13  ;;  %v1340_v29 = vadd.f32 %v1308_v39, %v1138_v2  ;;  %v868_v46 = vld [vmem:[#allocation2 + $0x7d] sm:$0xff] }
  0x79   : > { %11314 = vst [vmem:[#allocation31_spill] sm:$0xff] %v6534_v63  ;;  %v1441_v47 = vadd.f32 %v1409_v16, %v1239_v7  ;;  %v603_v21 = vmul.f32 %v6556_v25, %v6527_v51  ;;  %v704_v3 = vmul.f32 %v6563_v58, %v6529_v23  ;;  %v2046_v44 = vadd.f32 %v2014_v56, %v1844_v54  ;;  %v869_v16 = vld [vmem:[#allocation2 + $0x85] sm:$0xff] }
  0x7a   : > { %11315 = vst [vmem:[#allocation32_spill] sm:$0xff] %v6537_v42  ;;  %v6568_v2 = vmul.f32 %v6286_v8, %v565_v15  ;;  %v6571_v7 = vmul.f32 %v6291_v24, %v666_v14  ;;  %v804_v39 = vmul.f32 %v5946_v9, %v767_v11  ;;  %v969_v31 = vld [vmem:[#allocation2 + $0x7e] sm:$0xff]  ;;  %v6574_v42 = vadd.f32 %v2115_v41, %v1945_v53  ;;  %v970_v56 = vld [vmem:[#allocation2 + $0x86] sm:$0xff] }
  0x7b   : > { %v635_v40 = vadd.f32 %v603_v21, %v401_v59  ;;  %v805_v63 = vmul.f32 %v5946_v9, %v768_v37  ;;  %v1107_v33 = vmul.f32 %v5951_v10, %v6521_v28  ;;  %v736_v1 = vadd.f32 %v704_v3, %v502_v32 }
  0x7c   : > { %11316 = vst [vmem:[#allocation33_spill] sm:$0xff] %v6568_v2  ;;  %11317 = vst [vmem:[#allocation34_spill] sm:$0xff] %v6571_v7  ;;  %v836_v54 = vadd.f32 %v804_v39, %v634_v43  ;;  %v905_v15 = vmul.f32 %v11304_v26, %v868_v46  ;;  %v1208_v14 = vmul.f32 %v6004_v45, %v6523_v13 }
  0x7d   : > { %v906_v7 = vmul.f32 %v11304_v26, %v869_v16  ;;  %v1006_v2 = vmul.f32 %v5981_v30, %v969_v31  ;;  %v1139_v53 = vadd.f32 %v1107_v33, %v6457_v34  ;;  %v1309_v9 = vmul.f32 %v6020_v62, %v6527_v51 }
  0x7e   : > { %v837_v41 = vadd.f32 %v805_v63, %v635_v40  ;;  %v1240_v10 = vadd.f32 %v1208_v14, %v6464_v50  ;;  %v1410_v43 = vmul.f32 %v6028_v6, %v6529_v23  ;;  %v1510_v59 = vmul.f32 %v6039_v18, %v767_v11 }
  0x7f   : > { %v937_v32 = vadd.f32 %v905_v15, %v735_v55  ;;  %v1007_v45 = vmul.f32 %v5981_v30, %v970_v56  ;;  %v1341_v26 = vadd.f32 %v1309_v9, %v1139_v53  ;;  %v1511_v21 = vmul.f32 %v6039_v18, %v768_v37 }
  0x80   : > { %v6593_v3 = vadd.f32 %v906_v7, %v736_v1  ;;  %v1038_v34 = vadd.f32 %v1006_v2, %v836_v54  ;;  %v1442_v33 = vadd.f32 %v1410_v43, %v1240_v10  ;;  %v1542_v62 = vadd.f32 %v1510_v59, %v1340_v29  ;;  %v306_v2 = vld [vmem:[%s6046_s20 + $0x90] sm:$0xff] }
  0x81   : > { %v1543_v40 = vadd.f32 %v1511_v21, %v1341_v26  ;;  %v1611_v50 = vmul.f32 %v6052_v27, %v868_v46  ;;  %v1813_v6 = vmul.f32 %v11283_v22, %v6521_v28  ;;  %v1914_v55 = vmul.f32 %v6080_v49, %v6523_v13  ;;  %338 = vst.msk [vmem:[#allocation2 + $0x123] sm:$0xff] %vm233_vm0, %v306_v2  ;;  %v466_v10 = vld [vmem:[#allocation2 + $0x91] sm:$0xff] }
  0x82   : > { %v6600_v63 = vadd.f32 %v1007_v45, %v837_v41  ;;  %v1612_v30 = vmul.f32 %v6052_v27, %v869_v16  ;;  %v1712_v18 = vmul.f32 %v11305_v61, %v969_v31  ;;  %v1713_v1 = vmul.f32 %v11305_v61, %v970_v56  ;;  %v365_v61 = vld [vmem:[#allocation2 + $0x90] sm:$0xff] }
  0x83   : > { %v1845_v29 = vadd.f32 %v1813_v6, %v6475_v20  ;;  %v1946_v7 = vadd.f32 %v1914_v55, %v6480_v4  ;;  %v2015_v39 = vmul.f32 %v6085_v36, %v6527_v51  ;;  %v2216_v54 = vmul.f32 %v6112_v17, %v767_v11  ;;  %v567_v43 = vld [vmem:[#allocation2 + $0x92] sm:$0xff] }
  0x84   : > { %v1643_v15 = vadd.f32 %v1611_v50, %v1441_v47  ;;  %v6612_v14 = vadd.f32 %v1612_v30, %v1442_v33  ;;  %v1744_v27 = vadd.f32 %v1712_v18, %v1542_v62  ;;  %v2116_v53 = vmul.f32 %v6096_v57, %v6529_v23  ;;  %v668_v11 = vld [vmem:[#allocation2 + $0x93] sm:$0xff]  ;;  %v6650_v50 = vld [vmem:[%s10975_s0 + $0x8] ss:$0 sm:$0xff] }
  0x85   : > { %v6616_v9 = vadd.f32 %v1713_v1, %v1543_v40  ;;  %v2047_v20 = vadd.f32 %v2015_v39, %v1845_v29  ;;  %v2217_v4 = vmul.f32 %v6112_v17, %v768_v37  ;;  %v2248_v41 = vadd.f32 %v2216_v54, %v2046_v44  ;;  %v6670_v39 = vld [vmem:[#allocation2 + $0x99] sm:$0xff] }
  0x86   : > { %v2148_v59 = vadd.f32 %v2116_v53, %v1946_v7  ;;  %v2317_v47 = vmul.f32 %v6154_v19, %v868_v46  ;;  %v2318_v45 = vmul.f32 %v6154_v19, %v869_v16  ;;  %v2418_v26 = vmul.f32 %v11284_v52, %v969_v31  ;;  %v6634_v19 = vld [vmem:[%s10975_s0 + $0x7] ss:$0 sm:$0xff]  ;;  %v307_v46 = vld [vmem:[%s6046_s20 + $0x98] sm:$0xff] }
  0x87   : > { %v2249_v21 = vadd.f32 %v2217_v4, %v2047_v20  ;;  %v2419_v33 = vmul.f32 %v11284_v52, %v970_v56  ;;  %v6625_v62 = vmul.f32 %v6261_v60, %v6521_v28  ;;  %v402_v17 = vmul.f32 %v6542_v5, %v365_v61  ;;  %339 = vst.msk [vmem:[#allocation2 + $0x12b] sm:$0xff] %vm233_vm0, %v307_v46  ;;  %v6668_v7 = vld [vmem:[#allocation2 + $0x98] sm:$0xff] }
  0x88   : > { %v503_v44 = vmul.f32 %v6549_v35, %v466_v10  ;;  %v604_v37 = vmul.f32 %v6556_v25, %v567_v43  ;;  %v705_v40 = vmul.f32 %v6563_v58, %v668_v11  ;;  %v1108_v31 = vmul.f32 %v6634_v19, %v365_v61  ;;  %v6672_v54 = vld [vmem:[#allocation2 + $0x9a] sm:$0xff] }
  0x89   : > { %11318 = vst [vmem:[#allocation35_spill] sm:$0xff] %v6625_v62  ;;  %v6639_v16 = vadd.f32 %v2317_v47, %v6574_v42  ;;  %v6641_v28 = vadd.f32 %v2418_v26, %v2248_v41  ;;  %v6645_v56 = vmul.f32 %v6273_v38, %v6523_v13  ;;  %v1209_v6 = vmul.f32 %v6650_v50, %v466_v10  ;;  %v6690_v47 = vld [vmem:[#allocation2 + $0x94] sm:$0xff]  ;;  %v6723_v46 = vld [vmem:[#allocation2 + $0x9d] sm:$0xff] }
  0x8a   : > { %v6654_v55 = vadd.f32 %v2318_v45, %v2148_v59  ;;  %v6658_v42 = vmul.f32 %v6286_v8, %v6527_v51  ;;  %v6662_v30 = vmul.f32 %v6291_v24, %v6529_v23  ;;  %v1140_v13 = vadd.f32 %v1108_v31, %v937_v32  ;;  %v6677_v23 = vld [vmem:[%s10975_s0 + $0x9] ss:$0 sm:$0xff] }
  0x8b   : > { %11319 = vst [vmem:[#allocation36_spill] sm:$0xff] %v6639_v16  ;;  %11320 = vst [vmem:[#allocation37_spill] sm:$0xff] %v6641_v28  ;;  %v6664_v18 = vadd.f32 %v2419_v33, %v2249_v21  ;;  %v1241_v1 = vadd.f32 %v1209_v6, %v1038_v34  ;;  %v1814_v2 = vmul.f32 %v11283_v22, %v365_v61  ;;  %v6683_v22 = vld [vmem:[%s10975_s0 + $0xa] ss:$0 sm:$0xff]  ;;  %v6686_v34 = vld [vmem:[#allocation2 + $0x9b] sm:$0xff] }
  0x8c   : > { %11321 = vst [vmem:[#allocation38_spill] sm:$0xff] %v6645_v56  ;;  %11322 = vst [vmem:[#allocation39_spill] sm:$0xff] %v6654_v55  ;;  %v1915_v29 = vmul.f32 %v6080_v49, %v466_v10  ;;  %v636_v51 = vadd.f32 %v604_v37, %v402_v17  ;;  %v737_v53 = vadd.f32 %v705_v40, %v503_v44  ;;  %v6698_v17 = vld [vmem:[#allocation2 + $0x9c] sm:$0xff]  ;;  %v569_v16 = vld [vmem:[#allocation2 + $0xaa] sm:$0xff] }
  0x8d   : > { %11323 = vst [vmem:[#allocation40_spill] sm:$0xff] %v6658_v42  ;;  %11324 = vst [vmem:[#allocation41_spill] sm:$0xff] %v6662_v30  ;;  %v1310_v32 = vmul.f32 %v6677_v23, %v567_v43  ;;  %v1411_v49 = vmul.f32 %v6683_v22, %v668_v11  ;;  %v1846_v20 = vadd.f32 %v1814_v2, %v1643_v15  ;;  %v6708_v44 = vld [vmem:[#allocation2 + $0x95] sm:$0xff] }
  0x8e   : > { %11325 = vst [vmem:[#allocation42_spill] sm:$0xff] %v6664_v18  ;;  %v1947_v4 = vadd.f32 %v1915_v29, %v1744_v27  ;;  %v2016_v41 = vmul.f32 %v6085_v36, %v567_v43  ;;  %v2117_v59 = vmul.f32 %v6096_v57, %v668_v11  ;;  %v403_v26 = vmul.f32 %v6542_v5, %v6668_v7  ;;  %v6725_v6 = vld [vmem:[#allocation2 + $0x96] sm:$0xff] }
  0x8f   : > { %v1342_v45 = vadd.f32 %v1310_v32, %v1140_v13  ;;  %v504_v21 = vmul.f32 %v6549_v35, %v6670_v39  ;;  %v605_v33 = vmul.f32 %v6556_v25, %v6672_v54  ;;  %v1443_v15 = vadd.f32 %v1411_v49, %v1241_v1  ;;  %v6738_v49 = vld [vmem:[%s10975_s0 + $0x5] ss:$0 sm:$0xff] }
  0x90   : > { %v6701_v27 = vmul.f32 %v6261_v60, %v365_v61  ;;  %v6704_v36 = vmul.f32 %v6273_v38, %v466_v10  ;;  %v706_v57 = vmul.f32 %v6563_v58, %v6686_v34  ;;  %v6711_v37 = vmul.f32 %v6286_v8, %v567_v43  ;;  %v6719_v61 = vld [vmem:[%s10975_s0 + $0x4] ss:$0 sm:$0xff]  ;;  %11331 = vst [vmem:[#allocation48_spill] sm:$0xff] %v6738_v49 }
  0x91   : > { %v6714_v40 = vmul.f32 %v6291_v24, %v668_v11  ;;  %v637_v31 = vadd.f32 %v605_v33, %v403_v26  ;;  %11330 = vst [vmem:[#allocation47_spill] sm:$0xff] %v6719_v61  ;;  %v806_v10 = vmul.f32 %v6719_v61, %v6690_v47  ;;  %v2048_v13 = vadd.f32 %v2016_v41, %v1846_v20  ;;  %v6731_v11 = vld [vmem:[#allocation2 + $0x9e] sm:$0xff] }
  0x92   : > { %11326 = vst [vmem:[#allocation43_spill] sm:$0xff] %v6701_v27  ;;  %11327 = vst [vmem:[#allocation44_spill] sm:$0xff] %v6704_v36  ;;  %v6727_v1 = vadd.f32 %v2117_v59, %v1947_v4  ;;  %v807_v43 = vmul.f32 %v6719_v61, %v6698_v17  ;;  %v1109_v2 = vmul.f32 %v6634_v19, %v6668_v7  ;;  %v6749_v59 = vld [vmem:[%s10975_s0 + $0x6] ss:$0 sm:$0xff]  ;;  %v6831_v27 = vld [vmem:[%s10975_s0 + $0x12] ss:$0 sm:$0xff] }
  0x93   : > { %11328 = vst [vmem:[#allocation45_spill] sm:$0xff] %v6711_v37  ;;  %11329 = vst [vmem:[#allocation46_spill] sm:$0xff] %v6714_v40  ;;  %v738_v29 = vadd.f32 %v706_v57, %v504_v21  ;;  %v838_v32 = vadd.f32 %v806_v10, %v636_v51  ;;  %v907_v20 = vmul.f32 %v6738_v49, %v6708_v44  ;;  %v6766_v37 = vld [vmem:[%s10975_s0 + $0xb] ss:$0 sm:$0xff] }
  0x94   : > { %v1210_v4 = vmul.f32 %v6650_v50, %v6670_v39  ;;  %v908_v41 = vmul.f32 %v6738_v49, %v6723_v46  ;;  %11332 = vst [vmem:[#allocation49_spill] sm:$0xff] %v6749_v59  ;;  %v1008_v51 = vmul.f32 %v6749_v59, %v6725_v6  ;;  %v1141_v26 = vadd.f32 %v1109_v2, %v6593_v3 }
  0x95   : > { %v1311_v21 = vmul.f32 %v6677_v23, %v6672_v54  ;;  %v839_v33 = vadd.f32 %v807_v43, %v637_v31  ;;  %v1009_v57 = vmul.f32 %v6749_v59, %v6731_v11  ;;  %v1412_v18 = vmul.f32 %v6683_v22, %v6686_v34 }
  0x96   : > { %v1242_v10 = vadd.f32 %v1210_v4, %v6600_v63  ;;  %v6761_v55 = vadd.f32 %v907_v20, %v737_v53  ;;  %v1512_v3 = vmul.f32 %v6766_v37, %v6690_v47  ;;  %v1513_v31 = vmul.f32 %v6766_v37, %v6698_v17  ;;  %v6777_v53 = vld [vmem:[%s10975_s0 + $0xe] ss:$0 sm:$0xff] }
  0x97   : > { %v1343_v40 = vadd.f32 %v1311_v21, %v1141_v26  ;;  %v6772_v43 = vadd.f32 %v908_v41, %v738_v29  ;;  %v1040_v63 = vadd.f32 %v1008_v51, %v838_v32  ;;  %v1815_v20 = vmul.f32 %v6777_v53, %v6668_v7  ;;  %v6784_v21 = vld [vmem:[%s10975_s0 + $0xc] ss:$0 sm:$0xff]  ;;  %v6803_v51 = vld [vmem:[%s10975_s0 + $0x10] ss:$0 sm:$0xff] }
  0x98   : > { %v1444_v2 = vadd.f32 %v1412_v18, %v1242_v10  ;;  %v1544_v4 = vadd.f32 %v1512_v3, %v1342_v45  ;;  %v1613_v29 = vmul.f32 %v6784_v21, %v6708_v44  ;;  %v6791_v18 = vld [vmem:[%s10975_s0 + $0xf] ss:$0 sm:$0xff]  ;;  %v6795_v41 = vadd.f32 %v1009_v57, %v839_v33  ;;  %v308_v3 = vld [vmem:[%s6046_s20 + $0xa0] sm:$0xff]  ;;  %v6811_v33 = vld [vmem:[%s10975_s0 + $0xd] ss:$0 sm:$0xff] }
  0x99   : > { %v1545_v26 = vadd.f32 %v1513_v31, %v1343_v40  ;;  %v1916_v32 = vmul.f32 %v6791_v18, %v6670_v39  ;;  %v1614_v45 = vmul.f32 %v6784_v21, %v6723_v46  ;;  %v1847_v40 = vadd.f32 %v1815_v20, %v6612_v14  ;;  %340 = vst.msk [vmem:[#allocation2 + $0x13b] sm:$0xff] %vm233_vm0, %v308_v3  ;;  %v367_v3 = vld [vmem:[#allocation2 + $0xa8] sm:$0xff] }
  0x9a   : > { %v2017_v10 = vmul.f32 %v6803_v51, %v6672_v54  ;;  %v1645_v31 = vadd.f32 %v1613_v29, %v1443_v15  ;;  %v1714_v57 = vmul.f32 %v6811_v33, %v6725_v6  ;;  %v1715_v14 = vmul.f32 %v6811_v33, %v6731_v11  ;;  %v6824_v15 = vld [vmem:[%s10975_s0 + $0x11] ss:$0 sm:$0xff] }
  0x9b   : > { %v1948_v20 = vadd.f32 %v1916_v32, %v6616_v9  ;;  %v6819_v36 = vadd.f32 %v1614_v45, %v1444_v2  ;;  %v2118_v29 = vmul.f32 %v6824_v15, %v6686_v34  ;;  %v2218_v9 = vmul.f32 %v6831_v27, %v6690_v47 }
  0x9c   : > { %v2049_v28 = vadd.f32 %v2017_v10, %v1847_v40  ;;  %v1746_v32 = vadd.f32 %v1714_v57, %v1544_v4  ;;  %v6835_v2 = vadd.f32 %v1715_v14, %v1545_v26  ;;  %v2219_v45 = vmul.f32 %v6831_v27, %v6698_v17  ;;  %v6842_v40 = vld [vmem:[%s10975_s0 + $0x13] ss:$0 sm:$0xff]  ;;  %v468_v17 = vld [vmem:[#allocation2 + $0xa9] sm:$0xff] }
  0x9d   : > { %v2319_v10 = vmul.f32 %v6842_v40, %v6708_v44  ;;  %v2150_v30 = vadd.f32 %v2118_v29, %v1948_v20  ;;  %v2250_v42 = vadd.f32 %v2218_v9, %v2048_v13  ;;  %v2320_v47 = vmul.f32 %v6842_v40, %v6723_v46  ;;  %v670_v26 = vld [vmem:[#allocation2 + $0xab] sm:$0xff] }
  0x9e   : > { %v2420_v4 = vmul.f32 %v11284_v52, %v6725_v6  ;;  %v2251_v57 = vadd.f32 %v2219_v45, %v2049_v28  ;;  %v2421_v44 = vmul.f32 %v11284_v52, %v6731_v11  ;;  %v6857_v56 = vmul.f32 %v6261_v60, %v6668_v7 }
  0x9f   : > { %v6851_v14 = vadd.f32 %v2319_v10, %v6727_v1  ;;  %v6861_v13 = vmul.f32 %v6273_v38, %v6670_v39  ;;  %v6865_v46 = vmul.f32 %v6286_v8, %v6672_v54  ;;  %v404_v28 = vmul.f32 %v6542_v5, %v367_v3  ;;  %v309_v1 = vld [vmem:[%s6046_s20 + $0xa8] sm:$0xff] }
  0xa0   : > { %11334 = vst [vmem:[#allocation51_spill] sm:$0xff] %v6857_v56  ;;  %v606_v6 = vmul.f32 %v6556_v25, %v569_v16  ;;  %v505_v20 = vmul.f32 %v6549_v35, %v468_v17  ;;  %v707_v52 = vmul.f32 %v6563_v58, %v670_v26  ;;  %v1110_v7 = vmul.f32 %v6634_v19, %v367_v3 }
  0xa1   : > { %11333 = vst [vmem:[#allocation50_spill] sm:$0xff] %v6851_v14  ;;  %11335 = vst [vmem:[#allocation52_spill] sm:$0xff] %v6861_v13  ;;  %v1211_v11 = vmul.f32 %v6650_v50, %v468_v17  ;;  %v6875_v39 = vadd.f32 %v2320_v47, %v2150_v30  ;;  %v6877_v29 = vadd.f32 %v2420_v4, %v2250_v42  ;;  %v6888_v13 = vld [vmem:[#allocation2 + $0xb0] sm:$0xff] }
  0xa2   : > { %11336 = vst [vmem:[#allocation53_spill] sm:$0xff] %v6865_v46  ;;  %341 = vst.msk [vmem:[#allocation2 + $0x143] sm:$0xff] %vm233_vm0, %v309_v1  ;;  %v6881_v54 = vmul.f32 %v6291_v24, %v6686_v34  ;;  %v1816_v9 = vmul.f32 %v6777_v53, %v367_v3  ;;  %v6884_v45 = vadd.f32 %v2421_v44, %v2251_v57  ;;  %v6890_v1 = vld [vmem:[#allocation2 + $0xb1] sm:$0xff] }
  0xa3   : > { %11337 = vst [vmem:[#allocation54_spill] sm:$0xff] %v6875_v39  ;;  %11338 = vst [vmem:[#allocation55_spill] sm:$0xff] %v6877_v29  ;;  %v1142_v10 = vadd.f32 %v1110_v7, %v6761_v55  ;;  %v1243_v14 = vadd.f32 %v1211_v11, %v1040_v63  ;;  %v1917_v46 = vmul.f32 %v6791_v18, %v468_v17  ;;  %v6894_v4 = vld [vmem:[#allocation2 + $0xb2] sm:$0xff] }
  0xa4   : > { %11339 = vst [vmem:[#allocation56_spill] sm:$0xff] %v6881_v54  ;;  %11340 = vst [vmem:[#allocation57_spill] sm:$0xff] %v6884_v45  ;;  %v638_v30 = vadd.f32 %v606_v6, %v404_v28  ;;  %v1312_v42 = vmul.f32 %v6677_v23, %v569_v16  ;;  %v1413_v47 = vmul.f32 %v6683_v22, %v670_v26  ;;  %v6896_v39 = vld [vmem:[#allocation2 + $0xb3] sm:$0xff] }
  0xa5   : > { %v1848_v34 = vadd.f32 %v1816_v9, %v1645_v31  ;;  %v739_v57 = vadd.f32 %v707_v52, %v505_v20  ;;  %v1949_v44 = vadd.f32 %v1917_v46, %v1746_v32  ;;  %v2018_v55 = vmul.f32 %v6803_v51, %v569_v16  ;;  %v771_v7 = vld [vmem:[#allocation2 + $0xac] sm:$0xff]  ;;  %v772_v9 = vld [vmem:[#allocation2 + $0xb4] sm:$0xff] }
  0xa6   : > { %v2119_v63 = vmul.f32 %v6824_v15, %v670_v26  ;;  %v6901_v11 = vmul.f32 %v6261_v60, %v367_v3  ;;  %v6904_v28 = vmul.f32 %v6273_v38, %v468_v17  ;;  %v405_v31 = vmul.f32 %v6542_v5, %v6888_v13  ;;  %v872_v60 = vld [vmem:[#allocation2 + $0xad] sm:$0xff] }
  0xa7   : > { %v506_v6 = vmul.f32 %v6549_v35, %v6890_v1  ;;  %v1344_v20 = vadd.f32 %v1312_v42, %v1142_v10  ;;  %v1445_v32 = vadd.f32 %v1413_v47, %v1243_v14  ;;  %v607_v46 = vmul.f32 %v6556_v25, %v6894_v4  ;;  %v973_v29 = vld [vmem:[#allocation2 + $0xae] sm:$0xff] }
  0xa8   : > { %11341 = vst [vmem:[#allocation58_spill] sm:$0xff] %v6901_v11  ;;  %11342 = vst [vmem:[#allocation59_spill] sm:$0xff] %v6904_v28  ;;  %v708_v52 = vmul.f32 %v6563_v58, %v6896_v39  ;;  %v2050_v3 = vadd.f32 %v2018_v55, %v1848_v34  ;;  %v6915_v38 = vmul.f32 %v6286_v8, %v569_v16  ;;  %v873_v28 = vld [vmem:[#allocation2 + $0xb5] sm:$0xff] }
  0xa9   : > { %v6918_v17 = vmul.f32 %v6291_v24, %v670_v26  ;;  %v808_v45 = vmul.f32 %v6719_v61, %v771_v7  ;;  %v6921_v10 = vadd.f32 %v2119_v63, %v1949_v44  ;;  %v639_v14 = vadd.f32 %v607_v46, %v405_v31  ;;  %v974_v16 = vld [vmem:[#allocation2 + $0xb6] sm:$0xff] }
  0xaa   : > { %11343 = vst [vmem:[#allocation60_spill] sm:$0xff] %v6915_v38  ;;  %v809_v42 = vmul.f32 %v6719_v61, %v772_v9  ;;  %v1111_v47 = vmul.f32 %v6634_v19, %v6888_v13  ;;  %v740_v11 = vadd.f32 %v708_v52, %v506_v6  ;;  %v909_v8 = vmul.f32 %v6738_v49, %v872_v60 }
  0xab   : > { %11344 = vst [vmem:[#allocation61_spill] sm:$0xff] %v6918_v17  ;;  %v840_v34 = vadd.f32 %v808_v45, %v638_v30  ;;  %v1212_v24 = vmul.f32 %v6650_v50, %v6890_v1  ;;  %v910_v26 = vmul.f32 %v6738_v49, %v873_v28  ;;  %v1010_v55 = vmul.f32 %v6749_v59, %v973_v29 }
  0xac   : > { %v1143_v44 = vadd.f32 %v1111_v47, %v6772_v43  ;;  %v1313_v63 = vmul.f32 %v6677_v23, %v6894_v4  ;;  %v841_v31 = vadd.f32 %v809_v42, %v639_v14  ;;  %v1414_v45 = vmul.f32 %v6683_v22, %v6896_v39 }
  0xad   : > { %v1244_v46 = vadd.f32 %v1212_v24, %v6795_v41  ;;  %v1514_v30 = vmul.f32 %v6766_v37, %v771_v7  ;;  %v941_v6 = vadd.f32 %v909_v8, %v739_v57  ;;  %v1011_v52 = vmul.f32 %v6749_v59, %v974_v16 }
  0xae   : > { %v1345_v17 = vadd.f32 %v1313_v63, %v1143_v44  ;;  %v1515_v38 = vmul.f32 %v6766_v37, %v772_v9  ;;  %v6940_v54 = vadd.f32 %v910_v26, %v740_v11  ;;  %v1042_v43 = vadd.f32 %v1010_v55, %v840_v34  ;;  %v310_v34 = vld [vmem:[%s6046_s20 + $0xb0] sm:$0xff] }
  0xaf   : > { %v1446_v47 = vadd.f32 %v1414_v45, %v1244_v46  ;;  %v1546_v56 = vadd.f32 %v1514_v30, %v1344_v20  ;;  %v1615_v41 = vmul.f32 %v6784_v21, %v872_v60  ;;  %v1817_v42 = vmul.f32 %v6777_v53, %v6888_v13  ;;  %342 = vst.msk [vmem:[#allocation2 + $0x153] sm:$0xff] %vm233_vm0, %v310_v34  ;;  %v369_v45 = vld [vmem:[#allocation2 + $0xc0] sm:$0xff] }
  0xb0   : > { %v1547_v14 = vadd.f32 %v1515_v38, %v1345_v17  ;;  %v1918_v57 = vmul.f32 %v6791_v18, %v6890_v1  ;;  %v6947_v8 = vadd.f32 %v1011_v52, %v841_v31  ;;  %v1616_v24 = vmul.f32 %v6784_v21, %v873_v28 }
  0xb1   : > { %v1716_v44 = vmul.f32 %v6811_v33, %v973_v29  ;;  %v1717_v11 = vmul.f32 %v6811_v33, %v974_v16  ;;  %v1849_v20 = vadd.f32 %v1817_v42, %v6819_v36  ;;  %v2019_v17 = vmul.f32 %v6803_v51, %v6894_v4  ;;  %v470_v42 = vld [vmem:[#allocation2 + $0xc1] sm:$0xff] }
  0xb2   : > { %v1950_v38 = vadd.f32 %v1918_v57, %v6835_v2  ;;  %v2220_v26 = vmul.f32 %v6831_v27, %v771_v7  ;;  %v1647_v55 = vadd.f32 %v1615_v41, %v1445_v32  ;;  %v6959_v63 = vadd.f32 %v1616_v24, %v1446_v47  ;;  %v571_v57 = vld [vmem:[#allocation2 + $0xc2] sm:$0xff] }
  0xb3   : > { %v1748_v31 = vadd.f32 %v1716_v44, %v1546_v56  ;;  %v2120_v46 = vmul.f32 %v6824_v15, %v6896_v39  ;;  %v6963_v30 = vadd.f32 %v1717_v11, %v1547_v14  ;;  %v2051_v36 = vadd.f32 %v2019_v17, %v1849_v20  ;;  %v672_v7 = vld [vmem:[#allocation2 + $0xc3] sm:$0xff]  ;;  %v6971_v56 = vld [vmem:[%s10975_s0 + $0x14] ss:$0 sm:$0xff] }
  0xb4   : > { %v2221_v2 = vmul.f32 %v6831_v27, %v772_v9  ;;  %v2252_v52 = vadd.f32 %v2220_v26, %v2050_v3  ;;  %v2321_v32 = vmul.f32 %v6842_v40, %v872_v60  ;;  %v2322_v47 = vmul.f32 %v6842_v40, %v873_v28  ;;  %v6978_v3 = vld [vmem:[%s10975_s0 + $0x15] ss:$0 sm:$0xff] }
  0xb5   : > { %v2152_v62 = vadd.f32 %v2120_v46, %v1950_v38  ;;  %v2422_v14 = vmul.f32 %v6971_v56, %v973_v29  ;;  %v2423_v9 = vmul.f32 %v6971_v56, %v974_v16  ;;  %v6982_v60 = vmul.f32 %v6978_v3, %v6888_v13  ;;  %v311_v16 = vld [vmem:[%s6046_s20 + $0xb8] sm:$0xff]  ;;  %v6998_v13 = vld [vmem:[%s10975_s0 + $0x16] ss:$0 sm:$0xff] }
  0xb6   : > { %v2253_v41 = vadd.f32 %v2221_v2, %v2051_v36  ;;  %v406_v28 = vmul.f32 %v6542_v5, %v369_v45  ;;  %v507_v24 = vmul.f32 %v6549_v35, %v470_v42  ;;  %v608_v44 = vmul.f32 %v6556_v25, %v571_v57  ;;  %343 = vst.msk [vmem:[#allocation2 + $0x15b] sm:$0xff] %vm233_vm0, %v311_v16  ;;  %v7034_v16 = vld [vmem:[#allocation2 + $0xca] sm:$0xff] }
  0xb7   : > { %11345 = vst [vmem:[#allocation62_spill] sm:$0xff] %v6982_v60  ;;  %v709_v29 = vmul.f32 %v6563_v58, %v672_v7  ;;  %v1112_v11 = vmul.f32 %v6634_v19, %v369_v45  ;;  %v6991_v34 = vadd.f32 %v2321_v32, %v6921_v10  ;;  %v6993_v20 = vadd.f32 %v2422_v14, %v2252_v52  ;;  %v7011_v10 = vld [vmem:[%s10975_s0 + $0x17] ss:$0 sm:$0xff]  ;;  %v7030_v14 = vld [vmem:[#allocation2 + $0xc8] sm:$0xff] }
  0xb8   : > { %v7002_v38 = vmul.f32 %v6998_v13, %v6890_v1  ;;  %v1213_v17 = vmul.f32 %v6650_v50, %v470_v42  ;;  %v7006_v26 = vadd.f32 %v2322_v47, %v2152_v62  ;;  %v7015_v46 = vmul.f32 %v7011_v10, %v6894_v4  ;;  %v7020_v1 = vld [vmem:[%s10975_s0 + $0x18] ss:$0 sm:$0xff]  ;;  %v7032_v4 = vld [vmem:[#allocation2 + $0xc9] sm:$0xff] }
  0xb9   : > { %11346 = vst [vmem:[#allocation63_spill] sm:$0xff] %v6991_v34  ;;  %11347 = vst [vmem:[#allocation64_spill] sm:$0xff] %v6993_v20  ;;  %v7024_v36 = vmul.f32 %v7020_v1, %v6896_v39  ;;  %v1144_v62 = vadd.f32 %v1112_v11, %v941_v6  ;;  %v7026_v2 = vadd.f32 %v2423_v9, %v2253_v41  ;;  %v7038_v6 = vld [vmem:[#allocation2 + $0xcb] sm:$0xff] }
  0xba   : > { %11348 = vst [vmem:[#allocation65_spill] sm:$0xff] %v7002_v38  ;;  %11349 = vst [vmem:[#allocation66_spill] sm:$0xff] %v7006_v26  ;;  %v1245_v52 = vadd.f32 %v1213_v17, %v1042_v43  ;;  %v1818_v32 = vmul.f32 %v6777_v53, %v369_v45  ;;  %v1919_v47 = vmul.f32 %v6791_v18, %v470_v42  ;;  %v773_v17 = vld [vmem:[#allocation2 + $0xc4] sm:$0xff] }
  0xbb   : > { %11350 = vst [vmem:[#allocation67_spill] sm:$0xff] %v7015_v46  ;;  %11351 = vst [vmem:[#allocation68_spill] sm:$0xff] %v7024_v36  ;;  %v640_v26 = vadd.f32 %v608_v44, %v406_v28  ;;  %v741_v20 = vadd.f32 %v709_v29, %v507_v24  ;;  %v1314_v34 = vmul.f32 %v6677_v23, %v571_v57  ;;  %v774_v44 = vld [vmem:[#allocation2 + $0xcc] sm:$0xff] }
  0xbc   : > { %11352 = vst [vmem:[#allocation69_spill] sm:$0xff] %v7026_v2  ;;  %v1415_v39 = vmul.f32 %v6683_v22, %v672_v7  ;;  %v1850_v41 = vadd.f32 %v1818_v32, %v1647_v55  ;;  %v1951_v43 = vadd.f32 %v1919_v47, %v1748_v31  ;;  %v2020_v9 = vmul.f32 %v6803_v51, %v571_v57 }
  0xbd   : > { %v2121_v11 = vmul.f32 %v6824_v15, %v672_v7  ;;  %v1346_v2 = vadd.f32 %v1314_v34, %v1144_v62  ;;  %v407_v36 = vmul.f32 %v6542_v5, %v7030_v14  ;;  %v508_v28 = vmul.f32 %v6549_v35, %v7032_v4  ;;  %v874_v62 = vld [vmem:[#allocation2 + $0xc5] sm:$0xff] }
  0xbe   : > { %v609_v24 = vmul.f32 %v6556_v25, %v7034_v16  ;;  %v1447_v29 = vadd.f32 %v1415_v39, %v1245_v52  ;;  %v7049_v55 = vmul.f32 %v6978_v3, %v369_v45  ;;  %v7052_v31 = vmul.f32 %v6998_v13, %v470_v42  ;;  %v875_v52 = vld [vmem:[#allocation2 + $0xcd] sm:$0xff] }
  0xbf   : > { %v710_v34 = vmul.f32 %v6563_v58, %v7038_v6  ;;  %v7057_v32 = vmul.f32 %v7011_v10, %v571_v57  ;;  %v7060_v47 = vmul.f32 %v7020_v1, %v672_v7  ;;  %v810_v38 = vmul.f32 %v6719_v61, %v773_v17  ;;  %v975_v39 = vld [vmem:[#allocation2 + $0xc6] sm:$0xff] }
  0xc0   : > { %11353 = vst [vmem:[#allocation70_spill] sm:$0xff] %v7049_v55  ;;  %11354 = vst [vmem:[#allocation71_spill] sm:$0xff] %v7052_v31  ;;  %v641_v46 = vadd.f32 %v609_v24, %v407_v36  ;;  %v2052_v45 = vadd.f32 %v2020_v9, %v1850_v41  ;;  %v2153_v55 = vadd.f32 %v2121_v11, %v1951_v43  ;;  %v976_v31 = vld [vmem:[#allocation2 + $0xce] sm:$0xff] }
  0xc1   : > { %11355 = vst [vmem:[#allocation72_spill] sm:$0xff] %v7057_v32  ;;  %11356 = vst [vmem:[#allocation73_spill] sm:$0xff] %v7060_v47  ;;  %v811_v42 = vmul.f32 %v6719_v61, %v774_v44  ;;  %v1113_v60 = vmul.f32 %v6634_v19, %v7030_v14  ;;  %v742_v48 = vadd.f32 %v710_v34, %v508_v28 }
  0xc2   : > { %v842_v0 = vadd.f32 %v810_v38, %v640_v26  ;;  %v911_v57 = vmul.f32 %v6738_v49, %v874_v62  ;;  %v1214_v7 = vmul.f32 %v6650_v50, %v7032_v4  ;;  %v912_v36 = vmul.f32 %v6738_v49, %v875_v52 }
  0xc3   : > { %v1012_v24 = vmul.f32 %v6749_v59, %v975_v39  ;;  %v1145_v41 = vadd.f32 %v1113_v60, %v6940_v54  ;;  %v1315_v43 = vmul.f32 %v6677_v23, %v7034_v16  ;;  %v843_v9 = vadd.f32 %v811_v42, %v641_v46 }
  0xc4   : > { %v1013_v11 = vmul.f32 %v6749_v59, %v976_v31  ;;  %v1246_v28 = vadd.f32 %v1214_v7, %v6947_v8  ;;  %v1416_v38 = vmul.f32 %v6683_v22, %v7038_v6  ;;  %v943_v26 = vadd.f32 %v911_v57, %v741_v20 }
  0xc5   : > { %v1347_v34 = vadd.f32 %v1315_v43, %v1145_v41  ;;  %v1516_v47 = vmul.f32 %v6766_v37, %v773_v17  ;;  %v1517_v32 = vmul.f32 %v6766_v37, %v774_v44  ;;  %v7080_v12 = vadd.f32 %v912_v36, %v742_v48  ;;  %v312_v48 = vld [vmem:[%s6046_s20 + $0xc0] sm:$0xff] }
  0xc6   : > { %v1044_v54 = vadd.f32 %v1012_v24, %v842_v0  ;;  %v1448_v60 = vadd.f32 %v1416_v38, %v1246_v28  ;;  %v1819_v46 = vmul.f32 %v6777_v53, %v7030_v14  ;;  %v1617_v8 = vmul.f32 %v6784_v21, %v874_v62  ;;  %344 = vst.msk [vmem:[#allocation2 + $0x16b] sm:$0xff] %vm233_vm0, %v312_v48 }
  0xc7   : > { %v1548_v42 = vadd.f32 %v1516_v47, %v1346_v2  ;;  %v1549_v59 = vadd.f32 %v1517_v32, %v1347_v34  ;;  %v1920_v20 = vmul.f32 %v6791_v18, %v7032_v4  ;;  %v7087_v57 = vadd.f32 %v1013_v11, %v843_v9  ;;  %v371_v34 = vld [vmem:[#allocation2 + $0xd8] sm:$0xff] }
  0xc8   : > { %v1618_v7 = vmul.f32 %v6784_v21, %v875_v52  ;;  %v1851_v41 = vadd.f32 %v1819_v46, %v6959_v63  ;;  %v2021_v0 = vmul.f32 %v6803_v51, %v7034_v16  ;;  %v1649_v36 = vadd.f32 %v1617_v8, %v1447_v29 }
  0xc9   : > { %v1718_v24 = vmul.f32 %v6811_v33, %v975_v39  ;;  %v1719_v2 = vmul.f32 %v6811_v33, %v976_v31  ;;  %v1952_v32 = vadd.f32 %v1920_v20, %v6963_v30  ;;  %v2122_v9 = vmul.f32 %v6824_v15, %v7038_v6  ;;  %v573_v30 = vld [vmem:[#allocation2 + $0xda] sm:$0xff] }
  0xca   : > { %v7098_v47 = vadd.f32 %v1618_v7, %v1448_v60  ;;  %v2053_v43 = vadd.f32 %v2021_v0, %v1851_v41  ;;  %v2222_v63 = vmul.f32 %v6831_v27, %v773_v17  ;;  %v2223_v29 = vmul.f32 %v6831_v27, %v774_v44  ;;  %v472_v7 = vld [vmem:[#allocation2 + $0xd9] sm:$0xff] }
  0xcb   : > { %v1750_v11 = vadd.f32 %v1718_v24, %v1548_v42  ;;  %v7103_v28 = vadd.f32 %v1719_v2, %v1549_v59  ;;  %v2323_v38 = vmul.f32 %v6842_v40, %v874_v62  ;;  %v2154_v46 = vadd.f32 %v2122_v9, %v1952_v32  ;;  %v674_v41 = vld [vmem:[#allocation2 + $0xdb] sm:$0xff] }
  0xcc   : > { %v2254_v8 = vadd.f32 %v2222_v63, %v2052_v45  ;;  %v2324_v60 = vmul.f32 %v6842_v40, %v875_v52  ;;  %v2424_v20 = vmul.f32 %v6971_v56, %v975_v39  ;;  %v2255_v0 = vadd.f32 %v2223_v29, %v2053_v43  ;;  %v7144_v29 = vld [vmem:[#allocation2 + $0xe0] sm:$0xff] }
  0xcd   : > { %v7109_v17 = vadd.f32 %v2323_v38, %v2153_v55  ;;  %v2425_v59 = vmul.f32 %v6971_v56, %v976_v31  ;;  %v7114_v44 = vmul.f32 %v6978_v3, %v7030_v14  ;;  %v7118_v62 = vmul.f32 %v6998_v13, %v7032_v4  ;;  %v313_v55 = vld [vmem:[%s6046_s20 + $0xc8] sm:$0xff] }
  0xce   : > { %v7122_v52 = vmul.f32 %v7011_v10, %v7034_v16  ;;  %v408_v39 = vmul.f32 %v6542_v5, %v371_v34  ;;  %v610_v45 = vmul.f32 %v6556_v25, %v573_v30  ;;  %v509_v42 = vmul.f32 %v6549_v35, %v472_v7  ;;  %345 = vst.msk [vmem:[#allocation2 + $0x173] sm:$0xff] %vm233_vm0, %v313_v55  ;;  %v7146_v38 = vld [vmem:[#allocation2 + $0xe1] sm:$0xff] }
  0xcf   : > { %11357 = vst [vmem:[#allocation74_spill] sm:$0xff] %v7109_v17  ;;  %11358 = vst [vmem:[#allocation75_spill] sm:$0xff] %v7114_v44  ;;  %v711_v31 = vmul.f32 %v6563_v58, %v674_v41  ;;  %v1114_v14 = vmul.f32 %v6634_v19, %v371_v34  ;;  %v1215_v48 = vmul.f32 %v6650_v50, %v472_v7  ;;  %v7152_v55 = vld [vmem:[#allocation2 + $0xe3] sm:$0xff] }
  0xd0   : > { %11359 = vst [vmem:[#allocation76_spill] sm:$0xff] %v7118_v62  ;;  %11360 = vst [vmem:[#allocation77_spill] sm:$0xff] %v7122_v52  ;;  %v7132_v4 = vadd.f32 %v2324_v60, %v2154_v46  ;;  %v7134_v24 = vadd.f32 %v2424_v20, %v2254_v8  ;;  %v7138_v16 = vmul.f32 %v7020_v1, %v7038_v6  ;;  %v7150_v6 = vld [vmem:[#allocation2 + $0xe2] sm:$0xff] }
  0xd1   : > { %v1820_v2 = vmul.f32 %v6777_v53, %v371_v34  ;;  %v7141_v32 = vadd.f32 %v2425_v59, %v2255_v0  ;;  %v1146_v43 = vadd.f32 %v1114_v14, %v943_v26  ;;  %v1247_v9 = vadd.f32 %v1215_v48, %v1044_v54  ;;  %v775_v14 = vld [vmem:[#allocation2 + $0xdc] sm:$0xff] }
  0xd2   : > { %11361 = vst [vmem:[#allocation78_spill] sm:$0xff] %v7132_v4  ;;  %11362 = vst [vmem:[#allocation79_spill] sm:$0xff] %v7134_v24  ;;  %v1921_v63 = vmul.f32 %v6791_v18, %v472_v7  ;;  %v642_v46 = vadd.f32 %v610_v45, %v408_v39  ;;  %v1316_v8 = vmul.f32 %v6677_v23, %v573_v30  ;;  %v877_v24 = vld [vmem:[#allocation2 + $0xe5] sm:$0xff] }
  0xd3   : > { %11363 = vst [vmem:[#allocation80_spill] sm:$0xff] %v7138_v16  ;;  %11364 = vst [vmem:[#allocation81_spill] sm:$0xff] %v7141_v32  ;;  %v1417_v60 = vmul.f32 %v6683_v22, %v674_v41  ;;  %v1852_v20 = vadd.f32 %v1820_v2, %v1649_v36  ;;  %v743_v0 = vadd.f32 %v711_v31, %v509_v42  ;;  %v776_v2 = vld [vmem:[#allocation2 + $0xe4] sm:$0xff] }
  0xd4   : > { %v1953_v59 = vadd.f32 %v1921_v63, %v1750_v11  ;;  %v2022_v26 = vmul.f32 %v6803_v51, %v573_v30  ;;  %v2123_v54 = vmul.f32 %v6824_v15, %v674_v41  ;;  %v7157_v48 = vmul.f32 %v6978_v3, %v371_v34  ;;  %v876_v34 = vld [vmem:[#allocation2 + $0xdd] sm:$0xff] }
  0xd5   : > { %v7160_v39 = vmul.f32 %v6998_v13, %v472_v7  ;;  %v409_v36 = vmul.f32 %v6542_v5, %v7144_v29  ;;  %v510_v45 = vmul.f32 %v6549_v35, %v7146_v38  ;;  %v1348_v42 = vadd.f32 %v1316_v8, %v1146_v43 }
  0xd6   : > { %11365 = vst [vmem:[#allocation82_spill] sm:$0xff] %v7157_v48  ;;  %v1449_v11 = vadd.f32 %v1417_v60, %v1247_v9  ;;  %v611_v31 = vmul.f32 %v6556_v25, %v7150_v6  ;;  %v712_v63 = vmul.f32 %v6563_v58, %v7152_v55  ;;  %v2054_v32 = vadd.f32 %v2022_v26, %v1852_v20  ;;  %v977_v48 = vld [vmem:[#allocation2 + $0xde] sm:$0xff]  ;;  %v978_v26 = vld [vmem:[#allocation2 + $0xe6] sm:$0xff] }
  0xd7   : > { %11366 = vst [vmem:[#allocation83_spill] sm:$0xff] %v7160_v39  ;;  %v7171_v7 = vmul.f32 %v7011_v10, %v573_v30  ;;  %v7174_v4 = vmul.f32 %v7020_v1, %v674_v41  ;;  %v812_v39 = vmul.f32 %v6719_v61, %v775_v14  ;;  %v7177_v43 = vadd.f32 %v2123_v54, %v1953_v59 }
  0xd8   : > { %v643_v9 = vadd.f32 %v611_v31, %v409_v36  ;;  %v813_v8 = vmul.f32 %v6719_v61, %v776_v2  ;;  %v1115_v60 = vmul.f32 %v6634_v19, %v7144_v29  ;;  %v744_v17 = vadd.f32 %v712_v63, %v510_v45 }
  0xd9   : > { %11367 = vst [vmem:[#allocation84_spill] sm:$0xff] %v7171_v7  ;;  %11368 = vst [vmem:[#allocation85_spill] sm:$0xff] %v7174_v4  ;;  %v844_v20 = vadd.f32 %v812_v39, %v642_v46  ;;  %v913_v30 = vmul.f32 %v6738_v49, %v876_v34  ;;  %v1216_v41 = vmul.f32 %v6650_v50, %v7146_v38  ;;  %v11369_v7 = vld [vmem:[#allocation49_spill] sm:$0xff] }
  0xda   : > { %v914_v4 = vmul.f32 %v6738_v49, %v877_v24  ;;  %v1014_v16 = vmul.f32 %v11369_v7, %v977_v48  ;;  %v1147_v59 = vadd.f32 %v1115_v60, %v7080_v12  ;;  %v1317_v54 = vmul.f32 %v6677_v23, %v7150_v6 }
  0xdb   : > { %v845_v36 = vadd.f32 %v813_v8, %v643_v9  ;;  %v1248_v31 = vadd.f32 %v1216_v41, %v7087_v57  ;;  %v1418_v46 = vmul.f32 %v6683_v22, %v7152_v55  ;;  %v1518_v39 = vmul.f32 %v6766_v37, %v775_v14 }
  0xdc   : > { %v945_v45 = vadd.f32 %v913_v30, %v743_v0  ;;  %v1015_v63 = vmul.f32 %v11369_v7, %v978_v26  ;;  %v1349_v52 = vadd.f32 %v1317_v54, %v1147_v59  ;;  %v1519_v62 = vmul.f32 %v6766_v37, %v776_v2 }
  0xdd   : > { %v7196_v44 = vadd.f32 %v914_v4, %v744_v17  ;;  %v1046_v12 = vadd.f32 %v1014_v16, %v844_v20  ;;  %v1450_v60 = vadd.f32 %v1418_v46, %v1248_v31  ;;  %v1550_v49 = vadd.f32 %v1518_v39, %v1348_v42  ;;  %v474_v39 = vld [vmem:[#allocation2 + $0xf1] sm:$0xff] }
  0xde   : > { %v1551_v61 = vadd.f32 %v1519_v62, %v1349_v52  ;;  %v1619_v9 = vmul.f32 %v6784_v21, %v876_v34  ;;  %v1821_v57 = vmul.f32 %v6777_v53, %v7144_v29  ;;  %v1922_v8 = vmul.f32 %v6791_v18, %v7146_v38 }
  0xdf   : > { %v7203_v0 = vadd.f32 %v1015_v63, %v845_v36  ;;  %v1620_v30 = vmul.f32 %v6784_v21, %v877_v24  ;;  %v1720_v41 = vmul.f32 %v6811_v33, %v977_v48  ;;  %v1721_v17 = vmul.f32 %v6811_v33, %v978_v26  ;;  %v373_v36 = vld [vmem:[#allocation2 + $0xf0] sm:$0xff] }
  0xe0   : > { %v1853_v4 = vadd.f32 %v1821_v57, %v7098_v47  ;;  %v1954_v62 = vadd.f32 %v1922_v8, %v7103_v28  ;;  %v2023_v52 = vmul.f32 %v6803_v51, %v7150_v6  ;;  %v2224_v16 = vmul.f32 %v6831_v27, %v775_v14  ;;  %v575_v63 = vld [vmem:[#allocation2 + $0xf2] sm:$0xff] }
  0xe1   : > { %v1651_v42 = vadd.f32 %v1619_v9, %v1449_v11  ;;  %v7213_v20 = vadd.f32 %v1620_v30, %v1450_v60  ;;  %v1752_v59 = vadd.f32 %v1720_v41, %v1550_v49  ;;  %v2124_v54 = vmul.f32 %v6824_v15, %v7152_v55  ;;  %v676_v57 = vld [vmem:[#allocation2 + $0xf3] sm:$0xff] }
  0xe2   : > { %v7217_v31 = vadd.f32 %v1721_v17, %v1551_v61  ;;  %v2055_v47 = vadd.f32 %v2023_v52, %v1853_v4  ;;  %v2225_v28 = vmul.f32 %v6831_v27, %v776_v2  ;;  %v2256_v46 = vadd.f32 %v2224_v16, %v2054_v32  ;;  %v314_v9 = vld [vmem:[%s6046_s20 + $0xd0] sm:$0xff]  ;;  %v315_v8 = vld [vmem:[%s6046_s20 + $0xd8] sm:$0xff] }
  0xe3   : > { %v2156_v14 = vadd.f32 %v2124_v54, %v1954_v62  ;;  %v2325_v11 = vmul.f32 %v6842_v40, %v876_v34  ;;  %v2326_v60 = vmul.f32 %v6842_v40, %v877_v24  ;;  %v2426_v49 = vmul.f32 %v6971_v56, %v977_v48  ;;  %346 = vst.msk [vmem:[#allocation2 + $0x183] sm:$0xff] %vm233_vm0, %v314_v9  ;;  %v7261_v16 = vld [vmem:[#allocation2 + $0xf8] sm:$0xff] }
  0xe4   : > { %v2257_v30 = vadd.f32 %v2225_v28, %v2055_v47  ;;  %v2427_v61 = vmul.f32 %v6971_v56, %v978_v26  ;;  %v7228_v41 = vmul.f32 %v6978_v3, %v7144_v29  ;;  %v410_v32 = vmul.f32 %v6542_v5, %v373_v36  ;;  %347 = vst.msk [vmem:[#allocation2 + $0x18b] sm:$0xff] %vm233_vm0, %v315_v8  ;;  %v7263_v54 = vld [vmem:[#allocation2 + $0xf9] sm:$0xff] }
  0xe5   : > { %v511_v2 = vmul.f32 %v6549_v35, %v474_v39  ;;  %v612_v24 = vmul.f32 %v6556_v25, %v575_v63  ;;  %v713_v48 = vmul.f32 %v6563_v58, %v676_v57  ;;  %v1116_v34 = vmul.f32 %v6634_v19, %v373_v36  ;;  %v7265_v47 = vld [vmem:[#allocation2 + $0xfa] sm:$0xff] }
  0xe6   : > { %11370 = vst [vmem:[#allocation49_spill] sm:$0xff] %v7228_v41  ;;  %v7238_v26 = vadd.f32 %v2325_v11, %v7177_v43  ;;  %v7240_v17 = vadd.f32 %v2426_v49, %v2256_v46  ;;  %v7244_v5 = vmul.f32 %v6998_v13, %v7146_v38  ;;  %v1217_v29 = vmul.f32 %v6650_v50, %v474_v39  ;;  %v7273_v49 = vld [vmem:[#allocation2 + $0xf4] sm:$0xff]  ;;  %v7278_v8 = vld [vmem:[%s10975_s0] ss:$0 sm:$0xff] }
  0xe7   : > { %v7247_v4 = vadd.f32 %v2326_v60, %v2156_v14  ;;  %v7251_v35 = vmul.f32 %v7011_v10, %v7150_v6  ;;  %v7255_v25 = vmul.f32 %v7020_v1, %v7152_v55  ;;  %v1148_v58 = vadd.f32 %v1116_v34, %v945_v45  ;;  %v7269_v45 = vld [vmem:[#allocation2 + $0xfb] sm:$0xff] }
  0xe8   : > { %11371 = vst [vmem:[#allocation86_spill] sm:$0xff] %v7238_v26  ;;  %11372 = vst [vmem:[#allocation87_spill] sm:$0xff] %v7240_v17  ;;  %v7257_v43 = vadd.f32 %v2427_v61, %v2257_v30  ;;  %v1249_v62 = vadd.f32 %v1217_v29, %v1046_v12  ;;  %v1822_v52 = vmul.f32 %v6777_v53, %v373_v36  ;;  %v7292_v61 = vld [vmem:[%s10975_s0 + $0x2] ss:$0 sm:$0xff]  ;;  %v7305_v29 = vld [vmem:[%s10975_s0 + $0x3] ss:$0 sm:$0xff] }
  0xe9   : > { %11373 = vst [vmem:[#allocation88_spill] sm:$0xff] %v7244_v5  ;;  %11374 = vst [vmem:[#allocation89_spill] sm:$0xff] %v7247_v4  ;;  %v1923_v38 = vmul.f32 %v6791_v18, %v474_v39  ;;  %v644_v6 = vadd.f32 %v612_v24, %v410_v32  ;;  %v745_v28 = vadd.f32 %v713_v48, %v511_v2  ;;  %v778_v2 = vld [vmem:[#allocation2 + $0xfc] sm:$0xff] }
  0xea   : > { %11375 = vst [vmem:[#allocation90_spill] sm:$0xff] %v7251_v35  ;;  %11376 = vst [vmem:[#allocation91_spill] sm:$0xff] %v7255_v25  ;;  %v1318_v46 = vmul.f32 %v6677_v23, %v575_v63  ;;  %v1419_v55 = vmul.f32 %v6683_v22, %v676_v57  ;;  %v1854_v14 = vadd.f32 %v1822_v52, %v1651_v42  ;;  %v7285_v42 = vld [vmem:[%s10975_s0 + $0x1] ss:$0 sm:$0xff]  ;;  %v878_v52 = vld [vmem:[#allocation2 + $0xf5] sm:$0xff] }
  0xeb   : > { %11377 = vst [vmem:[#allocation92_spill] sm:$0xff] %v7257_v43  ;;  %v1955_v12 = vadd.f32 %v1923_v38, %v1752_v59  ;;  %v2024_v11 = vmul.f32 %v6803_v51, %v575_v63  ;;  %v2125_v60 = vmul.f32 %v6824_v15, %v676_v57  ;;  %v411_v30 = vmul.f32 %v7278_v8, %v7261_v16  ;;  %v979_v43 = vld [vmem:[#allocation2 + $0xf6] sm:$0xff] }
  0xec   : > { %v1350_v9 = vadd.f32 %v1318_v46, %v1148_v58  ;;  %v512_v59 = vmul.f32 %v7285_v42, %v7263_v54  ;;  %v613_v32 = vmul.f32 %v7292_v61, %v7265_v47  ;;  %v1451_v24 = vadd.f32 %v1419_v55, %v1249_v62  ;;  %v11382_v46 = vld [vmem:[#allocation47_spill] sm:$0xff]  ;;  %v879_v55 = vld [vmem:[#allocation2 + $0xfd] sm:$0xff] }
  0xed   : > { %v7297_v48 = vmul.f32 %v6978_v3, %v373_v36  ;;  %v7300_v34 = vmul.f32 %v6998_v13, %v474_v39  ;;  %v714_v58 = vmul.f32 %v7305_v29, %v7269_v45  ;;  %v7310_v38 = vmul.f32 %v7011_v10, %v575_v63 }
  0xee   : > { %v7313_v62 = vmul.f32 %v7020_v1, %v676_v57  ;;  %v645_v36 = vadd.f32 %v613_v32, %v411_v30  ;;  %v814_v39 = vmul.f32 %v11382_v46, %v7273_v49  ;;  %v2056_v4 = vadd.f32 %v2024_v11, %v1854_v14 }
  0xef   : > { %11378 = vst [vmem:[#allocation93_spill] sm:$0xff] %v7297_v48  ;;  %11379 = vst [vmem:[#allocation94_spill] sm:$0xff] %v7300_v34  ;;  %v2157_v34 = vadd.f32 %v2125_v60, %v1955_v12  ;;  %v815_v17 = vmul.f32 %v11382_v46, %v778_v2  ;;  %v980_v48 = vld [vmem:[#allocation2 + $0xfe] sm:$0xff]  ;;  %v1117_v26 = vmul.f32 %v6634_v19, %v7261_v16 }
  0xf0   : > { %11380 = vst [vmem:[#allocation95_spill] sm:$0xff] %v7310_v38  ;;  %11381 = vst [vmem:[#allocation96_spill] sm:$0xff] %v7313_v62  ;;  %v746_v25 = vadd.f32 %v714_v58, %v512_v59  ;;  %v846_v63 = vadd.f32 %v814_v39, %v644_v6  ;;  %v11383_v38 = vld [vmem:[#allocation48_spill] sm:$0xff]  ;;  %v1218_v57 = vmul.f32 %v6650_v50, %v7263_v54  ;;  %v316_v46 = vld [vmem:[%s6046_s20 + $0xe0] sm:$0xff] }
  0xf1   : > { %v915_v35 = vmul.f32 %v11383_v38, %v878_v52  ;;  %v916_v30 = vmul.f32 %v11383_v38, %v879_v55  ;;  %v1016_v32 = vmul.f32 %v11369_v7, %v979_v43  ;;  %v1149_v14 = vadd.f32 %v1117_v26, %v7196_v44  ;;  %v317_v39 = vld [vmem:[%s6046_s20 + $0xe8] sm:$0xff]  ;;  %348 = vst.msk [vmem:[#allocation2 + $0x19b] sm:$0xff] %vm233_vm0, %v316_v46 }
  0xf2   : > { %v1319_v12 = vmul.f32 %v6677_v23, %v7265_v47  ;;  %v847_v11 = vadd.f32 %v815_v17, %v645_v36  ;;  %v1017_v60 = vmul.f32 %v11369_v7, %v980_v48  ;;  %v1250_v19 = vadd.f32 %v1218_v57, %v7203_v0  ;;  %349 = vst.msk [vmem:[#allocation2 + $0x1a3] sm:$0xff] %vm233_vm0, %v317_v39  ;;  %v7410_v39 = vld [vmem:[#allocation2 + $0x110] sm:$0xff] }
  0xf3   : > { %v1420_v6 = vmul.f32 %v6683_v22, %v7269_v45  ;;  %v947_v59 = vadd.f32 %v915_v35, %v745_v28  ;;  %v1520_v58 = vmul.f32 %v6766_v37, %v7273_v49  ;;  %v1521_v44 = vmul.f32 %v6766_v37, %v778_v2 }
  0xf4   : > { %v1351_v50 = vadd.f32 %v1319_v12, %v1149_v14  ;;  %v7335_v26 = vadd.f32 %v916_v30, %v746_v25  ;;  %v1048_v23 = vadd.f32 %v1016_v32, %v846_v63  ;;  %v1823_v7 = vmul.f32 %v6777_v53, %v7261_v16 }
  0xf5   : > { %v1452_v17 = vadd.f32 %v1420_v6, %v1250_v19  ;;  %v1552_v0 = vadd.f32 %v1520_v58, %v1350_v9  ;;  %v1621_v22 = vmul.f32 %v6784_v21, %v878_v52  ;;  %v1924_v35 = vmul.f32 %v6791_v18, %v7263_v54 }
  0xf6   : > { %v1553_v38 = vadd.f32 %v1521_v44, %v1351_v50  ;;  %v7342_v28 = vadd.f32 %v1017_v60, %v847_v11  ;;  %v1622_v36 = vmul.f32 %v6784_v21, %v879_v55  ;;  %v1855_v37 = vadd.f32 %v1823_v7, %v7213_v20  ;;  %v375_v11 = vld [vmem:[#allocation2 + $0x108] sm:$0xff] }
  0xf7   : > { %v2025_v25 = vmul.f32 %v6803_v51, %v7265_v47  ;;  %v1653_v63 = vadd.f32 %v1621_v22, %v1451_v24  ;;  %v1722_v9 = vmul.f32 %v6811_v33, %v979_v43  ;;  %v1723_v57 = vmul.f32 %v6811_v33, %v980_v48  ;;  %v577_v60 = vld [vmem:[#allocation2 + $0x10a] sm:$0xff] }
  0xf8   : > { %v1956_v30 = vadd.f32 %v1924_v35, %v7217_v31  ;;  %v7355_v32 = vadd.f32 %v1622_v36, %v1452_v17  ;;  %v2126_v20 = vmul.f32 %v6824_v15, %v7269_v45  ;;  %v2226_v14 = vmul.f32 %v6831_v27, %v7273_v49  ;;  %v476_v44 = vld [vmem:[#allocation2 + $0x109] sm:$0xff] }
  0xf9   : > { %v2057_v21 = vadd.f32 %v2025_v25, %v1855_v37  ;;  %v1754_v24 = vadd.f32 %v1722_v9, %v1552_v0  ;;  %v7361_v12 = vadd.f32 %v1723_v57, %v1553_v38  ;;  %v2227_v33 = vmul.f32 %v6831_v27, %v778_v2  ;;  %v678_v17 = vld [vmem:[#allocation2 + $0x10b] sm:$0xff] }
  0xfa   : > { %v2327_v31 = vmul.f32 %v6842_v40, %v878_v52  ;;  %v2158_v19 = vadd.f32 %v2126_v20, %v1956_v30  ;;  %v2258_v6 = vadd.f32 %v2226_v14, %v2056_v4  ;;  %v2328_v50 = vmul.f32 %v6842_v40, %v879_v55  ;;  %v7412_v9 = vld [vmem:[#allocation2 + $0x111] sm:$0xff]  ;;  %v7417_v30 = vld [vmem:[%s10975_s0 + $0x9] ss:$0 sm:$0xff] }
  0xfb   : > { %v2428_v58 = vmul.f32 %v6971_v56, %v979_v43  ;;  %v2259_v7 = vadd.f32 %v2227_v33, %v2057_v21  ;;  %v2429_v49 = vmul.f32 %v6971_v56, %v980_v48  ;;  %v7372_v27 = vmul.f32 %v6978_v3, %v7261_v16  ;;  %v7389_v16 = vld [vmem:[%s10975_s0 + $0x7] ss:$0 sm:$0xff]  ;;  %v7428_v21 = vld [vmem:[#allocation2 + $0x113] sm:$0xff] }
  0xfc   : > { %v7367_v22 = vadd.f32 %v2327_v31, %v2157_v34  ;;  %v7376_v2 = vmul.f32 %v6998_v13, %v7263_v54  ;;  %v7380_v40 = vmul.f32 %v7011_v10, %v7265_v47  ;;  %v412_v4 = vmul.f32 %v7278_v8, %v375_v11  ;;  %v7395_v47 = vld [vmem:[%s10975_s0 + $0x8] ss:$0 sm:$0xff] }
  0xfd   : > { %11385 = vst [vmem:[#allocation48_spill] sm:$0xff] %v7372_v27  ;;  %v614_v43 = vmul.f32 %v7292_v61, %v577_v60  ;;  %v513_v34 = vmul.f32 %v7285_v42, %v476_v44  ;;  %v715_v48 = vmul.f32 %v7305_v29, %v678_v17  ;;  %v1118_v54 = vmul.f32 %v7389_v16, %v375_v11 }
  0xfe   : > { %11384 = vst [vmem:[#allocation47_spill] sm:$0xff] %v7367_v22  ;;  %11386 = vst [vmem:[#allocation97_spill] sm:$0xff] %v7376_v2  ;;  %v1219_v52 = vmul.f32 %v7395_v47, %v476_v44  ;;  %v7398_v55 = vadd.f32 %v2328_v50, %v2158_v19  ;;  %v7400_v0 = vadd.f32 %v2428_v58, %v2258_v6  ;;  %v7432_v19 = vld [vmem:[#allocation2 + $0x10c] sm:$0xff]  ;;  %v377_v22 = vld [vmem:[#allocation2 + $0x120] sm:$0xff] }
  0xff   : > { %11387 = vst [vmem:[#allocation98_spill] sm:$0xff] %v7380_v40  ;;  %v7404_v38 = vmul.f32 %v7020_v1, %v7269_v45  ;;  %v1824_v35 = vmul.f32 %v6777_v53, %v375_v11  ;;  %v7407_v36 = vadd.f32 %v2429_v49, %v2259_v7  ;;  %v1150_v37 = vadd.f32 %v1118_v54, %v947_v59  ;;  %v7423_v53 = vld [vmem:[%s10975_s0 + $0xa] ss:$0 sm:$0xff]  ;;  %v318_v7 = vld [vmem:[%s6046_s20 + $0xf0] sm:$0xff]  ;;  %v7466_v54 = vld [vmem:[%s10975_s0 + $0x4] ss:$0 sm:$0xff] }
 0x100   : > { %11388 = vst [vmem:[#allocation99_spill] sm:$0xff] %v7398_v55  ;;  %11389 = vst [vmem:[#allocation100_spill] sm:$0xff] %v7400_v0  ;;  %v1251_v25 = vadd.f32 %v1219_v52, %v1048_v23  ;;  %v1925_v46 = vmul.f32 %v6791_v18, %v476_v44  ;;  %v646_v57 = vadd.f32 %v614_v43, %v412_v4  ;;  %v7426_v23 = vld [vmem:[#allocation2 + $0x112] sm:$0xff]  ;;  %v7520_v0 = vld [vmem:[%s10975_s0 + $0xc] ss:$0 sm:$0xff] }
 0x101   : > { %11390 = vst [vmem:[#allocation101_spill] sm:$0xff] %v7404_v38  ;;  %11391 = vst [vmem:[#allocation102_spill] sm:$0xff] %v7407_v36  ;;  %v1320_v45 = vmul.f32 %v7417_v30, %v577_v60  ;;  %v1421_v18 = vmul.f32 %v7423_v53, %v678_v17  ;;  %v1856_v59 = vadd.f32 %v1824_v35, %v1653_v63  ;;  %v7451_v4 = vld [vmem:[#allocation2 + $0x10d] sm:$0xff]  ;;  %v7470_v35 = vld [vmem:[#allocation2 + $0x115] sm:$0xff] }
 0x102   : > { %v747_v20 = vadd.f32 %v715_v48, %v513_v34  ;;  %v1957_v14 = vadd.f32 %v1925_v46, %v1754_v24  ;;  %v2026_v33 = vmul.f32 %v6803_v51, %v577_v60  ;;  %v2127_v31 = vmul.f32 %v6824_v15, %v678_v17  ;;  %v7444_v24 = vld [vmem:[#allocation2 + $0x114] sm:$0xff]  ;;  %350 = vst.msk [vmem:[#allocation2 + $0x1b3] sm:$0xff] %vm233_vm0, %v318_v7  ;;  %v7508_v36 = vld [vmem:[%s10975_s0 + $0xb] ss:$0 sm:$0xff] }
 0x103   : > { %v7435_v6 = vmul.f32 %v6978_v3, %v375_v11  ;;  %v7438_v50 = vmul.f32 %v6998_v13, %v476_v44  ;;  %v413_v63 = vmul.f32 %v7278_v8, %v7410_v39  ;;  %v514_v58 = vmul.f32 %v7285_v42, %v7412_v9  ;;  %v319_v44 = vld [vmem:[%s6046_s20 + $0xf8] sm:$0xff]  ;;  %11396 = vst [vmem:[#allocation107_spill] sm:$0xff] %v7466_v54 }
 0x104   : > { %v1352_v51 = vadd.f32 %v1320_v45, %v1150_v37  ;;  %v1453_v49 = vadd.f32 %v1421_v18, %v1251_v25  ;;  %v615_v15 = vmul.f32 %v7292_v61, %v7426_v23  ;;  %v716_v11 = vmul.f32 %v7305_v29, %v7428_v21  ;;  %v7472_v37 = vld [vmem:[#allocation2 + $0x10e] sm:$0xff]  ;;  %351 = vst.msk [vmem:[#allocation2 + $0x1bb] sm:$0xff] %vm233_vm0, %v319_v44  ;;  %v982_v7 = vld [vmem:[#allocation2 + $0x116] sm:$0xff] }
 0x105   : > { %11392 = vst [vmem:[#allocation103_spill] sm:$0xff] %v7435_v6  ;;  %11393 = vst [vmem:[#allocation104_spill] sm:$0xff] %v7438_v50  ;;  %v7455_v43 = vadd.f32 %v2026_v33, %v1856_v59  ;;  %v7458_v34 = vmul.f32 %v7011_v10, %v577_v60  ;;  %v7461_v48 = vmul.f32 %v7020_v1, %v678_v17  ;;  %v7484_v59 = vld [vmem:[%s10975_s0 + $0x5] ss:$0 sm:$0xff] }
 0x106   : > { %v816_v52 = vmul.f32 %v7466_v54, %v7432_v19  ;;  %v7475_v25 = vadd.f32 %v2127_v31, %v1957_v14  ;;  %v647_v60 = vadd.f32 %v615_v15, %v413_v63  ;;  %v817_v17 = vmul.f32 %v7466_v54, %v7444_v24  ;;  %11397 = vst [vmem:[#allocation108_spill] sm:$0xff] %v7484_v59  ;;  %v7495_v63 = vld [vmem:[%s10975_s0 + $0x6] ss:$0 sm:$0xff] }
 0x107   : > { %11394 = vst [vmem:[#allocation105_spill] sm:$0xff] %v7458_v34  ;;  %11395 = vst [vmem:[#allocation106_spill] sm:$0xff] %v7461_v48  ;;  %v1119_v46 = vmul.f32 %v7389_v16, %v7410_v39  ;;  %v748_v45 = vadd.f32 %v716_v11, %v514_v58  ;;  %v917_v33 = vmul.f32 %v7484_v59, %v7451_v4 }
 0x108   : > { %v848_v18 = vadd.f32 %v816_v52, %v646_v57  ;;  %v1220_v14 = vmul.f32 %v7395_v47, %v7412_v9  ;;  %v918_v31 = vmul.f32 %v7484_v59, %v7470_v35  ;;  %11398 = vst [vmem:[#allocation109_spill] sm:$0xff] %v7495_v63  ;;  %v1018_v57 = vmul.f32 %v7495_v63, %v7472_v37 }
 0x109   : > { %v1151_v58 = vadd.f32 %v1119_v46, %v7335_v26  ;;  %v1321_v15 = vmul.f32 %v7417_v30, %v7426_v23  ;;  %v849_v11 = vadd.f32 %v817_v17, %v647_v60  ;;  %v1422_v52 = vmul.f32 %v7423_v53, %v7428_v21 }
 0x10a   : > { %v1252_v44 = vadd.f32 %v1220_v14, %v7342_v28  ;;  %v1522_v55 = vmul.f32 %v7508_v36, %v7432_v19  ;;  %v949_v48 = vadd.f32 %v917_v33, %v747_v20  ;;  %v1019_v26 = vmul.f32 %v7495_v63, %v982_v7  ;;  %v7527_v33 = vld [vmem:[%s10975_s0 + $0xe] ss:$0 sm:$0xff] }
 0x10b   : > { %v1353_v46 = vadd.f32 %v1321_v15, %v1151_v58  ;;  %v1523_v60 = vmul.f32 %v7508_v36, %v7444_v24  ;;  %v7515_v17 = vadd.f32 %v918_v31, %v748_v45  ;;  %v1050_v28 = vadd.f32 %v1018_v57, %v848_v18  ;;  %v7545_v57 = vld [vmem:[%s10975_s0 + $0xd] ss:$0 sm:$0xff] }
 0x10c   : > { %v1454_v14 = vadd.f32 %v1422_v52, %v1252_v44  ;;  %v1554_v34 = vadd.f32 %v1522_v55, %v1352_v51  ;;  %v1623_v20 = vmul.f32 %v7520_v0, %v7451_v4  ;;  %v1825_v45 = vmul.f32 %v7527_v33, %v7410_v39  ;;  %v7534_v55 = vld [vmem:[%s10975_s0 + $0xf] ss:$0 sm:$0xff] }
 0x10d   : > { %v1555_v50 = vadd.f32 %v1523_v60, %v1353_v46  ;;  %v1926_v51 = vmul.f32 %v7534_v55, %v7412_v9  ;;  %v7538_v18 = vadd.f32 %v1019_v26, %v849_v11  ;;  %v1624_v31 = vmul.f32 %v7520_v0, %v7470_v35  ;;  %v7555_v11 = vld [vmem:[%s10975_s0 + $0x10] ss:$0 sm:$0xff]  ;;  %v7562_v46 = vld [vmem:[%s10975_s0 + $0x12] ss:$0 sm:$0xff] }
 0x10e   : > { %v1724_v58 = vmul.f32 %v7545_v57, %v7472_v37  ;;  %v1725_v15 = vmul.f32 %v7545_v57, %v982_v7  ;;  %v1857_v44 = vadd.f32 %v1825_v45, %v7355_v32  ;;  %v2027_v26 = vmul.f32 %v7555_v11, %v7426_v23  ;;  %v7571_v45 = vld [vmem:[%s10975_s0 + $0x11] ss:$0 sm:$0xff] }
 0x10f   : > { %v1958_v52 = vadd.f32 %v1926_v51, %v7361_v12  ;;  %v2228_v60 = vmul.f32 %v7562_v46, %v7432_v19  ;;  %v1655_v6 = vadd.f32 %v1623_v20, %v1453_v49  ;;  %v7566_v32 = vadd.f32 %v1624_v31, %v1454_v14  ;;  %v478_v49 = vld [vmem:[#allocation2 + $0x121] sm:$0xff]  ;;  %v7583_v31 = vld [vmem:[%s10975_s0 + $0x13] ss:$0 sm:$0xff] }
 0x110   : > { %v1756_v12 = vadd.f32 %v1724_v58, %v1554_v34  ;;  %v2128_v51 = vmul.f32 %v7571_v45, %v7428_v21  ;;  %v7575_v38 = vadd.f32 %v1725_v15, %v1555_v50  ;;  %v2059_v40 = vadd.f32 %v2027_v26, %v1857_v44  ;;  %v579_v14 = vld [vmem:[#allocation2 + $0x122] sm:$0xff] }
 0x111   : > { %v2229_v2 = vmul.f32 %v7562_v46, %v7444_v24  ;;  %v2260_v19 = vadd.f32 %v2228_v60, %v7455_v43  ;;  %v680_v34 = vld [vmem:[#allocation2 + $0x123] sm:$0xff]  ;;  %v2329_v58 = vmul.f32 %v7583_v31, %v7451_v4  ;;  %v2330_v50 = vmul.f32 %v7583_v31, %v7470_v35 }
 0x112   : > { %v2160_v20 = vadd.f32 %v2128_v51, %v1958_v52  ;;  %v2430_v24 = vmul.f32 %v6971_v56, %v7472_v37  ;;  %v2431_v43 = vmul.f32 %v6971_v56, %v982_v7  ;;  %v7594_v44 = vmul.f32 %v6978_v3, %v7410_v39 }
 0x113   : > { %v2261_v15 = vadd.f32 %v2229_v2, %v2059_v40  ;;  %v414_v52 = vmul.f32 %v7278_v8, %v377_v22  ;;  %v515_v26 = vmul.f32 %v7285_v42, %v478_v49  ;;  %v616_v60 = vmul.f32 %v7292_v61, %v579_v14 }
 0x114   : > { %11399 = vst [vmem:[#allocation110_spill] sm:$0xff] %v7594_v44  ;;  %v717_v4 = vmul.f32 %v7305_v29, %v680_v34  ;;  %v1120_v35 = vmul.f32 %v7389_v16, %v377_v22  ;;  %v7602_v51 = vadd.f32 %v2329_v58, %v7475_v25  ;;  %v7604_v2 = vadd.f32 %v2430_v24, %v2260_v19 }
 0x115   : > { %v7608_v56 = vmul.f32 %v6998_v13, %v7412_v9  ;;  %v1221_v40 = vmul.f32 %v7395_v47, %v478_v49  ;;  %v7611_v39 = vadd.f32 %v2330_v50, %v2160_v20  ;;  %v7615_v37 = vmul.f32 %v7011_v10, %v7426_v23  ;;  %v7627_v20 = vld [vmem:[#allocation2 + $0x129] sm:$0xff] }
 0x116   : > { %11400 = vst [vmem:[#allocation111_spill] sm:$0xff] %v7602_v51  ;;  %11401 = vst [vmem:[#allocation112_spill] sm:$0xff] %v7604_v2  ;;  %v7619_v7 = vmul.f32 %v7020_v1, %v7428_v21  ;;  %v1152_v25 = vadd.f32 %v1120_v35, %v949_v48  ;;  %v7621_v58 = vadd.f32 %v2431_v43, %v2261_v15  ;;  %v7625_v2 = vld [vmem:[#allocation2 + $0x128] sm:$0xff] }
 0x117   : > { %11402 = vst [vmem:[#allocation113_spill] sm:$0xff] %v7608_v56  ;;  %11403 = vst [vmem:[#allocation114_spill] sm:$0xff] %v7611_v39  ;;  %v1253_v19 = vadd.f32 %v1221_v40, %v1050_v28  ;;  %v1826_v24 = vmul.f32 %v7527_v33, %v377_v22  ;;  %v1927_v9 = vmul.f32 %v7534_v55, %v478_v49  ;;  %v7629_v50 = vld [vmem:[#allocation2 + $0x12a] sm:$0xff] }
 0x118   : > { %11404 = vst [vmem:[#allocation115_spill] sm:$0xff] %v7615_v37  ;;  %11405 = vst [vmem:[#allocation116_spill] sm:$0xff] %v7619_v7  ;;  %v648_v23 = vadd.f32 %v616_v60, %v414_v52  ;;  %v749_v39 = vadd.f32 %v717_v4, %v515_v26  ;;  %v1322_v51 = vmul.f32 %v7417_v30, %v579_v14  ;;  %v7633_v48 = vld [vmem:[#allocation2 + $0x12b] sm:$0xff] }
 0x119   : > { %11406 = vst [vmem:[#allocation117_spill] sm:$0xff] %v7621_v58  ;;  %v1423_v21 = vmul.f32 %v7423_v53, %v680_v34  ;;  %v1858_v15 = vadd.f32 %v1826_v24, %v1655_v6  ;;  %v1959_v28 = vadd.f32 %v1927_v9, %v1756_v12  ;;  %v2028_v43 = vmul.f32 %v7555_v11, %v579_v14  ;;  %v781_v40 = vld [vmem:[#allocation2 + $0x124] sm:$0xff]  ;;  %v782_v60 = vld [vmem:[#allocation2 + $0x12c] sm:$0xff] }
 0x11a   : > { %v2129_v35 = vmul.f32 %v7571_v45, %v680_v34  ;;  %v1354_v58 = vadd.f32 %v1322_v51, %v1152_v25  ;;  %v415_v7 = vmul.f32 %v7278_v8, %v7625_v2  ;;  %v516_v52 = vmul.f32 %v7285_v42, %v7627_v20  ;;  %v882_v25 = vld [vmem:[#allocation2 + $0x125] sm:$0xff] }
 0x11b   : > { %v617_v26 = vmul.f32 %v7292_v61, %v7629_v50  ;;  %v1455_v4 = vadd.f32 %v1423_v21, %v1253_v19  ;;  %v7644_v6 = vmul.f32 %v6978_v3, %v377_v22  ;;  %v7647_v12 = vmul.f32 %v6998_v13, %v478_v49  ;;  %v883_v19 = vld [vmem:[#allocation2 + $0x12d] sm:$0xff] }
 0x11c   : > { %v718_v51 = vmul.f32 %v7305_v29, %v7633_v48  ;;  %v7652_v24 = vmul.f32 %v7011_v10, %v579_v14  ;;  %v7655_v9 = vmul.f32 %v7020_v1, %v680_v34  ;;  %v818_v56 = vmul.f32 %v7466_v54, %v781_v40  ;;  %v983_v21 = vld [vmem:[#allocation2 + $0x126] sm:$0xff]  ;;  %v984_v49 = vld [vmem:[#allocation2 + $0x12e] sm:$0xff] }
 0x11d   : > { %11407 = vst [vmem:[#allocation118_spill] sm:$0xff] %v7644_v6  ;;  %11408 = vst [vmem:[#allocation119_spill] sm:$0xff] %v7647_v12  ;;  %v649_v37 = vadd.f32 %v617_v26, %v415_v7  ;;  %v2060_v3 = vadd.f32 %v2028_v43, %v1858_v15  ;;  %v2161_v22 = vadd.f32 %v2129_v35, %v1959_v28 }
 0x11e   : > { %11409 = vst [vmem:[#allocation120_spill] sm:$0xff] %v7652_v24  ;;  %11410 = vst [vmem:[#allocation121_spill] sm:$0xff] %v7655_v9  ;;  %v819_v13 = vmul.f32 %v7466_v54, %v782_v60  ;;  %v1121_v12 = vmul.f32 %v7389_v16, %v7625_v2  ;;  %v750_v6 = vadd.f32 %v718_v51, %v516_v52 }
 0x11f   : > { %v850_v44 = vadd.f32 %v818_v56, %v648_v23  ;;  %v919_v10 = vmul.f32 %v7484_v59, %v882_v25  ;;  %v1222_v1 = vmul.f32 %v7395_v47, %v7627_v20  ;;  %v920_v14 = vmul.f32 %v7484_v59, %v883_v19 }
 0x120   : > { %v1020_v34 = vmul.f32 %v7495_v63, %v983_v21  ;;  %v1153_v7 = vadd.f32 %v1121_v12, %v7515_v17  ;;  %v1323_v15 = vmul.f32 %v7417_v30, %v7629_v50  ;;  %v851_v28 = vadd.f32 %v819_v13, %v649_v37 }
 0x121   : > { %v1021_v43 = vmul.f32 %v7495_v63, %v984_v49  ;;  %v1254_v35 = vadd.f32 %v1222_v1, %v7538_v18  ;;  %v1424_v56 = vmul.f32 %v7423_v53, %v7633_v48  ;;  %v951_v23 = vadd.f32 %v919_v10, %v749_v39 }
 0x122   : > { %v1355_v52 = vadd.f32 %v1323_v15, %v1153_v7  ;;  %v1524_v26 = vmul.f32 %v7508_v36, %v781_v40  ;;  %v1525_v51 = vmul.f32 %v7508_v36, %v782_v60  ;;  %v7675_v9 = vadd.f32 %v920_v14, %v750_v6 }
 0x123   : > { %v1052_v17 = vadd.f32 %v1020_v34, %v850_v44  ;;  %v1456_v12 = vadd.f32 %v1424_v56, %v1254_v35  ;;  %v1827_v37 = vmul.f32 %v7527_v33, %v7625_v2  ;;  %v1625_v18 = vmul.f32 %v7520_v0, %v882_v25 }
 0x124   : > { %v1556_v13 = vadd.f32 %v1524_v26, %v1354_v58  ;;  %v1557_v24 = vadd.f32 %v1525_v51, %v1355_v52  ;;  %v1928_v1 = vmul.f32 %v7534_v55, %v7627_v20  ;;  %v7682_v39 = vadd.f32 %v1021_v43, %v851_v28  ;;  %v379_v26 = vld [vmem:[#allocation2 + $0x138] sm:$0xff] }
 0x125   : > { %v1626_v10 = vmul.f32 %v7520_v0, %v883_v19  ;;  %v1859_v7 = vadd.f32 %v1827_v37, %v7566_v32  ;;  %v2029_v44 = vmul.f32 %v7555_v11, %v7629_v50  ;;  %v1657_v6 = vadd.f32 %v1625_v18, %v1455_v4  ;;  %v581_v51 = vld [vmem:[#allocation2 + $0x13a] sm:$0xff] }
 0x126   : > { %v1726_v14 = vmul.f32 %v7545_v57, %v983_v21  ;;  %v1727_v58 = vmul.f32 %v7545_v57, %v984_v49  ;;  %v1960_v34 = vadd.f32 %v1928_v1, %v7575_v38  ;;  %v2130_v28 = vmul.f32 %v7571_v45, %v7633_v48 }
 0x127   : > { %v7691_v15 = vadd.f32 %v1626_v10, %v1456_v12  ;;  %v2061_v35 = vadd.f32 %v2029_v44, %v1859_v7  ;;  %v2230_v43 = vmul.f32 %v7562_v46, %v781_v40  ;;  %v2231_v52 = vmul.f32 %v7562_v46, %v782_v60  ;;  %v7704_v12 = vld [vmem:[%s10975_s0 + $0x14] ss:$0 sm:$0xff] }
 0x128   : > { %v1758_v56 = vadd.f32 %v1726_v14, %v1556_v13  ;;  %v7696_v32 = vadd.f32 %v1727_v58, %v1557_v24  ;;  %v2331_v4 = vmul.f32 %v7583_v31, %v882_v25  ;;  %v2162_v37 = vadd.f32 %v2130_v28, %v1960_v34  ;;  %v480_v13 = vld [vmem:[#allocation2 + $0x139] sm:$0xff]  ;;  %v7713_v25 = vld [vmem:[%s10975_s0 + $0x15] ss:$0 sm:$0xff] }
 0x129   : > { %v2262_v18 = vadd.f32 %v2230_v43, %v2060_v3  ;;  %v2332_v38 = vmul.f32 %v7583_v31, %v883_v19  ;;  %v2432_v40 = vmul.f32 %v7704_v12, %v983_v21  ;;  %v682_v24 = vld [vmem:[#allocation2 + $0x13b] sm:$0xff]  ;;  %v2263_v1 = vadd.f32 %v2231_v52, %v2061_v35  ;;  %v7722_v21 = vld [vmem:[%s10975_s0 + $0x16] ss:$0 sm:$0xff] }
 0x12a   : > { %v7707_v10 = vadd.f32 %v2331_v4, %v2161_v22  ;;  %v2433_v60 = vmul.f32 %v7704_v12, %v984_v49  ;;  %v7717_v19 = vmul.f32 %v7713_v25, %v7625_v2  ;;  %v7726_v3 = vmul.f32 %v7722_v21, %v7627_v20  ;;  %v7731_v22 = vld [vmem:[%s10975_s0 + $0x17] ss:$0 sm:$0xff] }
 0x12b   : > { %v7735_v49 = vmul.f32 %v7731_v22, %v7629_v50  ;;  %v416_v2 = vmul.f32 %v7278_v8, %v379_v26  ;;  %v618_v7 = vmul.f32 %v7292_v61, %v581_v51  ;;  %v517_v44 = vmul.f32 %v7285_v42, %v480_v13  ;;  %v7750_v50 = vld [vmem:[%s10975_s0 + $0x18] ss:$0 sm:$0xff] }
 0x12c   : > { %11411 = vst [vmem:[#allocation122_spill] sm:$0xff] %v7707_v10  ;;  %11412 = vst [vmem:[#allocation123_spill] sm:$0xff] %v7717_v19  ;;  %v719_v14 = vmul.f32 %v7305_v29, %v682_v24  ;;  %v1122_v20 = vmul.f32 %v7389_v16, %v379_v26  ;;  %v1223_v58 = vmul.f32 %v7395_v47, %v480_v13  ;;  %v985_v19 = vld [vmem:[#allocation2 + $0x13e] sm:$0xff] }
 0x12d   : > { %11413 = vst [vmem:[#allocation124_spill] sm:$0xff] %v7726_v3  ;;  %11414 = vst [vmem:[#allocation125_spill] sm:$0xff] %v7735_v49  ;;  %v7743_v34 = vadd.f32 %v2332_v38, %v2162_v37  ;;  %v7745_v35 = vadd.f32 %v2432_v40, %v2262_v18  ;;  %v7754_v28 = vmul.f32 %v7750_v50, %v7633_v48  ;;  %v7760_v38 = vld [vmem:[#allocation2 + $0x140] sm:$0xff] }
 0x12e   : > { %v1828_v43 = vmul.f32 %v7527_v33, %v379_v26  ;;  %v7757_v52 = vadd.f32 %v2433_v60, %v2263_v1  ;;  %v1154_v4 = vadd.f32 %v1122_v20, %v951_v23  ;;  %v1255_v10 = vadd.f32 %v1223_v58, %v1052_v17  ;;  %v7762_v18 = vld [vmem:[#allocation2 + $0x141] sm:$0xff] }
 0x12f   : > { %11415 = vst [vmem:[#allocation126_spill] sm:$0xff] %v7743_v34  ;;  %11416 = vst [vmem:[#allocation127_spill] sm:$0xff] %v7745_v35  ;;  %v1929_v37 = vmul.f32 %v7534_v55, %v480_v13  ;;  %v650_v40 = vadd.f32 %v618_v7, %v416_v2  ;;  %v1324_v34 = vmul.f32 %v7417_v30, %v581_v51  ;;  %v7766_v48 = vld [vmem:[#allocation2 + $0x142] sm:$0xff] }
 0x130   : > { %11417 = vst [vmem:[#allocation128_spill] sm:$0xff] %v7754_v28  ;;  %11418 = vst [vmem:[#allocation129_spill] sm:$0xff] %v7757_v52  ;;  %v1425_v35 = vmul.f32 %v7423_v53, %v682_v24  ;;  %v1860_v49 = vadd.f32 %v1828_v43, %v1657_v6  ;;  %v7768_v28 = vld [vmem:[#allocation2 + $0x143] sm:$0xff]  ;;  %v751_v1 = vadd.f32 %v719_v14, %v517_v44 }
 0x131   : > { %v1961_v60 = vadd.f32 %v1929_v37, %v1758_v56  ;;  %v2030_v23 = vmul.f32 %v7555_v11, %v581_v51  ;;  %v2131_v17 = vmul.f32 %v7571_v45, %v682_v24  ;;  %v783_v20 = vld [vmem:[#allocation2 + $0x13c] sm:$0xff]  ;;  %v7773_v58 = vmul.f32 %v7713_v25, %v379_v26  ;;  %v784_v43 = vld [vmem:[#allocation2 + $0x144] sm:$0xff] }
 0x132   : > { %v7776_v2 = vmul.f32 %v7722_v21, %v480_v13  ;;  %v417_v6 = vmul.f32 %v7278_v8, %v7760_v38  ;;  %v518_v7 = vmul.f32 %v7285_v42, %v7762_v18  ;;  %v1356_v44 = vadd.f32 %v1324_v34, %v1154_v4  ;;  %v884_v26 = vld [vmem:[#allocation2 + $0x13d] sm:$0xff]  ;;  %v885_v3 = vld [vmem:[#allocation2 + $0x145] sm:$0xff] }
 0x133   : > { %11419 = vst [vmem:[#allocation130_spill] sm:$0xff] %v7773_v58  ;;  %v1457_v56 = vadd.f32 %v1425_v35, %v1255_v10  ;;  %v619_v14 = vmul.f32 %v7292_v61, %v7766_v48  ;;  %v720_v37 = vmul.f32 %v7305_v29, %v7768_v28  ;;  %v2062_v52 = vadd.f32 %v2030_v23, %v1860_v49 }
 0x134   : > { %11420 = vst [vmem:[#allocation131_spill] sm:$0xff] %v7776_v2  ;;  %v7787_v13 = vmul.f32 %v7731_v22, %v581_v51  ;;  %v7790_v2 = vmul.f32 %v7750_v50, %v682_v24  ;;  %v820_v58 = vmul.f32 %v7466_v54, %v783_v20  ;;  %v2163_v34 = vadd.f32 %v2131_v17, %v1961_v60  ;;  %v986_v51 = vld [vmem:[#allocation2 + $0x146] sm:$0xff] }
 0x135   : > { %v651_v10 = vadd.f32 %v619_v14, %v417_v6  ;;  %v821_v35 = vmul.f32 %v7466_v54, %v784_v43  ;;  %v1123_v4 = vmul.f32 %v7389_v16, %v7760_v38  ;;  %v752_v27 = vadd.f32 %v720_v37, %v518_v7 }
 0x136   : > { %11421 = vst [vmem:[#allocation132_spill] sm:$0xff] %v7787_v13  ;;  %11422 = vst [vmem:[#allocation133_spill] sm:$0xff] %v7790_v2  ;;  %v852_v62 = vadd.f32 %v820_v58, %v650_v40  ;;  %v921_v49 = vmul.f32 %v7484_v59, %v884_v26  ;;  %v1224_v24 = vmul.f32 %v7395_v47, %v7762_v18 }
 0x137   : > { %v922_v23 = vmul.f32 %v7484_v59, %v885_v3  ;;  %v1022_v2 = vmul.f32 %v7495_v63, %v985_v19  ;;  %v1155_v60 = vadd.f32 %v1123_v4, %v7675_v9  ;;  %v1325_v17 = vmul.f32 %v7417_v30, %v7766_v48 }
 0x138   : > { %v853_v6 = vadd.f32 %v821_v35, %v651_v10  ;;  %v1256_v14 = vadd.f32 %v1224_v24, %v7682_v39  ;;  %v1426_v40 = vmul.f32 %v7423_v53, %v7768_v28  ;;  %v1526_v58 = vmul.f32 %v7508_v36, %v783_v20 }
 0x139   : > { %v953_v7 = vadd.f32 %v921_v49, %v751_v1  ;;  %v1023_v37 = vmul.f32 %v7495_v63, %v986_v51  ;;  %v1357_v13 = vadd.f32 %v1325_v17, %v1155_v60  ;;  %v1527_v5 = vmul.f32 %v7508_v36, %v784_v43 }
 0x13a   : > { %v7810_v41 = vadd.f32 %v922_v23, %v752_v27  ;;  %v1054_v9 = vadd.f32 %v1022_v2, %v852_v62  ;;  %v1458_v4 = vadd.f32 %v1426_v40, %v1256_v14  ;;  %v1558_v59 = vadd.f32 %v1526_v58, %v1356_v44 }
 0x13b   : > { %v1559_v54 = vadd.f32 %v1527_v5, %v1357_v13  ;;  %v1627_v10 = vmul.f32 %v7520_v0, %v884_v26  ;;  %v1829_v39 = vmul.f32 %v7527_v33, %v7760_v38  ;;  %v1930_v35 = vmul.f32 %v7534_v55, %v7762_v18 }
 0x13c   : > { %v7817_v1 = vadd.f32 %v1023_v37, %v853_v6  ;;  %v1628_v49 = vmul.f32 %v7520_v0, %v885_v3  ;;  %v1728_v24 = vmul.f32 %v7545_v57, %v985_v19  ;;  %v1729_v27 = vmul.f32 %v7545_v57, %v986_v51  ;;  %v381_v6 = vld [vmem:[#allocation2 + $0x150] sm:$0xff] }
 0x13d   : > { %v1861_v62 = vadd.f32 %v1829_v39, %v7691_v15  ;;  %v1962_v5 = vadd.f32 %v1930_v35, %v7696_v32  ;;  %v2031_v2 = vmul.f32 %v7555_v11, %v7766_v48  ;;  %v2232_v44 = vmul.f32 %v7562_v46, %v783_v20  ;;  %v482_v32 = vld [vmem:[#allocation2 + $0x151] sm:$0xff] }
 0x13e   : > { %v1659_v13 = vadd.f32 %v1627_v10, %v1457_v56  ;;  %v7827_v23 = vadd.f32 %v1628_v49, %v1458_v4  ;;  %v1760_v60 = vadd.f32 %v1728_v24, %v1558_v59  ;;  %v2132_v17 = vmul.f32 %v7571_v45, %v7768_v28  ;;  %v583_v37 = vld [vmem:[#allocation2 + $0x152] sm:$0xff] }
 0x13f   : > { %v7831_v14 = vadd.f32 %v1729_v27, %v1559_v54  ;;  %v2063_v40 = vadd.f32 %v2031_v2, %v1861_v62  ;;  %v2233_v15 = vmul.f32 %v7562_v46, %v784_v43  ;;  %v2264_v58 = vadd.f32 %v2232_v44, %v2062_v52  ;;  %v684_v39 = vld [vmem:[#allocation2 + $0x153] sm:$0xff] }
 0x140   : > { %v2164_v35 = vadd.f32 %v2132_v17, %v1962_v5  ;;  %v2333_v20 = vmul.f32 %v7583_v31, %v884_v26  ;;  %v2334_v56 = vmul.f32 %v7583_v31, %v885_v3  ;;  %v2434_v59 = vmul.f32 %v7704_v12, %v985_v19 }
 0x141   : > { %v2265_v4 = vadd.f32 %v2233_v15, %v2063_v40  ;;  %v2435_v10 = vmul.f32 %v7704_v12, %v986_v51  ;;  %v7840_v54 = vmul.f32 %v7713_v25, %v7760_v38  ;;  %v418_v43 = vmul.f32 %v7278_v8, %v381_v6  ;;  %v7870_v40 = vld [vmem:[#allocation2 + $0x158] sm:$0xff] }
 0x142   : > { %v519_v52 = vmul.f32 %v7285_v42, %v482_v32  ;;  %v620_v49 = vmul.f32 %v7292_v61, %v583_v37  ;;  %v721_v24 = vmul.f32 %v7305_v29, %v684_v39  ;;  %v1124_v26 = vmul.f32 %v7389_v16, %v381_v6  ;;  %v7872_v15 = vld [vmem:[#allocation2 + $0x159] sm:$0xff] }
 0x143   : > { %11423 = vst [vmem:[#allocation134_spill] sm:$0xff] %v7840_v54  ;;  %v7847_v3 = vadd.f32 %v2333_v20, %v2163_v34  ;;  %v7849_v19 = vadd.f32 %v2434_v59, %v2264_v58  ;;  %v7853_v51 = vmul.f32 %v7722_v21, %v7762_v18  ;;  %v1225_v38 = vmul.f32 %v7395_v47, %v482_v32  ;;  %v7874_v58 = vld [vmem:[#allocation2 + $0x15a] sm:$0xff] }
 0x144   : > { %v7856_v27 = vadd.f32 %v2334_v56, %v2164_v35  ;;  %v7860_v62 = vmul.f32 %v7731_v22, %v7766_v48  ;;  %v7864_v5 = vmul.f32 %v7750_v50, %v7768_v28  ;;  %v1156_v34 = vadd.f32 %v1124_v26, %v953_v7  ;;  %v7878_v7 = vld [vmem:[#allocation2 + $0x15b] sm:$0xff] }
 0x145   : > { %11424 = vst [vmem:[#allocation135_spill] sm:$0xff] %v7847_v3  ;;  %11425 = vst [vmem:[#allocation136_spill] sm:$0xff] %v7849_v19  ;;  %v7866_v2 = vadd.f32 %v2435_v10, %v2265_v4  ;;  %v1257_v44 = vadd.f32 %v1225_v38, %v1054_v9  ;;  %v1830_v17 = vmul.f32 %v7527_v33, %v381_v6  ;;  %v785_v10 = vld [vmem:[#allocation2 + $0x154] sm:$0xff] }
 0x146   : > { %11426 = vst [vmem:[#allocation137_spill] sm:$0xff] %v7853_v51  ;;  %11427 = vst [vmem:[#allocation138_spill] sm:$0xff] %v7856_v27  ;;  %v1931_v18 = vmul.f32 %v7534_v55, %v482_v32  ;;  %v652_v48 = vadd.f32 %v620_v49, %v418_v43  ;;  %v753_v35 = vadd.f32 %v721_v24, %v519_v52  ;;  %v786_v49 = vld [vmem:[#allocation2 + $0x15c] sm:$0xff]  ;;  %v11435_v27 = vld [vmem:[#allocation107_spill] sm:$0xff] }
 0x147   : > { %11428 = vst [vmem:[#allocation139_spill] sm:$0xff] %v7860_v62  ;;  %11429 = vst [vmem:[#allocation140_spill] sm:$0xff] %v7864_v5  ;;  %v1326_v20 = vmul.f32 %v7417_v30, %v583_v37  ;;  %v1427_v28 = vmul.f32 %v7423_v53, %v684_v39  ;;  %v1862_v56 = vadd.f32 %v1830_v17, %v1659_v13  ;;  %v886_v17 = vld [vmem:[#allocation2 + $0x155] sm:$0xff] }
 0x148   : > { %11430 = vst [vmem:[#allocation141_spill] sm:$0xff] %v7866_v2  ;;  %v1963_v9 = vadd.f32 %v1931_v18, %v1760_v60  ;;  %v2032_v59 = vmul.f32 %v7555_v11, %v583_v37  ;;  %v2133_v4 = vmul.f32 %v7571_v45, %v684_v39  ;;  %v419_v38 = vmul.f32 %v7278_v8, %v7870_v40 }
 0x149   : > { %v1358_v26 = vadd.f32 %v1326_v20, %v1156_v34  ;;  %v520_v43 = vmul.f32 %v7285_v42, %v7872_v15  ;;  %v621_v52 = vmul.f32 %v7292_v61, %v7874_v58  ;;  %v1459_v24 = vadd.f32 %v1427_v28, %v1257_v44  ;;  %v887_v44 = vld [vmem:[#allocation2 + $0x15d] sm:$0xff] }
 0x14a   : > { %v7889_v13 = vmul.f32 %v7713_v25, %v381_v6  ;;  %v7892_v60 = vmul.f32 %v7722_v21, %v482_v32  ;;  %v722_v34 = vmul.f32 %v7305_v29, %v7878_v7  ;;  %v7897_v18 = vmul.f32 %v7731_v22, %v583_v37  ;;  %v987_v28 = vld [vmem:[#allocation2 + $0x156] sm:$0xff] }
 0x14b   : > { %v7900_v20 = vmul.f32 %v7750_v50, %v684_v39  ;;  %v653_v2 = vadd.f32 %v621_v52, %v419_v38  ;;  %v822_v19 = vmul.f32 %v11435_v27, %v785_v10  ;;  %v2064_v6 = vadd.f32 %v2032_v59, %v1862_v56  ;;  %v11436_v37 = vld [vmem:[#allocation108_spill] sm:$0xff] }
 0x14c   : > { %11431 = vst [vmem:[#allocation142_spill] sm:$0xff] %v7889_v13  ;;  %11432 = vst [vmem:[#allocation143_spill] sm:$0xff] %v7892_v60  ;;  %v2165_v13 = vadd.f32 %v2133_v4, %v1963_v9  ;;  %v823_v32 = vmul.f32 %v11435_v27, %v786_v49  ;;  %v988_v60 = vld [vmem:[#allocation2 + $0x15e] sm:$0xff]  ;;  %v1125_v3 = vmul.f32 %v7389_v16, %v7870_v40 }
 0x14d   : > { %11433 = vst [vmem:[#allocation144_spill] sm:$0xff] %v7897_v18  ;;  %11434 = vst [vmem:[#allocation145_spill] sm:$0xff] %v7900_v20  ;;  %v754_v5 = vadd.f32 %v722_v34, %v520_v43  ;;  %v854_v62 = vadd.f32 %v822_v19, %v652_v48  ;;  %v923_v18 = vmul.f32 %v11436_v37, %v886_v17 }
 0x14e   : > { %v1226_v39 = vmul.f32 %v7395_v47, %v7872_v15  ;;  %v924_v38 = vmul.f32 %v11436_v37, %v887_v44  ;;  %v1024_v52 = vmul.f32 %v7495_v63, %v987_v28  ;;  %v1157_v56 = vadd.f32 %v1125_v3, %v7810_v41 }
 0x14f   : > { %v1327_v9 = vmul.f32 %v7417_v30, %v7874_v58  ;;  %v855_v59 = vadd.f32 %v823_v32, %v653_v2  ;;  %v1025_v4 = vmul.f32 %v7495_v63, %v988_v60  ;;  %v1428_v19 = vmul.f32 %v7423_v53, %v7878_v7 }
 0x150   : > { %v1258_v43 = vadd.f32 %v1226_v39, %v7817_v1  ;;  %v955_v48 = vadd.f32 %v923_v18, %v753_v35  ;;  %v1528_v20 = vmul.f32 %v7508_v36, %v785_v10  ;;  %v1529_v51 = vmul.f32 %v7508_v36, %v786_v49 }
 0x151   : > { %v1359_v34 = vadd.f32 %v1327_v9, %v1157_v56  ;;  %v7920_v54 = vadd.f32 %v924_v38, %v754_v5  ;;  %v1056_v41 = vadd.f32 %v1024_v52, %v854_v62  ;;  %v1831_v2 = vmul.f32 %v7527_v33, %v7870_v40 }
 0x152   : > { %v1460_v3 = vadd.f32 %v1428_v19, %v1258_v43  ;;  %v1560_v32 = vadd.f32 %v1528_v20, %v1358_v26  ;;  %v1629_v1 = vmul.f32 %v7520_v0, %v886_v17  ;;  %v1932_v39 = vmul.f32 %v7534_v55, %v7872_v15  ;;  %v383_v19 = vld [vmem:[#allocation2 + $0x168] sm:$0xff] }
 0x153   : > { %v1561_v63 = vadd.f32 %v1529_v51, %v1359_v34  ;;  %v7927_v35 = vadd.f32 %v1025_v4, %v855_v59  ;;  %v1630_v18 = vmul.f32 %v7520_v0, %v887_v44  ;;  %v1863_v56 = vadd.f32 %v1831_v2, %v7827_v23  ;;  %v585_v34 = vld [vmem:[#allocation2 + $0x16a] sm:$0xff] }
 0x154   : > { %v2033_v62 = vmul.f32 %v7555_v11, %v7874_v58  ;;  %v1661_v5 = vadd.f32 %v1629_v1, %v1459_v24  ;;  %v1730_v38 = vmul.f32 %v7545_v57, %v987_v28  ;;  %v1731_v26 = vmul.f32 %v7545_v57, %v988_v60 }
 0x155   : > { %v1964_v51 = vadd.f32 %v1932_v39, %v7831_v14  ;;  %v7936_v20 = vadd.f32 %v1630_v18, %v1460_v3  ;;  %v2134_v9 = vmul.f32 %v7571_v45, %v7878_v7  ;;  %v2234_v59 = vmul.f32 %v7562_v46, %v785_v10  ;;  %v484_v39 = vld [vmem:[#allocation2 + $0x169] sm:$0xff] }
 0x156   : > { %v2065_v52 = vadd.f32 %v2033_v62, %v1863_v56  ;;  %v1762_v4 = vadd.f32 %v1730_v38, %v1560_v32  ;;  %v7941_v23 = vadd.f32 %v1731_v26, %v1561_v63  ;;  %v2235_v43 = vmul.f32 %v7562_v46, %v786_v49  ;;  %v686_v18 = vld [vmem:[#allocation2 + $0x16b] sm:$0xff] }
 0x157   : > { %v2335_v24 = vmul.f32 %v7583_v31, %v886_v17  ;;  %v2166_v2 = vadd.f32 %v2134_v9, %v1964_v51  ;;  %v2266_v1 = vadd.f32 %v2234_v59, %v2064_v6  ;;  %v2336_v14 = vmul.f32 %v7583_v31, %v887_v44  ;;  %v7980_v26 = vld [vmem:[#allocation2 + $0x170] sm:$0xff] }
 0x158   : > { %v2436_v3 = vmul.f32 %v7704_v12, %v987_v28  ;;  %v2267_v56 = vadd.f32 %v2235_v43, %v2065_v52  ;;  %v2437_v63 = vmul.f32 %v7704_v12, %v988_v60  ;;  %v7952_v10 = vmul.f32 %v7713_v25, %v7870_v40  ;;  %v7982_v51 = vld [vmem:[#allocation2 + $0x171] sm:$0xff] }
 0x159   : > { %v7947_v62 = vadd.f32 %v2335_v24, %v2165_v13  ;;  %v7956_v49 = vmul.f32 %v7722_v21, %v7872_v15  ;;  %v7960_v17 = vmul.f32 %v7731_v22, %v7874_v58  ;;  %v420_v44 = vmul.f32 %v7278_v8, %v383_v19  ;;  %v7988_v24 = vld [vmem:[#allocation2 + $0x173] sm:$0xff] }
 0x15a   : > { %11438 = vst [vmem:[#allocation108_spill] sm:$0xff] %v7952_v10  ;;  %v622_v28 = vmul.f32 %v7292_v61, %v585_v34  ;;  %v521_v13 = vmul.f32 %v7285_v42, %v484_v39  ;;  %v723_v60 = vmul.f32 %v7305_v29, %v686_v18  ;;  %v1126_v6 = vmul.f32 %v7389_v16, %v383_v19 }
 0x15b   : > { %11437 = vst [vmem:[#allocation107_spill] sm:$0xff] %v7947_v62  ;;  %11439 = vst [vmem:[#allocation146_spill] sm:$0xff] %v7956_v49  ;;  %v1227_v40 = vmul.f32 %v7395_v47, %v484_v39  ;;  %v7968_v32 = vadd.f32 %v2336_v14, %v2166_v2  ;;  %v7970_v15 = vadd.f32 %v2436_v3, %v2266_v1  ;;  %v787_v14 = vld [vmem:[#allocation2 + $0x16c] sm:$0xff]  ;;  %v3083_v62 = vld [vmem:[#allocation2 + $0x56] sm:$0xff] }
 0x15c   : > { %11440 = vst [vmem:[#allocation147_spill] sm:$0xff] %v7960_v17  ;;  %v7974_v58 = vmul.f32 %v7750_v50, %v7878_v7  ;;  %v1832_v8 = vmul.f32 %v7527_v33, %v383_v19  ;;  %v7977_v38 = vadd.f32 %v2437_v63, %v2267_v56  ;;  %v1158_v61 = vadd.f32 %v1126_v6, %v955_v48  ;;  %v7986_v7 = vld [vmem:[#allocation2 + $0x172] sm:$0xff]  ;;  %v5663_v6 = vld [vmem:[%s10975_s0 + $0x3] ss:$0 sm:$0xff] }
 0x15d   : > { %11441 = vst [vmem:[#allocation148_spill] sm:$0xff] %v7968_v32  ;;  %11442 = vst [vmem:[#allocation149_spill] sm:$0xff] %v7970_v15  ;;  %v1259_v42 = vadd.f32 %v1227_v40, %v1056_v41  ;;  %v1933_v29 = vmul.f32 %v7534_v55, %v484_v39  ;;  %v654_v52 = vadd.f32 %v622_v28, %v420_v44  ;;  %v788_v28 = vld [vmem:[#allocation2 + $0x174] sm:$0xff] }
 0x15e   : > { %11443 = vst [vmem:[#allocation150_spill] sm:$0xff] %v7974_v58  ;;  %11444 = vst [vmem:[#allocation151_spill] sm:$0xff] %v7977_v38  ;;  %v1328_v9 = vmul.f32 %v7417_v30, %v585_v34  ;;  %v1429_v59 = vmul.f32 %v7423_v53, %v686_v18  ;;  %v1864_v43 = vadd.f32 %v1832_v8, %v1661_v5  ;;  %v5660_v5 = vld [vmem:[%s10975_s0] ss:$0 sm:$0xff]  ;;  %v888_v8 = vld [vmem:[#allocation2 + $0x16d] sm:$0xff] }
 0x15f   : > { %v755_v2 = vadd.f32 %v723_v60, %v521_v13  ;;  %v1965_v1 = vadd.f32 %v1933_v29, %v1762_v4  ;;  %v2034_v48 = vmul.f32 %v7555_v11, %v585_v34  ;;  %v2135_v41 = vmul.f32 %v7571_v45, %v686_v18  ;;  %v5661_v4 = vld [vmem:[%s10975_s0 + $0x1] ss:$0 sm:$0xff]  ;;  %v990_v32 = vld [vmem:[#allocation2 + $0x176] sm:$0xff]  ;;  %v3185_v58 = vld [vmem:[#allocation2 + $0x68] sm:$0xff] }
 0x160   : > { %v7993_v3 = vmul.f32 %v7713_v25, %v383_v19  ;;  %v7996_v56 = vmul.f32 %v7722_v21, %v484_v39  ;;  %v421_v63 = vmul.f32 %v5660_v5, %v7980_v26  ;;  %v522_v44 = vmul.f32 %v5661_v4, %v7982_v51  ;;  %v5662_v19 = vld [vmem:[%s10975_s0 + $0x2] ss:$0 sm:$0xff] }
 0x161   : > { %v1360_v13 = vadd.f32 %v1328_v9, %v1158_v61  ;;  %v1461_v60 = vadd.f32 %v1429_v59, %v1259_v42  ;;  %v623_v39 = vmul.f32 %v5662_v19, %v7986_v7  ;;  %v724_v40 = vmul.f32 %v5663_v6, %v7988_v24  ;;  %v889_v9 = vld [vmem:[#allocation2 + $0x175] sm:$0xff] }
 0x162   : > { %11445 = vst [vmem:[#allocation152_spill] sm:$0xff] %v7993_v3  ;;  %11446 = vst [vmem:[#allocation153_spill] sm:$0xff] %v7996_v56  ;;  %v2066_v29 = vadd.f32 %v2034_v48, %v1864_v43  ;;  %v8015_v5 = vmul.f32 %v7731_v22, %v585_v34  ;;  %v8018_v61 = vmul.f32 %v7750_v50, %v686_v18  ;;  %v989_v59 = vld [vmem:[#allocation2 + $0x16e] sm:$0xff] }
 0x163   : > { %v824_v42 = vmul.f32 %v11435_v27, %v787_v14  ;;  %v2167_v4 = vadd.f32 %v2135_v41, %v1965_v1  ;;  %v655_v19 = vadd.f32 %v623_v39, %v421_v63  ;;  %v825_v38 = vmul.f32 %v11435_v27, %v788_v28 }
 0x164   : > { %11447 = vst [vmem:[#allocation154_spill] sm:$0xff] %v8015_v5  ;;  %11448 = vst [vmem:[#allocation155_spill] sm:$0xff] %v8018_v61  ;;  %v1127_v6 = vmul.f32 %v7389_v16, %v7980_v26  ;;  %v756_v56 = vadd.f32 %v724_v40, %v522_v44  ;;  %v925_v34 = vmul.f32 %v11436_v37, %v888_v8  ;;  %v11449_v61 = vld [vmem:[#allocation109_spill] sm:$0xff] }
 0x165   : > { %v856_v43 = vadd.f32 %v824_v42, %v654_v52  ;;  %v1228_v18 = vmul.f32 %v7395_v47, %v7982_v51  ;;  %v926_v48 = vmul.f32 %v11436_v37, %v889_v9  ;;  %v1026_v5 = vmul.f32 %v11449_v61, %v989_v59 }
 0x166   : > { %v1159_v1 = vadd.f32 %v1127_v6, %v7920_v54  ;;  %v1329_v27 = vmul.f32 %v7417_v30, %v7986_v7  ;;  %v857_v41 = vadd.f32 %v825_v38, %v655_v19  ;;  %v1027_v63 = vmul.f32 %v11449_v61, %v990_v32 }
 0x167   : > { %v1260_v44 = vadd.f32 %v1228_v18, %v7927_v35  ;;  %v1430_v52 = vmul.f32 %v7423_v53, %v7988_v24  ;;  %v957_v39 = vadd.f32 %v925_v34, %v755_v2  ;;  %v1530_v42 = vmul.f32 %v7508_v36, %v787_v14 }
 0x168   : > { %v1361_v40 = vadd.f32 %v1329_v27, %v1159_v1  ;;  %v1531_v37 = vmul.f32 %v7508_v36, %v788_v28  ;;  %v8038_v15 = vadd.f32 %v926_v48, %v756_v56  ;;  %v1058_v54 = vadd.f32 %v1026_v5, %v856_v43 }
 0x169   : > { %v1462_v6 = vadd.f32 %v1430_v52, %v1260_v44  ;;  %v1631_v3 = vmul.f32 %v7520_v0, %v888_v8  ;;  %v1562_v38 = vadd.f32 %v1530_v42, %v1360_v13  ;;  %v1833_v35 = vmul.f32 %v7527_v33, %v7980_v26  ;;  %v1091_v44 = vld [vmem:[#allocation2 + $0x180] sm:$0xff] }
 0x16a   : > { %v1563_v19 = vadd.f32 %v1531_v37, %v1361_v40  ;;  %v1934_v61 = vmul.f32 %v7534_v55, %v7982_v51  ;;  %v8045_v2 = vadd.f32 %v1027_v63, %v857_v41  ;;  %v1632_v34 = vmul.f32 %v7520_v0, %v889_v9  ;;  %v1293_v37 = vld [vmem:[#allocation2 + $0x182] sm:$0xff] }
 0x16b   : > { %v1732_v18 = vmul.f32 %v7545_v57, %v989_v59  ;;  %v2236_v56 = vmul.f32 %v7562_v46, %v787_v14  ;;  %v1733_v5 = vmul.f32 %v7545_v57, %v990_v32  ;;  %v1865_v43 = vadd.f32 %v1833_v35, %v7936_v20  ;;  %v1192_v20 = vld [vmem:[#allocation2 + $0x181] sm:$0xff] }
 0x16c   : > { %v1966_v13 = vadd.f32 %v1934_v61, %v7941_v23  ;;  %v2035_v48 = vmul.f32 %v7555_v11, %v7986_v7  ;;  %v1663_v1 = vadd.f32 %v1631_v3, %v1461_v60  ;;  %v8055_v27 = vadd.f32 %v1632_v34, %v1462_v6 }
 0x16d   : > { %v2136_v41 = vmul.f32 %v7571_v45, %v7988_v24  ;;  %v2268_v63 = vadd.f32 %v2236_v56, %v2066_v29  ;;  %v1764_v52 = vadd.f32 %v1732_v18, %v1562_v38  ;;  %v8059_v40 = vadd.f32 %v1733_v5, %v1563_v19  ;;  %v1394_v19 = vld [vmem:[#allocation2 + $0x183] sm:$0xff] }
 0x16e   : > { %v2067_v14 = vadd.f32 %v2035_v48, %v1865_v43  ;;  %v2237_v42 = vmul.f32 %v7562_v46, %v788_v28  ;;  %v2337_v35 = vmul.f32 %v7583_v31, %v888_v8  ;;  %v2338_v3 = vmul.f32 %v7583_v31, %v889_v9  ;;  %v1092_v18 = vld [vmem:[#allocation2 + $0x188] sm:$0xff] }
 0x16f   : > { %v2168_v23 = vadd.f32 %v2136_v41, %v1966_v13  ;;  %v2438_v60 = vmul.f32 %v7704_v12, %v989_v59  ;;  %v2439_v61 = vmul.f32 %v7704_v12, %v990_v32  ;;  %v8068_v29 = vmul.f32 %v7713_v25, %v7980_v26  ;;  %v1193_v5 = vld [vmem:[#allocation2 + $0x189] sm:$0xff] }
 0x170   : > { %v2269_v6 = vadd.f32 %v2237_v42, %v2067_v14  ;;  %v1128_v38 = vmul.f32 %v7389_v16, %v1091_v44  ;;  %v8071_v28 = vadd.f32 %v2337_v35, %v2167_v4  ;;  %v1229_v8 = vmul.f32 %v7395_v47, %v1192_v20  ;;  %v1294_v13 = vld [vmem:[#allocation2 + $0x18a] sm:$0xff] }
 0x171   : > { %11450 = vst [vmem:[#allocation109_spill] sm:$0xff] %v8068_v29  ;;  %v8073_v34 = vadd.f32 %v2438_v60, %v2268_v63  ;;  %v1330_v9 = vmul.f32 %v7417_v30, %v1293_v37  ;;  %v8079_v59 = vmul.f32 %v7722_v21, %v7982_v51  ;;  %v8083_v32 = vmul.f32 %v7731_v22, %v7986_v7  ;;  %v1495_v48 = vld [vmem:[#allocation2 + $0x184] sm:$0xff] }
 0x172   : > { %11451 = vst [vmem:[#allocation156_spill] sm:$0xff] %v8071_v28  ;;  %v1160_v26 = vadd.f32 %v1128_v38, %v957_v39  ;;  %v1834_v16 = vmul.f32 %v7527_v33, %v1091_v44  ;;  %v8086_v4 = vadd.f32 %v2338_v3, %v2168_v23  ;;  %v8090_v56 = vmul.f32 %v7750_v50, %v7988_v24  ;;  %v5665_v23 = vld [vmem:[%s10975_s0 + $0x8] ss:$0 sm:$0xff]  ;;  %v1395_v3 = vld [vmem:[#allocation2 + $0x18b] sm:$0xff]  ;;  %v11508_v28 = vld [vmem:[#allocation13_spill] sm:$0xff] }
 0x173   : > { %11452 = vst [vmem:[#allocation157_spill] sm:$0xff] %v8073_v34  ;;  %11453 = vst [vmem:[#allocation158_spill] sm:$0xff] %v8079_v59  ;;  %v1261_v47 = vadd.f32 %v1229_v8, %v1058_v54  ;;  %v1431_v30 = vmul.f32 %v7423_v53, %v1394_v19  ;;  %v8093_v51 = vadd.f32 %v2439_v61, %v2269_v6  ;;  %v5664_v53 = vld [vmem:[%s10975_s0 + $0x7] ss:$0 sm:$0xff]  ;;  %v8418_v34 = vld [vmem:[%s10975_s0 + $0x2e] ss:$0 sm:$0xff] }
 0x174   : > { %11454 = vst [vmem:[#allocation159_spill] sm:$0xff] %v8083_v32  ;;  %11455 = vst [vmem:[#allocation160_spill] sm:$0xff] %v8086_v4  ;;  %v1866_v43 = vadd.f32 %v1834_v16, %v1663_v1  ;;  %v1935_v7 = vmul.f32 %v7534_v55, %v1192_v20  ;;  %v2036_v39 = vmul.f32 %v7555_v11, %v1293_v37  ;;  %v1697_v38 = vld [vmem:[#allocation2 + $0x186] sm:$0xff]  ;;  %v1799_v4 = vld [vmem:[#allocation2 + $0x198] sm:$0xff] }
 0x175   : > { %11456 = vst [vmem:[#allocation161_spill] sm:$0xff] %v8090_v56  ;;  %11457 = vst [vmem:[#allocation162_spill] sm:$0xff] %v8093_v51  ;;  %v1362_v41 = vadd.f32 %v1330_v9, %v1160_v26  ;;  %v2137_v63 = vmul.f32 %v7571_v45, %v1394_v19  ;;  %v8099_v14 = vmul.f32 %v7713_v25, %v1091_v44  ;;  %v1596_v44 = vld [vmem:[#allocation2 + $0x185] sm:$0xff]  ;;  %v11509_v32 = vld [vmem:[#allocation7_spill] sm:$0xff] }
 0x176   : > { %v1129_v24 = vmul.f32 %v5664_v53, %v1092_v18  ;;  %v1967_v54 = vadd.f32 %v1935_v7, %v1764_v52  ;;  %v8105_v1 = vmul.f32 %v7722_v21, %v1192_v20  ;;  %v8108_v42 = vmul.f32 %v7731_v22, %v1293_v37  ;;  %v5666_v52 = vld [vmem:[%s10975_s0 + $0x9] ss:$0 sm:$0xff]  ;;  %v11510_v59 = vld [vmem:[#allocation16_spill] sm:$0xff] }
 0x177   : > { %11458 = vst [vmem:[#allocation163_spill] sm:$0xff] %v8099_v14  ;;  %v1230_v35 = vmul.f32 %v5665_v23, %v1193_v5  ;;  %v1463_v60 = vadd.f32 %v1431_v30, %v1261_v47  ;;  %v1331_v61 = vmul.f32 %v5666_v52, %v1294_v13  ;;  %v1532_v20 = vmul.f32 %v7508_v36, %v1495_v48  ;;  %v11507_v14 = vld [vmem:[#allocation6_spill] sm:$0xff] }
 0x178   : > { %11459 = vst [vmem:[#allocation164_spill] sm:$0xff] %v8105_v1  ;;  %11460 = vst [vmem:[#allocation165_spill] sm:$0xff] %v8108_v42  ;;  %v1161_v6 = vadd.f32 %v1129_v24, %v8038_v15  ;;  %v2068_v37 = vadd.f32 %v2036_v39, %v1866_v43  ;;  %v1835_v9 = vmul.f32 %v7527_v33, %v1092_v18  ;;  %v5667_v15 = vld [vmem:[%s10975_s0 + $0xa] ss:$0 sm:$0xff] }
 0x179   : > { %v1262_v8 = vadd.f32 %v1230_v35, %v8045_v2  ;;  %v1936_v26 = vmul.f32 %v7534_v55, %v1193_v5  ;;  %v8122_v16 = vmul.f32 %v7750_v50, %v1394_v19  ;;  %v1432_v47 = vmul.f32 %v5667_v15, %v1395_v3  ;;  %v1496_v55 = vld [vmem:[#allocation2 + $0x18c] sm:$0xff] }
 0x17a   : > { %v1564_v30 = vadd.f32 %v1532_v20, %v1362_v41  ;;  %v1633_v7 = vmul.f32 %v7520_v0, %v1596_v44  ;;  %v1734_v53 = vmul.f32 %v7545_v57, %v1697_v38  ;;  %v1867_v43 = vadd.f32 %v1835_v9, %v8055_v27  ;;  %v1597_v20 = vld [vmem:[#allocation2 + $0x18d] sm:$0xff] }
 0x17b   : > { %11461 = vst [vmem:[#allocation166_spill] sm:$0xff] %v8122_v16  ;;  %v1968_v2 = vadd.f32 %v1936_v26, %v8059_v40  ;;  %v2037_v39 = vmul.f32 %v7555_v11, %v1294_v13  ;;  %v2169_v24 = vadd.f32 %v2137_v63, %v1967_v54  ;;  %v1363_v19 = vadd.f32 %v1331_v61, %v1161_v6  ;;  %v1698_v11 = vld [vmem:[#allocation2 + $0x18e] sm:$0xff]  ;;  %v1900_v54 = vld [vmem:[#allocation2 + $0x199] sm:$0xff] }
 0x17c   : > { %v1665_v23 = vadd.f32 %v1633_v7, %v1463_v60  ;;  %v2138_v35 = vmul.f32 %v7571_v45, %v1395_v3  ;;  %v1464_v52 = vadd.f32 %v1432_v47, %v1262_v8  ;;  %v1766_v51 = vadd.f32 %v1734_v53, %v1564_v30  ;;  %v2001_v61 = vld [vmem:[#allocation2 + $0x19a] sm:$0xff] }
 0x17d   : > { %v2069_v15 = vadd.f32 %v2037_v39, %v1867_v43  ;;  %v2238_v41 = vmul.f32 %v7562_v46, %v1495_v48  ;;  %v2339_v16 = vmul.f32 %v7583_v31, %v1596_v44  ;;  %v2440_v27 = vmul.f32 %v7704_v12, %v1697_v38  ;;  %v1800_v47 = vld [vmem:[#allocation2 + $0x1a0] sm:$0xff] }
 0x17e   : > { %v8137_v40 = vmul.f32 %v7713_v25, %v1092_v18  ;;  %v1533_v63 = vmul.f32 %v7508_v36, %v1496_v55  ;;  %v2170_v60 = vadd.f32 %v2138_v35, %v1968_v2  ;;  %v8141_v6 = vmul.f32 %v7722_v21, %v1193_v5  ;;  %v5668_v5 = vld [vmem:[%s10975_s0 + $0xf] ss:$0 sm:$0xff]  ;;  %v1901_v7 = vld [vmem:[#allocation2 + $0x1a1] sm:$0xff]  ;;  %v5671_v35 = vld [vmem:[%s10975_s0 + $0xe] ss:$0 sm:$0xff] }
 0x17f   : > { %v2270_v45 = vadd.f32 %v2238_v41, %v2068_v37  ;;  %v2239_v48 = vmul.f32 %v7562_v46, %v1496_v55  ;;  %v8144_v8 = vadd.f32 %v2339_v16, %v2169_v24  ;;  %v1634_v38 = vmul.f32 %v7520_v0, %v1597_v20  ;;  %v2102_v46 = vld [vmem:[#allocation2 + $0x19b] sm:$0xff] }
 0x180   : > { %11462 = vst [vmem:[#allocation167_spill] sm:$0xff] %v8137_v40  ;;  %11463 = vst [vmem:[#allocation168_spill] sm:$0xff] %v8141_v6  ;;  %v1565_v44 = vadd.f32 %v1533_v63, %v1363_v19  ;;  %v1836_v18 = vmul.f32 %v7527_v33, %v1799_v4  ;;  %v8149_v9 = vmul.f32 %v7731_v22, %v1294_v13  ;;  %v5669_v33 = vld [vmem:[%s10975_s0 + $0x10] ss:$0 sm:$0xff]  ;;  %v2002_v39 = vld [vmem:[#allocation2 + $0x1a2] sm:$0xff] }
 0x181   : > { %11464 = vst [vmem:[#allocation169_spill] sm:$0xff] %v8144_v8  ;;  %v1735_v36 = vmul.f32 %v7545_v57, %v1698_v11  ;;  %v2271_v26 = vadd.f32 %v2239_v48, %v2069_v15  ;;  %v1937_v37 = vmul.f32 %v5668_v5, %v1900_v54  ;;  %v8156_v16 = vmul.f32 %v7750_v50, %v1395_v3  ;;  %v2203_v55 = vld [vmem:[#allocation2 + $0x19c] sm:$0xff]  ;;  %v5670_v19 = vld [vmem:[%s10975_s0 + $0x11] ss:$0 sm:$0xff]  ;;  %v8383_v8 = vld [vmem:[#allocation2 + $0x92] sm:$0xff] }
 0x182   : > { %11465 = vst [vmem:[#allocation170_spill] sm:$0xff] %v8149_v9  ;;  %v1666_v30 = vadd.f32 %v1634_v38, %v1464_v52  ;;  %v1868_v0 = vadd.f32 %v1836_v18, %v1665_v23  ;;  %v2038_v13 = vmul.f32 %v5669_v33, %v2001_v61  ;;  %v2340_v53 = vmul.f32 %v7583_v31, %v1597_v20  ;;  %v2103_v15 = vld [vmem:[#allocation2 + $0x1a3] sm:$0xff]  ;;  %v8406_v9 = vld [vmem:[#allocation2 + $0x93] sm:$0xff]  ;;  %v8411_v6 = vld [vmem:[%s10975_s0 + $0x2d] ss:$0 sm:$0xff] }
 0x183   : > { %11466 = vst [vmem:[#allocation171_spill] sm:$0xff] %v8156_v16  ;;  %v1767_v57 = vadd.f32 %v1735_v36, %v1565_v44  ;;  %v2441_v43 = vmul.f32 %v7704_v12, %v1698_v11  ;;  %v1969_v2 = vadd.f32 %v1937_v37, %v1766_v51  ;;  %v8163_v24 = vadd.f32 %v2440_v27, %v2270_v45  ;;  %v2204_v27 = vld [vmem:[#allocation2 + $0x1a4] sm:$0xff]  ;;  %v5672_v44 = vld [vmem:[%s10975_s0 + $0x12] ss:$0 sm:$0xff]  ;;  %v8413_v40 = vld [vmem:[#allocation2 + $0x94] sm:$0xff] }
 0x184   : > { %v2070_v3 = vadd.f32 %v2038_v13, %v1868_v0  ;;  %v2139_v23 = vmul.f32 %v5670_v19, %v2102_v46  ;;  %v1837_v52 = vmul.f32 %v5671_v35, %v1800_v47  ;;  %v8171_v31 = vadd.f32 %v2340_v53, %v2170_v60  ;;  %v2304_v11 = vld [vmem:[#allocation2 + $0x19d] sm:$0xff]  ;;  %v2305_v18 = vld [vmem:[#allocation2 + $0x1a5] sm:$0xff]  ;;  %11504 = vst [vmem:[#allocation197_spill] sm:$0xff] %v8383_v8 }
 0x185   : > { %11467 = vst [vmem:[#allocation172_spill] sm:$0xff] %v8163_v24  ;;  %v8173_v41 = vadd.f32 %v2441_v43, %v2271_v26  ;;  %v8176_v51 = vmul.f32 %v7713_v25, %v1799_v4  ;;  %v1938_v20 = vmul.f32 %v5668_v5, %v1901_v7  ;;  %v2039_v48 = vmul.f32 %v5669_v33, %v2002_v39  ;;  %v2405_v36 = vld [vmem:[#allocation2 + $0x19e] sm:$0xff]  ;;  %v2406_v37 = vld [vmem:[#allocation2 + $0x1a6] sm:$0xff]  ;;  %v5673_v33 = vld [vmem:[%s10975_s0 + $0x13] ss:$0 sm:$0xff] }
 0x186   : > { %11468 = vst [vmem:[#allocation173_spill] sm:$0xff] %v8171_v31  ;;  %v2171_v63 = vadd.f32 %v2139_v23, %v1969_v2  ;;  %v1869_v45 = vadd.f32 %v1837_v52, %v1666_v30  ;;  %v2240_v38 = vmul.f32 %v5672_v44, %v2203_v55  ;;  %v8182_v60 = vmul.f32 %v7722_v21, %v1900_v54  ;;  %v2607_v23 = vld [vmem:[#allocation2 + $0x1b1] sm:$0xff] }
 0x187   : > { %11469 = vst [vmem:[#allocation174_spill] sm:$0xff] %v8173_v41  ;;  %11470 = vst [vmem:[#allocation175_spill] sm:$0xff] %v8176_v51  ;;  %v8185_v26 = vmul.f32 %v7731_v22, %v2001_v61  ;;  %v1970_v4 = vadd.f32 %v1938_v20, %v1767_v57  ;;  %v2140_v5 = vmul.f32 %v5670_v19, %v2103_v15  ;;  %v2506_v61 = vld [vmem:[#allocation2 + $0x1b0] sm:$0xff]  ;;  %v8314_v41 = vld [vmem:[%s10975_s0 + $0x25] ss:$0 sm:$0xff] }
 0x188   : > { %11471 = vst [vmem:[#allocation176_spill] sm:$0xff] %v8182_v60  ;;  %v2071_v0 = vadd.f32 %v2039_v48, %v1869_v45  ;;  %v2241_v13 = vmul.f32 %v5672_v44, %v2204_v27  ;;  %v2272_v30 = vadd.f32 %v2240_v38, %v2070_v3  ;;  %v2341_v53 = vmul.f32 %v5673_v33, %v2304_v11  ;;  %v2708_v57 = vld [vmem:[#allocation2 + $0x1b2] sm:$0xff]  ;;  %v8208_v11 = vld [vmem:[%s10975_s0 + $0x1a] ss:$0 sm:$0xff]  ;;  %v2810_v38 = vld [vmem:[#allocation2 + $0x1bb] sm:$0xff] }
 0x189   : > { %11472 = vst [vmem:[#allocation177_spill] sm:$0xff] %v8185_v26  ;;  %v8191_v43 = vmul.f32 %v7750_v50, %v2102_v46  ;;  %v2172_v2 = vadd.f32 %v2140_v5, %v1970_v4  ;;  %v2342_v54 = vmul.f32 %v5673_v33, %v2305_v18  ;;  %v2442_v55 = vmul.f32 %v7704_v12, %v2405_v36  ;;  %v2809_v20 = vld [vmem:[#allocation2 + $0x1b3] sm:$0xff]  ;;  %v8224_v36 = vld [vmem:[%s10975_s0 + $0x1b] ss:$0 sm:$0xff]  ;;  %v3184_v4 = vld [vmem:[#allocation2 + $0x60] sm:$0xff] }
 0x18a   : > { %v2273_v19 = vadd.f32 %v2241_v13, %v2071_v0  ;;  %v8194_v35 = vadd.f32 %v2341_v53, %v2171_v63  ;;  %v2443_v3 = vmul.f32 %v7704_v12, %v2406_v37  ;;  %v8198_v52 = vmul.f32 %v7713_v25, %v1800_v47  ;;  %v2507_v27 = vld [vmem:[#allocation2 + $0x1b8] sm:$0xff]  ;;  %v3082_v18 = vld [vmem:[#allocation2 + $0x4e] sm:$0xff]  ;;  %v3386_v5 = vld [vmem:[#allocation2 + $0x62] sm:$0xff]  ;;  %11505 = vst [vmem:[#allocation198_spill] sm:$0xff] %v8406_v9 }
 0x18b   : > { %11473 = vst [vmem:[#allocation178_spill] sm:$0xff] %v8191_v43  ;;  %v8203_v46 = vld [vmem:[%s10975_s0 + $0x19] ss:$0 sm:$0xff]  ;;  %v8210_v45 = vadd.f32 %v2442_v55, %v2272_v30  ;;  %v8213_v63 = vmul.f32 %v7722_v21, %v1901_v7  ;;  %v8216_v12 = vmul.f32 %v7731_v22, %v2002_v39  ;;  %v8219_v47 = vmul.f32 %v7750_v50, %v2103_v15  ;;  %v2709_v44 = vld [vmem:[#allocation2 + $0x1ba] sm:$0xff]  ;;  %v3487_v53 = vld [vmem:[#allocation2 + $0x63] sm:$0xff] }
 0x18c   : > { %11474 = vst [vmem:[#allocation179_spill] sm:$0xff] %v8194_v35  ;;  %11475 = vst [vmem:[#allocation180_spill] sm:$0xff] %v8198_v52  ;;  %v2608_v48 = vld [vmem:[#allocation2 + $0x1b9] sm:$0xff]  ;;  %v3285_v39 = vld [vmem:[#allocation2 + $0x61] sm:$0xff]  ;;  %v8241_v0 = vadd.f32 %v2342_v54, %v2172_v2  ;;  %v8244_v13 = vmul.f32 %v7713_v25, %v2506_v61  ;;  %v8247_v30 = vmul.f32 %v7722_v21, %v2607_v23 }
 0x18d   : > { %11476 = vst [vmem:[#allocation181_spill] sm:$0xff] %v8210_v45  ;;  %11477 = vst [vmem:[#allocation182_spill] sm:$0xff] %v8213_v63  ;;  %v8229_v7 = vld [vmem:[%s10975_s0 + $0x1c] ss:$0 sm:$0xff]  ;;  %v8234_v15 = vld [vmem:[%s10975_s0 + $0x1d] ss:$0 sm:$0xff]  ;;  %v8250_v33 = vmul.f32 %v7731_v22, %v2708_v57  ;;  %v8263_v54 = vmul.f32 %v7750_v50, %v2809_v20  ;;  %v8266_v61 = vmul.f32 %v7713_v25, %v2507_v27 }
 0x18e   : > { %11478 = vst [vmem:[#allocation183_spill] sm:$0xff] %v8216_v12  ;;  %11479 = vst [vmem:[#allocation184_spill] sm:$0xff] %v8219_v47  ;;  %v8239_v37 = vld [vmem:[%s10975_s0 + $0x1e] ss:$0 sm:$0xff]  ;;  %v8255_v55 = vld [vmem:[%s10975_s0 + $0x1f] ss:$0 sm:$0xff]  ;;  %v2546_v56 = vadd.f32 %v11508_v28, %v11507_v14  ;;  %v2647_v29 = vadd.f32 %v11510_v59, %v11509_v32 }
 0x18f   : > { %11480 = vst [vmem:[#allocation185_spill] sm:$0xff] %v8241_v0  ;;  %11481 = vst [vmem:[#allocation186_spill] sm:$0xff] %v8244_v13  ;;  %v3588_v45 = vld [vmem:[#allocation2 + $0x64] sm:$0xff]  ;;  %v8260_v2 = vld [vmem:[%s10975_s0 + $0x20] ss:$0 sm:$0xff]  ;;  %v3524_v26 = vmul.f32 %v8255_v55, %v3487_v53 }
 0x190   : > { %11482 = vst [vmem:[#allocation187_spill] sm:$0xff] %v8247_v30  ;;  %11483 = vst [vmem:[#allocation188_spill] sm:$0xff] %v8250_v33  ;;  %v11486_v23 = vld [vmem:[#allocation10_spill] sm:$0xff]  ;;  %v11487_v57 = vld [vmem:[#allocation5_spill] sm:$0xff] }
 0x191   : > { %11484 = vst [vmem:[#allocation189_spill] sm:$0xff] %v8263_v54  ;;  %11485 = vst [vmem:[#allocation190_spill] sm:$0xff] %v8266_v61  ;;  %v2545_v0 = vadd.f32 %v11487_v57, %v11486_v23  ;;  %v11488_v33 = vld [vmem:[#allocation11_spill] sm:$0xff]  ;;  %v11489_v30 = vld [vmem:[#allocation9_spill] sm:$0xff]  ;;  %v8298_v23 = vadd.f32 %v2443_v3, %v2273_v19  ;;  %v8301_v57 = vmul.f32 %v7722_v21, %v2608_v48 }
 0x192   : > { %v2646_v13 = vadd.f32 %v11489_v30, %v11488_v33  ;;  %v3689_v35 = vld [vmem:[#allocation2 + $0x65] sm:$0xff]  ;;  %v8275_v47 = vld [vmem:[%s10975_s0 + $0x21] ss:$0 sm:$0xff]  ;;  %v8282_v20 = vld [vmem:[%s10975_s0 + $0x22] ss:$0 sm:$0xff]  ;;  %v8304_v61 = vmul.f32 %v7731_v22, %v2709_v44  ;;  %v8307_v54 = vmul.f32 %v7750_v50, %v2810_v38  ;;  %11506 = vst [vmem:[#allocation199_spill] sm:$0xff] %v8413_v40 }
 0x193   : > { %v8277_v12 = vld [vmem:[#allocation2 + $0x66] sm:$0xff]  ;;  %v8284_v25 = vld [vmem:[#allocation2 + $0x78] sm:$0xff]  ;;  %v8289_v27 = vld [vmem:[%s10975_s0 + $0x23] ss:$0 sm:$0xff]  ;;  %11491 = vst [vmem:[#allocation5_spill] sm:$0xff] %v8298_v23  ;;  %v3726_v60 = vmul.f32 %v8275_v47, %v3689_v35 }
 0x194   : > { %v8291_v30 = vld [vmem:[#allocation2 + $0x79] sm:$0xff]  ;;  %v8296_v33 = vld [vmem:[%s10975_s0 + $0x24] ss:$0 sm:$0xff]  ;;  %11492 = vst [vmem:[#allocation11_spill] sm:$0xff] %v8301_v57  ;;  %11493 = vst [vmem:[#allocation9_spill] sm:$0xff] %v8304_v61 }
 0x195   : > { %11490 = vst [vmem:[#allocation10_spill] sm:$0xff] %v8291_v30  ;;  %11494 = vst [vmem:[#allocation191_spill] sm:$0xff] %v8307_v54  ;;  %v8309_v63 = vld [vmem:[#allocation2 + $0x7a] sm:$0xff]  ;;  %v5674_v48 = vld [vmem:[#allocation2 + $0x4c] sm:$0xff]  ;;  %v4030_v53 = vmul.f32 %v8296_v33, %v8291_v30 }
 0x196   : > { %11495 = vst [vmem:[#allocation192_spill] sm:$0xff] %v8309_v63  ;;  %v8316_v52 = vld [vmem:[#allocation2 + $0x7b] sm:$0xff]  ;;  %v2917_v22 = vmul.f32 %v5674_v48, %v8203_v46  ;;  %v5675_v44 = vld [vmem:[#allocation2 + $0x4d] sm:$0xff]  ;;  %v8325_v38 = vld [vmem:[%s10975_s0 + $0x26] ss:$0 sm:$0xff]  ;;  %v8372_v24 = vmul.f32 %v8314_v41, %v8309_v63  ;;  %v8452_v63 = vmul.f32 %v8411_v6, %v8406_v9 }
 0x197   : > { %11496 = vst [vmem:[#allocation193_spill] sm:$0xff] %v8316_v52  ;;  %v11497_v19 = vld [vmem:[#allocation8_spill] sm:$0xff]  ;;  %v3018_v50 = vmul.f32 %v5675_v44, %v8208_v11  ;;  %v8332_v61 = vld [vmem:[%s10975_s0 + $0x27] ss:$0 sm:$0xff]  ;;  %v8343_v44 = vld [vmem:[%s10975_s0 + $0x28] ss:$0 sm:$0xff]  ;;  %v8376_v35 = vmul.f32 %v8325_v38, %v8316_v52 }
 0x198   : > { %v2747_v3 = vadd.f32 %v11497_v19, %v2545_v0  ;;  %v11498_v23 = vld [vmem:[#allocation12_spill] sm:$0xff]  ;;  %v3119_v0 = vmul.f32 %v8224_v36, %v3082_v18  ;;  %v3423_v19 = vmul.f32 %v8239_v37, %v3386_v5  ;;  %v3625_v18 = vmul.f32 %v8260_v2, %v3588_v45  ;;  %v8359_v5 = vld [vmem:[%s10975_s0 + $0x2a] ss:$0 sm:$0xff]  ;;  %v8381_v51 = vld [vmem:[%s10975_s0 + $0x2b] ss:$0 sm:$0xff] }
 0x199   : > { %v2848_v21 = vadd.f32 %v11498_v23, %v2646_v13  ;;  %v8327_v54 = vld [vmem:[#allocation2 + $0x7c] sm:$0xff]  ;;  %v3221_v13 = vmul.f32 %v8229_v7, %v3184_v4  ;;  %v3322_v23 = vmul.f32 %v8234_v15, %v3285_v39  ;;  %v8352_v4 = vld [vmem:[%s10975_s0 + $0x29] ss:$0 sm:$0xff]  ;;  %v8354_v39 = vld [vmem:[#allocation2 + $0x90] sm:$0xff]  ;;  %v3929_v45 = vmul.f32 %v8289_v27, %v8284_v25 }
 0x19a   : > { %11499 = vst [vmem:[#allocation8_spill] sm:$0xff] %v8327_v54  ;;  %v8338_v48 = vld [vmem:[#allocation2 + $0x7d] sm:$0xff]  ;;  %v2949_v31 = vadd.f32 %v2917_v22, %v2747_v3  ;;  %11502 = vst [vmem:[#allocation195_spill] sm:$0xff] %v8354_v39  ;;  %v3827_v3 = vmul.f32 %v8282_v20, %v8277_v12  ;;  %v8404_v16 = vmul.f32 %v8359_v5, %v8354_v39  ;;  %v5676_v59 = vld [vmem:[#allocation2 + $0x54] sm:$0xff] }
 0x19b   : > { %11500 = vst [vmem:[#allocation12_spill] sm:$0xff] %v8338_v48  ;;  %v8345_v57 = vld [vmem:[#allocation2 + $0x7e] sm:$0xff]  ;;  %v3050_v43 = vadd.f32 %v3018_v50, %v2848_v21  ;;  %v8368_v21 = vld [vmem:[#allocation2 + $0x91] sm:$0xff]  ;;  %v2918_v32 = vmul.f32 %v5676_v59, %v8203_v46  ;;  %v8456_v59 = vmul.f32 %v8418_v34, %v8413_v40 }
 0x19c   : > { %11501 = vst [vmem:[#allocation194_spill] sm:$0xff] %v8345_v57  ;;  %11503 = vst [vmem:[#allocation196_spill] sm:$0xff] %v8368_v21  ;;  %v3151_v22 = vadd.f32 %v3119_v0, %v2949_v31  ;;  %v8388_v31 = vld [vmem:[%s10975_s0 + $0x2c] ss:$0 sm:$0xff]  ;;  %v8396_v0 = vmul.f32 %v8343_v44, %v8338_v48  ;;  %v8426_v17 = vmul.f32 %v8381_v51, %v8368_v21  ;;  %v8439_v28 = vld [vmem:[#allocation2 + $0x96] sm:$0xff] }
 0x19d   : > { %v3253_v50 = vadd.f32 %v3221_v13, %v3050_v43  ;;  %v8392_v43 = vmul.f32 %v8332_v61, %v8327_v54  ;;  %v8400_v13 = vmul.f32 %v8352_v4, %v8345_v57  ;;  %11512 = vst [vmem:[#allocation13_spill] sm:$0xff] %v8439_v28  ;;  %v5677_v14 = vld [vmem:[#allocation2 + $0x55] sm:$0xff]  ;;  %v11514_v21 = vld [vmem:[#allocation18_spill] sm:$0xff] }
 0x19e   : > { %v3354_v42 = vadd.f32 %v3322_v23, %v3151_v22  ;;  %v8430_v23 = vmul.f32 %v8388_v31, %v8383_v8  ;;  %v8437_v22 = vld [vmem:[%s10975_s0 + $0x2f] ss:$0 sm:$0xff]  ;;  %v8446_v8 = vld [vmem:[%s10975_s0 + $0x30] ss:$0 sm:$0xff]  ;;  %v2748_v39 = vadd.f32 %v11514_v21, %v2546_v56 }
 0x19f   : > { %v3455_v1 = vadd.f32 %v3423_v19, %v3253_v50  ;;  %v8432_v19 = vld [vmem:[#allocation2 + $0x95] sm:$0xff]  ;;  %v3019_v50 = vmul.f32 %v5677_v14, %v8208_v11  ;;  %11513 = vst [vmem:[#allocation7_spill] sm:$0xff] %v8446_v8  ;;  %v3286_v54 = vld [vmem:[#allocation2 + $0x69] sm:$0xff]  ;;  %v8468_v40 = vmul.f32 %v8446_v8, %v8439_v28 }
 0x1a0   : > { %11511 = vst [vmem:[#allocation6_spill] sm:$0xff] %v8432_v19  ;;  %v3556_v49 = vadd.f32 %v3524_v26, %v3354_v42  ;;  %v11515_v57 = vld [vmem:[#allocation19_spill] sm:$0xff]  ;;  %v3222_v42 = vmul.f32 %v8229_v7, %v3185_v58  ;;  %v2950_v56 = vadd.f32 %v2918_v32, %v2748_v39  ;;  %v8464_v9 = vmul.f32 %v8437_v22, %v8432_v19  ;;  %v8476_v32 = vld [vmem:[#allocation2 + $0x82] sm:$0xff] }
 0x1a1   : > { %v3657_v10 = vadd.f32 %v3625_v18, %v3455_v1  ;;  %v2849_v48 = vadd.f32 %v11515_v57, %v2647_v29  ;;  %v3387_v52 = vld [vmem:[#allocation2 + $0x6a] sm:$0xff]  ;;  %v3120_v1 = vmul.f32 %v8224_v36, %v3083_v62  ;;  %v3323_v62 = vmul.f32 %v8234_v15, %v3286_v54  ;;  %11518 = vst [vmem:[#allocation19_spill] sm:$0xff] %v8476_v32 }
 0x1a2   : > { %v3488_v26 = vld [vmem:[#allocation2 + $0x6b] sm:$0xff]  ;;  %v3758_v18 = vadd.f32 %v3726_v60, %v3556_v49  ;;  %v3424_v58 = vmul.f32 %v8239_v37, %v3387_v52  ;;  %v8472_v49 = vld [vmem:[#allocation2 + $0x80] sm:$0xff] }
 0x1a3   : > { %v3859_v14 = vadd.f32 %v3827_v3, %v3657_v10  ;;  %v3051_v21 = vadd.f32 %v3019_v50, %v2849_v48  ;;  %v3589_v29 = vld [vmem:[#allocation2 + $0x6c] sm:$0xff]  ;;  %11516 = vst [vmem:[#allocation16_spill] sm:$0xff] %v8472_v49  ;;  %v3152_v48 = vadd.f32 %v3120_v1, %v2950_v56  ;;  %v8474_v3 = vld [vmem:[#allocation2 + $0x81] sm:$0xff]  ;;  %v3525_v19 = vmul.f32 %v8255_v55, %v3488_v26  ;;  %v8493_v26 = vld [vmem:[#allocation2 + $0x98] sm:$0xff] }
 0x1a4   : > { %v3690_v57 = vld [vmem:[#allocation2 + $0x6d] sm:$0xff]  ;;  %v3961_v10 = vadd.f32 %v3929_v45, %v3758_v18  ;;  %11517 = vst [vmem:[#allocation18_spill] sm:$0xff] %v8474_v3  ;;  %v8478_v50 = vld [vmem:[#allocation2 + $0x83] sm:$0xff]  ;;  %v3626_v28 = vmul.f32 %v8260_v2, %v3589_v29  ;;  %11523 = vst [vmem:[#allocation204_spill] sm:$0xff] %v8493_v26  ;;  %v3930_v56 = vmul.f32 %v8289_v27, %v8472_v49 }
 0x1a5   : > { %v8460_v30 = vld [vmem:[#allocation2 + $0x6e] sm:$0xff]  ;;  %v4062_v60 = vadd.f32 %v4030_v53, %v3859_v14  ;;  %v3254_v39 = vadd.f32 %v3222_v42, %v3051_v21  ;;  %11519 = vst [vmem:[#allocation200_spill] sm:$0xff] %v8478_v50  ;;  %v3727_v54 = vmul.f32 %v8275_v47, %v3690_v57  ;;  %v8485_v8 = vld [vmem:[#allocation2 + $0x84] sm:$0xff]  ;;  %v3355_v1 = vadd.f32 %v3323_v62, %v3152_v48 }
 0x1a6   : > { %v3828_v52 = vmul.f32 %v8282_v20, %v8460_v30  ;;  %11520 = vst [vmem:[#allocation201_spill] sm:$0xff] %v8485_v8  ;;  %v4163_v45 = vadd.f32 %v8372_v24, %v3961_v10  ;;  %v8489_v18 = vld [vmem:[#allocation2 + $0x85] sm:$0xff]  ;;  %v4031_v21 = vmul.f32 %v8296_v33, %v8474_v3  ;;  %v4132_v29 = vmul.f32 %v8314_v41, %v8476_v32  ;;  %v8505_v10 = vld [vmem:[#allocation2 + $0x99] sm:$0xff] }
 0x1a7   : > { %v4264_v53 = vadd.f32 %v8376_v35, %v4062_v60  ;;  %v3456_v42 = vadd.f32 %v3424_v58, %v3254_v39  ;;  %11521 = vst [vmem:[#allocation202_spill] sm:$0xff] %v8489_v18  ;;  %v8491_v14 = vld [vmem:[#allocation2 + $0x86] sm:$0xff]  ;;  %v4233_v24 = vmul.f32 %v8325_v38, %v8478_v50  ;;  %v3557_v62 = vadd.f32 %v3525_v19, %v3355_v1  ;;  %v8507_v60 = vld [vmem:[#allocation2 + $0x9a] sm:$0xff]  ;;  %v11528_v50 = vld [vmem:[#allocation15_spill] sm:$0xff] }
 0x1a8   : > { %11522 = vst [vmem:[#allocation203_spill] sm:$0xff] %v8491_v14  ;;  %v4365_v35 = vadd.f32 %v8392_v43, %v4163_v45  ;;  %11524 = vst [vmem:[#allocation205_spill] sm:$0xff] %v8505_v10  ;;  %v4334_v48 = vmul.f32 %v8332_v61, %v8485_v8  ;;  %v4435_v39 = vmul.f32 %v8343_v44, %v8489_v18  ;;  %v11527_v18 = vld [vmem:[#allocation21_spill] sm:$0xff] }
 0x1a9   : > { %v4466_v57 = vadd.f32 %v8396_v0, %v4264_v53  ;;  %v3658_v58 = vadd.f32 %v3626_v28, %v3456_v42  ;;  %11525 = vst [vmem:[#allocation206_spill] sm:$0xff] %v8507_v60  ;;  %v4536_v32 = vmul.f32 %v8352_v4, %v8491_v14  ;;  %v4638_v43 = vmul.f32 %v8359_v5, %v8493_v26  ;;  %v11526_v42 = vld [vmem:[#allocation14_spill] sm:$0xff] }
 0x1aa   : > { %v4567_v0 = vadd.f32 %v8400_v13, %v4365_v35  ;;  %v3759_v28 = vadd.f32 %v3727_v54, %v3557_v62  ;;  %v4739_v53 = vmul.f32 %v8381_v51, %v8505_v10  ;;  %v4840_v1 = vmul.f32 %v8388_v31, %v8507_v60  ;;  %v11529_v14 = vld [vmem:[#allocation22_spill] sm:$0xff]  ;;  %v11530_v54 = vld [vmem:[#allocation23_spill] sm:$0xff] }
 0x1ab   : > { %v4669_v19 = vadd.f32 %v8404_v16, %v4466_v57  ;;  %v3860_v45 = vadd.f32 %v3828_v52, %v3658_v58  ;;  %v2547_v8 = vadd.f32 %v11527_v18, %v11526_v42  ;;  %v2648_v3 = vadd.f32 %v11529_v14, %v11528_v50  ;;  %v11531_v57 = vld [vmem:[#allocation24_spill] sm:$0xff]  ;;  %v5678_v58 = vld [vmem:[#allocation2 + $0x64] sm:$0xff] }
 0x1ac   : > { %v4770_v26 = vadd.f32 %v8426_v17, %v4567_v0  ;;  %v3962_v35 = vadd.f32 %v3930_v56, %v3759_v28  ;;  %v2919_v10 = vmul.f32 %v5678_v58, %v8203_v46  ;;  %v5679_v60 = vld [vmem:[#allocation2 + $0x65] sm:$0xff]  ;;  %v8535_v0 = vld [vmem:[#allocation2 + $0x9b] sm:$0xff] }
 0x1ad   : > { %v4871_v13 = vadd.f32 %v8430_v23, %v4669_v19  ;;  %v4063_v16 = vadd.f32 %v4031_v21, %v3860_v45  ;;  %v2749_v52 = vadd.f32 %v11530_v54, %v2547_v8  ;;  %v2850_v62 = vadd.f32 %v11531_v57, %v2648_v3  ;;  %11532 = vst [vmem:[#allocation14_spill] sm:$0xff] %v8535_v0  ;;  %v11535_v19 = vld [vmem:[#allocation192_spill] sm:$0xff] }
 0x1ae   : > { %v3020_v49 = vmul.f32 %v5679_v60, %v8208_v11  ;;  %v4972_v18 = vadd.f32 %v8452_v63, %v4770_v26  ;;  %v4164_v14 = vadd.f32 %v4132_v29, %v3962_v35  ;;  %v3121_v8 = vmul.f32 %v8224_v36, %v8277_v12  ;;  %v8548_v29 = vld [vmem:[#allocation2 + $0x9c] sm:$0xff]  ;;  %v11534_v12 = vld [vmem:[#allocation10_spill] sm:$0xff] }
 0x1af   : > { %v5073_v50 = vadd.f32 %v8456_v59, %v4871_v13  ;;  %v4265_v17 = vadd.f32 %v4233_v24, %v4063_v16  ;;  %v2951_v23 = vadd.f32 %v2919_v10, %v2749_v52  ;;  %v3223_v3 = vmul.f32 %v8229_v7, %v8284_v25  ;;  %v8546_v59 = vld [vmem:[%s10976_s1] ss:$0 sm:$0xff]  ;;  %11533 = vst [vmem:[#allocation21_spill] sm:$0xff] %v8548_v29 }
 0x1b0   : > { %v3052_v56 = vadd.f32 %v3020_v49, %v2850_v62  ;;  %v5174_v21 = vadd.f32 %v8464_v9, %v4972_v18  ;;  %v4366_v63 = vadd.f32 %v4334_v48, %v4164_v14  ;;  %v3324_v10 = vmul.f32 %v8234_v15, %v11534_v12  ;;  %v8565_v45 = vld [vmem:[#allocation2 + $0x9e] sm:$0xff]  ;;  %v8588_v12 = vld [vmem:[#allocation2 + $0xa8] sm:$0xff] }
 0x1b1   : > { %v5275_v60 = vadd.f32 %v8468_v40, %v5073_v50  ;;  %v4467_v26 = vadd.f32 %v4435_v39, %v4265_v17  ;;  %v3153_v49 = vadd.f32 %v3121_v8, %v2951_v23  ;;  %v3425_v25 = vmul.f32 %v8239_v37, %v11535_v19  ;;  %v8563_v39 = vld [vmem:[#allocation2 + $0x9d] sm:$0xff]  ;;  %11537 = vst [vmem:[#allocation22_spill] sm:$0xff] %v8565_v45  ;;  %v11541_v17 = vld [vmem:[#allocation194_spill] sm:$0xff] }
 0x1b2   : > { %v3255_v24 = vadd.f32 %v3223_v3, %v3052_v56  ;;  %v4568_v28 = vadd.f32 %v4536_v32, %v4366_v63  ;;  %v4941_v48 = vmul.f32 %v8411_v6, %v8535_v0  ;;  %11536 = vst [vmem:[#allocation15_spill] sm:$0xff] %v8563_v39  ;;  %v11538_v35 = vld [vmem:[#allocation193_spill] sm:$0xff]  ;;  %v5042_v62 = vmul.f32 %v8418_v34, %v8548_v29  ;;  %v11540_v50 = vld [vmem:[#allocation12_spill] sm:$0xff]  ;;  %v11543_v63 = vld [vmem:[#allocation195_spill] sm:$0xff] }
 0x1b3   : > { %v5307_v9 = vadd.f32 %v5275_v60, %v5174_v21  ;;  %v4670_v40 = vadd.f32 %v4638_v43, %v4467_v26  ;;  %v3356_v42 = vadd.f32 %v3324_v10, %v3153_v49  ;;  %v3526_v32 = vmul.f32 %v8255_v55, %v11538_v35  ;;  %v11539_v43 = vld [vmem:[#allocation8_spill] sm:$0xff]  ;;  %11545 = vst [vmem:[#allocation23_spill] sm:$0xff] %v8588_v12  ;;  %v11549_v35 = vld [vmem:[#allocation199_spill] sm:$0xff] }
 0x1b4   : > { %v3457_v13 = vadd.f32 %v3425_v25, %v3255_v24  ;;  %v3627_v16 = vmul.f32 %v8260_v2, %v11539_v43  ;;  %v4771_v52 = vadd.f32 %v4739_v53, %v4568_v28  ;;  %v3728_v14 = vmul.f32 %v8275_v47, %v11540_v50  ;;  %v11542_v53 = vld [vmem:[#allocation7_spill] sm:$0xff]  ;;  %v11544_v49 = vld [vmem:[#allocation196_spill] sm:$0xff]  ;;  %v11546_v25 = vld [vmem:[#allocation197_spill] sm:$0xff] }
 0x1b5   : > { %v5345_v54 = vadd.f32 %v8546_v59, %v5307_v9  ;;  %v4872_v57 = vadd.f32 %v4840_v1, %v4670_v40  ;;  %v3558_v58 = vadd.f32 %v3526_v32, %v3356_v42  ;;  %v3829_v23 = vmul.f32 %v8282_v20, %v11541_v17  ;;  %v11547_v28 = vld [vmem:[#allocation198_spill] sm:$0xff]  ;;  %v11554_v50 = vld [vmem:[#allocation4_spill] sm:$0xff] }
 0x1b6   : > { %v3659_v18 = vadd.f32 %v3627_v16, %v3457_v13  ;;  %v4973_v56 = vadd.f32 %v4941_v48, %v4771_v52  ;;  %v5143_v3 = vmul.f32 %v8437_v22, %v8563_v39  ;;  %v5244_v1 = vmul.f32 %v11542_v53, %v8565_v45  ;;  %v8594_v48 = vld [vmem:[#allocation2 + $0xa9] sm:$0xff] }
 0x1b7   : > { %5377 = vst.msk [vmem:[%s8561_s5] sm:$0xff] %vm233_vm0, %v5345_v54  ;;  %v5074_v8 = vadd.f32 %v5042_v62, %v4872_v57  ;;  %v3760_v21 = vadd.f32 %v3728_v14, %v3558_v58  ;;  %v3931_v26 = vmul.f32 %v8289_v27, %v11543_v63  ;;  %v4032_v24 = vmul.f32 %v8296_v33, %v11544_v49  ;;  %v11550_v43 = vld [vmem:[#allocation6_spill] sm:$0xff]  ;;  %v11552_v57 = vld [vmem:[#allocation13_spill] sm:$0xff] }
 0x1b8   : > { %v3861_v60 = vadd.f32 %v3829_v23, %v3659_v18  ;;  %v5175_v10 = vadd.f32 %v5143_v3, %v4973_v56  ;;  %v4133_v9 = vmul.f32 %v8314_v41, %v11546_v25  ;;  %v4234_v40 = vmul.f32 %v8325_v38, %v11547_v28  ;;  %11548 = vst [vmem:[#allocation24_spill] sm:$0xff] %v8594_v48  ;;  %v8600_v54 = vld [vmem:[#allocation2 + $0xaa] sm:$0xff]  ;;  %v11553_v18 = vld [vmem:[#allocation17_spill] sm:$0xff] }
 0x1b9   : > { %v5276_v19 = vadd.f32 %v5244_v1, %v5074_v8  ;;  %v3963_v42 = vadd.f32 %v3931_v26, %v3760_v21  ;;  %v4335_v32 = vmul.f32 %v8332_v61, %v11549_v35  ;;  %v4436_v16 = vmul.f32 %v8343_v44, %v11550_v43  ;;  %11551 = vst [vmem:[#allocation10_spill] sm:$0xff] %v8600_v54  ;;  %v8610_v3 = vld [vmem:[#allocation2 + $0xab] sm:$0xff]  ;;  %v11557_v21 = vld [vmem:[#allocation20_spill] sm:$0xff] }
 0x1ba   : > { %v4064_v13 = vadd.f32 %v4032_v24, %v3861_v60  ;;  %v4537_v62 = vmul.f32 %v8352_v4, %v11552_v57  ;;  %v4639_v58 = vmul.f32 %v8359_v5, %v8588_v12  ;;  %v2548_v14 = vadd.f32 %v11554_v50, %v11553_v18  ;;  %11555 = vst [vmem:[#allocation192_spill] sm:$0xff] %v8610_v3  ;;  %v8612_v1 = vld [vmem:[#allocation2 + $0xac] sm:$0xff]  ;;  %v11558_v60 = vld [vmem:[#allocation25_spill] sm:$0xff] }
 0x1bb   : > { %v5308_v52 = vadd.f32 %v5276_v19, %v5175_v10  ;;  %v4165_v23 = vadd.f32 %v4133_v9, %v3963_v42  ;;  %v4740_v8 = vmul.f32 %v8381_v51, %v8594_v48  ;;  %11556 = vst [vmem:[#allocation193_spill] sm:$0xff] %v8612_v1  ;;  %v2649_v26 = vadd.f32 %v11558_v60, %v11557_v21  ;;  %v11559_v19 = vld [vmem:[#allocation26_spill] sm:$0xff]  ;;  %v11562_v12 = vld [vmem:[#allocation29_spill] sm:$0xff] }
 0x1bc   : > { %v4266_v56 = vadd.f32 %v4234_v40, %v4064_v13  ;;  %v4841_v10 = vmul.f32 %v8388_v31, %v8600_v54  ;;  %v2750_v18 = vadd.f32 %v11559_v19, %v2548_v14  ;;  %v5680_v9 = vld [vmem:[#allocation2 + $0x6c] sm:$0xff]  ;;  %v5043_v14 = vmul.f32 %v8418_v34, %v8612_v1  ;;  %v11563_v19 = vld [vmem:[#allocation16_spill] sm:$0xff] }
 0x1bd   : > { %v5346_v24 = vadd.f32 %v8546_v59, %v5308_v52  ;;  %v2920_v40 = vmul.f32 %v5680_v9, %v8203_v46  ;;  %v4367_v42 = vadd.f32 %v4335_v32, %v4165_v23  ;;  %v8621_v50 = vld [vmem:[#allocation2 + $0xad] sm:$0xff]  ;;  %v2851_v57 = vadd.f32 %v11562_v12, %v2649_v26 }
 0x1be   : > { %v4468_v13 = vadd.f32 %v4436_v16, %v4266_v56  ;;  %11560 = vst [vmem:[#allocation8_spill] sm:$0xff] %v8621_v50  ;;  %v8623_v48 = vld [vmem:[#allocation2 + $0xae] sm:$0xff]  ;;  %v4942_v52 = vmul.f32 %v8411_v6, %v8610_v3  ;;  %v3122_v32 = vmul.f32 %v8224_v36, %v8460_v30  ;;  %v3224_v12 = vmul.f32 %v8229_v7, %v11563_v19 }
 0x1bf   : > { %11561 = vst [vmem:[#allocation12_spill] sm:$0xff] %v8623_v48  ;;  %v5681_v43 = vld [vmem:[#allocation2 + $0x6d] sm:$0xff]  ;;  %5378 = vst.msk [vmem:[%s8561_s5 + $0x8] sm:$0xff] %vm233_vm0, %v5346_v24  ;;  %v2952_v60 = vadd.f32 %v2920_v40, %v2750_v18  ;;  %v4569_v16 = vadd.f32 %v4537_v62, %v4367_v42  ;;  %v5245_v26 = vmul.f32 %v11542_v53, %v8623_v48 }
 0x1c0   : > { %v3021_v21 = vmul.f32 %v5681_v43, %v8208_v11  ;;  %v4671_v23 = vadd.f32 %v4639_v58, %v4468_v13  ;;  %v5144_v43 = vmul.f32 %v8437_v22, %v8621_v50  ;;  %v11564_v9 = vld [vmem:[#allocation18_spill] sm:$0xff]  ;;  %v11565_v30 = vld [vmem:[#allocation19_spill] sm:$0xff]  ;;  %v11566_v58 = vld [vmem:[#allocation200_spill] sm:$0xff] }
 0x1c1   : > { %v3154_v24 = vadd.f32 %v3122_v32, %v2952_v60  ;;  %v3325_v1 = vmul.f32 %v8234_v15, %v11564_v9  ;;  %v4772_v18 = vadd.f32 %v4740_v8, %v4569_v16  ;;  %v3426_v62 = vmul.f32 %v8239_v37, %v11565_v30  ;;  %v11567_v13 = vld [vmem:[#allocation201_spill] sm:$0xff]  ;;  %v11568_v19 = vld [vmem:[#allocation202_spill] sm:$0xff]  ;;  %v11569_v9 = vld [vmem:[#allocation203_spill] sm:$0xff] }
 0x1c2   : > { %v3053_v56 = vadd.f32 %v3021_v21, %v2851_v57  ;;  %v4873_v40 = vadd.f32 %v4841_v10, %v4671_v23  ;;  %v3527_v42 = vmul.f32 %v8255_v55, %v11566_v58  ;;  %v3628_v21 = vmul.f32 %v8260_v2, %v11567_v13  ;;  %v11570_v16 = vld [vmem:[#allocation204_spill] sm:$0xff]  ;;  %v8659_v30 = vld [vmem:[#allocation2 + $0xb0] sm:$0xff] }
 0x1c3   : > { %v3357_v57 = vadd.f32 %v3325_v1, %v3154_v24  ;;  %v3729_v48 = vmul.f32 %v8275_v47, %v11568_v19  ;;  %v4974_v60 = vadd.f32 %v4942_v52, %v4772_v18  ;;  %v3830_v8 = vmul.f32 %v8282_v20, %v11569_v9  ;;  %v11571_v1 = vld [vmem:[#allocation205_spill] sm:$0xff]  ;;  %11573 = vst [vmem:[#allocation194_spill] sm:$0xff] %v8659_v30  ;;  %v8665_v18 = vld [vmem:[#allocation2 + $0xb2] sm:$0xff] }
 0x1c4   : > { %v3256_v3 = vadd.f32 %v3224_v12, %v3053_v56  ;;  %v5075_v32 = vadd.f32 %v5043_v14, %v4873_v40  ;;  %v3932_v23 = vmul.f32 %v8289_v27, %v11570_v16  ;;  %v4033_v56 = vmul.f32 %v8296_v33, %v11571_v1  ;;  %v11572_v12 = vld [vmem:[#allocation206_spill] sm:$0xff]  ;;  %v8663_v14 = vld [vmem:[#allocation2 + $0xb1] sm:$0xff]  ;;  %11575 = vst [vmem:[#allocation195_spill] sm:$0xff] %v8665_v18  ;;  %v5683_v16 = vld [vmem:[#allocation2 + $0x7d] sm:$0xff] }
 0x1c5   : > { %v3559_v10 = vadd.f32 %v3527_v42, %v3357_v57  ;;  %v4134_v24 = vmul.f32 %v8314_v41, %v11572_v12  ;;  %v5176_v58 = vadd.f32 %v5144_v43, %v4974_v60  ;;  %11574 = vst [vmem:[#allocation7_spill] sm:$0xff] %v8663_v14  ;;  %v4437_v57 = vmul.f32 %v8343_v44, %v8563_v39  ;;  %v11577_v19 = vld [vmem:[#allocation3_spill] sm:$0xff]  ;;  %v11585_v12 = vld [vmem:[#allocation34_spill] sm:$0xff] }
 0x1c6   : > { %v3458_v50 = vadd.f32 %v3426_v62, %v3256_v3  ;;  %v5277_v13 = vadd.f32 %v5245_v26, %v5075_v32  ;;  %v4235_v3 = vmul.f32 %v8325_v38, %v8535_v0  ;;  %v4336_v62 = vmul.f32 %v8332_v61, %v8548_v29  ;;  %v11578_v60 = vld [vmem:[#allocation31_spill] sm:$0xff]  ;;  %v11583_v0 = vld [vmem:[#allocation33_spill] sm:$0xff] }
 0x1c7   : > { %v3761_v40 = vadd.f32 %v3729_v48, %v3559_v10  ;;  %v4538_v42 = vmul.f32 %v8352_v4, %v8565_v45  ;;  %v2549_v32 = vadd.f32 %v11578_v60, %v11577_v19  ;;  %v4741_v10 = vmul.f32 %v8381_v51, %v8663_v14  ;;  %v8683_v29 = vld [vmem:[#allocation2 + $0xb4] sm:$0xff] }
 0x1c8   : > { %v3660_v52 = vadd.f32 %v3628_v21, %v3458_v50  ;;  %v5309_v43 = vadd.f32 %v5277_v13, %v5176_v58  ;;  %v4640_v50 = vmul.f32 %v8359_v5, %v8659_v30  ;;  %v8675_v21 = vld [vmem:[#allocation2 + $0xb3] sm:$0xff]  ;;  %v4842_v39 = vmul.f32 %v8388_v31, %v8665_v18  ;;  %11579 = vst [vmem:[#allocation197_spill] sm:$0xff] %v8683_v29 }
 0x1c9   : > { %11576 = vst [vmem:[#allocation196_spill] sm:$0xff] %v8675_v21  ;;  %v3964_v48 = vadd.f32 %v3932_v23, %v3761_v40  ;;  %v11580_v58 = vld [vmem:[#allocation28_spill] sm:$0xff]  ;;  %v2751_v19 = vadd.f32 %v11583_v0, %v2549_v32  ;;  %v4943_v14 = vmul.f32 %v8411_v6, %v8675_v21  ;;  %v5044_v0 = vmul.f32 %v8418_v34, %v8683_v29 }
 0x1ca   : > { %v3862_v26 = vadd.f32 %v3830_v8, %v3660_v52  ;;  %v11581_v8 = vld [vmem:[#allocation32_spill] sm:$0xff]  ;;  %v5347_v52 = vadd.f32 %v8546_v59, %v5309_v43 }
 0x1cb   : > { %v2650_v13 = vadd.f32 %v11581_v8, %v11580_v58  ;;  %v8688_v45 = vld [vmem:[#allocation2 + $0xb5] sm:$0xff]  ;;  %v4166_v60 = vadd.f32 %v4134_v24, %v3964_v48  ;;  %v3022_v58 = vmul.f32 %v5683_v16, %v8208_v11  ;;  %v3123_v24 = vmul.f32 %v8224_v36, %v11541_v17 }
 0x1cc   : > { %v4065_v30 = vadd.f32 %v4033_v56, %v3862_v26  ;;  %11582 = vst [vmem:[#allocation198_spill] sm:$0xff] %v8688_v45  ;;  %v5682_v23 = vld [vmem:[#allocation2 + $0x7c] sm:$0xff]  ;;  %5379 = vst.msk [vmem:[%s8561_s5 + $0x10] sm:$0xff] %vm233_vm0, %v5347_v52  ;;  %v5145_v32 = vmul.f32 %v8437_v22, %v8688_v45  ;;  %v3427_v17 = vmul.f32 %v8239_v37, %v11546_v25 }
 0x1cd   : > { %v2921_v40 = vmul.f32 %v5682_v23, %v8203_v46  ;;  %v8694_v18 = vld [vmem:[#allocation2 + $0xb6] sm:$0xff]  ;;  %v2852_v1 = vadd.f32 %v11585_v12, %v2650_v13  ;;  %v4368_v26 = vadd.f32 %v4336_v62, %v4166_v60  ;;  %v3225_v12 = vmul.f32 %v8229_v7, %v11543_v63 }
 0x1ce   : > { %11584 = vst [vmem:[#allocation199_spill] sm:$0xff] %v8694_v18  ;;  %v4267_v56 = vadd.f32 %v4235_v3, %v4065_v30  ;;  %v5246_v16 = vmul.f32 %v11542_v53, %v8694_v18  ;;  %v3326_v3 = vmul.f32 %v8234_v15, %v11544_v49  ;;  %v3528_v62 = vmul.f32 %v8255_v55, %v11547_v28 }
 0x1cf   : > { %v2953_v43 = vadd.f32 %v2921_v40, %v2751_v19  ;;  %v3054_v48 = vadd.f32 %v3022_v58, %v2852_v1  ;;  %v4570_v13 = vadd.f32 %v4538_v42, %v4368_v26  ;;  %v3629_v63 = vmul.f32 %v8260_v2, %v11549_v35  ;;  %v11587_v58 = vld [vmem:[#allocation13_spill] sm:$0xff]  ;;  %v11588_v42 = vld [vmem:[#allocation23_spill] sm:$0xff] }
 0x1d0   : > { %v4469_v8 = vadd.f32 %v4437_v57, %v4267_v56  ;;  %v11586_v57 = vld [vmem:[#allocation6_spill] sm:$0xff]  ;;  %v3831_v49 = vmul.f32 %v8282_v20, %v11587_v58  ;;  %v3933_v56 = vmul.f32 %v8289_v27, %v11588_v42  ;;  %v8728_v35 = vld [vmem:[#allocation2 + $0xc0] sm:$0xff] }
 0x1d1   : > { %v3155_v30 = vadd.f32 %v3123_v24, %v2953_v43  ;;  %v3257_v52 = vadd.f32 %v3225_v12, %v3054_v48  ;;  %v3730_v23 = vmul.f32 %v8275_v47, %v11586_v57  ;;  %v4773_v40 = vadd.f32 %v4741_v10, %v4570_v13  ;;  %v11589_v24 = vld [vmem:[#allocation24_spill] sm:$0xff]  ;;  %11590 = vst [vmem:[#allocation17_spill] sm:$0xff] %v8728_v35  ;;  %v8730_v26 = vld [vmem:[#allocation2 + $0xc1] sm:$0xff] }
 0x1d2   : > { %v4672_v1 = vadd.f32 %v4640_v50, %v4469_v8  ;;  %v4034_v28 = vmul.f32 %v8296_v33, %v11589_v24  ;;  %v4135_v50 = vmul.f32 %v8314_v41, %v8600_v54  ;;  %11591 = vst [vmem:[#allocation4_spill] sm:$0xff] %v8730_v26  ;;  %v11592_v12 = vld [vmem:[#allocation192_spill] sm:$0xff]  ;;  %v5684_v24 = vld [vmem:[#allocation2 + $0x84] sm:$0xff] }
 0x1d3   : > { %v3358_v19 = vadd.f32 %v3326_v3, %v3155_v30  ;;  %v3459_v60 = vadd.f32 %v3427_v17, %v3257_v52  ;;  %v4975_v10 = vadd.f32 %v4943_v14, %v4773_v40  ;;  %v4236_v8 = vmul.f32 %v8325_v38, %v11592_v12  ;;  %v11593_v30 = vld [vmem:[#allocation193_spill] sm:$0xff]  ;;  %v11594_v52 = vld [vmem:[#allocation8_spill] sm:$0xff]  ;;  %v11597_v40 = vld [vmem:[#allocation27_spill] sm:$0xff] }
 0x1d4   : > { %v4874_v25 = vadd.f32 %v4842_v39, %v4672_v1  ;;  %v4337_v3 = vmul.f32 %v8332_v61, %v11593_v30  ;;  %v4438_v17 = vmul.f32 %v8343_v44, %v11594_v52  ;;  %v4641_v14 = vmul.f32 %v8359_v5, %v8728_v35  ;;  %v11600_v52 = vld [vmem:[#allocation30_spill] sm:$0xff] }
 0x1d5   : > { %v3560_v43 = vadd.f32 %v3528_v62, %v3358_v19  ;;  %v3661_v48 = vadd.f32 %v3629_v63, %v3459_v60  ;;  %v11595_v62 = vld [vmem:[#allocation12_spill] sm:$0xff]  ;;  %v8740_v19 = vld [vmem:[#allocation2 + $0xc2] sm:$0xff]  ;;  %v4742_v63 = vmul.f32 %v8381_v51, %v8730_v26  ;;  %v11598_v60 = vld [vmem:[#allocation35_spill] sm:$0xff]  ;;  %v2922_v26 = vmul.f32 %v5684_v24, %v8203_v46 }
 0x1d6   : > { %v5076_v39 = vadd.f32 %v5044_v0, %v4874_v25  ;;  %v4539_v1 = vmul.f32 %v8352_v4, %v11595_v62  ;;  %11596 = vst [vmem:[#allocation20_spill] sm:$0xff] %v8740_v19  ;;  %v2550_v30 = vadd.f32 %v11598_v60, %v11597_v40  ;;  %v5177_v0 = vadd.f32 %v5145_v32, %v4975_v10  ;;  %v11601_v12 = vld [vmem:[#allocation38_spill] sm:$0xff]  ;;  %v11604_v32 = vld [vmem:[#allocation41_spill] sm:$0xff] }
 0x1d7   : > { %v3762_v13 = vadd.f32 %v3730_v23, %v3560_v43  ;;  %v3863_v57 = vadd.f32 %v3831_v49, %v3661_v48  ;;  %v8748_v43 = vld [vmem:[#allocation2 + $0xc3] sm:$0xff]  ;;  %v2651_v62 = vadd.f32 %v11601_v12, %v11600_v52  ;;  %v4843_v49 = vmul.f32 %v8388_v31, %v8740_v19  ;;  %v11602_v48 = vld [vmem:[#allocation40_spill] sm:$0xff] }
 0x1d8   : > { %v5278_v23 = vadd.f32 %v5246_v16, %v5076_v39  ;;  %11599 = vst [vmem:[#allocation25_spill] sm:$0xff] %v8748_v43  ;;  %v2752_v35 = vadd.f32 %v11602_v48, %v2550_v30  ;;  %v8756_v40 = vld [vmem:[#allocation2 + $0xc4] sm:$0xff]  ;;  %v3124_v24 = vmul.f32 %v8224_v36, %v11569_v9 }
 0x1d9   : > { %v3965_v25 = vadd.f32 %v3933_v56, %v3762_v13  ;;  %v4066_v54 = vadd.f32 %v4034_v28, %v3863_v57  ;;  %11603 = vst [vmem:[#allocation26_spill] sm:$0xff] %v8756_v40  ;;  %v2853_v16 = vadd.f32 %v11604_v32, %v2651_v62  ;;  %v5685_v56 = vld [vmem:[#allocation2 + $0x85] sm:$0xff]  ;;  %v4944_v28 = vmul.f32 %v8411_v6, %v8748_v43  ;;  %v11607_v57 = vld [vmem:[#allocation204_spill] sm:$0xff] }
 0x1da   : > { %v5310_v42 = vadd.f32 %v5278_v23, %v5177_v0  ;;  %v3023_v10 = vmul.f32 %v5685_v56, %v8208_v11  ;;  %v8762_v39 = vld [vmem:[#allocation2 + $0xc5] sm:$0xff]  ;;  %v2954_v30 = vadd.f32 %v2922_v26, %v2752_v35  ;;  %v3226_v60 = vmul.f32 %v8229_v7, %v11607_v57 }
 0x1db   : > { %v4167_v58 = vadd.f32 %v4135_v50, %v3965_v25  ;;  %v4268_v12 = vadd.f32 %v4236_v8, %v4066_v54  ;;  %11605 = vst [vmem:[#allocation29_spill] sm:$0xff] %v8762_v39  ;;  %v8767_v52 = vld [vmem:[#allocation2 + $0xc6] sm:$0xff]  ;;  %v5045_v54 = vmul.f32 %v8418_v34, %v8756_v40 }
 0x1dc   : > { %v5348_v50 = vadd.f32 %v8546_v59, %v5310_v42  ;;  %11606 = vst [vmem:[#allocation16_spill] sm:$0xff] %v8767_v52  ;;  %v3055_v62 = vadd.f32 %v3023_v10, %v2853_v16  ;;  %v3156_v8 = vadd.f32 %v3124_v24, %v2954_v30  ;;  %v11608_v23 = vld [vmem:[#allocation205_spill] sm:$0xff]  ;;  %v11609_v26 = vld [vmem:[#allocation206_spill] sm:$0xff]  ;;  %v11612_v30 = vld [vmem:[#allocation15_spill] sm:$0xff] }
 0x1dd   : > { %v4369_v13 = vadd.f32 %v4337_v3, %v4167_v58  ;;  %v4470_v0 = vadd.f32 %v4438_v17, %v4268_v12  ;;  %v3327_v35 = vmul.f32 %v8234_v15, %v11608_v23  ;;  %v5146_v58 = vmul.f32 %v8437_v22, %v8762_v39  ;;  %v11610_v32 = vld [vmem:[#allocation14_spill] sm:$0xff]  ;;  %v11611_v12 = vld [vmem:[#allocation21_spill] sm:$0xff]  ;;  %v11615_v23 = vld [vmem:[#allocation7_spill] sm:$0xff] }
 0x1de   : > { %5380 = vst.msk [vmem:[%s8561_s5 + $0x18] sm:$0xff] %vm233_vm0, %v5348_v50  ;;  %v3258_v42 = vadd.f32 %v3226_v60, %v3055_v62  ;;  %v3428_v3 = vmul.f32 %v8239_v37, %v11609_v26  ;;  %v5247_v17 = vmul.f32 %v11542_v53, %v8767_v52  ;;  %v3529_v16 = vmul.f32 %v8255_v55, %v11610_v32  ;;  %v11613_v62 = vld [vmem:[#allocation22_spill] sm:$0xff] }
 0x1df   : > { %v4571_v9 = vadd.f32 %v4539_v1, %v4369_v13  ;;  %v4673_v25 = vadd.f32 %v4641_v14, %v4470_v0  ;;  %v3359_v48 = vadd.f32 %v3327_v35, %v3156_v8  ;;  %v3630_v1 = vmul.f32 %v8260_v2, %v11611_v12  ;;  %v11614_v57 = vld [vmem:[#allocation194_spill] sm:$0xff]  ;;  %v11616_v35 = vld [vmem:[#allocation195_spill] sm:$0xff] }
 0x1e0   : > { %v3460_v10 = vadd.f32 %v3428_v3, %v3258_v42  ;;  %v3731_v24 = vmul.f32 %v8275_v47, %v11612_v30  ;;  %v3832_v14 = vmul.f32 %v8282_v20, %v11613_v62  ;;  %v3934_v60 = vmul.f32 %v8289_v27, %v11614_v57  ;;  %v8797_v42 = vld [vmem:[#allocation2 + $0xc8] sm:$0xff] }
 0x1e1   : > { %v4774_v56 = vadd.f32 %v4742_v63, %v4571_v9  ;;  %v4875_v50 = vadd.f32 %v4843_v49, %v4673_v25  ;;  %v3561_v13 = vadd.f32 %v3529_v16, %v3359_v48  ;;  %v4035_v63 = vmul.f32 %v8296_v33, %v11615_v23  ;;  %11617 = vst [vmem:[#allocation18_spill] sm:$0xff] %v8797_v42  ;;  %v8803_v48 = vld [vmem:[#allocation2 + $0xc9] sm:$0xff] }
 0x1e2   : > { %v3662_v8 = vadd.f32 %v3630_v1, %v3460_v10  ;;  %v4136_v9 = vmul.f32 %v8314_v41, %v11616_v35  ;;  %v4237_v49 = vmul.f32 %v8325_v38, %v8675_v21  ;;  %v4338_v25 = vmul.f32 %v8332_v61, %v8683_v29  ;;  %11618 = vst [vmem:[#allocation19_spill] sm:$0xff] %v8803_v48  ;;  %v8813_v30 = vld [vmem:[#allocation2 + $0xcb] sm:$0xff] }
 0x1e3   : > { %v4976_v0 = vadd.f32 %v4944_v28, %v4774_v56  ;;  %v5077_v26 = vadd.f32 %v5045_v54, %v4875_v50  ;;  %v3763_v3 = vadd.f32 %v3731_v24, %v3561_v13  ;;  %v8805_v28 = vld [vmem:[#allocation2 + $0xca] sm:$0xff]  ;;  %v4439_v56 = vmul.f32 %v8343_v44, %v8688_v45  ;;  %v11620_v24 = vld [vmem:[#allocation36_spill] sm:$0xff] }
 0x1e4   : > { %11619 = vst [vmem:[#allocation200_spill] sm:$0xff] %v8805_v28  ;;  %v3864_v16 = vadd.f32 %v3832_v14, %v3662_v8  ;;  %v4540_v10 = vmul.f32 %v8352_v4, %v8694_v18  ;;  %v4642_v1 = vmul.f32 %v8359_v5, %v8797_v42  ;;  %v11621_v50 = vld [vmem:[#allocation43_spill] sm:$0xff]  ;;  %v4844_v14 = vmul.f32 %v8388_v31, %v8805_v28  ;;  %v11623_v8 = vld [vmem:[#allocation44_spill] sm:$0xff] }
 0x1e5   : > { %v5178_v32 = vadd.f32 %v5146_v58, %v4976_v0  ;;  %v5279_v54 = vadd.f32 %v5247_v17, %v5077_v26  ;;  %v3966_v12 = vadd.f32 %v3934_v60, %v3763_v3  ;;  %v2551_v13 = vadd.f32 %v11621_v50, %v11620_v24  ;;  %v11622_v0 = vld [vmem:[#allocation37_spill] sm:$0xff]  ;;  %v8823_v26 = vld [vmem:[#allocation2 + $0xcc] sm:$0xff]  ;;  %v5686_v45 = vld [vmem:[#allocation2 + $0x94] sm:$0xff] }
 0x1e6   : > { %v4067_v29 = vadd.f32 %v4035_v63, %v3864_v16  ;;  %v4743_v58 = vmul.f32 %v8381_v51, %v8803_v48  ;;  %v2652_v18 = vadd.f32 %v11623_v8, %v11622_v0  ;;  %v11624_v3 = vld [vmem:[#allocation45_spill] sm:$0xff]  ;;  %v2923_v21 = vmul.f32 %v5686_v45, %v8203_v46  ;;  %v8829_v24 = vld [vmem:[#allocation2 + $0xcd] sm:$0xff]  ;;  %v5687_v48 = vld [vmem:[#allocation2 + $0x95] sm:$0xff] }
 0x1e7   : > { %v5311_v17 = vadd.f32 %v5279_v54, %v5178_v32  ;;  %v4168_v60 = vadd.f32 %v4136_v9, %v3966_v12  ;;  %v2753_v42 = vadd.f32 %v11624_v3, %v2551_v13  ;;  %v4945_v16 = vmul.f32 %v8411_v6, %v8813_v30  ;;  %11625 = vst [vmem:[#allocation201_spill] sm:$0xff] %v8829_v24  ;;  %v11626_v50 = vld [vmem:[#allocation46_spill] sm:$0xff]  ;;  %v11628_v0 = vld [vmem:[#allocation13_spill] sm:$0xff]  ;;  %v11629_v3 = vld [vmem:[#allocation23_spill] sm:$0xff] }
 0x1e8   : > { %v4269_v63 = vadd.f32 %v4237_v49, %v4067_v29  ;;  %v2854_v28 = vadd.f32 %v11626_v50, %v2652_v18  ;;  %v3024_v32 = vmul.f32 %v5687_v48, %v8208_v11  ;;  %v8834_v12 = vld [vmem:[#allocation2 + $0xce] sm:$0xff]  ;;  %v3125_v45 = vmul.f32 %v8224_v36, %v11628_v0 }
 0x1e9   : > { %v5349_v9 = vadd.f32 %v8546_v59, %v5311_v17  ;;  %v4370_v54 = vadd.f32 %v4338_v25, %v4168_v60  ;;  %11627 = vst [vmem:[#allocation202_spill] sm:$0xff] %v8834_v12  ;;  %v2955_v13 = vadd.f32 %v2923_v21, %v2753_v42  ;;  %v5046_v49 = vmul.f32 %v8418_v34, %v8823_v26  ;;  %v11630_v60 = vld [vmem:[#allocation24_spill] sm:$0xff]  ;;  %v11631_v50 = vld [vmem:[#allocation10_spill] sm:$0xff] }
 0x1ea   : > { %v4471_v29 = vadd.f32 %v4439_v56, %v4269_v63  ;;  %v3056_v8 = vadd.f32 %v3024_v32, %v2854_v28  ;;  %v3227_v18 = vmul.f32 %v8229_v7, %v11629_v3  ;;  %v5147_v25 = vmul.f32 %v8437_v22, %v8829_v24  ;;  %v11632_v3 = vld [vmem:[#allocation192_spill] sm:$0xff] }
 0x1eb   : > { %5381 = vst.msk [vmem:[%s8561_s5 + $0x20] sm:$0xff] %vm233_vm0, %v5349_v9  ;;  %v4572_v48 = vadd.f32 %v4540_v10, %v4370_v54  ;;  %v3157_v17 = vadd.f32 %v3125_v45, %v2955_v13  ;;  %v3328_v21 = vmul.f32 %v8234_v15, %v11630_v60  ;;  %v5248_v56 = vmul.f32 %v11542_v53, %v8834_v12  ;;  %v11633_v9 = vld [vmem:[#allocation193_spill] sm:$0xff]  ;;  %v11634_v24 = vld [vmem:[#allocation8_spill] sm:$0xff] }
 0x1ec   : > { %v4674_v42 = vadd.f32 %v4642_v1, %v4471_v29  ;;  %v3259_v63 = vadd.f32 %v3227_v18, %v3056_v8  ;;  %v3429_v28 = vmul.f32 %v8239_v37, %v11631_v50  ;;  %v3530_v10 = vmul.f32 %v8255_v55, %v11632_v3  ;;  %v11635_v29 = vld [vmem:[#allocation12_spill] sm:$0xff]  ;;  %v11636_v12 = vld [vmem:[#allocation17_spill] sm:$0xff] }
 0x1ed   : > { %v4775_v32 = vadd.f32 %v4743_v58, %v4572_v48  ;;  %v3360_v0 = vadd.f32 %v3328_v21, %v3157_v17  ;;  %v3631_v54 = vmul.f32 %v8260_v2, %v11633_v9  ;;  %v3732_v1 = vmul.f32 %v8275_v47, %v11634_v24  ;;  %v11637_v48 = vld [vmem:[#allocation4_spill] sm:$0xff] }
 0x1ee   : > { %v4876_v13 = vadd.f32 %v4844_v14, %v4674_v42  ;;  %v3461_v45 = vadd.f32 %v3429_v28, %v3259_v63  ;;  %v3833_v60 = vmul.f32 %v8282_v20, %v11635_v29  ;;  %v3935_v58 = vmul.f32 %v8289_v27, %v11636_v12  ;;  %v8864_v21 = vld [vmem:[#allocation2 + $0xd8] sm:$0xff] }
 0x1ef   : > { %v4977_v8 = vadd.f32 %v4945_v16, %v4775_v32  ;;  %v3562_v18 = vadd.f32 %v3530_v10, %v3360_v0  ;;  %v4036_v17 = vmul.f32 %v8296_v33, %v11637_v48  ;;  %11638 = vst [vmem:[#allocation203_spill] sm:$0xff] %v8864_v21  ;;  %v4137_v14 = vmul.f32 %v8314_v41, %v8740_v19  ;;  %v8870_v42 = vld [vmem:[#allocation2 + $0xd9] sm:$0xff] }
 0x1f0   : > { %v5078_v50 = vadd.f32 %v5046_v49, %v4876_v13  ;;  %v3663_v3 = vadd.f32 %v3631_v54, %v3461_v45  ;;  %v4238_v24 = vmul.f32 %v8325_v38, %v8748_v43  ;;  %11639 = vst [vmem:[#allocation3_spill] sm:$0xff] %v8870_v42  ;;  %v4339_v28 = vmul.f32 %v8332_v61, %v8756_v40  ;;  %v8876_v0 = vld [vmem:[#allocation2 + $0xda] sm:$0xff] }
 0x1f1   : > { %v5179_v16 = vadd.f32 %v5147_v25, %v4977_v8  ;;  %v3764_v63 = vadd.f32 %v3732_v1, %v3562_v18  ;;  %v4440_v32 = vmul.f32 %v8343_v44, %v8762_v39  ;;  %11640 = vst [vmem:[#allocation31_spill] sm:$0xff] %v8876_v0  ;;  %v4541_v9 = vmul.f32 %v8352_v4, %v8767_v52  ;;  %v8884_v45 = vld [vmem:[#allocation2 + $0xdb] sm:$0xff]  ;;  %v11642_v1 = vld [vmem:[#allocation39_spill] sm:$0xff]  ;;  %v11644_v39 = vld [vmem:[#allocation42_spill] sm:$0xff] }
 0x1f2   : > { %v5280_v49 = vadd.f32 %v5248_v56, %v5078_v50  ;;  %v3865_v10 = vadd.f32 %v3833_v60, %v3663_v3  ;;  %v4643_v54 = vmul.f32 %v8359_v5, %v8864_v21  ;;  %v4744_v25 = vmul.f32 %v8381_v51, %v8870_v42  ;;  %11641 = vst [vmem:[#allocation28_spill] sm:$0xff] %v8884_v45  ;;  %v11643_v8 = vld [vmem:[#allocation51_spill] sm:$0xff]  ;;  %v11645_v40 = vld [vmem:[#allocation52_spill] sm:$0xff]  ;;  %v11648_v52 = vld [vmem:[#allocation53_spill] sm:$0xff] }
 0x1f3   : > { %v3967_v13 = vadd.f32 %v3935_v58, %v3764_v63  ;;  %v2552_v18 = vadd.f32 %v11643_v8, %v11642_v1  ;;  %v2653_v43 = vadd.f32 %v11645_v40, %v11644_v39  ;;  %v4845_v50 = vmul.f32 %v8388_v31, %v8876_v0  ;;  %v5688_v3 = vld [vmem:[#allocation2 + $0x9c] sm:$0xff] }
 0x1f4   : > { %v5312_v56 = vadd.f32 %v5280_v49, %v5179_v16  ;;  %v4068_v60 = vadd.f32 %v4036_v17, %v3865_v10  ;;  %v2924_v21 = vmul.f32 %v5688_v3, %v8203_v46  ;;  %v8893_v63 = vld [vmem:[#allocation2 + $0xdc] sm:$0xff]  ;;  %v4946_v16 = vmul.f32 %v8411_v6, %v8884_v45 }
 0x1f5   : > { %v4169_v58 = vadd.f32 %v4137_v14, %v3967_v13  ;;  %11646 = vst [vmem:[#allocation32_spill] sm:$0xff] %v8893_v63  ;;  %v8895_v42 = vld [vmem:[#allocation2 + $0xdd] sm:$0xff]  ;;  %v2754_v19 = vadd.f32 %v11648_v52, %v2552_v18  ;;  %v3126_v46 = vmul.f32 %v8224_v36, %v11613_v62  ;;  %v5047_v52 = vmul.f32 %v8418_v34, %v8893_v63 }
 0x1f6   : > { %11647 = vst [vmem:[#allocation33_spill] sm:$0xff] %v8895_v42  ;;  %v11649_v1 = vld [vmem:[#allocation56_spill] sm:$0xff]  ;;  %v5350_v39 = vadd.f32 %v8546_v59, %v5312_v56  ;;  %v4270_v17 = vadd.f32 %v4238_v24, %v4068_v60  ;;  %v3329_v36 = vmul.f32 %v8234_v15, %v11615_v23  ;;  %v11652_v18 = vld [vmem:[#allocation197_spill] sm:$0xff]  ;;  %v11653_v15 = vld [vmem:[#allocation198_spill] sm:$0xff] }
 0x1f7   : > { %v2855_v8 = vadd.f32 %v11649_v1, %v2653_v43  ;;  %v5689_v48 = vld [vmem:[#allocation2 + $0x9d] sm:$0xff]  ;;  %v4371_v14 = vadd.f32 %v4339_v28, %v4169_v58  ;;  %v2956_v10 = vadd.f32 %v2924_v21, %v2754_v19  ;;  %v3228_v43 = vmul.f32 %v8229_v7, %v11614_v57  ;;  %v11654_v1 = vld [vmem:[#allocation199_spill] sm:$0xff] }
 0x1f8   : > { %v3025_v40 = vmul.f32 %v5689_v48, %v8208_v11  ;;  %v8905_v49 = vld [vmem:[#allocation2 + $0xde] sm:$0xff]  ;;  %5382 = vst.msk [vmem:[%s8561_s5 + $0x28] sm:$0xff] %vm233_vm0, %v5350_v39  ;;  %v4472_v11 = vadd.f32 %v4440_v32, %v4270_v17  ;;  %v5148_v48 = vmul.f32 %v8437_v22, %v8895_v42  ;;  %v3430_v19 = vmul.f32 %v8239_v37, %v11616_v35  ;;  %v11655_v35 = vld [vmem:[#allocation18_spill] sm:$0xff] }
 0x1f9   : > { %11650 = vst [vmem:[#allocation34_spill] sm:$0xff] %v8905_v49  ;;  %v4573_v62 = vadd.f32 %v4541_v9, %v4371_v14  ;;  %v3158_v24 = vadd.f32 %v3126_v46, %v2956_v10  ;;  %v5249_v7 = vmul.f32 %v11542_v53, %v8905_v49  ;;  %v11651_v57 = vld [vmem:[#allocation196_spill] sm:$0xff]  ;;  %v3632_v56 = vmul.f32 %v8260_v2, %v11652_v18  ;;  %v8943_v10 = vld [vmem:[#allocation2 + $0xe1] sm:$0xff] }
 0x1fa   : > { %v3057_v13 = vadd.f32 %v3025_v40, %v2855_v8  ;;  %v4675_v21 = vadd.f32 %v4643_v54, %v4472_v11  ;;  %v3531_v32 = vmul.f32 %v8255_v55, %v11651_v57  ;;  %v3733_v23 = vmul.f32 %v8275_v47, %v11653_v15  ;;  %v11656_v8 = vld [vmem:[#allocation19_spill] sm:$0xff]  ;;  %v8933_v55 = vld [vmem:[#allocation2 + $0xe0] sm:$0xff]  ;;  %v11657_v17 = vld [vmem:[#allocation200_spill] sm:$0xff] }
 0x1fb   : > { %v4776_v60 = vadd.f32 %v4744_v25, %v4573_v62  ;;  %v3361_v3 = vadd.f32 %v3329_v36, %v3158_v24  ;;  %v3834_v37 = vmul.f32 %v8282_v20, %v11654_v1  ;;  %v3936_v54 = vmul.f32 %v8289_v27, %v11655_v35  ;;  %v8949_v36 = vld [vmem:[#allocation2 + $0xe2] sm:$0xff]  ;;  %v11663_v24 = vld [vmem:[#allocation55_spill] sm:$0xff] }
 0x1fc   : > { %v3260_v28 = vadd.f32 %v3228_v43, %v3057_v13  ;;  %v4877_v9 = vadd.f32 %v4845_v50, %v4675_v21  ;;  %v4037_v40 = vmul.f32 %v8296_v33, %v11656_v8  ;;  %v4138_v46 = vmul.f32 %v8314_v41, %v11657_v17  ;;  %v11658_v50 = vld [vmem:[#allocation201_spill] sm:$0xff]  ;;  %11660 = vst [vmem:[#allocation6_spill] sm:$0xff] %v8949_v36  ;;  %v11662_v62 = vld [vmem:[#allocation58_spill] sm:$0xff] }
 0x1fd   : > { %v4978_v39 = vadd.f32 %v4946_v16, %v4776_v60  ;;  %v3563_v2 = vadd.f32 %v3531_v32, %v3361_v3  ;;  %v4239_v47 = vmul.f32 %v8325_v38, %v8813_v30  ;;  %v4340_v20 = vmul.f32 %v8332_v61, %v8823_v26  ;;  %v11659_v16 = vld [vmem:[#allocation202_spill] sm:$0xff]  ;;  %v11668_v3 = vld [vmem:[#allocation61_spill] sm:$0xff] }
 0x1fe   : > { %v3462_v58 = vadd.f32 %v3430_v19, %v3260_v28  ;;  %v5079_v14 = vadd.f32 %v5047_v52, %v4877_v9  ;;  %v4441_v27 = vmul.f32 %v8343_v44, %v11658_v50  ;;  %v4542_v43 = vmul.f32 %v8352_v4, %v11659_v16  ;;  %v11661_v38 = vld [vmem:[#allocation50_spill] sm:$0xff]  ;;  %v11664_v28 = vld [vmem:[#allocation59_spill] sm:$0xff]  ;;  %v8960_v4 = vld [vmem:[%s10975_s0 + $0x19] ss:$0 sm:$0xff] }
 0x1ff   : > { %v3765_v33 = vadd.f32 %v3733_v23, %v3563_v2  ;;  %v4644_v41 = vmul.f32 %v8359_v5, %v8933_v55  ;;  %v5180_v11 = vadd.f32 %v5148_v48, %v4978_v39  ;;  %v2553_v61 = vadd.f32 %v11662_v62, %v11661_v38  ;;  %v5690_v32 = vld [vmem:[#allocation2 + $0xac] sm:$0xff]  ;;  %v8965_v18 = vld [vmem:[#allocation2 + $0xe4] sm:$0xff] }
 0x200   : > { %v3664_v25 = vadd.f32 %v3632_v56, %v3462_v58  ;;  %v5281_v52 = vadd.f32 %v5249_v7, %v5079_v14  ;;  %v2654_v44 = vadd.f32 %v11664_v28, %v11663_v24  ;;  %v4745_v57 = vmul.f32 %v8381_v51, %v8943_v10  ;;  %v8963_v7 = vld [vmem:[#allocation2 + $0xe3] sm:$0xff]  ;;  %11666 = vst [vmem:[#allocation35_spill] sm:$0xff] %v8965_v18  ;;  %v11667_v56 = vld [vmem:[#allocation60_spill] sm:$0xff]  ;;  %v5692_v15 = vld [vmem:[#allocation2 + $0xad] sm:$0xff] }
 0x201   : > { %v3968_v19 = vadd.f32 %v3936_v54, %v3765_v33  ;;  %v2925_v5 = vmul.f32 %v8960_v4, %v5690_v32  ;;  %11665 = vst [vmem:[#allocation27_spill] sm:$0xff] %v8963_v7  ;;  %v2755_v60 = vadd.f32 %v11667_v56, %v2553_v61  ;;  %v8972_v51 = vld [vmem:[%s10975_s0 + $0x1a] ss:$0 sm:$0xff]  ;;  %v4846_v54 = vmul.f32 %v8388_v31, %v8949_v36  ;;  %v8987_v14 = vld [vmem:[#allocation2 + $0xe6] sm:$0xff]  ;;  %v8992_v31 = vld [vmem:[%s10975_s0 + $0x1c] ss:$0 sm:$0xff] }
 0x202   : > { %v3866_v13 = vadd.f32 %v3834_v37, %v3664_v25  ;;  %v5313_v48 = vadd.f32 %v5281_v52, %v5180_v11  ;;  %v2856_v58 = vadd.f32 %v11668_v3, %v2654_v44  ;;  %v3026_v23 = vmul.f32 %v8972_v51, %v5692_v15  ;;  %v8985_v25 = vld [vmem:[#allocation2 + $0xe5] sm:$0xff]  ;;  %v9005_v61 = vld [vmem:[%s10975_s0 + $0x1d] ss:$0 sm:$0xff]  ;;  %v9037_v3 = vld [vmem:[%s10975_s0 + $0x21] ss:$0 sm:$0xff] }
 0x203   : > { %v4170_v9 = vadd.f32 %v4138_v46, %v3968_v19  ;;  %11669 = vst [vmem:[#allocation30_spill] sm:$0xff] %v8985_v25  ;;  %v2957_v46 = vadd.f32 %v2925_v5, %v2755_v60  ;;  %v5048_v52 = vmul.f32 %v8418_v34, %v8965_v18  ;;  %v11670_v24 = vld [vmem:[#allocation4_spill] sm:$0xff]  ;;  %v5149_v44 = vmul.f32 %v8437_v22, %v8985_v25 }
 0x204   : > { %v4069_v21 = vadd.f32 %v4037_v40, %v3866_v13  ;;  %v8980_v40 = vld [vmem:[%s10975_s0 + $0x1b] ss:$0 sm:$0xff]  ;;  %v5351_v2 = vadd.f32 %v8546_v59, %v5313_v48  ;;  %v3058_v33 = vadd.f32 %v3026_v23, %v2856_v58  ;;  %v5250_v19 = vmul.f32 %v11542_v53, %v8987_v14  ;;  %v9023_v5 = vld [vmem:[%s10975_s0 + $0x1f] ss:$0 sm:$0xff]  ;;  %v11672_v48 = vld [vmem:[#allocation25_spill] sm:$0xff] }
 0x205   : > { %v3127_v39 = vmul.f32 %v8980_v40, %v11635_v29  ;;  %v4372_v13 = vadd.f32 %v4340_v20, %v4170_v9  ;;  %v4947_v29 = vmul.f32 %v8411_v6, %v8963_v7  ;;  %v9012_v20 = vld [vmem:[%s10975_s0 + $0x1e] ss:$0 sm:$0xff]  ;;  %v3532_v56 = vmul.f32 %v9023_v5, %v11672_v48  ;;  %v11674_v58 = vld [vmem:[#allocation29_spill] sm:$0xff]  ;;  %v9092_v48 = vld [vmem:[#allocation2 + $0xf1] sm:$0xff] }
 0x206   : > { %v4271_v37 = vadd.f32 %v4239_v47, %v4069_v21  ;;  %v3229_v47 = vmul.f32 %v8992_v31, %v11636_v12  ;;  %5383 = vst.msk [vmem:[%s8561_s5 + $0x30] sm:$0xff] %vm233_vm0, %v5351_v2  ;;  %v3330_v12 = vmul.f32 %v9005_v61, %v11670_v24  ;;  %v11671_v6 = vld [vmem:[#allocation20_spill] sm:$0xff]  ;;  %v3734_v15 = vmul.f32 %v9037_v3, %v11674_v58  ;;  %v9044_v23 = vld [vmem:[%s10975_s0 + $0x22] ss:$0 sm:$0xff]  ;;  %v9067_v24 = vld [vmem:[%s10975_s0 + $0x25] ss:$0 sm:$0xff] }
 0x207   : > { %v3159_v38 = vadd.f32 %v3127_v39, %v2957_v46  ;;  %v3431_v34 = vmul.f32 %v9012_v20, %v11671_v6  ;;  %v11675_v9 = vld [vmem:[#allocation16_spill] sm:$0xff]  ;;  %v9074_v6 = vld [vmem:[%s10975_s0 + $0x26] ss:$0 sm:$0xff]  ;;  %11679 = vst [vmem:[#allocation40_spill] sm:$0xff] %v9092_v48 }
 0x208   : > { %v4473_v11 = vadd.f32 %v4441_v27, %v4271_v37  ;;  %v3261_v62 = vadd.f32 %v3229_v47, %v3058_v33  ;;  %v4574_v27 = vadd.f32 %v4542_v43, %v4372_v13  ;;  %v9030_v43 = vld [vmem:[%s10975_s0 + $0x20] ss:$0 sm:$0xff]  ;;  %v3835_v37 = vmul.f32 %v9044_v23, %v11675_v9  ;;  %v9058_v33 = vld [vmem:[%s10975_s0 + $0x24] ss:$0 sm:$0xff]  ;;  %v11677_v47 = vld [vmem:[#allocation3_spill] sm:$0xff] }
 0x209   : > { %v3362_v21 = vadd.f32 %v3330_v12, %v3159_v38  ;;  %v4038_v13 = vmul.f32 %v9058_v33, %v11677_v47  ;;  %v4139_v12 = vmul.f32 %v9067_v24, %v8876_v0 }
 0x20a   : > { %v4676_v28 = vadd.f32 %v4644_v41, %v4473_v11  ;;  %v3463_v32 = vadd.f32 %v3431_v34, %v3261_v62  ;;  %v11673_v41 = vld [vmem:[#allocation26_spill] sm:$0xff]  ;;  %v4777_v60 = vadd.f32 %v4745_v57, %v4574_v27  ;;  %v9051_v57 = vld [vmem:[%s10975_s0 + $0x23] ss:$0 sm:$0xff]  ;;  %v9062_v11 = vld [vmem:[#allocation2 + $0xf0] sm:$0xff]  ;;  %v4240_v34 = vmul.f32 %v9074_v6, %v8884_v45 }
 0x20b   : > { %v3633_v22 = vmul.f32 %v9030_v43, %v11673_v41  ;;  %v3564_v39 = vadd.f32 %v3532_v56, %v3362_v21  ;;  %11678 = vst [vmem:[#allocation38_spill] sm:$0xff] %v9062_v11  ;;  %v9088_v21 = vld [vmem:[%s10975_s0 + $0x28] ss:$0 sm:$0xff] }
 0x20c   : > { %v4878_v53 = vadd.f32 %v4846_v54, %v4676_v28  ;;  %v11676_v54 = vld [vmem:[#allocation203_spill] sm:$0xff]  ;;  %v4979_v38 = vadd.f32 %v4947_v29, %v4777_v60  ;;  %v9081_v29 = vld [vmem:[%s10975_s0 + $0x27] ss:$0 sm:$0xff] }
 0x20d   : > { %v3665_v2 = vadd.f32 %v3633_v22, %v3463_v32  ;;  %v3937_v46 = vmul.f32 %v9051_v57, %v11676_v54  ;;  %v3766_v27 = vadd.f32 %v3734_v15, %v3564_v39  ;;  %v4442_v32 = vmul.f32 %v9088_v21, %v8895_v42  ;;  %v9097_v22 = vld [vmem:[%s10975_s0 + $0x29] ss:$0 sm:$0xff] }
 0x20e   : > { %v5080_v62 = vadd.f32 %v5048_v52, %v4878_v53  ;;  %v4341_v52 = vmul.f32 %v9081_v29, %v8893_v63  ;;  %v5181_v56 = vadd.f32 %v5149_v44, %v4979_v38  ;;  %v4543_v60 = vmul.f32 %v9097_v22, %v8905_v49  ;;  %v9104_v53 = vld [vmem:[%s10975_s0 + $0x2a] ss:$0 sm:$0xff]  ;;  %v9108_v44 = vld [vmem:[#allocation2 + $0xf2] sm:$0xff]  ;;  %v11683_v38 = vld [vmem:[#allocation57_spill] sm:$0xff] }
 0x20f   : > { %v3867_v28 = vadd.f32 %v3835_v37, %v3665_v2  ;;  %v4645_v58 = vmul.f32 %v9104_v53, %v9062_v11  ;;  %v3969_v15 = vadd.f32 %v3937_v46, %v3766_v27  ;;  %11680 = vst [vmem:[#allocation41_spill] sm:$0xff] %v9108_v44  ;;  %v11682_v39 = vld [vmem:[#allocation62_spill] sm:$0xff]  ;;  %v5711_v11 = vld [vmem:[#allocation2 + $0xb4] sm:$0xff] }
 0x210   : > { %v5282_v41 = vadd.f32 %v5250_v19, %v5080_v62  ;;  %v11681_v19 = vld [vmem:[#allocation54_spill] sm:$0xff]  ;;  %v11684_v62 = vld [vmem:[#allocation65_spill] sm:$0xff]  ;;  %v2926_v46 = vmul.f32 %v5711_v11, %v8960_v4 }
 0x211   : > { %v4070_v37 = vadd.f32 %v4038_v13, %v3867_v28  ;;  %v2554_v2 = vadd.f32 %v11682_v39, %v11681_v19  ;;  %v2655_v42 = vadd.f32 %v11684_v62, %v11683_v38  ;;  %v9117_v49 = vld [vmem:[%s10975_s0 + $0x2b] ss:$0 sm:$0xff]  ;;  %v5712_v13 = vld [vmem:[#allocation2 + $0xb5] sm:$0xff]  ;;  %v4171_v28 = vadd.f32 %v4139_v12, %v3969_v15  ;;  %v9133_v11 = vld [vmem:[%s10975_s0 + $0x2c] ss:$0 sm:$0xff] }
 0x212   : > { %v5314_v63 = vadd.f32 %v5282_v41, %v5181_v56  ;;  %v4746_v45 = vmul.f32 %v9117_v49, %v9092_v48  ;;  %v3027_v27 = vmul.f32 %v5712_v13, %v8972_v51  ;;  %v9123_v39 = vld [vmem:[#allocation2 + $0xf3] sm:$0xff]  ;;  %v4847_v12 = vmul.f32 %v9133_v11, %v9108_v44 }
 0x213   : > { %v4272_v19 = vadd.f32 %v4240_v34, %v4070_v37  ;;  %11685 = vst [vmem:[#allocation204_spill] sm:$0xff] %v9123_v39  ;;  %v9125_v56 = vld [vmem:[#allocation2 + $0xf4] sm:$0xff]  ;;  %v3128_v34 = vmul.f32 %v8980_v40, %v11654_v1  ;;  %v3230_v15 = vmul.f32 %v8992_v31, %v11655_v35  ;;  %v4373_v37 = vadd.f32 %v4341_v52, %v4171_v28  ;;  %v9157_v35 = vld [vmem:[%s10975_s0 + $0x2e] ss:$0 sm:$0xff] }
 0x214   : > { %11686 = vst [vmem:[#allocation205_spill] sm:$0xff] %v9125_v56  ;;  %v11687_v41 = vld [vmem:[#allocation67_spill] sm:$0xff]  ;;  %v11688_v62 = vld [vmem:[#allocation68_spill] sm:$0xff]  ;;  %v5352_v47 = vadd.f32 %v8546_v59, %v5314_v63  ;;  %v5049_v52 = vmul.f32 %v9157_v35, %v9125_v56 }
 0x215   : > { %v2756_v38 = vadd.f32 %v11687_v41, %v2554_v2  ;;  %v2857_v0 = vadd.f32 %v11688_v62, %v2655_v42  ;;  %v4474_v2 = vadd.f32 %v4442_v32, %v4272_v19  ;;  %v9141_v13 = vld [vmem:[#allocation2 + $0xf5] sm:$0xff]  ;;  %v9150_v62 = vld [vmem:[%s10975_s0 + $0x2d] ss:$0 sm:$0xff]  ;;  %v4575_v32 = vadd.f32 %v4543_v60, %v4373_v37  ;;  %v9168_v19 = vld [vmem:[%s10975_s0 + $0x2f] ss:$0 sm:$0xff] }
 0x216   : > { %11689 = vst [vmem:[#allocation206_spill] sm:$0xff] %v9141_v13  ;;  %v9143_v42 = vld [vmem:[#allocation2 + $0xf6] sm:$0xff]  ;;  %5384 = vst.msk [vmem:[%s8561_s5 + $0x38] sm:$0xff] %vm233_vm0, %v5352_v47  ;;  %v4948_v1 = vmul.f32 %v9150_v62, %v9123_v39  ;;  %v3432_v47 = vmul.f32 %v9012_v20, %v11657_v17  ;;  %v9175_v56 = vld [vmem:[%s10975_s0 + $0x30] ss:$0 sm:$0xff]  ;;  %v3533_v17 = vmul.f32 %v9023_v5, %v8813_v30 }
 0x217   : > { %11690 = vst [vmem:[#allocation14_spill] sm:$0xff] %v9143_v42  ;;  %v2958_v63 = vadd.f32 %v2926_v46, %v2756_v38  ;;  %v3059_v41 = vadd.f32 %v3027_v27, %v2857_v0  ;;  %v3331_v0 = vmul.f32 %v9005_v61, %v11656_v8  ;;  %v4677_v46 = vadd.f32 %v4645_v58, %v4474_v2 }
 0x218   : > { %v5150_v38 = vmul.f32 %v9168_v19, %v9141_v13  ;;  %v5251_v8 = vmul.f32 %v9175_v56, %v9143_v42  ;;  %v3634_v60 = vmul.f32 %v9030_v43, %v8823_v26  ;;  %v4778_v58 = vadd.f32 %v4746_v45, %v4575_v32  ;;  %v9191_v45 = vld [vmem:[#allocation2 + $0xf8] sm:$0xff] }
 0x219   : > { %v3160_v27 = vadd.f32 %v3128_v34, %v2958_v63  ;;  %v3262_v28 = vadd.f32 %v3230_v15, %v3059_v41  ;;  %v4879_v34 = vadd.f32 %v4847_v12, %v4677_v46  ;;  %v3735_v2 = vmul.f32 %v9037_v3, %v11658_v50  ;;  %11691 = vst [vmem:[#allocation21_spill] sm:$0xff] %v9191_v45  ;;  %v9201_v32 = vld [vmem:[#allocation2 + $0xf9] sm:$0xff] }
 0x21a   : > { %v3836_v63 = vmul.f32 %v9044_v23, %v11659_v16  ;;  %v3938_v41 = vmul.f32 %v9051_v57, %v8933_v55  ;;  %v4039_v42 = vmul.f32 %v9058_v33, %v8943_v10  ;;  %v4980_v30 = vadd.f32 %v4948_v1, %v4778_v58  ;;  %v11693_v58 = vld [vmem:[#allocation63_spill] sm:$0xff] }
 0x21b   : > { %v3363_v15 = vadd.f32 %v3331_v0, %v3160_v27  ;;  %v3464_v37 = vadd.f32 %v3432_v47, %v3262_v28  ;;  %v5081_v13 = vadd.f32 %v5049_v52, %v4879_v34  ;;  %v4140_v12 = vmul.f32 %v9067_v24, %v8949_v36  ;;  %v11694_v34 = vld [vmem:[#allocation70_spill] sm:$0xff] }
 0x21c   : > { %v4241_v50 = vmul.f32 %v9074_v6, %v8963_v7  ;;  %v4342_v0 = vmul.f32 %v9081_v29, %v8965_v18  ;;  %v4443_v47 = vmul.f32 %v9088_v21, %v8985_v25  ;;  %v5182_v1 = vadd.f32 %v5150_v38, %v4980_v30  ;;  %v11696_v18 = vld [vmem:[#allocation71_spill] sm:$0xff]  ;;  %v11700_v30 = vld [vmem:[#allocation73_spill] sm:$0xff] }
 0x21d   : > { %v3565_v39 = vadd.f32 %v3533_v17, %v3363_v15  ;;  %v3666_v26 = vadd.f32 %v3634_v60, %v3464_v37  ;;  %v5283_v52 = vadd.f32 %v5251_v8, %v5081_v13  ;;  %v4544_v28 = vmul.f32 %v9097_v22, %v8987_v14  ;;  %v9207_v60 = vld [vmem:[#allocation2 + $0xfa] sm:$0xff] }
 0x21e   : > { %v4646_v17 = vmul.f32 %v9104_v53, %v9191_v45  ;;  %11692 = vst [vmem:[#allocation15_spill] sm:$0xff] %v9207_v60  ;;  %v2555_v15 = vadd.f32 %v11694_v34, %v11693_v58  ;;  %v11695_v37 = vld [vmem:[#allocation64_spill] sm:$0xff]  ;;  %v5718_v45 = vld [vmem:[#allocation2 + $0xc4] sm:$0xff] }
 0x21f   : > { %v3767_v46 = vadd.f32 %v3735_v2, %v3565_v39  ;;  %v3868_v27 = vadd.f32 %v3836_v63, %v3666_v26  ;;  %v2656_v25 = vadd.f32 %v11696_v18, %v11695_v37  ;;  %v5315_v7 = vadd.f32 %v5283_v52, %v5182_v1  ;;  %v9215_v13 = vld [vmem:[#allocation2 + $0xfb] sm:$0xff]  ;;  %v5719_v34 = vld [vmem:[#allocation2 + $0xc5] sm:$0xff] }
 0x220   : > { %v4747_v39 = vmul.f32 %v9117_v49, %v9201_v32  ;;  %11697 = vst [vmem:[#allocation22_spill] sm:$0xff] %v9215_v13  ;;  %v9217_v8 = vld [vmem:[#allocation2 + $0xfc] sm:$0xff]  ;;  %v2927_v58 = vmul.f32 %v5718_v45, %v8960_v4  ;;  %v3028_v18 = vmul.f32 %v5719_v34, %v8972_v51  ;;  %v4848_v52 = vmul.f32 %v9133_v11, %v9207_v60 }
 0x221   : > { %v3970_v36 = vadd.f32 %v3938_v41, %v3767_v46  ;;  %v4071_v38 = vadd.f32 %v4039_v42, %v3868_v27  ;;  %11698 = vst [vmem:[#allocation194_spill] sm:$0xff] %v9217_v8  ;;  %v11699_v2 = vld [vmem:[#allocation72_spill] sm:$0xff]  ;;  %v2858_v26 = vadd.f32 %v11700_v30, %v2656_v25  ;;  %v5353_v42 = vadd.f32 %v8546_v59, %v5315_v7  ;;  %v11703_v30 = vld [vmem:[#allocation31_spill] sm:$0xff] }
 0x222   : > { %v2757_v63 = vadd.f32 %v11699_v2, %v2555_v15  ;;  %v9226_v46 = vld [vmem:[#allocation2 + $0xfd] sm:$0xff]  ;;  %v3129_v25 = vmul.f32 %v8980_v40, %v11675_v9  ;;  %v3231_v45 = vmul.f32 %v8992_v31, %v11676_v54  ;;  %v4949_v7 = vmul.f32 %v9150_v62, %v9215_v13  ;;  %v11702_v2 = vld [vmem:[#allocation3_spill] sm:$0xff] }
 0x223   : > { %v4172_v41 = vadd.f32 %v4140_v12, %v3970_v36  ;;  %v4273_v1 = vadd.f32 %v4241_v50, %v4071_v38  ;;  %11701 = vst [vmem:[#allocation7_spill] sm:$0xff] %v9226_v46  ;;  %v9228_v27 = vld [vmem:[#allocation2 + $0xfe] sm:$0xff]  ;;  %v3060_v37 = vadd.f32 %v3028_v18, %v2858_v26  ;;  %5385 = vst.msk [vmem:[%s8561_s5 + $0x40] sm:$0xff] %vm233_vm0, %v5353_v42 }
 0x224   : > { %v2959_v15 = vadd.f32 %v2927_v58, %v2757_v63  ;;  %v5050_v12 = vmul.f32 %v9157_v35, %v9217_v8  ;;  %v3332_v63 = vmul.f32 %v9005_v61, %v11702_v2  ;;  %v3433_v9 = vmul.f32 %v9012_v20, %v11703_v30  ;;  %v11704_v18 = vld [vmem:[#allocation28_spill] sm:$0xff]  ;;  %v11708_v2 = vld [vmem:[#allocation38_spill] sm:$0xff] }
 0x225   : > { %v4374_v59 = vadd.f32 %v4342_v0, %v4172_v41  ;;  %v4475_v36 = vadd.f32 %v4443_v47, %v4273_v1  ;;  %v3263_v38 = vadd.f32 %v3231_v45, %v3060_v37  ;;  %v5151_v0 = vmul.f32 %v9168_v19, %v9226_v46  ;;  %v11705_v41 = vld [vmem:[#allocation32_spill] sm:$0xff] }
 0x226   : > { %v3161_v50 = vadd.f32 %v3129_v25, %v2959_v15  ;;  %v5252_v47 = vmul.f32 %v9175_v56, %v9228_v27  ;;  %v3534_v42 = vmul.f32 %v9023_v5, %v11704_v18  ;;  %v3635_v1 = vmul.f32 %v9030_v43, %v11705_v41  ;;  %v11706_v25 = vld [vmem:[#allocation33_spill] sm:$0xff] }
 0x227   : > { %v4576_v26 = vadd.f32 %v4544_v28, %v4374_v59  ;;  %v4678_v54 = vadd.f32 %v4646_v17, %v4475_v36  ;;  %v3465_v34 = vadd.f32 %v3433_v9, %v3263_v38  ;;  %v3736_v28 = vmul.f32 %v9037_v3, %v11706_v25  ;;  %v11707_v17 = vld [vmem:[#allocation34_spill] sm:$0xff] }
 0x228   : > { %v3364_v58 = vadd.f32 %v3332_v63, %v3161_v50  ;;  %v3837_v45 = vmul.f32 %v9044_v23, %v11707_v17  ;;  %v3939_v50 = vmul.f32 %v9051_v57, %v11708_v2  ;;  %v4040_v38 = vmul.f32 %v9058_v33, %v9092_v48  ;;  %v9260_v63 = vld [vmem:[#allocation2 + $0x108] sm:$0xff] }
 0x229   : > { %v4779_v15 = vadd.f32 %v4747_v39, %v4576_v26  ;;  %v4880_v37 = vadd.f32 %v4848_v52, %v4678_v54  ;;  %v3667_v36 = vadd.f32 %v3635_v1, %v3465_v34  ;;  %11709 = vst [vmem:[#allocation195_spill] sm:$0xff] %v9260_v63  ;;  %v4141_v39 = vmul.f32 %v9067_v24, %v9108_v44  ;;  %v11710_v52 = vld [vmem:[#allocation204_spill] sm:$0xff]  ;;  %v9270_v1 = vld [vmem:[#allocation2 + $0x109] sm:$0xff] }
 0x22a   : > { %v3566_v59 = vadd.f32 %v3534_v42, %v3364_v58  ;;  %v4242_v26 = vmul.f32 %v9074_v6, %v11710_v52  ;;  %v11711_v58 = vld [vmem:[#allocation205_spill] sm:$0xff]  ;;  %v11712_v42 = vld [vmem:[#allocation206_spill] sm:$0xff]  ;;  %11713 = vst [vmem:[#allocation36_spill] sm:$0xff] %v9270_v1  ;;  %v11719_v44 = vld [vmem:[#allocation76_spill] sm:$0xff] }
 0x22b   : > { %v4981_v30 = vadd.f32 %v4949_v7, %v4779_v15  ;;  %v5082_v9 = vadd.f32 %v5050_v12, %v4880_v37  ;;  %v3869_v18 = vadd.f32 %v3837_v45, %v3667_v36  ;;  %v4343_v34 = vmul.f32 %v9081_v29, %v11711_v58  ;;  %v11714_v7 = vld [vmem:[#allocation14_spill] sm:$0xff]  ;;  %v11718_v58 = vld [vmem:[#allocation69_spill] sm:$0xff] }
 0x22c   : > { %v3768_v54 = vadd.f32 %v3736_v28, %v3566_v59  ;;  %v4444_v41 = vmul.f32 %v9088_v21, %v11712_v42  ;;  %v4545_v12 = vmul.f32 %v9097_v22, %v11714_v7  ;;  %v4647_v15 = vmul.f32 %v9104_v53, %v9260_v63  ;;  %v9276_v28 = vld [vmem:[#allocation2 + $0x10a] sm:$0xff] }
 0x22d   : > { %v5183_v25 = vadd.f32 %v5151_v0, %v4981_v30  ;;  %v5284_v48 = vadd.f32 %v5252_v47, %v5082_v9  ;;  %v4072_v52 = vadd.f32 %v4040_v38, %v3869_v18  ;;  %11715 = vst [vmem:[#allocation43_spill] sm:$0xff] %v9276_v28  ;;  %v11716_v45 = vld [vmem:[#allocation66_spill] sm:$0xff]  ;;  %v11717_v59 = vld [vmem:[#allocation75_spill] sm:$0xff]  ;;  %v2657_v42 = vadd.f32 %v11719_v44, %v11718_v58  ;;  %v11723_v44 = vld [vmem:[#allocation80_spill] sm:$0xff] }
 0x22e   : > { %v3971_v37 = vadd.f32 %v3939_v50, %v3768_v54  ;;  %v2556_v36 = vadd.f32 %v11717_v59, %v11716_v45  ;;  %v4748_v0 = vmul.f32 %v9117_v49, %v9270_v1  ;;  %v5720_v47 = vld [vmem:[#allocation2 + $0xcc] sm:$0xff]  ;;  %v11722_v45 = vld [vmem:[#allocation77_spill] sm:$0xff] }
 0x22f   : > { %v5316_v2 = vadd.f32 %v5284_v48, %v5183_v25  ;;  %v2928_v30 = vmul.f32 %v5720_v47, %v8960_v4  ;;  %v5721_v9 = vld [vmem:[#allocation2 + $0xcd] sm:$0xff]  ;;  %v4274_v38 = vadd.f32 %v4242_v26, %v4072_v52  ;;  %v2859_v48 = vadd.f32 %v11723_v44, %v2657_v42  ;;  %v9295_v58 = vld [vmem:[%s10976_s1] ss:$0 sm:$0xff] }
 0x230   : > { %v3029_v63 = vmul.f32 %v5721_v9, %v8972_v51  ;;  %v4173_v50 = vadd.f32 %v4141_v39, %v3971_v37  ;;  %v9286_v54 = vld [vmem:[#allocation2 + $0x10b] sm:$0xff]  ;;  %v2758_v59 = vadd.f32 %v11722_v45, %v2556_v36  ;;  %v4849_v39 = vmul.f32 %v9133_v11, %v9276_v28 }
 0x231   : > { %11720 = vst [vmem:[#allocation37_spill] sm:$0xff] %v9286_v54  ;;  %v9288_v18 = vld [vmem:[#allocation2 + $0x10c] sm:$0xff]  ;;  %v5354_v25 = vadd.f32 %v9295_v58, %v5316_v2  ;;  %v3130_v52 = vmul.f32 %v8980_v40, %v11659_v16  ;;  %v3232_v26 = vmul.f32 %v8992_v31, %v8933_v55  ;;  %v4476_v36 = vadd.f32 %v4444_v41, %v4274_v38 }
 0x232   : > { %11721 = vst [vmem:[#allocation44_spill] sm:$0xff] %v9288_v18  ;;  %v4375_v37 = vadd.f32 %v4343_v34, %v4173_v50  ;;  %v9304_v47 = vld [vmem:[#allocation2 + $0x10d] sm:$0xff]  ;;  %v2960_v9 = vadd.f32 %v2928_v30, %v2758_v59  ;;  %v3061_v45 = vadd.f32 %v3029_v63, %v2859_v48  ;;  %v4950_v2 = vmul.f32 %v9150_v62, %v9286_v54 }
 0x233   : > { %11724 = vst [vmem:[#allocation45_spill] sm:$0xff] %v9304_v47  ;;  %v9306_v42 = vld [vmem:[#allocation2 + $0x10e] sm:$0xff]  ;;  %5386 = vst.msk [vmem:[%s8561_s5 + $0x48] sm:$0xff] %vm233_vm0, %v5354_v25  ;;  %v5051_v44 = vmul.f32 %v9157_v35, %v9288_v18  ;;  %v3333_v16 = vmul.f32 %v9005_v61, %v8943_v10  ;;  %v4679_v50 = vadd.f32 %v4647_v15, %v4476_v36 }
 0x234   : > { %v11725_v55 = vld [vmem:[#allocation6_spill] sm:$0xff]  ;;  %v4577_v41 = vadd.f32 %v4545_v12, %v4375_v37  ;;  %v3162_v38 = vadd.f32 %v3130_v52, %v2960_v9  ;;  %v3264_v28 = vadd.f32 %v3232_v26, %v3061_v45  ;;  %v5152_v63 = vmul.f32 %v9168_v19, %v9304_v47  ;;  %v11726_v59 = vld [vmem:[#allocation27_spill] sm:$0xff]  ;;  %v11729_v26 = vld [vmem:[#allocation21_spill] sm:$0xff] }
 0x235   : > { %v3434_v34 = vmul.f32 %v9012_v20, %v11725_v55  ;;  %v5253_v30 = vmul.f32 %v9175_v56, %v9306_v42  ;;  %v3535_v48 = vmul.f32 %v9023_v5, %v11726_v59  ;;  %v11727_v25 = vld [vmem:[#allocation35_spill] sm:$0xff]  ;;  %v4881_v54 = vadd.f32 %v4849_v39, %v4679_v50  ;;  %v11728_v12 = vld [vmem:[#allocation30_spill] sm:$0xff] }
 0x236   : > { %v3636_v18 = vmul.f32 %v9030_v43, %v11727_v25  ;;  %v4780_v10 = vadd.f32 %v4748_v0, %v4577_v41  ;;  %v3365_v1 = vadd.f32 %v3333_v16, %v3162_v38  ;;  %v3737_v15 = vmul.f32 %v9037_v3, %v11728_v12  ;;  %v9334_v0 = vld [vmem:[#allocation2 + $0x110] sm:$0xff] }
 0x237   : > { %v3466_v55 = vadd.f32 %v3434_v34, %v3264_v28  ;;  %v3838_v52 = vmul.f32 %v9044_v23, %v8987_v14  ;;  %v3940_v37 = vmul.f32 %v9051_v57, %v11729_v26  ;;  %v4041_v36 = vmul.f32 %v9058_v33, %v9201_v32  ;;  %11730 = vst [vmem:[#allocation46_spill] sm:$0xff] %v9334_v0  ;;  %v9344_v41 = vld [vmem:[#allocation2 + $0x111] sm:$0xff] }
 0x238   : > { %v4982_v9 = vadd.f32 %v4950_v2, %v4780_v10  ;;  %v5083_v45 = vadd.f32 %v5051_v44, %v4881_v54  ;;  %v3567_v59 = vadd.f32 %v3535_v48, %v3365_v1  ;;  %v4142_v28 = vmul.f32 %v9067_v24, %v9207_v60  ;;  %v9350_v38 = vld [vmem:[#allocation2 + $0x112] sm:$0xff]  ;;  %v11732_v48 = vld [vmem:[#allocation74_spill] sm:$0xff] }
 0x239   : > { %v3668_v25 = vadd.f32 %v3636_v18, %v3466_v55  ;;  %v4243_v39 = vmul.f32 %v9074_v6, %v9215_v13  ;;  %v4344_v16 = vmul.f32 %v9081_v29, %v9217_v8  ;;  %v4445_v34 = vmul.f32 %v9088_v21, %v9226_v46  ;;  %11731 = vst [vmem:[#allocation13_spill] sm:$0xff] %v9350_v38  ;;  %v11733_v10 = vld [vmem:[#allocation82_spill] sm:$0xff]  ;;  %v11734_v12 = vld [vmem:[#allocation79_spill] sm:$0xff] }
 0x23a   : > { %v5184_v2 = vadd.f32 %v5152_v63, %v4982_v9  ;;  %v5285_v54 = vadd.f32 %v5253_v30, %v5083_v45  ;;  %v3769_v1 = vadd.f32 %v3737_v15, %v3567_v59  ;;  %v4546_v44 = vmul.f32 %v9097_v22, %v9228_v27  ;;  %v11735_v8 = vld [vmem:[#allocation83_spill] sm:$0xff]  ;;  %v11738_v9 = vld [vmem:[#allocation84_spill] sm:$0xff]  ;;  %v11739_v59 = vld [vmem:[#allocation85_spill] sm:$0xff] }
 0x23b   : > { %v3870_v18 = vadd.f32 %v3838_v52, %v3668_v25  ;;  %v4648_v50 = vmul.f32 %v9104_v53, %v9334_v0  ;;  %v2557_v55 = vadd.f32 %v11733_v10, %v11732_v48  ;;  %v2658_v46 = vadd.f32 %v11735_v8, %v11734_v12  ;;  %v9358_v15 = vld [vmem:[#allocation2 + $0x113] sm:$0xff]  ;;  %v5723_v0 = vld [vmem:[#allocation2 + $0xdc] sm:$0xff] }
 0x23c   : > { %v5317_v13 = vadd.f32 %v5285_v54, %v5184_v2  ;;  %v3972_v60 = vadd.f32 %v3940_v37, %v3769_v1  ;;  %v4749_v30 = vmul.f32 %v9117_v49, %v9344_v41  ;;  %11736 = vst [vmem:[#allocation23_spill] sm:$0xff] %v9358_v15  ;;  %v9360_v52 = vld [vmem:[#allocation2 + $0x114] sm:$0xff]  ;;  %v2929_v48 = vmul.f32 %v5723_v0, %v8960_v4  ;;  %v5724_v10 = vld [vmem:[#allocation2 + $0xdd] sm:$0xff]  ;;  %v11741_v0 = vld [vmem:[#allocation38_spill] sm:$0xff] }
 0x23d   : > { %v4073_v63 = vadd.f32 %v4041_v36, %v3870_v18  ;;  %11737 = vst [vmem:[#allocation24_spill] sm:$0xff] %v9360_v52  ;;  %v2759_v45 = vadd.f32 %v11738_v9, %v2557_v55  ;;  %v2860_v25 = vadd.f32 %v11739_v59, %v2658_v46  ;;  %v3030_v8 = vmul.f32 %v5724_v10, %v8972_v51  ;;  %v9369_v1 = vld [vmem:[#allocation2 + $0x115] sm:$0xff] }
 0x23e   : > { %v5355_v37 = vadd.f32 %v9295_v58, %v5317_v13  ;;  %v4174_v36 = vadd.f32 %v4142_v28, %v3972_v60  ;;  %v4850_v54 = vmul.f32 %v9133_v11, %v9350_v38  ;;  %11740 = vst [vmem:[#allocation10_spill] sm:$0xff] %v9369_v1  ;;  %v9371_v18 = vld [vmem:[#allocation2 + $0x116] sm:$0xff]  ;;  %v3131_v46 = vmul.f32 %v8980_v40, %v11707_v17 }
 0x23f   : > { %v4275_v2 = vadd.f32 %v4243_v39, %v4073_v63  ;;  %v2961_v55 = vadd.f32 %v2929_v48, %v2759_v45  ;;  %v3062_v12 = vadd.f32 %v3030_v8, %v2860_v25  ;;  %v3233_v9 = vmul.f32 %v8992_v31, %v11741_v0  ;;  %v11742_v45 = vld [vmem:[#allocation40_spill] sm:$0xff]  ;;  %v11743_v48 = vld [vmem:[#allocation41_spill] sm:$0xff] }
 0x240   : > { %5387 = vst.msk [vmem:[%s8561_s5 + $0x50] sm:$0xff] %vm233_vm0, %v5355_v37  ;;  %v4376_v13 = vadd.f32 %v4344_v16, %v4174_v36  ;;  %v4951_v28 = vmul.f32 %v9150_v62, %v9358_v15  ;;  %v5052_v39 = vmul.f32 %v9157_v35, %v9360_v52  ;;  %v3334_v25 = vmul.f32 %v9005_v61, %v11742_v45  ;;  %v11746_v45 = vld [vmem:[#allocation206_spill] sm:$0xff] }
 0x241   : > { %v4477_v60 = vadd.f32 %v4445_v34, %v4275_v2  ;;  %v3163_v63 = vadd.f32 %v3131_v46, %v2961_v55  ;;  %v3265_v59 = vadd.f32 %v3233_v9, %v3062_v12  ;;  %v3435_v17 = vmul.f32 %v9012_v20, %v11743_v48  ;;  %v11744_v2 = vld [vmem:[#allocation204_spill] sm:$0xff]  ;;  %v11745_v12 = vld [vmem:[#allocation205_spill] sm:$0xff]  ;;  %v11747_v48 = vld [vmem:[#allocation195_spill] sm:$0xff] }
 0x242   : > { %v4578_v10 = vadd.f32 %v4546_v44, %v4376_v13  ;;  %v5153_v16 = vmul.f32 %v9168_v19, %v9369_v1  ;;  %v5254_v34 = vmul.f32 %v9175_v56, %v9371_v18  ;;  %v3536_v55 = vmul.f32 %v9023_v5, %v11744_v2 }
 0x243   : > { %v4680_v8 = vadd.f32 %v4648_v50, %v4477_v60  ;;  %v3366_v37 = vadd.f32 %v3334_v25, %v3163_v63  ;;  %v3467_v36 = vadd.f32 %v3435_v17, %v3265_v59  ;;  %v3637_v46 = vmul.f32 %v9030_v43, %v11745_v12  ;;  %v11748_v59 = vld [vmem:[#allocation36_spill] sm:$0xff]  ;;  %v9403_v17 = vld [vmem:[#allocation2 + $0x120] sm:$0xff] }
 0x244   : > { %v4781_v0 = vadd.f32 %v4749_v30, %v4578_v10  ;;  %v3738_v44 = vmul.f32 %v9037_v3, %v11746_v45  ;;  %v3839_v50 = vmul.f32 %v9044_v23, %v11714_v7  ;;  %v3941_v63 = vmul.f32 %v9051_v57, %v11747_v48  ;;  %11749 = vst [vmem:[#allocation192_spill] sm:$0xff] %v9403_v17  ;;  %v11750_v30 = vld [vmem:[#allocation43_spill] sm:$0xff]  ;;  %v11751_v10 = vld [vmem:[#allocation37_spill] sm:$0xff] }
 0x245   : > { %v4882_v9 = vadd.f32 %v4850_v54, %v4680_v8  ;;  %v3568_v13 = vadd.f32 %v3536_v55, %v3366_v37  ;;  %v3669_v60 = vadd.f32 %v3637_v46, %v3467_v36  ;;  %v4042_v25 = vmul.f32 %v9058_v33, %v11748_v59  ;;  %v11752_v37 = vld [vmem:[#allocation44_spill] sm:$0xff]  ;;  %v9413_v46 = vld [vmem:[#allocation2 + $0x121] sm:$0xff] }
 0x246   : > { %v4983_v2 = vadd.f32 %v4951_v28, %v4781_v0  ;;  %v4143_v54 = vmul.f32 %v9067_v24, %v11750_v30  ;;  %v4244_v8 = vmul.f32 %v9074_v6, %v11751_v10  ;;  %v4345_v36 = vmul.f32 %v9081_v29, %v11752_v37  ;;  %11753 = vst [vmem:[#allocation193_spill] sm:$0xff] %v9413_v46  ;;  %v11757_v37 = vld [vmem:[#allocation81_spill] sm:$0xff]  ;;  %v11758_v10 = vld [vmem:[#allocation88_spill] sm:$0xff] }
 0x247   : > { %v5084_v12 = vadd.f32 %v5052_v39, %v4882_v9  ;;  %v3770_v45 = vadd.f32 %v3738_v44, %v3568_v13  ;;  %v3871_v7 = vadd.f32 %v3839_v50, %v3669_v60  ;;  %v4446_v55 = vmul.f32 %v9088_v21, %v9304_v47  ;;  %v9419_v44 = vld [vmem:[#allocation2 + $0x122] sm:$0xff] }
 0x248   : > { %v5185_v59 = vadd.f32 %v5153_v16, %v4983_v2  ;;  %v4547_v28 = vmul.f32 %v9097_v22, %v9306_v42  ;;  %v4649_v39 = vmul.f32 %v9104_v53, %v9403_v17  ;;  %11754 = vst [vmem:[#allocation8_spill] sm:$0xff] %v9419_v44  ;;  %v11755_v50 = vld [vmem:[#allocation78_spill] sm:$0xff]  ;;  %v11756_v13 = vld [vmem:[#allocation49_spill] sm:$0xff]  ;;  %v2659_v47 = vadd.f32 %v11758_v10, %v11757_v37  ;;  %v11762_v10 = vld [vmem:[#allocation91_spill] sm:$0xff] }
 0x249   : > { %v5286_v48 = vadd.f32 %v5254_v34, %v5084_v12  ;;  %v3973_v0 = vadd.f32 %v3941_v63, %v3770_v45  ;;  %v4074_v9 = vadd.f32 %v4042_v25, %v3871_v7  ;;  %v2558_v60 = vadd.f32 %v11756_v13, %v11755_v50  ;;  %v5725_v34 = vld [vmem:[#allocation2 + $0xe4] sm:$0xff] }
 0x24a   : > { %v4750_v16 = vmul.f32 %v9117_v49, %v9413_v46  ;;  %v2930_v2 = vmul.f32 %v5725_v34, %v8960_v4  ;;  %v5726_v12 = vld [vmem:[#allocation2 + $0xe5] sm:$0xff]  ;;  %v4851_v37 = vmul.f32 %v9133_v11, %v9419_v44  ;;  %v3132_v34 = vmul.f32 %v8980_v40, %v8987_v14 }
 0x24b   : > { %v5318_v30 = vadd.f32 %v5286_v48, %v5185_v59  ;;  %v3031_v17 = vmul.f32 %v5726_v12, %v8972_v51  ;;  %v4175_v63 = vadd.f32 %v4143_v54, %v3973_v0  ;;  %v4276_v7 = vadd.f32 %v4244_v8, %v4074_v9  ;;  %v9429_v25 = vld [vmem:[#allocation2 + $0x123] sm:$0xff] }
 0x24c   : > { %11759 = vst [vmem:[#allocation12_spill] sm:$0xff] %v9429_v25  ;;  %v9431_v45 = vld [vmem:[#allocation2 + $0x124] sm:$0xff]  ;;  %v2861_v48 = vadd.f32 %v11762_v10, %v2659_v47  ;;  %v3234_v54 = vmul.f32 %v8992_v31, %v11729_v26  ;;  %v4952_v47 = vmul.f32 %v9150_v62, %v9429_v25  ;;  %v3335_v14 = vmul.f32 %v9005_v61, %v9201_v32  ;;  %v11764_v26 = vld [vmem:[#allocation15_spill] sm:$0xff] }
 0x24d   : > { %11760 = vst [vmem:[#allocation17_spill] sm:$0xff] %v9431_v45  ;;  %v11761_v50 = vld [vmem:[#allocation90_spill] sm:$0xff]  ;;  %v5356_v59 = vadd.f32 %v9295_v58, %v5318_v30  ;;  %v4377_v8 = vadd.f32 %v4345_v36, %v4175_v63  ;;  %v4478_v0 = vadd.f32 %v4446_v55, %v4276_v7  ;;  %v5053_v30 = vmul.f32 %v9157_v35, %v9431_v45 }
 0x24e   : > { %v2760_v13 = vadd.f32 %v11761_v50, %v2558_v60  ;;  %v9442_v9 = vld [vmem:[#allocation2 + $0x125] sm:$0xff]  ;;  %v3063_v50 = vadd.f32 %v3031_v17, %v2861_v48  ;;  %v3436_v36 = vmul.f32 %v9012_v20, %v11764_v26 }
 0x24f   : > { %11763 = vst [vmem:[#allocation39_spill] sm:$0xff] %v9442_v9  ;;  %v9444_v12 = vld [vmem:[#allocation2 + $0x126] sm:$0xff]  ;;  %5388 = vst.msk [vmem:[%s8561_s5 + $0x58] sm:$0xff] %vm233_vm0, %v5356_v59  ;;  %v4579_v55 = vadd.f32 %v4547_v28, %v4377_v8  ;;  %v4681_v63 = vadd.f32 %v4649_v39, %v4478_v0  ;;  %v5154_v17 = vmul.f32 %v9168_v19, %v9442_v9  ;;  %v11767_v28 = vld [vmem:[#allocation7_spill] sm:$0xff] }
 0x250   : > { %v2962_v60 = vadd.f32 %v2930_v2, %v2760_v13  ;;  %v3266_v10 = vadd.f32 %v3234_v54, %v3063_v50  ;;  %v5255_v2 = vmul.f32 %v9175_v56, %v9444_v12  ;;  %v11765_v13 = vld [vmem:[#allocation22_spill] sm:$0xff]  ;;  %v3739_v39 = vmul.f32 %v9037_v3, %v11767_v28  ;;  %v11774_v28 = vld [vmem:[#allocation87_spill] sm:$0xff] }
 0x251   : > { %v3537_v48 = vmul.f32 %v9023_v5, %v11765_v13  ;;  %v11766_v59 = vld [vmem:[#allocation194_spill] sm:$0xff]  ;;  %v4782_v32 = vadd.f32 %v4750_v16, %v4579_v55  ;;  %v4883_v25 = vadd.f32 %v4851_v37, %v4681_v63  ;;  %v4043_v0 = vmul.f32 %v9058_v33, %v9344_v41 }
 0x252   : > { %v3164_v7 = vadd.f32 %v3132_v34, %v2962_v60  ;;  %v3638_v45 = vmul.f32 %v9030_v43, %v11766_v59  ;;  %v3468_v26 = vadd.f32 %v3436_v36, %v3266_v10  ;;  %v3840_v34 = vmul.f32 %v9044_v23, %v9228_v27  ;;  %v11768_v54 = vld [vmem:[#allocation46_spill] sm:$0xff] }
 0x253   : > { %v3942_v8 = vmul.f32 %v9051_v57, %v11768_v54  ;;  %v4984_v60 = vadd.f32 %v4952_v47, %v4782_v32  ;;  %v5085_v50 = vadd.f32 %v5053_v30, %v4883_v25  ;;  %v9472_v16 = vld [vmem:[#allocation2 + $0x128] sm:$0xff]  ;;  %v4144_v37 = vmul.f32 %v9067_v24, %v9350_v38  ;;  %v11773_v32 = vld [vmem:[#allocation93_spill] sm:$0xff] }
 0x254   : > { %v3367_v44 = vadd.f32 %v3335_v14, %v3164_v7  ;;  %v3670_v59 = vadd.f32 %v3638_v45, %v3468_v26  ;;  %11769 = vst [vmem:[#allocation51_spill] sm:$0xff] %v9472_v16  ;;  %v4245_v14 = vmul.f32 %v9074_v6, %v9358_v15  ;;  %v4346_v36 = vmul.f32 %v9081_v29, %v9360_v52  ;;  %v9482_v63 = vld [vmem:[#allocation2 + $0x129] sm:$0xff] }
 0x255   : > { %v4447_v55 = vmul.f32 %v9088_v21, %v9369_v1  ;;  %11770 = vst [vmem:[#allocation42_spill] sm:$0xff] %v9482_v63  ;;  %v5186_v47 = vadd.f32 %v5154_v17, %v4984_v60  ;;  %v5287_v25 = vadd.f32 %v5255_v2, %v5085_v50  ;;  %v4548_v30 = vmul.f32 %v9097_v22, %v9371_v18  ;;  %v9488_v10 = vld [vmem:[#allocation2 + $0x12a] sm:$0xff] }
 0x256   : > { %v3569_v13 = vadd.f32 %v3537_v48, %v3367_v44  ;;  %v3872_v45 = vadd.f32 %v3840_v34, %v3670_v59  ;;  %v4650_v7 = vmul.f32 %v9104_v53, %v9472_v16  ;;  %11771 = vst [vmem:[#allocation52_spill] sm:$0xff] %v9488_v10  ;;  %v11772_v48 = vld [vmem:[#allocation86_spill] sm:$0xff]  ;;  %v4751_v2 = vmul.f32 %v9117_v49, %v9482_v63  ;;  %v11778_v60 = vld [vmem:[#allocation95_spill] sm:$0xff] }
 0x257   : > { %v2559_v26 = vadd.f32 %v11773_v32, %v11772_v48  ;;  %v11775_v52 = vld [vmem:[#allocation94_spill] sm:$0xff]  ;;  %v5319_v15 = vadd.f32 %v5287_v25, %v5186_v47  ;;  %v5727_v16 = vld [vmem:[#allocation2 + $0xf4] sm:$0xff]  ;;  %v4852_v25 = vmul.f32 %v9133_v11, %v9488_v10 }
 0x258   : > { %v3771_v44 = vadd.f32 %v3739_v39, %v3569_v13  ;;  %v2660_v1 = vadd.f32 %v11775_v52, %v11774_v28  ;;  %v4075_v17 = vadd.f32 %v4043_v0, %v3872_v45  ;;  %v9496_v39 = vld [vmem:[#allocation2 + $0x12b] sm:$0xff]  ;;  %v11779_v13 = vld [vmem:[#allocation96_spill] sm:$0xff]  ;;  %v2931_v48 = vmul.f32 %v5727_v16, %v8960_v4 }
 0x259   : > { %11776 = vst [vmem:[#allocation53_spill] sm:$0xff] %v9496_v39  ;;  %v9498_v34 = vld [vmem:[#allocation2 + $0x12c] sm:$0xff]  ;;  %v2761_v50 = vadd.f32 %v11778_v60, %v2559_v26  ;;  %v5728_v32 = vld [vmem:[#allocation2 + $0xf5] sm:$0xff] }
 0x25a   : > { %v3974_v38 = vadd.f32 %v3942_v8, %v3771_v44  ;;  %11777 = vst [vmem:[#allocation56_spill] sm:$0xff] %v9498_v34  ;;  %v2862_v59 = vadd.f32 %v11779_v13, %v2660_v1  ;;  %v3032_v52 = vmul.f32 %v5728_v32, %v8972_v51  ;;  %v5357_v8 = vadd.f32 %v9295_v58, %v5319_v15  ;;  %v9507_v44 = vld [vmem:[#allocation2 + $0x12d] sm:$0xff] }
 0x25b   : > { %v4277_v47 = vadd.f32 %v4245_v14, %v4075_v17  ;;  %11780 = vst [vmem:[#allocation196_spill] sm:$0xff] %v9507_v44  ;;  %v9509_v45 = vld [vmem:[#allocation2 + $0x12e] sm:$0xff]  ;;  %v2963_v26 = vadd.f32 %v2931_v48, %v2761_v50  ;;  %v5054_v14 = vmul.f32 %v9157_v35, %v9498_v34  ;;  %v11783_v50 = vld [vmem:[#allocation36_spill] sm:$0xff]  ;;  %v11787_v34 = vld [vmem:[#allocation45_spill] sm:$0xff] }
 0x25c   : > { %v4176_v0 = vadd.f32 %v4144_v37, %v3974_v38  ;;  %v3064_v28 = vadd.f32 %v3032_v52, %v2862_v59  ;;  %v11781_v1 = vld [vmem:[#allocation14_spill] sm:$0xff]  ;;  %v11782_v16 = vld [vmem:[#allocation195_spill] sm:$0xff]  ;;  %5389 = vst.msk [vmem:[%s8561_s5 + $0x60] sm:$0xff] %vm233_vm0, %v5357_v8  ;;  %v4953_v37 = vmul.f32 %v9150_v62, %v9496_v39  ;;  %v3336_v59 = vmul.f32 %v9005_v61, %v11783_v50 }
 0x25d   : > { %v3133_v60 = vmul.f32 %v8980_v40, %v11781_v1  ;;  %v3235_v13 = vmul.f32 %v8992_v31, %v11782_v16  ;;  %v4479_v38 = vadd.f32 %v4447_v55, %v4277_v47  ;;  %v11784_v48 = vld [vmem:[#allocation43_spill] sm:$0xff]  ;;  %v5256_v55 = vmul.f32 %v9175_v56, %v9509_v45  ;;  %v11785_v47 = vld [vmem:[#allocation37_spill] sm:$0xff] }
 0x25e   : > { %v4378_v15 = vadd.f32 %v4346_v36, %v4176_v0  ;;  %v3437_v52 = vmul.f32 %v9012_v20, %v11784_v48  ;;  %v5155_v36 = vmul.f32 %v9168_v19, %v9507_v44  ;;  %v11788_v48 = vld [vmem:[#allocation192_spill] sm:$0xff] }
 0x25f   : > { %v3165_v17 = vadd.f32 %v3133_v60, %v2963_v26  ;;  %v3267_v32 = vadd.f32 %v3235_v13, %v3064_v28  ;;  %v4682_v16 = vadd.f32 %v4650_v7, %v4479_v38  ;;  %v3538_v26 = vmul.f32 %v9023_v5, %v11785_v47  ;;  %v11786_v28 = vld [vmem:[#allocation44_spill] sm:$0xff] }
 0x260   : > { %v4580_v1 = vadd.f32 %v4548_v30, %v4378_v15  ;;  %v3639_v60 = vmul.f32 %v9030_v43, %v11786_v28  ;;  %v3740_v30 = vmul.f32 %v9037_v3, %v11787_v34  ;;  %v3841_v7 = vmul.f32 %v9044_v23, %v9306_v42 }
 0x261   : > { %v3368_v8 = vadd.f32 %v3336_v59, %v3165_v17  ;;  %v3469_v0 = vadd.f32 %v3437_v52, %v3267_v32  ;;  %v4884_v50 = vadd.f32 %v4852_v25, %v4682_v16  ;;  %v3943_v17 = vmul.f32 %v9051_v57, %v11788_v48  ;;  %v9541_v59 = vld [vmem:[#allocation2 + $0x138] sm:$0xff] }
 0x262   : > { %v4783_v13 = vadd.f32 %v4751_v2, %v4580_v1  ;;  %v4044_v32 = vmul.f32 %v9058_v33, %v9413_v46  ;;  %11789 = vst [vmem:[#allocation197_spill] sm:$0xff] %v9541_v59  ;;  %v11790_v2 = vld [vmem:[#allocation8_spill] sm:$0xff] }
 0x263   : > { %v3570_v15 = vadd.f32 %v3538_v26, %v3368_v8  ;;  %v3671_v38 = vadd.f32 %v3639_v60, %v3469_v0  ;;  %v5086_v47 = vadd.f32 %v5054_v14, %v4884_v50  ;;  %v4145_v25 = vmul.f32 %v9067_v24, %v11790_v2  ;;  %v11791_v1 = vld [vmem:[#allocation12_spill] sm:$0xff]  ;;  %v11792_v8 = vld [vmem:[#allocation17_spill] sm:$0xff] }
 0x264   : > { %v4985_v52 = vadd.f32 %v4953_v37, %v4783_v13  ;;  %v4246_v34 = vmul.f32 %v9074_v6, %v11791_v1  ;;  %v4347_v0 = vmul.f32 %v9081_v29, %v11792_v8  ;;  %v4448_v26 = vmul.f32 %v9088_v21, %v9442_v9  ;;  %v9551_v60 = vld [vmem:[#allocation2 + $0x139] sm:$0xff] }
 0x265   : > { %v3772_v16 = vadd.f32 %v3740_v30, %v3570_v15  ;;  %v3873_v28 = vadd.f32 %v3841_v7, %v3671_v38  ;;  %v5288_v48 = vadd.f32 %v5256_v55, %v5086_v47  ;;  %v4549_v37 = vmul.f32 %v9097_v22, %v9444_v12  ;;  %v9557_v30 = vld [vmem:[#allocation2 + $0x13a] sm:$0xff] }
 0x266   : > { %v5187_v46 = vadd.f32 %v5155_v36, %v4985_v52  ;;  %v4651_v14 = vmul.f32 %v9104_v53, %v9541_v59  ;;  %11793 = vst [vmem:[#allocation198_spill] sm:$0xff] %v9557_v30  ;;  %v11794_v7 = vld [vmem:[#allocation89_spill] sm:$0xff]  ;;  %v11795_v15 = vld [vmem:[#allocation48_spill] sm:$0xff]  ;;  %v4752_v36 = vmul.f32 %v9117_v49, %v9551_v60 }
 0x267   : > { %v3975_v13 = vadd.f32 %v3943_v17, %v3772_v16  ;;  %v4076_v50 = vadd.f32 %v4044_v32, %v3873_v28  ;;  %v2560_v38 = vadd.f32 %v11795_v15, %v11794_v7  ;;  %v11796_v8 = vld [vmem:[#allocation92_spill] sm:$0xff]  ;;  %v11797_v1 = vld [vmem:[#allocation97_spill] sm:$0xff]  ;;  %v11800_v7 = vld [vmem:[#allocation98_spill] sm:$0xff] }
 0x268   : > { %v2661_v9 = vadd.f32 %v11797_v1, %v11796_v8  ;;  %v5320_v2 = vadd.f32 %v5288_v48, %v5187_v46  ;;  %v5729_v55 = vld [vmem:[#allocation2 + $0xfc] sm:$0xff]  ;;  %v4853_v8 = vmul.f32 %v9133_v11, %v9557_v30 }
 0x269   : > { %v2932_v52 = vmul.f32 %v5729_v55, %v8960_v4  ;;  %v5730_v47 = vld [vmem:[#allocation2 + $0xfd] sm:$0xff]  ;;  %v4177_v17 = vadd.f32 %v4145_v25, %v3975_v13  ;;  %v4278_v32 = vadd.f32 %v4246_v34, %v4076_v50  ;;  %v2762_v15 = vadd.f32 %v11800_v7, %v2560_v38 }
 0x26a   : > { %v3033_v59 = vmul.f32 %v5730_v47, %v8972_v51  ;;  %v9567_v16 = vld [vmem:[#allocation2 + $0x13b] sm:$0xff]  ;;  %v5358_v48 = vadd.f32 %v9295_v58, %v5320_v2  ;;  %v3134_v55 = vmul.f32 %v8980_v40, %v9228_v27  ;;  %v3236_v25 = vmul.f32 %v8992_v31, %v11768_v54 }
 0x26b   : > { %11798 = vst [vmem:[#allocation199_spill] sm:$0xff] %v9567_v16  ;;  %v9569_v28 = vld [vmem:[#allocation2 + $0x13c] sm:$0xff]  ;;  %v4379_v34 = vadd.f32 %v4347_v0, %v4177_v17  ;;  %v4480_v13 = vadd.f32 %v4448_v26, %v4278_v32  ;;  %v2964_v38 = vadd.f32 %v2932_v52, %v2762_v15  ;;  %v3337_v27 = vmul.f32 %v9005_v61, %v9344_v41  ;;  %v11803_v15 = vld [vmem:[#allocation23_spill] sm:$0xff] }
 0x26c   : > { %11799 = vst [vmem:[#allocation18_spill] sm:$0xff] %v9569_v28  ;;  %v11801_v1 = vld [vmem:[#allocation101_spill] sm:$0xff]  ;;  %5390 = vst.msk [vmem:[%s8561_s5 + $0x68] sm:$0xff] %vm233_vm0, %v5358_v48  ;;  %v5055_v2 = vmul.f32 %v9157_v35, %v9569_v28  ;;  %v11804_v48 = vld [vmem:[#allocation24_spill] sm:$0xff] }
 0x26d   : > { %v2863_v46 = vadd.f32 %v11801_v1, %v2661_v9  ;;  %v9580_v50 = vld [vmem:[#allocation2 + $0x13d] sm:$0xff]  ;;  %v4954_v9 = vmul.f32 %v9150_v62, %v9567_v16  ;;  %v4581_v26 = vadd.f32 %v4549_v37, %v4379_v34  ;;  %v4683_v17 = vadd.f32 %v4651_v14, %v4480_v13  ;;  %v11805_v37 = vld [vmem:[#allocation10_spill] sm:$0xff] }
 0x26e   : > { %v9582_v47 = vld [vmem:[#allocation2 + $0x13e] sm:$0xff]  ;;  %v3166_v32 = vadd.f32 %v3134_v55, %v2964_v38  ;;  %v3640_v28 = vmul.f32 %v9030_v43, %v11804_v48  ;;  %v3741_v14 = vmul.f32 %v9037_v3, %v11805_v37  ;;  %v3842_v55 = vmul.f32 %v9044_v23, %v9371_v18 }
 0x26f   : > { %v3065_v7 = vadd.f32 %v3033_v59, %v2863_v46  ;;  %v11802_v54 = vld [vmem:[#allocation13_spill] sm:$0xff]  ;;  %v5156_v59 = vmul.f32 %v9168_v19, %v9580_v50  ;;  %v5257_v52 = vmul.f32 %v9175_v56, %v9582_v47  ;;  %v3539_v46 = vmul.f32 %v9023_v5, %v11803_v15 }
 0x270   : > { %v3438_v0 = vmul.f32 %v9012_v20, %v11802_v54  ;;  %v4784_v41 = vadd.f32 %v4752_v36, %v4581_v26  ;;  %v4885_v16 = vadd.f32 %v4853_v8, %v4683_v17  ;;  %v3369_v30 = vadd.f32 %v3337_v27, %v3166_v32  ;;  %v9610_v36 = vld [vmem:[#allocation2 + $0x140] sm:$0xff] }
 0x271   : > { %v3268_v1 = vadd.f32 %v3236_v25, %v3065_v7  ;;  %v11806_v25 = vld [vmem:[#allocation51_spill] sm:$0xff]  ;;  %v4045_v13 = vmul.f32 %v9058_v33, %v9482_v63  ;;  %11807 = vst [vmem:[#allocation19_spill] sm:$0xff] %v9610_v36  ;;  %v4146_v8 = vmul.f32 %v9067_v24, %v9488_v10  ;;  %v4247_v27 = vmul.f32 %v9074_v6, %v9496_v39  ;;  %v9620_v32 = vld [vmem:[#allocation2 + $0x141] sm:$0xff]  ;;  %v11814_v39 = vld [vmem:[#allocation104_spill] sm:$0xff] }
 0x272   : > { %v3944_v34 = vmul.f32 %v9051_v57, %v11806_v25  ;;  %v4986_v38 = vadd.f32 %v4954_v9, %v4784_v41  ;;  %v5087_v7 = vadd.f32 %v5055_v2, %v4885_v16  ;;  %v3571_v15 = vadd.f32 %v3539_v46, %v3369_v30  ;;  %11809 = vst [vmem:[#allocation200_spill] sm:$0xff] %v9620_v32  ;;  %v9626_v46 = vld [vmem:[#allocation2 + $0x142] sm:$0xff]  ;;  %v11811_v41 = vld [vmem:[#allocation47_spill] sm:$0xff] }
 0x273   : > { %v3470_v54 = vadd.f32 %v3438_v0, %v3268_v1  ;;  %v11808_v0 = vld [vmem:[#allocation56_spill] sm:$0xff]  ;;  %v4449_v17 = vmul.f32 %v9088_v21, %v9507_v44  ;;  %v4550_v2 = vmul.f32 %v9097_v22, %v9509_v45  ;;  %v4652_v1 = vmul.f32 %v9104_v53, %v9610_v36  ;;  %11810 = vst [vmem:[#allocation201_spill] sm:$0xff] %v9626_v46  ;;  %v5731_v36 = vld [vmem:[#allocation2 + $0x10c] sm:$0xff] }
 0x274   : > { %v4348_v26 = vmul.f32 %v9081_v29, %v11808_v0  ;;  %v5188_v9 = vadd.f32 %v5156_v59, %v4986_v38  ;;  %v5289_v16 = vadd.f32 %v5257_v52, %v5087_v7  ;;  %v3773_v30 = vadd.f32 %v3741_v14, %v3571_v15  ;;  %v11813_v0 = vld [vmem:[#allocation100_spill] sm:$0xff]  ;;  %v9634_v14 = vld [vmem:[#allocation2 + $0x143] sm:$0xff] }
 0x275   : > { %v3672_v48 = vadd.f32 %v3640_v28, %v3470_v54  ;;  %v11812_v54 = vld [vmem:[#allocation103_spill] sm:$0xff]  ;;  %v2662_v44 = vadd.f32 %v11814_v39, %v11813_v0  ;;  %v4753_v52 = vmul.f32 %v9117_v49, %v9620_v32  ;;  %11815 = vst [vmem:[#allocation202_spill] sm:$0xff] %v9634_v14  ;;  %v11817_v38 = vld [vmem:[#allocation105_spill] sm:$0xff]  ;;  %v11818_v15 = vld [vmem:[#allocation106_spill] sm:$0xff] }
 0x276   : > { %v2561_v37 = vadd.f32 %v11812_v54, %v11811_v41  ;;  %v5321_v10 = vadd.f32 %v5289_v16, %v5188_v9  ;;  %v3976_v63 = vadd.f32 %v3944_v34, %v3773_v30  ;;  %v2933_v41 = vmul.f32 %v5731_v36, %v8960_v4  ;;  %v5732_v54 = vld [vmem:[#allocation2 + $0x10d] sm:$0xff]  ;;  %v9645_v16 = vld [vmem:[#allocation2 + $0x145] sm:$0xff]  ;;  %v11821_v4 = vld [vmem:[#allocation192_spill] sm:$0xff] }
 0x277   : > { %v3874_v28 = vadd.f32 %v3842_v55, %v3672_v48  ;;  %v9636_v55 = vld [vmem:[#allocation2 + $0x144] sm:$0xff]  ;;  %v2864_v48 = vadd.f32 %v11818_v15, %v2662_v44  ;;  %v3034_v39 = vmul.f32 %v5732_v54, %v8972_v51  ;;  %v4854_v9 = vmul.f32 %v9133_v11, %v9626_v46  ;;  %11819 = vst [vmem:[#allocation58_spill] sm:$0xff] %v9645_v16  ;;  %v11823_v15 = vld [vmem:[#allocation8_spill] sm:$0xff] }
 0x278   : > { %11816 = vst [vmem:[#allocation50_spill] sm:$0xff] %v9636_v55  ;;  %v2763_v7 = vadd.f32 %v11817_v38, %v2561_v37  ;;  %v5359_v34 = vadd.f32 %v9295_v58, %v5321_v10  ;;  %v9647_v30 = vld [vmem:[#allocation2 + $0x146] sm:$0xff]  ;;  %v3135_v44 = vmul.f32 %v8980_v40, %v9306_v42  ;;  %v3237_v36 = vmul.f32 %v8992_v31, %v11821_v4  ;;  %v11824_v54 = vld [vmem:[#allocation12_spill] sm:$0xff] }
 0x279   : > { %v4077_v59 = vadd.f32 %v4045_v13, %v3874_v28  ;;  %v4178_v13 = vadd.f32 %v4146_v8, %v3976_v63  ;;  %11820 = vst [vmem:[#allocation55_spill] sm:$0xff] %v9647_v30  ;;  %v3066_v37 = vadd.f32 %v3034_v39, %v2864_v48  ;;  %v4955_v10 = vmul.f32 %v9150_v62, %v9634_v14  ;;  %v11822_v38 = vld [vmem:[#allocation193_spill] sm:$0xff] }
 0x27a   : > { %v2965_v28 = vadd.f32 %v2933_v41, %v2763_v7  ;;  %5391 = vst.msk [vmem:[%s8561_s5 + $0x70] sm:$0xff] %vm233_vm0, %v5359_v34  ;;  %v5056_v8 = vmul.f32 %v9157_v35, %v9636_v55  ;;  %v3338_v7 = vmul.f32 %v9005_v61, %v11822_v38  ;;  %v3439_v40 = vmul.f32 %v9012_v20, %v11823_v15  ;;  %v11825_v34 = vld [vmem:[#allocation17_spill] sm:$0xff] }
 0x27b   : > { %v4279_v0 = vadd.f32 %v4247_v27, %v4077_v59  ;;  %v4380_v51 = vadd.f32 %v4348_v26, %v4178_v13  ;;  %v3269_v59 = vadd.f32 %v3237_v36, %v3066_v37  ;;  %v5157_v26 = vmul.f32 %v9168_v19, %v9645_v16 }
 0x27c   : > { %v3167_v27 = vadd.f32 %v3135_v44, %v2965_v28  ;;  %v3540_v39 = vmul.f32 %v9023_v5, %v11824_v54  ;;  %v3641_v13 = vmul.f32 %v9030_v43, %v11825_v34  ;;  %v11826_v28 = vld [vmem:[#allocation39_spill] sm:$0xff]  ;;  %v11827_v44 = vld [vmem:[#allocation197_spill] sm:$0xff]  ;;  %v4046_v36 = vmul.f32 %v9058_v33, %v9551_v60  ;;  %v9712_v34 = vld [vmem:[%s10975_s0 + $0x1a] ss:$0 sm:$0xff] }
 0x27d   : > { %v4481_v63 = vadd.f32 %v4449_v17, %v4279_v0  ;;  %v4582_v42 = vadd.f32 %v4550_v2, %v4380_v51  ;;  %v5258_v17 = vmul.f32 %v9175_v56, %v9647_v30  ;;  %v3471_v41 = vadd.f32 %v3439_v40, %v3269_v59  ;;  %v9679_v5 = vld [vmem:[#allocation2 + $0x150] sm:$0xff]  ;;  %v11830_v59 = vld [vmem:[#allocation18_spill] sm:$0xff] }
 0x27e   : > { %v3370_v48 = vadd.f32 %v3338_v7, %v3167_v27  ;;  %v3742_v20 = vmul.f32 %v9037_v3, %v11826_v28  ;;  %v3843_v2 = vmul.f32 %v9044_v23, %v9444_v12  ;;  %v3945_v4 = vmul.f32 %v9051_v57, %v11827_v44  ;;  %v9689_v7 = vld [vmem:[#allocation2 + $0x151] sm:$0xff] }
 0x27f   : > { %v4684_v31 = vadd.f32 %v4652_v1, %v4481_v63  ;;  %v4785_v61 = vadd.f32 %v4753_v52, %v4582_v42  ;;  %v3673_v37 = vadd.f32 %v3641_v13, %v3471_v41  ;;  %v11828_v52 = vld [vmem:[#allocation198_spill] sm:$0xff]  ;;  %v11829_v63 = vld [vmem:[#allocation199_spill] sm:$0xff]  ;;  %v4349_v38 = vmul.f32 %v9081_v29, %v11830_v59  ;;  %v11834_v41 = vld [vmem:[#allocation113_spill] sm:$0xff] }
 0x280   : > { %v3572_v1 = vadd.f32 %v3540_v39, %v3370_v48  ;;  %v4248_v3 = vmul.f32 %v9074_v6, %v11829_v63  ;;  %v4450_v57 = vmul.f32 %v9088_v21, %v9580_v50  ;;  %v9695_v40 = vld [vmem:[#allocation2 + $0x152] sm:$0xff]  ;;  %v11833_v48 = vld [vmem:[#allocation102_spill] sm:$0xff] }
 0x281   : > { %v4886_v0 = vadd.f32 %v4854_v9, %v4684_v31  ;;  %v4987_v51 = vadd.f32 %v4955_v10, %v4785_v61  ;;  %v4147_v9 = vmul.f32 %v9067_v24, %v11828_v52  ;;  %v3875_v23 = vadd.f32 %v3843_v2, %v3673_v37  ;;  %v11831_v42 = vld [vmem:[#allocation99_spill] sm:$0xff]  ;;  %v11832_v31 = vld [vmem:[#allocation110_spill] sm:$0xff] }
 0x282   : > { %v3774_v27 = vadd.f32 %v3742_v20, %v3572_v1  ;;  %v4551_v10 = vmul.f32 %v9097_v22, %v9582_v47  ;;  %v4653_v24 = vmul.f32 %v9104_v53, %v9679_v5  ;;  %v2562_v29 = vadd.f32 %v11832_v31, %v11831_v42  ;;  %v9706_v22 = vld [vmem:[%s10975_s0 + $0x19] ss:$0 sm:$0xff]  ;;  %v11837_v20 = vld [vmem:[#allocation115_spill] sm:$0xff]  ;;  %v9758_v42 = vld [vmem:[%s10975_s0 + $0x1e] ss:$0 sm:$0xff] }
 0x283   : > { %v5088_v43 = vadd.f32 %v5056_v8, %v4886_v0  ;;  %v5189_v33 = vadd.f32 %v5157_v26, %v4987_v51  ;;  %v4078_v6 = vadd.f32 %v4046_v36, %v3875_v23  ;;  %v2663_v21 = vadd.f32 %v11834_v41, %v11833_v48  ;;  %v5735_v39 = vld [vmem:[#allocation2 + $0x115] sm:$0xff] }
 0x284   : > { %v3977_v8 = vadd.f32 %v3945_v4, %v3774_v27  ;;  %v4754_v26 = vmul.f32 %v9117_v49, %v9689_v7  ;;  %v3035_v13 = vmul.f32 %v9712_v34, %v5735_v39  ;;  %v9715_v28 = vld [vmem:[#allocation2 + $0x153] sm:$0xff]  ;;  %v2764_v2 = vadd.f32 %v11837_v20, %v2562_v29  ;;  %v9727_v51 = vld [vmem:[%s10975_s0 + $0x1b] ss:$0 sm:$0xff]  ;;  %v9783_v20 = vld [vmem:[%s10975_s0 + $0x21] ss:$0 sm:$0xff] }
 0x285   : > { %v5290_v15 = vadd.f32 %v5258_v17, %v5088_v43  ;;  %v5733_v17 = vld [vmem:[#allocation2 + $0x114] sm:$0xff]  ;;  %v4280_v0 = vadd.f32 %v4248_v3, %v4078_v6  ;;  %11835 = vst [vmem:[#allocation59_spill] sm:$0xff] %v9715_v28  ;;  %v4855_v36 = vmul.f32 %v9133_v11, %v9695_v40  ;;  %v3136_v43 = vmul.f32 %v9727_v51, %v9371_v18 }
 0x286   : > { %v2934_v53 = vmul.f32 %v9706_v22, %v5733_v17  ;;  %v4179_v61 = vadd.f32 %v4147_v9, %v3977_v8  ;;  %v9717_v49 = vld [vmem:[#allocation2 + $0x154] sm:$0xff]  ;;  %v9734_v9 = vld [vmem:[%s10975_s0 + $0x1c] ss:$0 sm:$0xff]  ;;  %v4956_v18 = vmul.f32 %v9150_v62, %v9715_v28  ;;  %v9769_v17 = vld [vmem:[%s10975_s0 + $0x1f] ss:$0 sm:$0xff] }
 0x287   : > { %v5322_v54 = vadd.f32 %v5290_v15, %v5189_v33  ;;  %11836 = vst [vmem:[#allocation60_spill] sm:$0xff] %v9717_v49  ;;  %v11838_v1 = vld [vmem:[#allocation116_spill] sm:$0xff]  ;;  %v3238_v3 = vmul.f32 %v9734_v9, %v11806_v25  ;;  %v4482_v23 = vadd.f32 %v4450_v57, %v4280_v0  ;;  %v5057_v6 = vmul.f32 %v9157_v35, %v9717_v49 }
 0x288   : > { %v2865_v37 = vadd.f32 %v11838_v1, %v2663_v21  ;;  %v4381_v27 = vadd.f32 %v4349_v38, %v4179_v61  ;;  %v9738_v33 = vld [vmem:[#allocation2 + $0x155] sm:$0xff]  ;;  %v2966_v15 = vadd.f32 %v2934_v53, %v2764_v2  ;;  %v9751_v25 = vld [vmem:[%s10975_s0 + $0x1d] ss:$0 sm:$0xff]  ;;  %v11840_v38 = vld [vmem:[#allocation42_spill] sm:$0xff] }
 0x289   : > { %v5360_v4 = vadd.f32 %v9295_v58, %v5322_v54  ;;  %11839 = vst [vmem:[#allocation61_spill] sm:$0xff] %v9738_v33  ;;  %v9740_v11 = vld [vmem:[#allocation2 + $0x156] sm:$0xff]  ;;  %v3339_v57 = vmul.f32 %v9751_v25, %v11840_v38  ;;  %v4685_v48 = vadd.f32 %v4653_v24, %v4482_v23  ;;  %v5158_v21 = vmul.f32 %v9168_v19, %v9738_v33  ;;  %v11842_v53 = vld [vmem:[#allocation53_spill] sm:$0xff] }
 0x28a   : > { %v3067_v8 = vadd.f32 %v3035_v13, %v2865_v37  ;;  %v11841_v31 = vld [vmem:[#allocation52_spill] sm:$0xff]  ;;  %v4583_v62 = vadd.f32 %v4551_v10, %v4381_v27  ;;  %v3168_v41 = vadd.f32 %v3136_v43, %v2966_v15  ;;  %v5259_v54 = vmul.f32 %v9175_v56, %v9740_v11  ;;  %v9776_v10 = vld [vmem:[%s10975_s0 + $0x20] ss:$0 sm:$0xff]  ;;  %v9790_v37 = vld [vmem:[%s10975_s0 + $0x22] ss:$0 sm:$0xff] }
 0x28b   : > { %5392 = vst.msk [vmem:[%s8561_s5 + $0x78] sm:$0xff] %vm233_vm0, %v5360_v4  ;;  %v3440_v29 = vmul.f32 %v9758_v42, %v11841_v31  ;;  %v3541_v39 = vmul.f32 %v9769_v17, %v11842_v53  ;;  %v11843_v24 = vld [vmem:[#allocation56_spill] sm:$0xff]  ;;  %v4887_v61 = vadd.f32 %v4855_v36, %v4685_v48  ;;  %v3844_v4 = vmul.f32 %v9790_v37, %v9509_v45  ;;  %v11845_v36 = vld [vmem:[#allocation19_spill] sm:$0xff]  ;;  %v9813_v31 = vld [vmem:[%s10975_s0 + $0x25] ss:$0 sm:$0xff] }
 0x28c   : > { %v3270_v35 = vadd.f32 %v3238_v3, %v3067_v8  ;;  %v3642_v13 = vmul.f32 %v9776_v10, %v11843_v24  ;;  %v4786_v19 = vadd.f32 %v4754_v26, %v4583_v62  ;;  %v3371_v0 = vadd.f32 %v3339_v57, %v3168_v41  ;;  %v11844_v2 = vld [vmem:[#allocation196_spill] sm:$0xff]  ;;  %v9797_v26 = vld [vmem:[%s10975_s0 + $0x23] ss:$0 sm:$0xff]  ;;  %v9804_v3 = vld [vmem:[%s10975_s0 + $0x24] ss:$0 sm:$0xff] }
 0x28d   : > { %v3743_v1 = vmul.f32 %v9783_v20, %v11844_v2  ;;  %v3946_v43 = vmul.f32 %v9797_v26, %v11845_v36  ;;  %v4047_v27 = vmul.f32 %v9804_v3, %v9620_v32  ;;  %v5089_v15 = vadd.f32 %v5057_v6, %v4887_v61  ;;  %v9808_v57 = vld [vmem:[#allocation2 + $0x158] sm:$0xff]  ;;  %v9820_v62 = vld [vmem:[%s10975_s0 + $0x26] ss:$0 sm:$0xff]  ;;  %v9827_v6 = vld [vmem:[%s10975_s0 + $0x27] ss:$0 sm:$0xff] }
 0x28e   : > { %v3472_v56 = vadd.f32 %v3440_v29, %v3270_v35  ;;  %v4988_v23 = vadd.f32 %v4956_v18, %v4786_v19  ;;  %v3573_v8 = vadd.f32 %v3541_v39, %v3371_v0  ;;  %11846 = vst [vmem:[#allocation4_spill] sm:$0xff] %v9808_v57  ;;  %v4148_v29 = vmul.f32 %v9813_v31, %v9626_v46  ;;  %v9834_v41 = vld [vmem:[%s10975_s0 + $0x28] ss:$0 sm:$0xff]  ;;  %v9838_v53 = vld [vmem:[#allocation2 + $0x159] sm:$0xff]  ;;  %v9843_v61 = vld [vmem:[%s10975_s0 + $0x29] ss:$0 sm:$0xff] }
 0x28f   : > { %v4249_v18 = vmul.f32 %v9820_v62, %v9634_v14  ;;  %v4350_v48 = vmul.f32 %v9827_v6, %v9636_v55  ;;  %v4451_v35 = vmul.f32 %v9834_v41, %v9645_v16  ;;  %11847 = vst [vmem:[#allocation20_spill] sm:$0xff] %v9838_v53  ;;  %v5291_v24 = vadd.f32 %v5259_v54, %v5089_v15  ;;  %v11849_v54 = vld [vmem:[#allocation111_spill] sm:$0xff]  ;;  %v9869_v46 = vld [vmem:[#allocation2 + $0x15c] sm:$0xff] }
 0x290   : > { %v3674_v38 = vadd.f32 %v3642_v13, %v3472_v56  ;;  %v5190_v39 = vadd.f32 %v5158_v21, %v4988_v23  ;;  %v3775_v13 = vadd.f32 %v3743_v1, %v3573_v8  ;;  %v4552_v0 = vmul.f32 %v9843_v61, %v9647_v30  ;;  %v9850_v56 = vld [vmem:[%s10975_s0 + $0x2a] ss:$0 sm:$0xff]  ;;  %v9854_v21 = vld [vmem:[#allocation2 + $0x15a] sm:$0xff]  ;;  %v11852_v15 = vld [vmem:[#allocation119_spill] sm:$0xff]  ;;  %11854 = vst [vmem:[#allocation29_spill] sm:$0xff] %v9869_v46 }
 0x291   : > { %v4654_v2 = vmul.f32 %v9850_v56, %v9808_v57  ;;  %11848 = vst [vmem:[#allocation25_spill] sm:$0xff] %v9854_v21  ;;  %v11850_v1 = vld [vmem:[#allocation118_spill] sm:$0xff]  ;;  %v11851_v23 = vld [vmem:[#allocation112_spill] sm:$0xff] }
 0x292   : > { %v3876_v19 = vadd.f32 %v3844_v4, %v3674_v38  ;;  %v2563_v4 = vadd.f32 %v11850_v1, %v11849_v54  ;;  %v2664_v8 = vadd.f32 %v11852_v15, %v11851_v23  ;;  %v5323_v38 = vadd.f32 %v5291_v24, %v5190_v39  ;;  %v9863_v30 = vld [vmem:[%s10975_s0 + $0x2b] ss:$0 sm:$0xff]  ;;  %v9867_v57 = vld [vmem:[#allocation2 + $0x15b] sm:$0xff]  ;;  %v9879_v15 = vld [vmem:[%s10975_s0 + $0x2c] ss:$0 sm:$0xff] }
 0x293   : > { %v3978_v16 = vadd.f32 %v3946_v43, %v3775_v13  ;;  %v4755_v14 = vmul.f32 %v9863_v30, %v9838_v53  ;;  %11853 = vst [vmem:[#allocation26_spill] sm:$0xff] %v9867_v57  ;;  %v11855_v32 = vld [vmem:[#allocation120_spill] sm:$0xff]  ;;  %v11856_v1 = vld [vmem:[#allocation121_spill] sm:$0xff] }
 0x294   : > { %v4079_v55 = vadd.f32 %v4047_v27, %v3876_v19  ;;  %v2765_v54 = vadd.f32 %v11855_v32, %v2563_v4  ;;  %v2866_v36 = vadd.f32 %v11856_v1, %v2664_v8  ;;  %v5754_v39 = vld [vmem:[#allocation2 + $0x124] sm:$0xff]  ;;  %v5361_v13 = vadd.f32 %v9295_v58, %v5323_v38 }
 0x295   : > { %v2935_v43 = vmul.f32 %v5754_v39, %v9706_v22  ;;  %v5755_v27 = vld [vmem:[#allocation2 + $0x125] sm:$0xff]  ;;  %v4180_v19 = vadd.f32 %v4148_v29, %v3978_v16  ;;  %v4856_v32 = vmul.f32 %v9879_v15, %v9854_v21  ;;  %v9883_v4 = vld [vmem:[#allocation2 + $0x15d] sm:$0xff] }
 0x296   : > { %v3036_v24 = vmul.f32 %v5755_v27, %v9712_v34  ;;  %v4281_v23 = vadd.f32 %v4249_v18, %v4079_v55  ;;  %11857 = vst [vmem:[#allocation16_spill] sm:$0xff] %v9883_v4  ;;  %v9885_v8 = vld [vmem:[#allocation2 + $0x15e] sm:$0xff]  ;;  %v3137_v27 = vmul.f32 %v9727_v51, %v9444_v12  ;;  %v3239_v55 = vmul.f32 %v9734_v9, %v11827_v44  ;;  %v9896_v18 = vld [vmem:[%s10975_s0 + $0x2d] ss:$0 sm:$0xff] }
 0x297   : > { %v2967_v1 = vadd.f32 %v2935_v43, %v2765_v54  ;;  %5393 = vst.msk [vmem:[%s8561_s5 + $0x80] sm:$0xff] %vm233_vm0, %v5361_v13  ;;  %v4382_v16 = vadd.f32 %v4350_v48, %v4180_v19  ;;  %v4957_v38 = vmul.f32 %v9896_v18, %v9867_v57  ;;  %v3340_v48 = vmul.f32 %v9751_v25, %v9551_v60  ;;  %v9914_v13 = vld [vmem:[%s10975_s0 + $0x2f] ss:$0 sm:$0xff] }
 0x298   : > { %v3068_v39 = vadd.f32 %v3036_v24, %v2866_v36  ;;  %v4483_v29 = vadd.f32 %v4451_v35, %v4281_v23  ;;  %v9903_v36 = vld [vmem:[%s10975_s0 + $0x2e] ss:$0 sm:$0xff]  ;;  %v3441_v35 = vmul.f32 %v9758_v42, %v11828_v52  ;;  %v5159_v19 = vmul.f32 %v9914_v13, %v9883_v4  ;;  %v9921_v23 = vld [vmem:[%s10975_s0 + $0x30] ss:$0 sm:$0xff] }
 0x299   : > { %v5058_v12 = vmul.f32 %v9903_v36, %v9869_v46  ;;  %v3169_v44 = vadd.f32 %v3137_v27, %v2967_v1  ;;  %v4584_v43 = vadd.f32 %v4552_v0, %v4382_v16  ;;  %v5260_v60 = vmul.f32 %v9921_v23, %v9885_v8 }
 0x29a   : > { %v3271_v54 = vadd.f32 %v3239_v55, %v3068_v39  ;;  %v4686_v24 = vadd.f32 %v4654_v2, %v4483_v29  ;;  %v3542_v0 = vmul.f32 %v9769_v17, %v11829_v63  ;;  %v3643_v2 = vmul.f32 %v9776_v10, %v11830_v59  ;;  %v9937_v63 = vld [vmem:[#allocation2 + $0x168] sm:$0xff] }
 0x29b   : > { %v3372_v1 = vadd.f32 %v3340_v48, %v3169_v44  ;;  %v4787_v39 = vadd.f32 %v4755_v14, %v4584_v43  ;;  %v3744_v55 = vmul.f32 %v9783_v20, %v9580_v50  ;;  %v3845_v16 = vmul.f32 %v9790_v37, %v9582_v47  ;;  %11858 = vst [vmem:[#allocation203_spill] sm:$0xff] %v9937_v63 }
 0x29c   : > { %v3473_v52 = vadd.f32 %v3441_v35, %v3271_v54  ;;  %v4888_v27 = vadd.f32 %v4856_v32, %v4686_v24  ;;  %v3947_v44 = vmul.f32 %v9797_v26, %v9679_v5  ;;  %v4048_v54 = vmul.f32 %v9804_v3, %v9689_v7 }
 0x29d   : > { %v3574_v29 = vadd.f32 %v3542_v0, %v3372_v1  ;;  %v4989_v48 = vadd.f32 %v4957_v38, %v4787_v39  ;;  %v4149_v14 = vmul.f32 %v9813_v31, %v9695_v40  ;;  %v4250_v50 = vmul.f32 %v9820_v62, %v9715_v28  ;;  %v9947_v1 = vld [vmem:[#allocation2 + $0x169] sm:$0xff] }
 0x29e   : > { %v3675_v4 = vadd.f32 %v3643_v2, %v3473_v52  ;;  %v5090_v59 = vadd.f32 %v5058_v12, %v4888_v27  ;;  %v4351_v43 = vmul.f32 %v9827_v6, %v9717_v49  ;;  %v4452_v24 = vmul.f32 %v9834_v41, %v9738_v33  ;;  %11859 = vst [vmem:[#allocation54_spill] sm:$0xff] %v9947_v1  ;;  %v9953_v27 = vld [vmem:[#allocation2 + $0x16a] sm:$0xff]  ;;  %v11864_v49 = vld [vmem:[#allocation124_spill] sm:$0xff] }
 0x29f   : > { %v3776_v32 = vadd.f32 %v3744_v55, %v3574_v29  ;;  %v5191_v52 = vadd.f32 %v5159_v19, %v4989_v48  ;;  %v4553_v38 = vmul.f32 %v9843_v61, %v9740_v11  ;;  %v4655_v12 = vmul.f32 %v9850_v56, %v9937_v63  ;;  %11860 = vst [vmem:[#allocation62_spill] sm:$0xff] %v9953_v27  ;;  %v11862_v55 = vld [vmem:[#allocation123_spill] sm:$0xff]  ;;  %v11863_v29 = vld [vmem:[#allocation117_spill] sm:$0xff] }
 0x2a0   : > { %v3877_v35 = vadd.f32 %v3845_v16, %v3675_v4  ;;  %v5292_v0 = vadd.f32 %v5260_v60, %v5090_v59  ;;  %v11861_v4 = vld [vmem:[#allocation114_spill] sm:$0xff]  ;;  %v2665_v33 = vadd.f32 %v11864_v49, %v11863_v29  ;;  %v4756_v19 = vmul.f32 %v9863_v30, %v9947_v1  ;;  %v11868_v49 = vld [vmem:[#allocation128_spill] sm:$0xff] }
 0x2a1   : > { %v3979_v2 = vadd.f32 %v3947_v44, %v3776_v32  ;;  %v2564_v16 = vadd.f32 %v11862_v55, %v11861_v4  ;;  %v5761_v60 = vld [vmem:[#allocation2 + $0x12c] sm:$0xff]  ;;  %v11867_v4 = vld [vmem:[#allocation125_spill] sm:$0xff]  ;;  %v4857_v29 = vmul.f32 %v9879_v15, %v9953_v27 }
 0x2a2   : > { %v4080_v39 = vadd.f32 %v4048_v54, %v3877_v35  ;;  %v5324_v28 = vadd.f32 %v5292_v0, %v5191_v52  ;;  %v2936_v48 = vmul.f32 %v5761_v60, %v9706_v22  ;;  %v5762_v59 = vld [vmem:[#allocation2 + $0x12d] sm:$0xff]  ;;  %v2867_v52 = vadd.f32 %v11868_v49, %v2665_v33  ;;  %v11873_v49 = vld [vmem:[#allocation201_spill] sm:$0xff] }
 0x2a3   : > { %v3037_v63 = vmul.f32 %v5762_v59, %v9712_v34  ;;  %v4181_v44 = vadd.f32 %v4149_v14, %v3979_v2  ;;  %v9963_v32 = vld [vmem:[#allocation2 + $0x16b] sm:$0xff]  ;;  %v2766_v55 = vadd.f32 %v11867_v4, %v2564_v16  ;;  %v3138_v60 = vmul.f32 %v9727_v51, %v9509_v45  ;;  %v11872_v45 = vld [vmem:[#allocation200_spill] sm:$0xff] }
 0x2a4   : > { %v4282_v54 = vadd.f32 %v4250_v50, %v4080_v39  ;;  %11865 = vst [vmem:[#allocation57_spill] sm:$0xff] %v9963_v32  ;;  %v9965_v35 = vld [vmem:[#allocation2 + $0x16c] sm:$0xff]  ;;  %v5362_v0 = vadd.f32 %v9295_v58, %v5324_v28  ;;  %v4958_v58 = vmul.f32 %v9896_v18, %v9963_v32  ;;  %v3341_v33 = vmul.f32 %v9751_v25, %v11872_v45 }
 0x2a5   : > { %11866 = vst [vmem:[#allocation65_spill] sm:$0xff] %v9965_v35  ;;  %v11869_v59 = vld [vmem:[#allocation19_spill] sm:$0xff]  ;;  %v4383_v50 = vadd.f32 %v4351_v43, %v4181_v44  ;;  %v2968_v16 = vadd.f32 %v2936_v48, %v2766_v55  ;;  %v3069_v4 = vadd.f32 %v3037_v63, %v2867_v52  ;;  %v5059_v28 = vmul.f32 %v9903_v36, %v9965_v35  ;;  %v11874_v55 = vld [vmem:[#allocation202_spill] sm:$0xff] }
 0x2a6   : > { %v3240_v14 = vmul.f32 %v9734_v9, %v11869_v59  ;;  %v4484_v2 = vadd.f32 %v4452_v24, %v4282_v54  ;;  %v9976_v39 = vld [vmem:[#allocation2 + $0x16d] sm:$0xff]  ;;  %5394 = vst.msk [vmem:[%s8561_s5 + $0x88] sm:$0xff] %vm233_vm0, %v5362_v0  ;;  %v3442_v43 = vmul.f32 %v9758_v42, %v11873_v49  ;;  %v3543_v52 = vmul.f32 %v9769_v17, %v11874_v55 }
 0x2a7   : > { %11870 = vst [vmem:[#allocation67_spill] sm:$0xff] %v9976_v39  ;;  %v9978_v1 = vld [vmem:[#allocation2 + $0x16e] sm:$0xff]  ;;  %v4585_v24 = vadd.f32 %v4553_v38, %v4383_v50  ;;  %v3170_v54 = vadd.f32 %v3138_v60, %v2968_v16  ;;  %v5160_v63 = vmul.f32 %v9914_v13, %v9976_v39  ;;  %v11878_v50 = vld [vmem:[#allocation4_spill] sm:$0xff]  ;;  %v4049_v16 = vmul.f32 %v9804_v3, %v9838_v53 }
 0x2a8   : > { %11871 = vst [vmem:[#allocation68_spill] sm:$0xff] %v9978_v1  ;;  %v4687_v44 = vadd.f32 %v4655_v12, %v4484_v2  ;;  %v3272_v59 = vadd.f32 %v3240_v14, %v3069_v4  ;;  %v5261_v48 = vmul.f32 %v9921_v23, %v9978_v1  ;;  %v11875_v0 = vld [vmem:[#allocation50_spill] sm:$0xff]  ;;  %v11877_v60 = vld [vmem:[#allocation55_spill] sm:$0xff]  ;;  %v3948_v2 = vmul.f32 %v9797_v26, %v11878_v50 }
 0x2a9   : > { %v3644_v35 = vmul.f32 %v9776_v10, %v11875_v0  ;;  %v4788_v45 = vadd.f32 %v4756_v19, %v4585_v24  ;;  %v3373_v27 = vadd.f32 %v3341_v33, %v3170_v54  ;;  %v11876_v38 = vld [vmem:[#allocation58_spill] sm:$0xff]  ;;  %v3846_v14 = vmul.f32 %v9790_v37, %v11877_v60  ;;  %v10006_v19 = vld [vmem:[#allocation2 + $0x170] sm:$0xff]  ;;  %v11880_v24 = vld [vmem:[#allocation16_spill] sm:$0xff] }
 0x2aa   : > { %v4889_v32 = vadd.f32 %v4857_v29, %v4687_v44  ;;  %v3474_v49 = vadd.f32 %v3442_v43, %v3272_v59  ;;  %v3745_v12 = vmul.f32 %v9783_v20, %v11876_v38  ;;  %11879 = vst [vmem:[#allocation63_spill] sm:$0xff] %v10006_v19  ;;  %v4150_v29 = vmul.f32 %v9813_v31, %v9854_v21  ;;  %v10016_v54 = vld [vmem:[#allocation2 + $0x171] sm:$0xff] }
 0x2ab   : > { %v4990_v4 = vadd.f32 %v4958_v58, %v4788_v45  ;;  %v3575_v1 = vadd.f32 %v3543_v52, %v3373_v27  ;;  %v4251_v33 = vmul.f32 %v9820_v62, %v9867_v57  ;;  %v4352_v43 = vmul.f32 %v9827_v6, %v9869_v46  ;;  %v10022_v52 = vld [vmem:[#allocation2 + $0x172] sm:$0xff]  ;;  %v11882_v45 = vld [vmem:[#allocation122_spill] sm:$0xff] }
 0x2ac   : > { %v5091_v55 = vadd.f32 %v5059_v28, %v4889_v32  ;;  %v3676_v0 = vadd.f32 %v3644_v35, %v3474_v49  ;;  %v4453_v44 = vmul.f32 %v9834_v41, %v11880_v24  ;;  %v4554_v28 = vmul.f32 %v9843_v61, %v9885_v8  ;;  %11881 = vst [vmem:[#allocation70_spill] sm:$0xff] %v10022_v52  ;;  %v11883_v49 = vld [vmem:[#allocation130_spill] sm:$0xff]  ;;  %v11884_v46 = vld [vmem:[#allocation127_spill] sm:$0xff] }
 0x2ad   : > { %v5192_v58 = vadd.f32 %v5160_v63, %v4990_v4  ;;  %v3777_v27 = vadd.f32 %v3745_v12, %v3575_v1  ;;  %v4656_v59 = vmul.f32 %v9850_v56, %v10006_v19  ;;  %v2565_v38 = vadd.f32 %v11883_v49, %v11882_v45  ;;  %v11885_v57 = vld [vmem:[#allocation131_spill] sm:$0xff]  ;;  %v5763_v19 = vld [vmem:[#allocation2 + $0x13c] sm:$0xff] }
 0x2ae   : > { %v5293_v32 = vadd.f32 %v5261_v48, %v5091_v55  ;;  %v3878_v35 = vadd.f32 %v3846_v14, %v3676_v0  ;;  %v2666_v24 = vadd.f32 %v11885_v57, %v11884_v46  ;;  %v4757_v1 = vmul.f32 %v9863_v30, %v10016_v54  ;;  %v10030_v48 = vld [vmem:[#allocation2 + $0x173] sm:$0xff]  ;;  %v11889_v55 = vld [vmem:[#allocation133_spill] sm:$0xff] }
 0x2af   : > { %v3980_v53 = vadd.f32 %v3948_v2, %v3777_v27  ;;  %11886 = vst [vmem:[#allocation64_spill] sm:$0xff] %v10030_v48  ;;  %v10032_v12 = vld [vmem:[#allocation2 + $0x174] sm:$0xff]  ;;  %v2937_v45 = vmul.f32 %v5763_v19, %v9706_v22  ;;  %v5764_v49 = vld [vmem:[#allocation2 + $0x13d] sm:$0xff] }
 0x2b0   : > { %v5325_v21 = vadd.f32 %v5293_v32, %v5192_v58  ;;  %v4081_v63 = vadd.f32 %v4049_v16, %v3878_v35  ;;  %11887 = vst [vmem:[#allocation71_spill] sm:$0xff] %v10032_v12  ;;  %v11888_v14 = vld [vmem:[#allocation132_spill] sm:$0xff]  ;;  %v2868_v0 = vadd.f32 %v11889_v55, %v2666_v24  ;;  %v3038_v46 = vmul.f32 %v5764_v49, %v9712_v34  ;;  %v10041_v57 = vld [vmem:[%s10976_s1] ss:$0 sm:$0xff] }
 0x2b1   : > { %v2767_v4 = vadd.f32 %v11888_v14, %v2565_v38  ;;  %v4182_v16 = vadd.f32 %v4150_v29, %v3980_v53  ;;  %v4858_v32 = vmul.f32 %v9879_v15, %v10022_v52  ;;  %v10046_v24 = vld [vmem:[#allocation2 + $0x175] sm:$0xff]  ;;  %v3139_v38 = vmul.f32 %v9727_v51, %v9582_v47 }
 0x2b2   : > { %v5363_v2 = vadd.f32 %v10041_v57, %v5325_v21  ;;  %v4283_v58 = vadd.f32 %v4251_v33, %v4081_v63  ;;  %11890 = vst [vmem:[#allocation72_spill] sm:$0xff] %v10046_v24  ;;  %v10048_v27 = vld [vmem:[#allocation2 + $0x176] sm:$0xff]  ;;  %v3070_v35 = vadd.f32 %v3038_v46, %v2868_v0  ;;  %v3241_v14 = vmul.f32 %v9734_v9, %v9679_v5 }
 0x2b3   : > { %v2969_v19 = vadd.f32 %v2937_v45, %v2767_v4  ;;  %v4384_v21 = vadd.f32 %v4352_v43, %v4182_v16  ;;  %v4959_v29 = vmul.f32 %v9896_v18, %v10030_v48  ;;  %v5060_v33 = vmul.f32 %v9903_v36, %v10032_v12  ;;  %v11891_v46 = vld [vmem:[#allocation59_spill] sm:$0xff]  ;;  %v11892_v16 = vld [vmem:[#allocation60_spill] sm:$0xff] }
 0x2b4   : > { %5395 = vst.msk [vmem:[%s8561_s5 + $0x90] sm:$0xff] %vm233_vm0, %v5363_v2  ;;  %v4485_v53 = vadd.f32 %v4453_v44, %v4283_v58  ;;  %v3273_v55 = vadd.f32 %v3241_v14, %v3070_v35  ;;  %v3342_v4 = vmul.f32 %v9751_v25, %v9689_v7  ;;  %v3443_v47 = vmul.f32 %v9758_v42, %v9695_v40  ;;  %v11893_v35 = vld [vmem:[#allocation61_spill] sm:$0xff]  ;;  %v11894_v14 = vld [vmem:[#allocation203_spill] sm:$0xff] }
 0x2b5   : > { %v3171_v63 = vadd.f32 %v3139_v38, %v2969_v19  ;;  %v4586_v0 = vadd.f32 %v4554_v28, %v4384_v21  ;;  %v5161_v43 = vmul.f32 %v9914_v13, %v10046_v24  ;;  %v5262_v44 = vmul.f32 %v9921_v23, %v10048_v27 }
 0x2b6   : > { %v4688_v5 = vadd.f32 %v4656_v59, %v4485_v53  ;;  %v3475_v49 = vadd.f32 %v3443_v47, %v3273_v55  ;;  %v3544_v2 = vmul.f32 %v9769_v17, %v11891_v46  ;;  %v3645_v58 = vmul.f32 %v9776_v10, %v11892_v16  ;;  %v11895_v53 = vld [vmem:[#allocation54_spill] sm:$0xff]  ;;  %v10080_v55 = vld [vmem:[#allocation2 + $0x180] sm:$0xff] }
 0x2b7   : > { %v3374_v45 = vadd.f32 %v3342_v4, %v3171_v63  ;;  %v4789_v7 = vadd.f32 %v4757_v1, %v4586_v0  ;;  %v3746_v40 = vmul.f32 %v9783_v20, %v11893_v35  ;;  %v3847_v28 = vmul.f32 %v9790_v37, %v9740_v11  ;;  %11896 = vst [vmem:[#allocation73_spill] sm:$0xff] %v10080_v55  ;;  %v11897_v1 = vld [vmem:[#allocation62_spill] sm:$0xff]  ;;  %v11898_v0 = vld [vmem:[#allocation57_spill] sm:$0xff] }
 0x2b8   : > { %v4890_v19 = vadd.f32 %v4858_v32, %v4688_v5  ;;  %v3677_v38 = vadd.f32 %v3645_v58, %v3475_v49  ;;  %v3949_v21 = vmul.f32 %v9797_v26, %v11894_v14  ;;  %v4050_v63 = vmul.f32 %v9804_v3, %v11895_v53  ;;  %v10090_v58 = vld [vmem:[#allocation2 + $0x181] sm:$0xff] }
 0x2b9   : > { %v3576_v59 = vadd.f32 %v3544_v2, %v3374_v45  ;;  %v4991_v4 = vadd.f32 %v4959_v29, %v4789_v7  ;;  %v4151_v32 = vmul.f32 %v9813_v31, %v11897_v1  ;;  %v4252_v5 = vmul.f32 %v9820_v62, %v11898_v0  ;;  %v11899_v45 = vld [vmem:[#allocation65_spill] sm:$0xff]  ;;  %11900 = vst [vmem:[#allocation3_spill] sm:$0xff] %v10090_v58  ;;  %v11901_v29 = vld [vmem:[#allocation68_spill] sm:$0xff] }
 0x2ba   : > { %v5092_v47 = vadd.f32 %v5060_v33, %v4890_v19  ;;  %v3879_v16 = vadd.f32 %v3847_v28, %v3677_v38  ;;  %v4353_v49 = vmul.f32 %v9827_v6, %v11899_v45  ;;  %v4454_v2 = vmul.f32 %v9834_v41, %v9976_v39  ;;  %v11903_v28 = vld [vmem:[#allocation126_spill] sm:$0xff]  ;;  %v11905_v45 = vld [vmem:[#allocation129_spill] sm:$0xff] }
 0x2bb   : > { %v3778_v46 = vadd.f32 %v3746_v40, %v3576_v59  ;;  %v5193_v35 = vadd.f32 %v5161_v43, %v4991_v4  ;;  %v4555_v33 = vmul.f32 %v9843_v61, %v11901_v29  ;;  %v4657_v7 = vmul.f32 %v9850_v56, %v10080_v55  ;;  %v10096_v40 = vld [vmem:[#allocation2 + $0x182] sm:$0xff] }
 0x2bc   : > { %v5294_v53 = vadd.f32 %v5262_v44, %v5092_v47  ;;  %v4082_v0 = vadd.f32 %v4050_v63, %v3879_v16  ;;  %11902 = vst [vmem:[#allocation31_spill] sm:$0xff] %v10096_v40  ;;  %v11904_v59 = vld [vmem:[#allocation134_spill] sm:$0xff]  ;;  %v11906_v1 = vld [vmem:[#allocation137_spill] sm:$0xff]  ;;  %v4758_v43 = vmul.f32 %v9863_v30, %v10090_v58 }
 0x2bd   : > { %v3981_v19 = vadd.f32 %v3949_v21, %v3778_v46  ;;  %v2566_v38 = vadd.f32 %v11904_v59, %v11903_v28  ;;  %v2667_v39 = vadd.f32 %v11906_v1, %v11905_v45  ;;  %v5766_v44 = vld [vmem:[#allocation2 + $0x144] sm:$0xff]  ;;  %v11909_v28 = vld [vmem:[#allocation139_spill] sm:$0xff]  ;;  %v11910_v1 = vld [vmem:[#allocation140_spill] sm:$0xff] }
 0x2be   : > { %v5326_v14 = vadd.f32 %v5294_v53, %v5193_v35  ;;  %v2938_v4 = vmul.f32 %v5766_v44, %v9706_v22  ;;  %v5767_v47 = vld [vmem:[#allocation2 + $0x145] sm:$0xff]  ;;  %v4284_v63 = vadd.f32 %v4252_v5, %v4082_v0  ;;  %v4859_v35 = vmul.f32 %v9879_v15, %v10096_v40 }
 0x2bf   : > { %v3039_v55 = vmul.f32 %v5767_v47, %v9712_v34  ;;  %v4183_v21 = vadd.f32 %v4151_v32, %v3981_v19  ;;  %v10106_v46 = vld [vmem:[#allocation2 + $0x183] sm:$0xff]  ;;  %v2768_v59 = vadd.f32 %v11909_v28, %v2566_v38  ;;  %v2869_v53 = vadd.f32 %v11910_v1, %v2667_v39 }
 0x2c0   : > { %11907 = vst [vmem:[#allocation28_spill] sm:$0xff] %v10106_v46  ;;  %v10108_v16 = vld [vmem:[#allocation2 + $0x184] sm:$0xff]  ;;  %v5364_v45 = vadd.f32 %v10041_v57, %v5326_v14  ;;  %v3140_v44 = vmul.f32 %v9727_v51, %v11877_v60  ;;  %v3242_v32 = vmul.f32 %v9734_v9, %v11878_v50  ;;  %v4486_v5 = vadd.f32 %v4454_v2, %v4284_v63  ;;  %v11912_v60 = vld [vmem:[#allocation20_spill] sm:$0xff] }
 0x2c1   : > { %11908 = vst [vmem:[#allocation32_spill] sm:$0xff] %v10108_v16  ;;  %v4385_v0 = vadd.f32 %v4353_v49, %v4183_v21  ;;  %v10119_v19 = vld [vmem:[#allocation2 + $0x185] sm:$0xff]  ;;  %v2970_v38 = vadd.f32 %v2938_v4, %v2768_v59  ;;  %v3071_v28 = vadd.f32 %v3039_v55, %v2869_v53  ;;  %v4960_v39 = vmul.f32 %v9896_v18, %v10106_v46 }
 0x2c2   : > { %11911 = vst [vmem:[#allocation33_spill] sm:$0xff] %v10119_v19  ;;  %v10121_v47 = vld [vmem:[#allocation2 + $0x186] sm:$0xff]  ;;  %5396 = vst.msk [vmem:[%s8561_s5 + $0x98] sm:$0xff] %vm233_vm0, %v5364_v45  ;;  %v5061_v14 = vmul.f32 %v9903_v36, %v10108_v16  ;;  %v3343_v1 = vmul.f32 %v9751_v25, %v11912_v60  ;;  %v4689_v21 = vadd.f32 %v4657_v7, %v4486_v5 }
 0x2c3   : > { %v11913_v50 = vld [vmem:[#allocation25_spill] sm:$0xff]  ;;  %v4587_v2 = vadd.f32 %v4555_v33, %v4385_v0  ;;  %v3172_v63 = vadd.f32 %v3140_v44, %v2970_v38  ;;  %v3274_v40 = vadd.f32 %v3242_v32, %v3071_v28  ;;  %v5162_v55 = vmul.f32 %v9914_v13, %v10119_v19  ;;  %v11914_v59 = vld [vmem:[#allocation26_spill] sm:$0xff]  ;;  %v11916_v33 = vld [vmem:[#allocation16_spill] sm:$0xff] }
 0x2c4   : > { %v3444_v49 = vmul.f32 %v9758_v42, %v11913_v50  ;;  %v5263_v4 = vmul.f32 %v9921_v23, %v10121_v47  ;;  %v3545_v53 = vmul.f32 %v9769_v17, %v11914_v59  ;;  %v11915_v45 = vld [vmem:[#allocation29_spill] sm:$0xff]  ;;  %v4891_v46 = vadd.f32 %v4859_v35, %v4689_v21  ;;  %v11917_v32 = vld [vmem:[#allocation63_spill] sm:$0xff] }
 0x2c5   : > { %v3646_v16 = vmul.f32 %v9776_v10, %v11915_v45  ;;  %v4790_v60 = vadd.f32 %v4758_v43, %v4587_v2  ;;  %v3375_v58 = vadd.f32 %v3343_v1, %v3172_v63  ;;  %v3747_v7 = vmul.f32 %v9783_v20, %v11916_v33  ;;  %v10149_v43 = vld [vmem:[#allocation2 + $0x188] sm:$0xff]  ;;  %v11922_v33 = vld [vmem:[#allocation136_spill] sm:$0xff] }
 0x2c6   : > { %v3476_v50 = vadd.f32 %v3444_v49, %v3274_v40  ;;  %v3848_v44 = vmul.f32 %v9790_v37, %v9885_v8  ;;  %v3950_v0 = vmul.f32 %v9797_v26, %v11917_v32  ;;  %v4051_v5 = vmul.f32 %v9804_v3, %v10016_v54  ;;  %11918 = vst [vmem:[#allocation34_spill] sm:$0xff] %v10149_v43  ;;  %v10159_v2 = vld [vmem:[#allocation2 + $0x189] sm:$0xff] }
 0x2c7   : > { %v4992_v38 = vadd.f32 %v4960_v39, %v4790_v60  ;;  %v5093_v28 = vadd.f32 %v5061_v14, %v4891_v46  ;;  %v3577_v59 = vadd.f32 %v3545_v53, %v3375_v58  ;;  %v4152_v40 = vmul.f32 %v9813_v31, %v10022_v52  ;;  %v10165_v63 = vld [vmem:[#allocation2 + $0x18a] sm:$0xff] }
 0x2c8   : > { %v3678_v45 = vadd.f32 %v3646_v16, %v3476_v50  ;;  %v4253_v35 = vmul.f32 %v9820_v62, %v10030_v48  ;;  %v4354_v1 = vmul.f32 %v9827_v6, %v10032_v12  ;;  %v4455_v49 = vmul.f32 %v9834_v41, %v10046_v24  ;;  %11919 = vst [vmem:[#allocation66_spill] sm:$0xff] %v10165_v63  ;;  %v11920_v53 = vld [vmem:[#allocation135_spill] sm:$0xff]  ;;  %v11921_v60 = vld [vmem:[#allocation142_spill] sm:$0xff] }
 0x2c9   : > { %v5194_v39 = vadd.f32 %v5162_v55, %v4992_v38  ;;  %v5295_v46 = vadd.f32 %v5263_v4, %v5093_v28  ;;  %v3779_v58 = vadd.f32 %v3747_v7, %v3577_v59  ;;  %v4556_v14 = vmul.f32 %v9843_v61, %v10048_v27  ;;  %v11923_v12 = vld [vmem:[#allocation143_spill] sm:$0xff]  ;;  %v11926_v38 = vld [vmem:[#allocation144_spill] sm:$0xff]  ;;  %v11927_v59 = vld [vmem:[#allocation145_spill] sm:$0xff] }
 0x2ca   : > { %v3880_v16 = vadd.f32 %v3848_v44, %v3678_v45  ;;  %v4658_v21 = vmul.f32 %v9850_v56, %v10149_v43  ;;  %v2567_v50 = vadd.f32 %v11921_v60, %v11920_v53  ;;  %v2668_v24 = vadd.f32 %v11923_v12, %v11922_v33  ;;  %v10173_v7 = vld [vmem:[#allocation2 + $0x18b] sm:$0xff]  ;;  %v5768_v43 = vld [vmem:[#allocation2 + $0x154] sm:$0xff] }
 0x2cb   : > { %v5327_v48 = vadd.f32 %v5295_v46, %v5194_v39  ;;  %v3982_v52 = vadd.f32 %v3950_v0, %v3779_v58  ;;  %v4759_v4 = vmul.f32 %v9863_v30, %v10159_v2  ;;  %11924 = vst [vmem:[#allocation75_spill] sm:$0xff] %v10173_v7  ;;  %v10175_v44 = vld [vmem:[#allocation2 + $0x18c] sm:$0xff]  ;;  %v2939_v53 = vmul.f32 %v5768_v43, %v9706_v22  ;;  %v5769_v60 = vld [vmem:[#allocation2 + $0x155] sm:$0xff] }
 0x2cc   : > { %v4083_v55 = vadd.f32 %v4051_v5, %v3880_v16  ;;  %11925 = vst [vmem:[#allocation69_spill] sm:$0xff] %v10175_v44  ;;  %v2769_v28 = vadd.f32 %v11926_v38, %v2567_v50  ;;  %v2870_v45 = vadd.f32 %v11927_v59, %v2668_v24  ;;  %v3040_v12 = vmul.f32 %v5769_v60, %v9712_v34  ;;  %v10184_v58 = vld [vmem:[#allocation2 + $0x18d] sm:$0xff] }
 0x2cd   : > { %v5365_v0 = vadd.f32 %v10041_v57, %v5327_v48  ;;  %v4184_v5 = vadd.f32 %v4152_v40, %v3982_v52  ;;  %v4860_v46 = vmul.f32 %v9879_v15, %v10165_v63  ;;  %11928 = vst [vmem:[#allocation76_spill] sm:$0xff] %v10184_v58  ;;  %v10186_v16 = vld [vmem:[#allocation2 + $0x18e] sm:$0xff]  ;;  %v3141_v24 = vmul.f32 %v9727_v51, %v9740_v11 }
 0x2ce   : > { %v4285_v39 = vadd.f32 %v4253_v35, %v4083_v55  ;;  %v2971_v50 = vadd.f32 %v2939_v53, %v2769_v28  ;;  %v3072_v33 = vadd.f32 %v3040_v12, %v2870_v45  ;;  %v11929_v43 = vld [vmem:[#allocation203_spill] sm:$0xff]  ;;  %v4961_v40 = vmul.f32 %v9896_v18, %v10173_v7  ;;  %v11930_v28 = vld [vmem:[#allocation54_spill] sm:$0xff] }
 0x2cf   : > { %v3243_v38 = vmul.f32 %v9734_v9, %v11929_v43  ;;  %5397 = vst.msk [vmem:[%s8561_s5 + $0xa0] sm:$0xff] %vm233_vm0, %v5365_v0  ;;  %v4386_v48 = vadd.f32 %v4354_v1, %v4184_v5  ;;  %v5062_v35 = vmul.f32 %v9903_v36, %v10175_v44  ;;  %v3344_v45 = vmul.f32 %v9751_v25, %v11930_v28  ;;  %v11931_v53 = vld [vmem:[#allocation62_spill] sm:$0xff]  ;;  %v11934_v28 = vld [vmem:[#allocation67_spill] sm:$0xff] }
 0x2d0   : > { %v4487_v52 = vadd.f32 %v4455_v49, %v4285_v39  ;;  %v3173_v55 = vadd.f32 %v3141_v24, %v2971_v50  ;;  %v3445_v11 = vmul.f32 %v9758_v42, %v11931_v53  ;;  %v5163_v1 = vmul.f32 %v9914_v13, %v10184_v58  ;;  %v11932_v39 = vld [vmem:[#allocation57_spill] sm:$0xff] }
 0x2d1   : > { %v3275_v59 = vadd.f32 %v3243_v38, %v3072_v33  ;;  %v4588_v60 = vadd.f32 %v4556_v14, %v4386_v48  ;;  %v5264_v49 = vmul.f32 %v9921_v23, %v10186_v16  ;;  %v3546_v50 = vmul.f32 %v9769_v17, %v11932_v39  ;;  %v11933_v33 = vld [vmem:[#allocation65_spill] sm:$0xff] }
 0x2d2   : > { %v4690_v12 = vadd.f32 %v4658_v21, %v4487_v52  ;;  %v3376_v0 = vadd.f32 %v3344_v45, %v3173_v55  ;;  %v3647_v24 = vmul.f32 %v9776_v10, %v11933_v33  ;;  %v3748_v14 = vmul.f32 %v9783_v20, %v11934_v28  ;;  %v11935_v53 = vld [vmem:[#allocation73_spill] sm:$0xff] }
 0x2d3   : > { %v3477_v5 = vadd.f32 %v3445_v11, %v3275_v59  ;;  %v4791_v43 = vadd.f32 %v4759_v4, %v4588_v60  ;;  %v3849_v21 = vmul.f32 %v9790_v37, %v11901_v29  ;;  %v3951_v55 = vmul.f32 %v9797_v26, %v11935_v53  ;;  %v11936_v59 = vld [vmem:[#allocation3_spill] sm:$0xff]  ;;  %v10218_v11 = vld [vmem:[#allocation2 + $0x198] sm:$0xff] }
 0x2d4   : > { %v4892_v38 = vadd.f32 %v4860_v46, %v4690_v12  ;;  %v3578_v48 = vadd.f32 %v3546_v50, %v3376_v0  ;;  %v4052_v45 = vmul.f32 %v9804_v3, %v11936_v59  ;;  %11937 = vst [vmem:[#allocation77_spill] sm:$0xff] %v10218_v11  ;;  %v11938_v4 = vld [vmem:[#allocation31_spill] sm:$0xff]  ;;  %v11939_v60 = vld [vmem:[#allocation28_spill] sm:$0xff]  ;;  %v4456_v50 = vmul.f32 %v9834_v41, %v10119_v19 }
 0x2d5   : > { %v3679_v52 = vadd.f32 %v3647_v24, %v3477_v5  ;;  %v4993_v39 = vadd.f32 %v4961_v40, %v4791_v43  ;;  %v4153_v46 = vmul.f32 %v9813_v31, %v11938_v4  ;;  %v4254_v12 = vmul.f32 %v9820_v62, %v11939_v60  ;;  %v11940_v0 = vld [vmem:[#allocation32_spill] sm:$0xff]  ;;  %v11946_v60 = vld [vmem:[#allocation146_spill] sm:$0xff] }
 0x2d6   : > { %v5094_v33 = vadd.f32 %v5062_v35, %v4892_v38  ;;  %v3780_v28 = vadd.f32 %v3748_v14, %v3578_v48  ;;  %v4355_v5 = vmul.f32 %v9827_v6, %v11940_v0  ;;  %v10228_v24 = vld [vmem:[#allocation2 + $0x199] sm:$0xff]  ;;  %v4557_v40 = vmul.f32 %v9843_v61, %v10121_v47 }
 0x2d7   : > { %v3881_v29 = vadd.f32 %v3849_v21, %v3679_v52  ;;  %11941 = vst [vmem:[#allocation80_spill] sm:$0xff] %v10228_v24  ;;  %v5195_v59 = vadd.f32 %v5163_v1, %v4993_v39  ;;  %v4659_v35 = vmul.f32 %v9850_v56, %v10218_v11  ;;  %v10234_v14 = vld [vmem:[#allocation2 + $0x19a] sm:$0xff]  ;;  %v11943_v21 = vld [vmem:[#allocation138_spill] sm:$0xff]  ;;  %v4760_v1 = vmul.f32 %v9863_v30, %v10228_v24 }
 0x2d8   : > { %v5296_v53 = vadd.f32 %v5264_v49, %v5094_v33  ;;  %v3983_v43 = vadd.f32 %v3951_v55, %v3780_v28  ;;  %11942 = vst [vmem:[#allocation6_spill] sm:$0xff] %v10234_v14  ;;  %v11944_v48 = vld [vmem:[#allocation108_spill] sm:$0xff]  ;;  %v11945_v0 = vld [vmem:[#allocation141_spill] sm:$0xff] }
 0x2d9   : > { %v4084_v38 = vadd.f32 %v4052_v45, %v3881_v29  ;;  %v2568_v52 = vadd.f32 %v11944_v48, %v11943_v21  ;;  %v2669_v19 = vadd.f32 %v11946_v60, %v11945_v0  ;;  %v5770_v49 = vld [vmem:[#allocation2 + $0x15c] sm:$0xff]  ;;  %v11949_v21 = vld [vmem:[#allocation147_spill] sm:$0xff]  ;;  %v11950_v60 = vld [vmem:[#allocation150_spill] sm:$0xff]  ;;  %v4861_v0 = vmul.f32 %v9879_v15, %v10234_v14 }
 0x2da   : > { %v5328_v4 = vadd.f32 %v5296_v53, %v5195_v59  ;;  %v2940_v39 = vmul.f32 %v5770_v49, %v9706_v22  ;;  %v5771_v33 = vld [vmem:[#allocation2 + $0x15d] sm:$0xff]  ;;  %v4185_v55 = vadd.f32 %v4153_v46, %v3983_v43  ;;  %v3142_v49 = vmul.f32 %v9727_v51, %v9885_v8 }
 0x2db   : > { %v3041_v11 = vmul.f32 %v5771_v33, %v9712_v34  ;;  %v4286_v29 = vadd.f32 %v4254_v12, %v4084_v38  ;;  %v10244_v45 = vld [vmem:[#allocation2 + $0x19b] sm:$0xff]  ;;  %v2770_v48 = vadd.f32 %v11949_v21, %v2568_v52  ;;  %v2871_v53 = vadd.f32 %v11950_v60, %v2669_v19 }
 0x2dc   : > { %11947 = vst [vmem:[#allocation27_spill] sm:$0xff] %v10244_v45  ;;  %v10246_v28 = vld [vmem:[#allocation2 + $0x19c] sm:$0xff]  ;;  %v5366_v59 = vadd.f32 %v10041_v57, %v5328_v4  ;;  %v3244_v46 = vmul.f32 %v9734_v9, %v11917_v32  ;;  %v4387_v12 = vadd.f32 %v4355_v5, %v4185_v55  ;;  %v4962_v19 = vmul.f32 %v9896_v18, %v10244_v45  ;;  %v11952_v32 = vld [vmem:[#allocation70_spill] sm:$0xff] }
 0x2dd   : > { %11948 = vst [vmem:[#allocation35_spill] sm:$0xff] %v10246_v28  ;;  %v4488_v43 = vadd.f32 %v4456_v50, %v4286_v29  ;;  %v10257_v38 = vld [vmem:[#allocation2 + $0x19d] sm:$0xff]  ;;  %v2972_v52 = vadd.f32 %v2940_v39, %v2770_v48  ;;  %v3073_v21 = vadd.f32 %v3041_v11, %v2871_v53  ;;  %v5063_v4 = vmul.f32 %v9903_v36, %v10246_v28 }
 0x2de   : > { %11951 = vst [vmem:[#allocation30_spill] sm:$0xff] %v10257_v38  ;;  %v10259_v33 = vld [vmem:[#allocation2 + $0x19e] sm:$0xff]  ;;  %5398 = vst.msk [vmem:[%s8561_s5 + $0xa8] sm:$0xff] %vm233_vm0, %v5366_v59  ;;  %v3345_v8 = vmul.f32 %v9751_v25, %v10016_v54  ;;  %v3446_v5 = vmul.f32 %v9758_v42, %v11952_v32  ;;  %v4589_v50 = vadd.f32 %v4557_v40, %v4387_v12  ;;  %v11954_v59 = vld [vmem:[#allocation71_spill] sm:$0xff] }
 0x2df   : > { %v4691_v55 = vadd.f32 %v4659_v35, %v4488_v43  ;;  %v3174_v29 = vadd.f32 %v3142_v49, %v2972_v52  ;;  %v3276_v60 = vadd.f32 %v3244_v46, %v3073_v21  ;;  %v5164_v11 = vmul.f32 %v9914_v13, %v10257_v38  ;;  %v11953_v48 = vld [vmem:[#allocation64_spill] sm:$0xff]  ;;  %v11956_v46 = vld [vmem:[#allocation34_spill] sm:$0xff] }
 0x2e0   : > { %v5265_v39 = vmul.f32 %v9921_v23, %v10259_v33  ;;  %v3547_v53 = vmul.f32 %v9769_v17, %v11953_v48  ;;  %v3648_v28 = vmul.f32 %v9776_v10, %v11954_v59  ;;  %v4792_v54 = vadd.f32 %v4760_v1, %v4589_v50  ;;  %v11955_v40 = vld [vmem:[#allocation72_spill] sm:$0xff]  ;;  %v10287_v1 = vld [vmem:[#allocation2 + $0x1a0] sm:$0xff] }
 0x2e1   : > { %v4893_v45 = vadd.f32 %v4861_v0, %v4691_v55  ;;  %v3377_v14 = vadd.f32 %v3345_v8, %v3174_v29  ;;  %v3478_v32 = vadd.f32 %v3446_v5, %v3276_v60  ;;  %v3749_v35 = vmul.f32 %v9783_v20, %v11955_v40  ;;  %11957 = vst [vmem:[#allocation21_spill] sm:$0xff] %v10287_v1  ;;  %v10297_v55 = vld [vmem:[#allocation2 + $0x1a1] sm:$0xff] }
 0x2e2   : > { %v3850_v49 = vmul.f32 %v9790_v37, %v10048_v27  ;;  %v3952_v12 = vmul.f32 %v9797_v26, %v11956_v46  ;;  %v4053_v43 = vmul.f32 %v9804_v3, %v10159_v2  ;;  %v4994_v52 = vadd.f32 %v4962_v19, %v4792_v54  ;;  %v10303_v60 = vld [vmem:[#allocation2 + $0x1a2] sm:$0xff]  ;;  %v11959_v54 = vld [vmem:[#allocation152_spill] sm:$0xff] }
 0x2e3   : > { %v5095_v21 = vadd.f32 %v5063_v4, %v4893_v45  ;;  %v3579_v48 = vadd.f32 %v3547_v53, %v3377_v14  ;;  %v3680_v59 = vadd.f32 %v3648_v28, %v3478_v32  ;;  %v4154_v0 = vmul.f32 %v9813_v31, %v10165_v63  ;;  %v11958_v53 = vld [vmem:[#allocation107_spill] sm:$0xff]  ;;  %v11960_v40 = vld [vmem:[#allocation149_spill] sm:$0xff] }
 0x2e4   : > { %v4255_v8 = vmul.f32 %v9820_v62, %v10173_v7  ;;  %v4356_v5 = vmul.f32 %v9827_v6, %v10175_v44  ;;  %v4457_v50 = vmul.f32 %v9834_v41, %v10184_v58  ;;  %v5196_v19 = vadd.f32 %v5164_v11, %v4994_v52  ;;  %v11961_v44 = vld [vmem:[#allocation153_spill] sm:$0xff]  ;;  %v11963_v52 = vld [vmem:[#allocation154_spill] sm:$0xff] }
 0x2e5   : > { %v5297_v45 = vadd.f32 %v5265_v39, %v5095_v21  ;;  %v3781_v14 = vadd.f32 %v3749_v35, %v3579_v48  ;;  %v3882_v28 = vadd.f32 %v3850_v49, %v3680_v59  ;;  %v4558_v4 = vmul.f32 %v9843_v61, %v10186_v16  ;;  %v10311_v35 = vld [vmem:[#allocation2 + $0x1a3] sm:$0xff]  ;;  %v11964_v48 = vld [vmem:[#allocation155_spill] sm:$0xff] }
 0x2e6   : > { %v4660_v29 = vmul.f32 %v9850_v56, %v10287_v1  ;;  %v2569_v32 = vadd.f32 %v11959_v54, %v11958_v53  ;;  %v2670_v58 = vadd.f32 %v11961_v44, %v11960_v40  ;;  %v4761_v39 = vmul.f32 %v9863_v30, %v10297_v55  ;;  %v10313_v49 = vld [vmem:[#allocation2 + $0x1a4] sm:$0xff]  ;;  %v5772_v1 = vld [vmem:[#allocation2 + $0x16c] sm:$0xff] }
 0x2e7   : > { %v5329_v7 = vadd.f32 %v5297_v45, %v5196_v19  ;;  %v3984_v63 = vadd.f32 %v3952_v12, %v3781_v14  ;;  %v4085_v11 = vadd.f32 %v4053_v43, %v3882_v28  ;;  %11962 = vst [vmem:[#allocation74_spill] sm:$0xff] %v10313_v49  ;;  %v2941_v53 = vmul.f32 %v5772_v1, %v9706_v22  ;;  %v5773_v54 = vld [vmem:[#allocation2 + $0x16d] sm:$0xff]  ;;  %v10322_v14 = vld [vmem:[#allocation2 + $0x1a5] sm:$0xff] }
 0x2e8   : > { %v2771_v21 = vadd.f32 %v11963_v52, %v2569_v32  ;;  %v2872_v59 = vadd.f32 %v11964_v48, %v2670_v58  ;;  %v3042_v44 = vmul.f32 %v5773_v54, %v9712_v34  ;;  %v4862_v45 = vmul.f32 %v9879_v15, %v10303_v60  ;;  %v10324_v28 = vld [vmem:[#allocation2 + $0x1a6] sm:$0xff]  ;;  %v11965_v58 = vld [vmem:[#allocation68_spill] sm:$0xff] }
 0x2e9   : > { %v5367_v12 = vadd.f32 %v10041_v57, %v5329_v7  ;;  %v4186_v43 = vadd.f32 %v4154_v0, %v3984_v63  ;;  %v4287_v19 = vadd.f32 %v4255_v8, %v4085_v11  ;;  %v3143_v52 = vmul.f32 %v9727_v51, %v11965_v58  ;;  %v11966_v1 = vld [vmem:[#allocation73_spill] sm:$0xff] }
 0x2ea   : > { %v2973_v32 = vadd.f32 %v2941_v53, %v2771_v21  ;;  %v3074_v40 = vadd.f32 %v3042_v44, %v2872_v59  ;;  %v3245_v48 = vmul.f32 %v9734_v9, %v11966_v1  ;;  %v4963_v0 = vmul.f32 %v9896_v18, %v10311_v35  ;;  %v11967_v21 = vld [vmem:[#allocation3_spill] sm:$0xff] }
 0x2eb   : > { %5399 = vst.msk [vmem:[%s8561_s5 + $0xb0] sm:$0xff] %vm233_vm0, %v5367_v12  ;;  %v4388_v7 = vadd.f32 %v4356_v5, %v4186_v43  ;;  %v4489_v63 = vadd.f32 %v4457_v50, %v4287_v19  ;;  %v5064_v8 = vmul.f32 %v9903_v36, %v10313_v49  ;;  %v3346_v59 = vmul.f32 %v9751_v25, %v11967_v21  ;;  %v11968_v53 = vld [vmem:[#allocation31_spill] sm:$0xff]  ;;  %v11969_v19 = vld [vmem:[#allocation28_spill] sm:$0xff]  ;;  %v11971_v49 = vld [vmem:[#allocation33_spill] sm:$0xff] }
 0x2ec   : > { %v3175_v11 = vadd.f32 %v3143_v52, %v2973_v32  ;;  %v3277_v54 = vadd.f32 %v3245_v48, %v3074_v40  ;;  %v3447_v44 = vmul.f32 %v9758_v42, %v11968_v53  ;;  %v5165_v5 = vmul.f32 %v9914_v13, %v10322_v14  ;;  %v11970_v40 = vld [vmem:[#allocation32_spill] sm:$0xff]  ;;  %v11972_v53 = vld [vmem:[#allocation77_spill] sm:$0xff] }
 0x2ed   : > { %v4590_v58 = vadd.f32 %v4558_v4, %v4388_v7  ;;  %v4692_v1 = vadd.f32 %v4660_v29, %v4489_v63  ;;  %v5266_v50 = vmul.f32 %v9921_v23, %v10324_v28  ;;  %v3548_v32 = vmul.f32 %v9769_v17, %v11969_v19 }
 0x2ee   : > { %v3378_v12 = vadd.f32 %v3346_v59, %v3175_v11  ;;  %v3479_v43 = vadd.f32 %v3447_v44, %v3277_v54  ;;  %v3649_v52 = vmul.f32 %v9776_v10, %v11970_v40  ;;  %v3750_v4 = vmul.f32 %v9783_v20, %v11971_v49  ;;  %v10356_v59 = vld [vmem:[#allocation2 + $0x1b0] sm:$0xff] }
 0x2ef   : > { %v4793_v48 = vadd.f32 %v4761_v39, %v4590_v58  ;;  %v4894_v21 = vadd.f32 %v4862_v45, %v4692_v1  ;;  %v3851_v29 = vmul.f32 %v9790_v37, %v10121_v47  ;;  %v3953_v11 = vmul.f32 %v9797_v26, %v11972_v53  ;;  %11973 = vst [vmem:[#allocation82_spill] sm:$0xff] %v10356_v59  ;;  %v11974_v39 = vld [vmem:[#allocation6_spill] sm:$0xff]  ;;  %v11975_v58 = vld [vmem:[#allocation27_spill] sm:$0xff] }
 0x2f0   : > { %v3580_v7 = vadd.f32 %v3548_v32, %v3378_v12  ;;  %v3681_v63 = vadd.f32 %v3649_v52, %v3479_v43  ;;  %v4054_v54 = vmul.f32 %v9804_v3, %v10228_v24  ;;  %v4155_v45 = vmul.f32 %v9813_v31, %v11974_v39  ;;  %v11976_v12 = vld [vmem:[#allocation35_spill] sm:$0xff] }
 0x2f1   : > { %v4995_v44 = vadd.f32 %v4963_v0, %v4793_v48  ;;  %v5096_v19 = vadd.f32 %v5064_v8, %v4894_v21  ;;  %v4256_v49 = vmul.f32 %v9820_v62, %v11975_v58  ;;  %v4357_v43 = vmul.f32 %v9827_v6, %v11976_v12  ;;  %v10366_v52 = vld [vmem:[#allocation2 + $0x1b1] sm:$0xff]  ;;  %v11982_v58 = vld [vmem:[#allocation158_spill] sm:$0xff] }
 0x2f2   : > { %v3782_v1 = vadd.f32 %v3750_v4, %v3580_v7  ;;  %v3883_v40 = vadd.f32 %v3851_v29, %v3681_v63  ;;  %v4458_v32 = vmul.f32 %v9834_v41, %v10257_v38  ;;  %11977 = vst [vmem:[#allocation79_spill] sm:$0xff] %v10366_v52  ;;  %v4559_v0 = vmul.f32 %v9843_v61, %v10259_v33  ;;  %v10372_v4 = vld [vmem:[#allocation2 + $0x1b2] sm:$0xff]  ;;  %v11980_v7 = vld [vmem:[#allocation109_spill] sm:$0xff] }
 0x2f3   : > { %v5197_v24 = vadd.f32 %v5165_v5, %v4995_v44  ;;  %v5298_v53 = vadd.f32 %v5266_v50, %v5096_v19  ;;  %v4661_v8 = vmul.f32 %v9850_v56, %v10356_v59  ;;  %11978 = vst [vmem:[#allocation83_spill] sm:$0xff] %v10372_v4  ;;  %v11979_v29 = vld [vmem:[#allocation148_spill] sm:$0xff]  ;;  %v11981_v12 = vld [vmem:[#allocation151_spill] sm:$0xff]  ;;  %v4762_v5 = vmul.f32 %v9863_v30, %v10366_v52 }
 0x2f4   : > { %v3985_v48 = vadd.f32 %v3953_v11, %v3782_v1  ;;  %v4086_v21 = vadd.f32 %v4054_v54, %v3883_v40  ;;  %v2570_v63 = vadd.f32 %v11980_v7, %v11979_v29  ;;  %v2671_v38 = vadd.f32 %v11982_v58, %v11981_v12  ;;  %v5774_v50 = vld [vmem:[#allocation2 + $0x174] sm:$0xff]  ;;  %v11986_v58 = vld [vmem:[#allocation161_spill] sm:$0xff] }
 0x2f5   : > { %v5330_v39 = vadd.f32 %v5298_v53, %v5197_v24  ;;  %v2942_v44 = vmul.f32 %v5774_v50, %v9706_v22  ;;  %v5775_v19 = vld [vmem:[#allocation2 + $0x175] sm:$0xff]  ;;  %v4863_v12 = vmul.f32 %v9879_v15, %v10372_v4  ;;  %v3144_v22 = vmul.f32 %v9727_v51, %v10048_v27 }
 0x2f6   : > { %v3043_v59 = vmul.f32 %v5775_v19, %v9712_v34  ;;  %v4187_v11 = vadd.f32 %v4155_v45, %v3985_v48  ;;  %v4288_v54 = vadd.f32 %v4256_v49, %v4086_v21  ;;  %v10382_v1 = vld [vmem:[#allocation2 + $0x1b3] sm:$0xff]  ;;  %v2873_v24 = vadd.f32 %v11986_v58, %v2671_v38 }
 0x2f7   : > { %11983 = vst [vmem:[#allocation84_spill] sm:$0xff] %v10382_v1  ;;  %v10384_v40 = vld [vmem:[#allocation2 + $0x1b4] sm:$0xff]  ;;  %v5368_v53 = vadd.f32 %v10041_v57, %v5330_v39  ;;  %v3246_v34 = vmul.f32 %v9734_v9, %v11956_v46  ;;  %v4964_v38 = vmul.f32 %v9896_v18, %v10382_v1  ;;  %v3347_v51 = vmul.f32 %v9751_v25, %v10159_v2  ;;  %v11989_v9 = vld [vmem:[#allocation66_spill] sm:$0xff] }
 0x2f8   : > { %11984 = vst [vmem:[#allocation85_spill] sm:$0xff] %v10384_v40  ;;  %v11985_v29 = vld [vmem:[#allocation159_spill] sm:$0xff]  ;;  %v4389_v45 = vadd.f32 %v4357_v43, %v4187_v11  ;;  %v4490_v49 = vadd.f32 %v4458_v32, %v4288_v54  ;;  %v3075_v50 = vadd.f32 %v3043_v59, %v2873_v24  ;;  %v5065_v39 = vmul.f32 %v9903_v36, %v10384_v40 }
 0x2f9   : > { %v2772_v7 = vadd.f32 %v11985_v29, %v2570_v63  ;;  %v10395_v48 = vld [vmem:[#allocation2 + $0x1b5] sm:$0xff]  ;;  %5400 = vst.msk [vmem:[%s8561_s5 + $0xb8] sm:$0xff] %vm233_vm0, %v5368_v53  ;;  %v3448_v27 = vmul.f32 %v9758_v42, %v11989_v9  ;;  %v11991_v29 = vld [vmem:[#allocation69_spill] sm:$0xff]  ;;  %v3852_v24 = vmul.f32 %v9790_v37, %v10186_v16  ;;  %v4560_v9 = vmul.f32 %v9843_v61, %v10324_v28 }
 0x2fa   : > { %11987 = vst [vmem:[#allocation38_spill] sm:$0xff] %v10395_v48  ;;  %v10397_v21 = vld [vmem:[#allocation2 + $0x1b6] sm:$0xff]  ;;  %v4591_v46 = vadd.f32 %v4559_v0, %v4389_v45  ;;  %v4693_v43 = vadd.f32 %v4661_v8, %v4490_v49  ;;  %v3278_v19 = vadd.f32 %v3246_v34, %v3075_v50  ;;  %v5166_v59 = vmul.f32 %v9914_v13, %v10395_v48  ;;  %v11993_v53 = vld [vmem:[#allocation21_spill] sm:$0xff] }
 0x2fb   : > { %11988 = vst [vmem:[#allocation40_spill] sm:$0xff] %v10397_v21  ;;  %v2974_v63 = vadd.f32 %v2942_v44, %v2772_v7  ;;  %v5267_v44 = vmul.f32 %v9921_v23, %v10397_v21  ;;  %v11990_v11 = vld [vmem:[#allocation75_spill] sm:$0xff]  ;;  %v3650_v7 = vmul.f32 %v9776_v10, %v11991_v29  ;;  %v11992_v0 = vld [vmem:[#allocation76_spill] sm:$0xff]  ;;  %v4055_v34 = vmul.f32 %v9804_v3, %v10297_v55  ;;  %v12002_v29 = vld [vmem:[#allocation165_spill] sm:$0xff] }
 0x2fc   : > { %v3549_v54 = vmul.f32 %v9769_v17, %v11990_v11  ;;  %v4794_v25 = vadd.f32 %v4762_v5, %v4591_v46  ;;  %v4895_v2 = vadd.f32 %v4863_v12, %v4693_v43  ;;  %v3480_v42 = vadd.f32 %v3448_v27, %v3278_v19  ;;  %v10425_v5 = vld [vmem:[#allocation2 + $0x1b8] sm:$0xff]  ;;  %v11997_v46 = vld [vmem:[#allocation163_spill] sm:$0xff]  ;;  %v11998_v43 = vld [vmem:[#allocation157_spill] sm:$0xff] }
 0x2fd   : > { %v3176_v32 = vadd.f32 %v3144_v22, %v2974_v63  ;;  %v3751_v8 = vmul.f32 %v9783_v20, %v11992_v0  ;;  %v3954_v22 = vmul.f32 %v9797_v26, %v11993_v53  ;;  %v4156_v12 = vmul.f32 %v9813_v31, %v10303_v60  ;;  %v11994_v63 = vld [vmem:[#allocation74_spill] sm:$0xff]  ;;  %v10435_v50 = vld [vmem:[#allocation2 + $0x1b9] sm:$0xff] }
 0x2fe   : > { %v4996_v17 = vadd.f32 %v4964_v38, %v4794_v25  ;;  %v5097_v45 = vadd.f32 %v5065_v39, %v4895_v2  ;;  %v3682_v10 = vadd.f32 %v3650_v7, %v3480_v42  ;;  %v4257_v20 = vmul.f32 %v9820_v62, %v10311_v35  ;;  %v10441_v27 = vld [vmem:[#allocation2 + $0x1ba] sm:$0xff]  ;;  %v12003_v7 = vld [vmem:[#allocation166_spill] sm:$0xff] }
 0x2ff   : > { %v3379_v58 = vadd.f32 %v3347_v51, %v3176_v32  ;;  %v4358_v37 = vmul.f32 %v9827_v6, %v11994_v63  ;;  %v4459_v26 = vmul.f32 %v9834_v41, %v10322_v14  ;;  %v4662_v31 = vmul.f32 %v9850_v56, %v10425_v5  ;;  %11995 = vst [vmem:[#allocation41_spill] sm:$0xff] %v10441_v27  ;;  %v11996_v62 = vld [vmem:[#allocation156_spill] sm:$0xff]  ;;  %v5776_v2 = vld [vmem:[#allocation2 + $0x184] sm:$0xff] }
 0x300   : > { %v5198_v3 = vadd.f32 %v5166_v59, %v4996_v17  ;;  %v5299_v38 = vadd.f32 %v5267_v44, %v5097_v45  ;;  %v3884_v51 = vadd.f32 %v3852_v24, %v3682_v10  ;;  %v2571_v6 = vadd.f32 %v11997_v46, %v11996_v62  ;;  %v11999_v32 = vld [vmem:[#allocation164_spill] sm:$0xff]  ;;  %v5778_v0 = vld [vmem:[#allocation2 + $0x185] sm:$0xff] }
 0x301   : > { %v3581_v49 = vadd.f32 %v3549_v54, %v3379_v58  ;;  %v2672_v41 = vadd.f32 %v11999_v32, %v11998_v43  ;;  %v4763_v44 = vmul.f32 %v9863_v30, %v10435_v50  ;;  %v10449_v54 = vld [vmem:[#allocation2 + $0x1bb] sm:$0xff]  ;;  %v10458_v58 = vld [vmem:[%s10975_s0 + $0x19] ss:$0 sm:$0xff]  ;;  %v10464_v30 = vld [vmem:[%s10975_s0 + $0x1a] ss:$0 sm:$0xff]  ;;  %v4864_v17 = vmul.f32 %v9879_v15, %v10441_v27 }
 0x302   : > { %v5331_v19 = vadd.f32 %v5299_v38, %v5198_v3  ;;  %v4087_v59 = vadd.f32 %v4055_v34, %v3884_v51  ;;  %12000 = vst [vmem:[#allocation204_spill] sm:$0xff] %v10449_v54  ;;  %v10451_v61 = vld [vmem:[#allocation2 + $0x1bc] sm:$0xff]  ;;  %v2773_v56 = vadd.f32 %v12002_v29, %v2571_v6  ;;  %v2943_v42 = vmul.f32 %v10458_v58, %v5776_v2  ;;  %v10477_v38 = vld [vmem:[%s10975_s0 + $0x1b] ss:$0 sm:$0xff]  ;;  %v12008_v2 = vld [vmem:[#allocation27_spill] sm:$0xff] }
 0x303   : > { %v3783_v39 = vadd.f32 %v3751_v8, %v3581_v49  ;;  %12001 = vst [vmem:[#allocation205_spill] sm:$0xff] %v10451_v61  ;;  %v2874_v25 = vadd.f32 %v12003_v7, %v2672_v41  ;;  %v3044_v8 = vmul.f32 %v10464_v30, %v5778_v0  ;;  %v10470_v45 = vld [vmem:[#allocation2 + $0x1bd] sm:$0xff]  ;;  %v4965_v46 = vmul.f32 %v9896_v18, %v10449_v54 }
 0x304   : > { %v5369_v24 = vadd.f32 %v10041_v57, %v5331_v19  ;;  %v4289_v34 = vadd.f32 %v4257_v20, %v4087_v59  ;;  %12004 = vst [vmem:[#allocation206_spill] sm:$0xff] %v10470_v45  ;;  %v10472_v49 = vld [vmem:[#allocation2 + $0x1be] sm:$0xff]  ;;  %v2975_v10 = vadd.f32 %v2943_v42, %v2773_v56  ;;  %v5066_v6 = vmul.f32 %v9903_v36, %v10451_v61  ;;  %v10497_v32 = vld [vmem:[%s10975_s0 + $0x1d] ss:$0 sm:$0xff] }
 0x305   : > { %v3986_v11 = vadd.f32 %v3954_v22, %v3783_v39  ;;  %v3076_v3 = vadd.f32 %v3044_v8, %v2874_v25  ;;  %v3145_v39 = vmul.f32 %v10477_v38, %v10121_v47  ;;  %v12005_v15 = vld [vmem:[#allocation77_spill] sm:$0xff]  ;;  %v12006_v41 = vld [vmem:[#allocation80_spill] sm:$0xff]  ;;  %v5167_v59 = vmul.f32 %v9914_v13, %v10470_v45 }
 0x306   : > { %5401 = vst.msk [vmem:[%s8561_s5 + $0xc0] sm:$0xff] %vm233_vm0, %v5369_v24  ;;  %v4491_v62 = vadd.f32 %v4459_v26, %v4289_v34  ;;  %v3348_v19 = vmul.f32 %v10497_v32, %v12006_v41  ;;  %v12007_v26 = vld [vmem:[#allocation6_spill] sm:$0xff]  ;;  %v5268_v29 = vmul.f32 %v9921_v23, %v10472_v49  ;;  %v10515_v25 = vld [vmem:[%s10975_s0 + $0x1f] ss:$0 sm:$0xff]  ;;  %v10529_v8 = vld [vmem:[%s10975_s0 + $0x21] ss:$0 sm:$0xff] }
 0x307   : > { %v4188_v22 = vadd.f32 %v4156_v12, %v3986_v11  ;;  %v10484_v12 = vld [vmem:[%s10975_s0 + $0x1c] ss:$0 sm:$0xff]  ;;  %v3177_v43 = vadd.f32 %v3145_v39, %v2975_v10  ;;  %v3550_v42 = vmul.f32 %v10515_v25, %v12008_v2  ;;  %v12010_v24 = vld [vmem:[#allocation30_spill] sm:$0xff]  ;;  %v10536_v34 = vld [vmem:[%s10975_s0 + $0x22] ss:$0 sm:$0xff] }
 0x308   : > { %v3247_v20 = vmul.f32 %v10484_v12, %v12005_v15  ;;  %v4694_v36 = vadd.f32 %v4662_v31, %v4491_v62  ;;  %v12009_v31 = vld [vmem:[#allocation35_spill] sm:$0xff]  ;;  %v3853_v10 = vmul.f32 %v10536_v34, %v10259_v33  ;;  %v10554_v62 = vld [vmem:[#allocation2 + $0x1c8] sm:$0xff]  ;;  %v10559_v41 = vld [vmem:[%s10975_s0 + $0x25] ss:$0 sm:$0xff] }
 0x309   : > { %v4390_v51 = vadd.f32 %v4358_v37, %v4188_v22  ;;  %v10504_v37 = vld [vmem:[%s10975_s0 + $0x1e] ss:$0 sm:$0xff]  ;;  %v3380_v56 = vadd.f32 %v3348_v19, %v3177_v43  ;;  %v3752_v22 = vmul.f32 %v10529_v8, %v12010_v24  ;;  %12012 = vst [vmem:[#allocation78_spill] sm:$0xff] %v10554_v62  ;;  %v4157_v19 = vmul.f32 %v10559_v41, %v10372_v4  ;;  %v10584_v2 = vld [vmem:[#allocation2 + $0x1c9] sm:$0xff] }
 0x30a   : > { %v3279_v47 = vadd.f32 %v3247_v20, %v3076_v3  ;;  %v3449_v18 = vmul.f32 %v10504_v37, %v12007_v26  ;;  %v4896_v23 = vadd.f32 %v4864_v17, %v4694_v36  ;;  %v12011_v17 = vld [vmem:[#allocation82_spill] sm:$0xff]  ;;  %v10550_v20 = vld [vmem:[%s10975_s0 + $0x24] ss:$0 sm:$0xff]  ;;  %v10566_v26 = vld [vmem:[%s10975_s0 + $0x26] ss:$0 sm:$0xff]  ;;  %12014 = vst [vmem:[#allocation81_spill] sm:$0xff] %v10584_v2 }
 0x30b   : > { %v4592_v11 = vadd.f32 %v4560_v9, %v4390_v51  ;;  %v10522_v9 = vld [vmem:[%s10975_s0 + $0x20] ss:$0 sm:$0xff]  ;;  %v3582_v3 = vadd.f32 %v3550_v42, %v3380_v56  ;;  %v4056_v51 = vmul.f32 %v10550_v20, %v10366_v52  ;;  %v10580_v56 = vld [vmem:[%s10975_s0 + $0x28] ss:$0 sm:$0xff] }
 0x30c   : > { %v3481_v7 = vadd.f32 %v3449_v18, %v3279_v47  ;;  %v3651_v13 = vmul.f32 %v10522_v9, %v12009_v31  ;;  %v5098_v47 = vadd.f32 %v5066_v6, %v4896_v23  ;;  %v4258_v18 = vmul.f32 %v10566_v26, %v10382_v1  ;;  %v10596_v23 = vld [vmem:[%s10975_s0 + $0x2a] ss:$0 sm:$0xff] }
 0x30d   : > { %v4795_v0 = vadd.f32 %v4763_v44, %v4592_v11  ;;  %v10543_v44 = vld [vmem:[%s10975_s0 + $0x23] ss:$0 sm:$0xff]  ;;  %v3784_v11 = vadd.f32 %v3752_v22, %v3582_v3  ;;  %v4663_v24 = vmul.f32 %v10596_v23, %v10554_v62  ;;  %v12017_v3 = vld [vmem:[#allocation167_spill] sm:$0xff] }
 0x30e   : > { %v3683_v39 = vadd.f32 %v3651_v13, %v3481_v7  ;;  %v3955_v15 = vmul.f32 %v10543_v44, %v12011_v17  ;;  %v4460_v7 = vmul.f32 %v10580_v56, %v10395_v48  ;;  %v5300_v31 = vadd.f32 %v5268_v29, %v5098_v47  ;;  %v10589_v13 = vld [vmem:[%s10975_s0 + $0x29] ss:$0 sm:$0xff]  ;;  %v12016_v29 = vld [vmem:[#allocation160_spill] sm:$0xff]  ;;  %v5797_v62 = vld [vmem:[#allocation2 + $0x18c] sm:$0xff] }
 0x30f   : > { %v4997_v43 = vadd.f32 %v4965_v46, %v4795_v0  ;;  %v10573_v46 = vld [vmem:[%s10975_s0 + $0x27] ss:$0 sm:$0xff]  ;;  %v4561_v0 = vmul.f32 %v10589_v13, %v10397_v21  ;;  %v12019_v47 = vld [vmem:[#allocation168_spill] sm:$0xff]  ;;  %v10609_v21 = vld [vmem:[%s10975_s0 + $0x2b] ss:$0 sm:$0xff] }
 0x310   : > { %v3885_v36 = vadd.f32 %v3853_v10, %v3683_v39  ;;  %12013 = vst [vmem:[#allocation49_spill] sm:$0xff] %v10573_v46  ;;  %v4359_v6 = vmul.f32 %v10573_v46, %v10384_v40  ;;  %v3987_v22 = vadd.f32 %v3955_v15, %v3784_v11  ;;  %v2572_v39 = vadd.f32 %v12017_v3, %v12016_v29  ;;  %v10615_v3 = vld [vmem:[#allocation2 + $0x1cb] sm:$0xff] }
 0x311   : > { %v5199_v42 = vadd.f32 %v5167_v59, %v4997_v43  ;;  %v10600_v59 = vld [vmem:[#allocation2 + $0x1ca] sm:$0xff]  ;;  %v4764_v1 = vmul.f32 %v10609_v21, %v10584_v2  ;;  %v2944_v15 = vmul.f32 %v5797_v62, %v10458_v58  ;;  %12020 = vst [vmem:[#allocation90_spill] sm:$0xff] %v10615_v3 }
 0x312   : > { %v4088_v10 = vadd.f32 %v4056_v51, %v3885_v36  ;;  %12015 = vst [vmem:[#allocation88_spill] sm:$0xff] %v10600_v59  ;;  %v12018_v43 = vld [vmem:[#allocation162_spill] sm:$0xff]  ;;  %v4189_v36 = vadd.f32 %v4157_v19, %v3987_v22  ;;  %v3248_v22 = vmul.f32 %v10484_v12, %v11993_v53 }
 0x313   : > { %v2673_v48 = vadd.f32 %v12019_v47, %v12018_v43  ;;  %v5332_v40 = vadd.f32 %v5300_v31, %v5199_v42  ;;  %v5798_v51 = vld [vmem:[#allocation2 + $0x18d] sm:$0xff]  ;;  %v10625_v62 = vld [vmem:[%s10975_s0 + $0x2c] ss:$0 sm:$0xff] }
 0x314   : > { %v3045_v11 = vmul.f32 %v5798_v51, %v10464_v30  ;;  %v4290_v29 = vadd.f32 %v4258_v18, %v4088_v10  ;;  %v10617_v42 = vld [vmem:[#allocation2 + $0x1cc] sm:$0xff]  ;;  %v4865_v19 = vmul.f32 %v10625_v62, %v10600_v59  ;;  %v3146_v18 = vmul.f32 %v10477_v38, %v10186_v16 }
 0x315   : > { %12021 = vst [vmem:[#allocation91_spill] sm:$0xff] %v10617_v42  ;;  %v12022_v31 = vld [vmem:[#allocation170_spill] sm:$0xff]  ;;  %v12023_v47 = vld [vmem:[#allocation171_spill] sm:$0xff]  ;;  %v5370_v52 = vadd.f32 %v10041_v57, %v5332_v40  ;;  %v4391_v10 = vadd.f32 %v4359_v6, %v4189_v36 }
 0x316   : > { %v2774_v43 = vadd.f32 %v12022_v31, %v2572_v39  ;;  %v2875_v4 = vadd.f32 %v12023_v47, %v2673_v48  ;;  %v4492_v39 = vadd.f32 %v4460_v7, %v4290_v29  ;;  %v10633_v51 = vld [vmem:[#allocation2 + $0x1cd] sm:$0xff] }
 0x317   : > { %12024 = vst [vmem:[#allocation15_spill] sm:$0xff] %v10633_v51  ;;  %v10635_v48 = vld [vmem:[#allocation2 + $0x1ce] sm:$0xff]  ;;  %5402 = vst.msk [vmem:[%s8561_s5 + $0xc8] sm:$0xff] %vm233_vm0, %v5370_v52  ;;  %v10642_v47 = vld [vmem:[%s10975_s0 + $0x2d] ss:$0 sm:$0xff]  ;;  %v3450_v52 = vmul.f32 %v10504_v37, %v10303_v60  ;;  %v4593_v7 = vadd.f32 %v4561_v0, %v4391_v10  ;;  %v3551_v60 = vmul.f32 %v10515_v25, %v10311_v35 }
 0x318   : > { %12025 = vst [vmem:[#allocation22_spill] sm:$0xff] %v10635_v48  ;;  %v2976_v40 = vadd.f32 %v2944_v15, %v2774_v43  ;;  %v3077_v31 = vadd.f32 %v3045_v11, %v2875_v4  ;;  %v4966_v16 = vmul.f32 %v10642_v47, %v10615_v3  ;;  %v10649_v53 = vld [vmem:[%s10975_s0 + $0x2e] ss:$0 sm:$0xff]  ;;  %v3349_v4 = vmul.f32 %v10497_v32, %v10297_v55  ;;  %v10660_v29 = vld [vmem:[%s10975_s0 + $0x2f] ss:$0 sm:$0xff] }
 0x319   : > { %v5067_v6 = vmul.f32 %v10649_v53, %v10617_v42  ;;  %v4695_v15 = vadd.f32 %v4663_v24, %v4492_v39  ;;  %v5168_v43 = vmul.f32 %v10660_v29, %v10633_v51  ;;  %v10667_v42 = vld [vmem:[%s10975_s0 + $0x30] ss:$0 sm:$0xff]  ;;  %v3652_v0 = vmul.f32 %v10522_v9, %v11994_v63 }
 0x31a   : > { %v3178_v11 = vadd.f32 %v3146_v18, %v2976_v40  ;;  %v3280_v36 = vadd.f32 %v3248_v22, %v3077_v31  ;;  %v5269_v55 = vmul.f32 %v10667_v42, %v10635_v48  ;;  %v4796_v24 = vadd.f32 %v4764_v1, %v4593_v7  ;;  %v10683_v1 = vld [vmem:[#allocation2 + $0x1d0] sm:$0xff] }
 0x31b   : > { %v4897_v18 = vadd.f32 %v4865_v19, %v4695_v15  ;;  %v3753_v39 = vmul.f32 %v10529_v8, %v10322_v14  ;;  %v3854_v40 = vmul.f32 %v10536_v34, %v10324_v28  ;;  %v3956_v31 = vmul.f32 %v10543_v44, %v10425_v5  ;;  %12026 = vst [vmem:[#allocation194_spill] sm:$0xff] %v10683_v1  ;;  %v10693_v7 = vld [vmem:[#allocation2 + $0x1d1] sm:$0xff] }
 0x31c   : > { %v3381_v22 = vadd.f32 %v3349_v4, %v3178_v11  ;;  %v3482_v10 = vadd.f32 %v3450_v52, %v3280_v36  ;;  %v4057_v48 = vmul.f32 %v10550_v20, %v10435_v50  ;;  %v4998_v35 = vadd.f32 %v4966_v16, %v4796_v24  ;;  %12027 = vst [vmem:[#allocation7_spill] sm:$0xff] %v10693_v7  ;;  %v12029_v24 = vld [vmem:[#allocation169_spill] sm:$0xff] }
 0x31d   : > { %v5099_v51 = vadd.f32 %v5067_v6, %v4897_v18  ;;  %v4158_v19 = vmul.f32 %v10559_v41, %v10441_v27  ;;  %v4259_v14 = vmul.f32 %v10566_v26, %v10449_v54  ;;  %v4360_v4 = vmul.f32 %v10573_v46, %v10451_v61  ;;  %v12030_v18 = vld [vmem:[#allocation175_spill] sm:$0xff]  ;;  %v12032_v61 = vld [vmem:[#allocation176_spill] sm:$0xff] }
 0x31e   : > { %v3583_v3 = vadd.f32 %v3551_v60, %v3381_v22  ;;  %v3684_v63 = vadd.f32 %v3652_v0, %v3482_v10  ;;  %v4461_v52 = vmul.f32 %v10580_v56, %v10470_v45  ;;  %v5200_v16 = vadd.f32 %v5168_v43, %v4998_v35  ;;  %v10699_v0 = vld [vmem:[#allocation2 + $0x1d2] sm:$0xff]  ;;  %v12036_v35 = vld [vmem:[#allocation178_spill] sm:$0xff] }
 0x31f   : > { %v5301_v6 = vadd.f32 %v5269_v55, %v5099_v51  ;;  %v4562_v36 = vmul.f32 %v10589_v13, %v10472_v49  ;;  %v4664_v60 = vmul.f32 %v10596_v23, %v10683_v1  ;;  %12028 = vst [vmem:[#allocation46_spill] sm:$0xff] %v10699_v0  ;;  %v2573_v22 = vadd.f32 %v12030_v18, %v12029_v24  ;;  %v12031_v10 = vld [vmem:[#allocation172_spill] sm:$0xff] }
 0x320   : > { %v3785_v15 = vadd.f32 %v3753_v39, %v3583_v3  ;;  %v3886_v11 = vadd.f32 %v3854_v40, %v3684_v63  ;;  %v2674_v45 = vadd.f32 %v12032_v61, %v12031_v10  ;;  %v4765_v3 = vmul.f32 %v10609_v21, %v10693_v7  ;;  %v10707_v51 = vld [vmem:[#allocation2 + $0x1d3] sm:$0xff]  ;;  %v12035_v39 = vld [vmem:[#allocation177_spill] sm:$0xff] }
 0x321   : > { %v5333_v54 = vadd.f32 %v5301_v6, %v5200_v16  ;;  %12033 = vst [vmem:[#allocation86_spill] sm:$0xff] %v10707_v51  ;;  %v10709_v55 = vld [vmem:[#allocation2 + $0x1d4] sm:$0xff]  ;;  %v2775_v40 = vadd.f32 %v12035_v39, %v2573_v22  ;;  %v5804_v1 = vld [vmem:[#allocation2 + $0x19c] sm:$0xff]  ;;  %v4866_v6 = vmul.f32 %v10625_v62, %v10699_v0 }
 0x322   : > { %v3988_v27 = vadd.f32 %v3956_v31, %v3785_v15  ;;  %v4089_v43 = vadd.f32 %v4057_v48, %v3886_v11  ;;  %12034 = vst [vmem:[#allocation93_spill] sm:$0xff] %v10709_v55  ;;  %v2876_v63 = vadd.f32 %v12036_v35, %v2674_v45  ;;  %v2945_v24 = vmul.f32 %v5804_v1, %v10458_v58  ;;  %v5805_v18 = vld [vmem:[#allocation2 + $0x19d] sm:$0xff]  ;;  %v10718_v15 = vld [vmem:[#allocation2 + $0x1d5] sm:$0xff] }
 0x323   : > { %v3046_v61 = vmul.f32 %v5805_v18, %v10464_v30  ;;  %v5371_v48 = vadd.f32 %v10041_v57, %v5333_v54  ;;  %12037 = vst [vmem:[#allocation87_spill] sm:$0xff] %v10718_v15  ;;  %v10720_v11 = vld [vmem:[#allocation2 + $0x1d6] sm:$0xff]  ;;  %v3147_v45 = vmul.f32 %v10477_v38, %v10259_v33  ;;  %v3249_v1 = vmul.f32 %v10484_v12, %v12011_v17 }
 0x324   : > { %v4190_v31 = vadd.f32 %v4158_v19, %v3988_v27  ;;  %v4291_v16 = vadd.f32 %v4259_v14, %v4089_v43  ;;  %v2977_v22 = vadd.f32 %v2945_v24, %v2775_v40  ;;  %v4967_v54 = vmul.f32 %v10642_v47, %v10707_v51  ;;  %v12038_v39 = vld [vmem:[#allocation79_spill] sm:$0xff] }
 0x325   : > { %v3078_v10 = vadd.f32 %v3046_v61, %v2876_v63  ;;  %5403 = vst.msk [vmem:[%s8561_s5 + $0xd0] sm:$0xff] %vm233_vm0, %v5371_v48  ;;  %v5068_v19 = vmul.f32 %v10649_v53, %v10709_v55  ;;  %v3350_v40 = vmul.f32 %v10497_v32, %v12038_v39  ;;  %v12039_v35 = vld [vmem:[#allocation83_spill] sm:$0xff]  ;;  %v12040_v61 = vld [vmem:[#allocation84_spill] sm:$0xff]  ;;  %v12044_v39 = vld [vmem:[#allocation78_spill] sm:$0xff] }
 0x326   : > { %v4392_v57 = vadd.f32 %v4360_v4, %v4190_v31  ;;  %v4493_v27 = vadd.f32 %v4461_v52, %v4291_v16  ;;  %v3179_v14 = vadd.f32 %v3147_v45, %v2977_v22  ;;  %v3451_v33 = vmul.f32 %v10504_v37, %v12039_v35  ;;  %v12041_v31 = vld [vmem:[#allocation85_spill] sm:$0xff]  ;;  %v12042_v45 = vld [vmem:[#allocation38_spill] sm:$0xff] }
 0x327   : > { %v3281_v43 = vadd.f32 %v3249_v1, %v3078_v10  ;;  %v5169_v4 = vmul.f32 %v10660_v29, %v10718_v15  ;;  %v5270_v52 = vmul.f32 %v10667_v42, %v10720_v11  ;;  %v3552_v48 = vmul.f32 %v10515_v25, %v12040_v61  ;;  %v12046_v61 = vld [vmem:[#allocation91_spill] sm:$0xff] }
 0x328   : > { %v4594_v63 = vadd.f32 %v4562_v36, %v4392_v57  ;;  %v4696_v17 = vadd.f32 %v4664_v60, %v4493_v27  ;;  %v3382_v24 = vadd.f32 %v3350_v40, %v3179_v14  ;;  %v3653_v16 = vmul.f32 %v10522_v9, %v12041_v31  ;;  %v12043_v60 = vld [vmem:[#allocation40_spill] sm:$0xff]  ;;  %v10760_v31 = vld [vmem:[#allocation2 + $0x1e0] sm:$0xff] }
 0x329   : > { %v3483_v18 = vadd.f32 %v3451_v33, %v3281_v43  ;;  %v3754_v36 = vmul.f32 %v10529_v8, %v12042_v45  ;;  %v3855_v1 = vmul.f32 %v10536_v34, %v12043_v60  ;;  %v3957_v14 = vmul.f32 %v10543_v44, %v12044_v39  ;;  %12048 = vst [vmem:[#allocation94_spill] sm:$0xff] %v10760_v31 }
 0x32a   : > { %v4797_v22 = vadd.f32 %v4765_v3, %v4594_v63  ;;  %v4898_v10 = vadd.f32 %v4866_v6, %v4696_v17  ;;  %v3584_v57 = vadd.f32 %v3552_v48, %v3382_v24  ;;  %v4058_v43 = vmul.f32 %v10550_v20, %v10584_v2  ;;  %v12045_v6 = vld [vmem:[#allocation90_spill] sm:$0xff] }
 0x32b   : > { %v3685_v27 = vadd.f32 %v3653_v16, %v3483_v18  ;;  %v4159_v3 = vmul.f32 %v10559_v41, %v10600_v59  ;;  %v4260_v33 = vmul.f32 %v10566_v26, %v12045_v6  ;;  %v4361_v24 = vmul.f32 %v10573_v46, %v12046_v61  ;;  %v12047_v18 = vld [vmem:[#allocation15_spill] sm:$0xff]  ;;  %v10762_v16 = vld [vmem:[#allocation2 + $0x1e1] sm:$0xff]  ;;  %v12053_v61 = vld [vmem:[#allocation180_spill] sm:$0xff] }
 0x32c   : > { %v4999_v40 = vadd.f32 %v4967_v54, %v4797_v22  ;;  %v5100_v35 = vadd.f32 %v5068_v19, %v4898_v10  ;;  %v3786_v63 = vadd.f32 %v3754_v36, %v3584_v57  ;;  %v4462_v48 = vmul.f32 %v10580_v56, %v12047_v18  ;;  %12049 = vst [vmem:[#allocation95_spill] sm:$0xff] %v10762_v16  ;;  %v12050_v22 = vld [vmem:[#allocation22_spill] sm:$0xff] }
 0x32d   : > { %v3887_v17 = vadd.f32 %v3855_v1, %v3685_v27  ;;  %v4563_v10 = vmul.f32 %v10589_v13, %v12050_v22  ;;  %v4665_v45 = vmul.f32 %v10596_v23, %v10760_v31  ;;  %v10768_v57 = vld [vmem:[#allocation2 + $0x1e2] sm:$0xff] }
 0x32e   : > { %v5201_v54 = vadd.f32 %v5169_v4, %v4999_v40  ;;  %v5302_v19 = vadd.f32 %v5270_v52, %v5100_v35  ;;  %v3989_v36 = vadd.f32 %v3957_v14, %v3786_v63  ;;  %12051 = vst [vmem:[#allocation96_spill] sm:$0xff] %v10768_v57  ;;  %v12052_v27 = vld [vmem:[#allocation173_spill] sm:$0xff]  ;;  %v12054_v18 = vld [vmem:[#allocation174_spill] sm:$0xff]  ;;  %v4766_v4 = vmul.f32 %v10609_v21, %v10762_v16 }
 0x32f   : > { %v4090_v1 = vadd.f32 %v4058_v43, %v3887_v17  ;;  %v2574_v6 = vadd.f32 %v12053_v61, %v12052_v27  ;;  %v12055_v59 = vld [vmem:[#allocation182_spill] sm:$0xff]  ;;  %v12058_v61 = vld [vmem:[#allocation183_spill] sm:$0xff] }
 0x330   : > { %v2675_v2 = vadd.f32 %v12055_v59, %v12054_v18  ;;  %v5334_v60 = vadd.f32 %v5302_v19, %v5201_v54  ;;  %v5806_v52 = vld [vmem:[#allocation2 + $0x1a4] sm:$0xff]  ;;  %v4191_v14 = vadd.f32 %v4159_v3, %v3989_v36  ;;  %v12059_v59 = vld [vmem:[#allocation184_spill] sm:$0xff]  ;;  %v10787_v54 = vld [vmem:[%s10976_s1] ss:$0 sm:$0xff]  ;;  %v4867_v3 = vmul.f32 %v10625_v62, %v10768_v57 }
 0x331   : > { %v2946_v40 = vmul.f32 %v5806_v52, %v10458_v58  ;;  %v5807_v35 = vld [vmem:[#allocation2 + $0x1a5] sm:$0xff]  ;;  %v4292_v43 = vadd.f32 %v4260_v33, %v4090_v1  ;;  %v2776_v27 = vadd.f32 %v12058_v61, %v2574_v6  ;;  %v3148_v33 = vmul.f32 %v10477_v38, %v10324_v28 }
 0x332   : > { %v3047_v31 = vmul.f32 %v5807_v35, %v10464_v30  ;;  %v10778_v63 = vld [vmem:[#allocation2 + $0x1e3] sm:$0xff]  ;;  %v2877_v18 = vadd.f32 %v12059_v59, %v2675_v2  ;;  %v5372_v19 = vadd.f32 %v10787_v54, %v5334_v60  ;;  %v3250_v36 = vmul.f32 %v10484_v12, %v10425_v5 }
 0x333   : > { %12056 = vst [vmem:[#allocation14_spill] sm:$0xff] %v10778_v63  ;;  %v10780_v17 = vld [vmem:[#allocation2 + $0x1e4] sm:$0xff]  ;;  %v4393_v1 = vadd.f32 %v4361_v24, %v4191_v14  ;;  %v4494_v6 = vadd.f32 %v4462_v48, %v4292_v43  ;;  %v2978_v35 = vadd.f32 %v2946_v40, %v2776_v27  ;;  %v4968_v60 = vmul.f32 %v10642_v47, %v10778_v63  ;;  %v12061_v27 = vld [vmem:[#allocation204_spill] sm:$0xff] }
 0x334   : > { %12057 = vst [vmem:[#allocation195_spill] sm:$0xff] %v10780_v17  ;;  %v10796_v52 = vld [vmem:[#allocation2 + $0x1e5] sm:$0xff]  ;;  %v3079_v61 = vadd.f32 %v3047_v31, %v2877_v18  ;;  %5404 = vst.msk [vmem:[%s8561_s5 + $0xd8] sm:$0xff] %vm233_vm0, %v5372_v19  ;;  %v5069_v59 = vmul.f32 %v10649_v53, %v10780_v17  ;;  %v3351_v28 = vmul.f32 %v10497_v32, %v10435_v50 }
 0x335   : > { %v10798_v2 = vld [vmem:[#allocation2 + $0x1e6] sm:$0xff]  ;;  %v4595_v48 = vadd.f32 %v4563_v10, %v4393_v1  ;;  %v4697_v14 = vadd.f32 %v4665_v45, %v4494_v6  ;;  %v3180_v43 = vadd.f32 %v3148_v33, %v2978_v35  ;;  %v5170_v31 = vmul.f32 %v10660_v29, %v10796_v52 }
 0x336   : > { %v12060_v5 = vld [vmem:[#allocation41_spill] sm:$0xff]  ;;  %v3282_v57 = vadd.f32 %v3250_v36, %v3079_v61  ;;  %v5271_v40 = vmul.f32 %v10667_v42, %v10798_v2  ;;  %v3553_v18 = vmul.f32 %v10515_v25, %v12061_v27  ;;  %v12063_v10 = vld [vmem:[#allocation206_spill] sm:$0xff]  ;;  %v3856_v33 = vmul.f32 %v10536_v34, %v10472_v49 }
 0x337   : > { %v3452_v24 = vmul.f32 %v10504_v37, %v12060_v5  ;;  %v12062_v19 = vld [vmem:[#allocation205_spill] sm:$0xff]  ;;  %v4798_v50 = vadd.f32 %v4766_v4, %v4595_v48  ;;  %v4899_v63 = vadd.f32 %v4867_v3, %v4697_v14  ;;  %v3383_v16 = vadd.f32 %v3351_v28, %v3180_v43  ;;  %v12064_v36 = vld [vmem:[#allocation194_spill] sm:$0xff]  ;;  %v2910_v48 = vld [vmem:[#allocation2 + $0x1b4] sm:$0xff] }
 0x338   : > { %v3654_v17 = vmul.f32 %v10522_v9, %v12062_v19  ;;  %v3755_v45 = vmul.f32 %v10529_v8, %v12063_v10  ;;  %v3958_v1 = vmul.f32 %v10543_v44, %v12064_v36  ;;  %v4059_v6 = vmul.f32 %v10550_v20, %v10693_v7  ;;  %v3011_v14 = vld [vmem:[#allocation2 + $0x1b5] sm:$0xff] }
 0x339   : > { %v3484_v5 = vadd.f32 %v3452_v24, %v3282_v57  ;;  %v5000_v35 = vadd.f32 %v4968_v60, %v4798_v50  ;;  %v5101_v61 = vadd.f32 %v5069_v59, %v4899_v63  ;;  %v3585_v27 = vadd.f32 %v3553_v18, %v3383_v16  ;;  %v10834_v24 = vld [vmem:[#allocation2 + $0x1e9] sm:$0xff] }
 0x33a   : > { %v4160_v4 = vmul.f32 %v10559_v41, %v10699_v0  ;;  %v4261_v57 = vmul.f32 %v10566_v26, %v10707_v51  ;;  %v4362_v3 = vmul.f32 %v10573_v46, %v10709_v55  ;;  %v4463_v28 = vmul.f32 %v10580_v56, %v10718_v15  ;;  %v10836_v59 = vld [vmem:[#allocation2 + $0x1e8] sm:$0xff]  ;;  %v12065_v50 = vld [vmem:[#allocation179_spill] sm:$0xff]  ;;  %v12067_v15 = vld [vmem:[#allocation181_spill] sm:$0xff] }
 0x33b   : > { %v3686_v19 = vadd.f32 %v3654_v17, %v3484_v5  ;;  %v5202_v60 = vadd.f32 %v5170_v31, %v5000_v35  ;;  %v5303_v63 = vadd.f32 %v5271_v40, %v5101_v61  ;;  %v3787_v16 = vadd.f32 %v3755_v45, %v3585_v27  ;;  %v12066_v5 = vld [vmem:[#allocation186_spill] sm:$0xff]  ;;  %v12068_v55 = vld [vmem:[#allocation187_spill] sm:$0xff]  ;;  %v12069_v35 = vld [vmem:[#allocation188_spill] sm:$0xff] }
 0x33c   : > { %v4564_v43 = vmul.f32 %v10589_v13, %v10720_v11  ;;  %v4666_v18 = vmul.f32 %v10596_v23, %v10836_v59  ;;  %v2575_v10 = vadd.f32 %v12066_v5, %v12065_v50  ;;  %v2676_v51 = vadd.f32 %v12068_v55, %v12067_v15  ;;  %v10848_v45 = vld [vmem:[#allocation2 + $0x1ea] sm:$0xff]  ;;  %v12070_v27 = vld [vmem:[#allocation189_spill] sm:$0xff] }
 0x33d   : > { %v3888_v17 = vadd.f32 %v3856_v33, %v3686_v19  ;;  %v5335_v0 = vadd.f32 %v5303_v63, %v5202_v60  ;;  %v3990_v7 = vadd.f32 %v3958_v1, %v3787_v16  ;;  %v4767_v40 = vmul.f32 %v10609_v21, %v10834_v24  ;;  %v10850_v33 = vld [vmem:[#allocation2 + $0x1eb] sm:$0xff] }
 0x33e   : > { %v2777_v61 = vadd.f32 %v12069_v35, %v2575_v10  ;;  %v2878_v19 = vadd.f32 %v12070_v27, %v2676_v51  ;;  %v2947_v50 = vmul.f32 %v10458_v58, %v2910_v48  ;;  %v3048_v5 = vmul.f32 %v10464_v30, %v3011_v14  ;;  %v10861_v63 = vld [vmem:[#allocation2 + $0x1ed] sm:$0xff]  ;;  %v12073_v51 = vld [vmem:[#allocation40_spill] sm:$0xff]  ;;  %v12074_v35 = vld [vmem:[#allocation81_spill] sm:$0xff] }
 0x33f   : > { %v4091_v31 = vadd.f32 %v4059_v6, %v3888_v17  ;;  %v5373_v55 = vadd.f32 %v10787_v54, %v5335_v0  ;;  %v4192_v15 = vadd.f32 %v4160_v4, %v3990_v7  ;;  %v10857_v6 = vld [vmem:[#allocation2 + $0x1ec] sm:$0xff]  ;;  %v3251_v60 = vmul.f32 %v10484_v12, %v12044_v39  ;;  %12071 = vst [vmem:[#allocation36_spill] sm:$0xff] %v10861_v63  ;;  %v12075_v27 = vld [vmem:[#allocation88_spill] sm:$0xff] }
 0x340   : > { %v10863_v16 = vld [vmem:[#allocation2 + $0x1ee] sm:$0xff]  ;;  %v2979_v17 = vadd.f32 %v2947_v50, %v2777_v61  ;;  %v3080_v10 = vadd.f32 %v3048_v5, %v2878_v19  ;;  %v3149_v48 = vmul.f32 %v10477_v38, %v12073_v51  ;;  %v3352_v14 = vmul.f32 %v10497_v32, %v12074_v35 }
 0x341   : > { %v4293_v1 = vadd.f32 %v4261_v57, %v4091_v31  ;;  %12072 = vst [vmem:[#allocation43_spill] sm:$0xff] %v10863_v16  ;;  %5405 = vst.msk [vmem:[%s8561_s5 + $0xe0] sm:$0xff] %vm233_vm0, %v5373_v55  ;;  %v4394_v7 = vadd.f32 %v4362_v3, %v4192_v15  ;;  %v4868_v4 = vmul.f32 %v10625_v62, %v10848_v45  ;;  %v12077_v35 = vld [vmem:[#allocation91_spill] sm:$0xff] }
 0x342   : > { %v4969_v39 = vmul.f32 %v10642_v47, %v10850_v33  ;;  %v5070_v57 = vmul.f32 %v10649_v53, %v10857_v6  ;;  %v3181_v31 = vadd.f32 %v3149_v48, %v2979_v17  ;;  %v3283_v61 = vadd.f32 %v3251_v60, %v3080_v10  ;;  %v12078_v48 = vld [vmem:[#allocation15_spill] sm:$0xff] }
 0x343   : > { %v4495_v0 = vadd.f32 %v4463_v28, %v4293_v1  ;;  %v3453_v19 = vmul.f32 %v10504_v37, %v12075_v27  ;;  %v4596_v50 = vadd.f32 %v4564_v43, %v4394_v7  ;;  %v5171_v3 = vmul.f32 %v10660_v29, %v10861_v63  ;;  %v12076_v1 = vld [vmem:[#allocation90_spill] sm:$0xff] }
 0x344   : > { %v5272_v28 = vmul.f32 %v10667_v42, %v10863_v16  ;;  %v3384_v55 = vadd.f32 %v3352_v14, %v3181_v31  ;;  %v3554_v51 = vmul.f32 %v10515_v25, %v12076_v1  ;;  %v3655_v17 = vmul.f32 %v10522_v9, %v12077_v35  ;;  %v12079_v27 = vld [vmem:[#allocation94_spill] sm:$0xff]  ;;  %v12080_v31 = vld [vmem:[#allocation95_spill] sm:$0xff]  ;;  %v12081_v35 = vld [vmem:[#allocation96_spill] sm:$0xff] }
 0x345   : > { %v4698_v5 = vadd.f32 %v4666_v18, %v4495_v0  ;;  %v3485_v15 = vadd.f32 %v3453_v19, %v3283_v61  ;;  %v4799_v60 = vadd.f32 %v4767_v40, %v4596_v50  ;;  %v3756_v43 = vmul.f32 %v10529_v8, %v12078_v48  ;;  %v4630_v19 = vld [vmem:[#allocation2 + $0x1f8] sm:$0xff]  ;;  %v12085_v63 = vld [vmem:[#allocation190_spill] sm:$0xff] }
 0x346   : > { %v3857_v18 = vmul.f32 %v10536_v34, %v12050_v22  ;;  %v3586_v7 = vadd.f32 %v3554_v51, %v3384_v55  ;;  %v3959_v14 = vmul.f32 %v10543_v44, %v12079_v27  ;;  %v4060_v61 = vmul.f32 %v10550_v20, %v12080_v31  ;;  %v3012_v48 = vld [vmem:[#allocation2 + $0x1bd] sm:$0xff] }
 0x347   : > { %v4900_v10 = vadd.f32 %v4868_v4, %v4698_v5  ;;  %v3687_v0 = vadd.f32 %v3655_v17, %v3485_v15  ;;  %v5001_v1 = vadd.f32 %v4969_v39, %v4799_v60  ;;  %v4161_v40 = vmul.f32 %v10559_v41, %v12081_v35  ;;  %v12082_v4 = vld [vmem:[#allocation14_spill] sm:$0xff]  ;;  %v2911_v5 = vld [vmem:[#allocation2 + $0x1bc] sm:$0xff]  ;;  %v12083_v15 = vld [vmem:[#allocation195_spill] sm:$0xff] }
 0x348   : > { %v4262_v50 = vmul.f32 %v10566_v26, %v12082_v4  ;;  %v3788_v22 = vadd.f32 %v3756_v43, %v3586_v7  ;;  %v4363_v51 = vmul.f32 %v10573_v46, %v12083_v15  ;;  %v4464_v17 = vmul.f32 %v10580_v56, %v10796_v52  ;;  %v4731_v27 = vld [vmem:[#allocation2 + $0x1f9] sm:$0xff]  ;;  %v12087_v7 = vld [vmem:[#allocation11_spill] sm:$0xff] }
 0x349   : > { %v5102_v16 = vadd.f32 %v5070_v57, %v4900_v10  ;;  %v3889_v55 = vadd.f32 %v3857_v18, %v3687_v0  ;;  %v5203_v31 = vadd.f32 %v5171_v3, %v5001_v1  ;;  %v4565_v57 = vmul.f32 %v10589_v13, %v10798_v2  ;;  %v12084_v4 = vld [vmem:[#allocation185_spill] sm:$0xff] }
 0x34a   : > { %v4667_v60 = vmul.f32 %v10596_v23, %v4630_v19  ;;  %v3991_v10 = vadd.f32 %v3959_v14, %v3788_v22  ;;  %v2576_v43 = vadd.f32 %v12085_v63, %v12084_v4  ;;  %v12086_v18 = vld [vmem:[#allocation5_spill] sm:$0xff]  ;;  %v4768_v46 = vmul.f32 %v10609_v21, %v4731_v27  ;;  %v12089_v22 = vld [vmem:[#allocation191_spill] sm:$0xff] }
 0x34b   : > { %v5304_v39 = vadd.f32 %v5272_v28, %v5102_v16  ;;  %v4092_v35 = vadd.f32 %v4060_v61, %v3889_v55  ;;  %v2677_v0 = vadd.f32 %v12087_v7, %v12086_v18  ;;  %v2948_v52 = vmul.f32 %v10458_v58, %v2911_v5  ;;  %v4832_v2 = vld [vmem:[#allocation2 + $0x1fa] sm:$0xff]  ;;  %v12090_v5 = vld [vmem:[#allocation7_spill] sm:$0xff]  ;;  %v12092_v7 = vld [vmem:[#allocation86_spill] sm:$0xff] }
 0x34c   : > { %v3049_v16 = vmul.f32 %v10464_v30, %v3012_v48  ;;  %v4193_v3 = vadd.f32 %v4161_v40, %v3991_v10  ;;  %v4933_v19 = vld [vmem:[#allocation2 + $0x1fb] sm:$0xff]  ;;  %v3252_v58 = vmul.f32 %v10484_v12, %v12064_v36  ;;  %v3353_v30 = vmul.f32 %v10497_v32, %v12090_v5 }
 0x34d   : > { %v5336_v15 = vadd.f32 %v5304_v39, %v5203_v31  ;;  %v4294_v28 = vadd.f32 %v4262_v50, %v4092_v35  ;;  %v5034_v14 = vld [vmem:[#allocation2 + $0x1fc] sm:$0xff]  ;;  %v2879_v63 = vadd.f32 %v12089_v22, %v2677_v0  ;;  %v3150_v31 = vmul.f32 %v10477_v38, %v10472_v49  ;;  %v12091_v38 = vld [vmem:[#allocation46_spill] sm:$0xff] }
 0x34e   : > { %v12088_v61 = vld [vmem:[#allocation9_spill] sm:$0xff]  ;;  %v4395_v40 = vadd.f32 %v4363_v51, %v4193_v3  ;;  %v4869_v35 = vmul.f32 %v10625_v62, %v4832_v2  ;;  %v4970_v4 = vmul.f32 %v10642_v47, %v4933_v19  ;;  %v5071_v49 = vmul.f32 %v10649_v53, %v5034_v14  ;;  %v12094_v19 = vld [vmem:[#allocation87_spill] sm:$0xff] }
 0x34f   : > { %v2778_v1 = vadd.f32 %v12088_v61, %v2576_v43  ;;  %v5374_v55 = vadd.f32 %v10787_v54, %v5336_v15  ;;  %v4496_v50 = vadd.f32 %v4464_v17, %v4294_v28  ;;  %v5135_v48 = vld [vmem:[#allocation2 + $0x1fd] sm:$0xff]  ;;  %v3081_v10 = vadd.f32 %v3049_v16, %v2879_v63 }
 0x350   : > { %v5236_v27 = vld [vmem:[#allocation2 + $0x1fe] sm:$0xff]  ;;  %v3454_v12 = vmul.f32 %v10504_v37, %v12091_v38  ;;  %v4597_v36 = vadd.f32 %v4565_v57, %v4395_v40  ;;  %v5172_v17 = vmul.f32 %v10660_v29, %v5135_v48  ;;  %v3555_v0 = vmul.f32 %v10515_v25, %v12092_v7 }
 0x351   : > { %v2980_v39 = vadd.f32 %v2948_v52, %v2778_v1  ;;  %5406 = vst.msk [vmem:[%s8561_s5 + $0xe8] sm:$0xff] %vm233_vm0, %v5374_v55  ;;  %v4699_v43 = vadd.f32 %v4667_v60, %v4496_v50  ;;  %v3284_v51 = vadd.f32 %v3252_v58, %v3081_v10  ;;  %v5273_v18 = vmul.f32 %v10667_v42, %v5236_v27  ;;  %v12093_v15 = vld [vmem:[#allocation93_spill] sm:$0xff]  ;;  %v12097_v10 = vld [vmem:[#allocation43_spill] sm:$0xff] }
 0x352   : > { %v3656_v52 = vmul.f32 %v10522_v9, %v12093_v15  ;;  %v4800_v16 = vadd.f32 %v4768_v46, %v4597_v36  ;;  %v3757_v37 = vmul.f32 %v10529_v8, %v12094_v19  ;;  %v3858_v57 = vmul.f32 %v10536_v34, %v10720_v11  ;;  %v4833_v48 = vld [vmem:[#allocation2 + $0x202] sm:$0xff] }
 0x353   : > { %v3182_v32 = vadd.f32 %v3150_v31, %v2980_v39  ;;  %v4901_v3 = vadd.f32 %v4869_v35, %v4699_v43  ;;  %v3486_v2 = vadd.f32 %v3454_v12, %v3284_v51  ;;  %v3960_v60 = vmul.f32 %v10543_v44, %v10836_v59  ;;  %v4631_v31 = vld [vmem:[#allocation2 + $0x200] sm:$0xff]  ;;  %v12096_v59 = vld [vmem:[#allocation36_spill] sm:$0xff] }
 0x354   : > { %v4061_v14 = vmul.f32 %v10550_v20, %v10834_v24  ;;  %v5002_v25 = vadd.f32 %v4970_v4, %v4800_v16  ;;  %v4162_v46 = vmul.f32 %v10559_v41, %v10848_v45  ;;  %v4263_v44 = vmul.f32 %v10566_v26, %v10850_v33  ;;  %v12095_v20 = vld [vmem:[#allocation49_spill] sm:$0xff] }
 0x355   : > { %v3385_v28 = vadd.f32 %v3353_v30, %v3182_v32  ;;  %v5103_v61 = vadd.f32 %v5071_v49, %v4901_v3  ;;  %v3688_v9 = vadd.f32 %v3656_v52, %v3486_v2  ;;  %v4364_v24 = vmul.f32 %v12095_v20, %v10857_v6  ;;  %v4732_v30 = vld [vmem:[#allocation2 + $0x201] sm:$0xff] }
 0x356   : > { %v5204_v22 = vadd.f32 %v5172_v17, %v5002_v25  ;;  %v4465_v5 = vmul.f32 %v10580_v56, %v12096_v59  ;;  %v4668_v50 = vmul.f32 %v10596_v23, %v4631_v31  ;;  %v4566_v26 = vmul.f32 %v10589_v13, %v12097_v10  ;;  %v4934_v6 = vld [vmem:[#allocation2 + $0x203] sm:$0xff] }
 0x357   : > { %v3587_v1 = vadd.f32 %v3555_v0, %v3385_v28  ;;  %v5305_v63 = vadd.f32 %v5273_v18, %v5103_v61  ;;  %v3890_v55 = vadd.f32 %v3858_v57, %v3688_v9  ;;  %v4769_v33 = vmul.f32 %v10609_v21, %v4732_v30  ;;  %v5035_v35 = vld [vmem:[#allocation2 + $0x204] sm:$0xff] }
 0x358   : > { %v4870_v49 = vmul.f32 %v10625_v62, %v4833_v48  ;;  %v5136_v38 = vld [vmem:[#allocation2 + $0x205] sm:$0xff]  ;;  %v4971_v43 = vmul.f32 %v10642_v47, %v4934_v6  ;;  %v5072_v32 = vmul.f32 %v10649_v53, %v5035_v35 }
 0x359   : > { %v3789_v8 = vadd.f32 %v3757_v37, %v3587_v1  ;;  %v5337_v34 = vadd.f32 %v5305_v63, %v5204_v22  ;;  %v4093_v58 = vadd.f32 %v4061_v14, %v3890_v55  ;;  %v5237_v12 = vld [vmem:[#allocation2 + $0x206] sm:$0xff]  ;;  %v5173_v13 = vmul.f32 %v10660_v29, %v5136_v38 }
 0x35a   : > { %v5274_v21 = vmul.f32 %v10667_v42, %v5237_v12 }
 0x35b   : > { %v3992_v11 = vadd.f32 %v3960_v60, %v3789_v8  ;;  %v5375_v41 = vadd.f32 %v10787_v54, %v5337_v34  ;;  %v4295_v40 = vadd.f32 %v4263_v44, %v4093_v58 }
 0x35d   : > { %v4194_v45 = vadd.f32 %v4162_v46, %v3992_v11  ;;  %5407 = vst.msk [vmem:[%s8561_s5 + $0xf0] sm:$0xff] %vm233_vm0, %v5375_v41  ;;  %v4497_v39 = vadd.f32 %v4465_v5, %v4295_v40 }
 0x35f   : > { %v4396_v27 = vadd.f32 %v4364_v24, %v4194_v45  ;;  %v4700_v4 = vadd.f32 %v4668_v50, %v4497_v39 }
 0x361   : > { %v4598_v56 = vadd.f32 %v4566_v26, %v4396_v27  ;;  %v4902_v36 = vadd.f32 %v4870_v49, %v4700_v4 }
 0x363   : > { %v4801_v23 = vadd.f32 %v4769_v33, %v4598_v56  ;;  %v5104_v17 = vadd.f32 %v5072_v32, %v4902_v36 }
 0x365   : > { %v5003_v51 = vadd.f32 %v4971_v43, %v4801_v23  ;;  %v5306_v7 = vadd.f32 %v5274_v21, %v5104_v17 }
 0x367   : > { %v5205_v18 = vadd.f32 %v5173_v13, %v5003_v51 }
 0x369   : > { %v5338_v0 = vadd.f32 %v5306_v7, %v5205_v18 }
 0x36b   : > { %v5376_v15 = vadd.f32 %v10787_v54, %v5338_v0 }
 0x36d   : > { %5408 = vst.msk [vmem:[%s8561_s5 + $0xf8] sm:$0xff] %vm233_vm0, %v5376_v15 }
 0x36e PF: > { %s13_s14 = sadd.s32 1, %s5831_s14   ;;  %s12098_s12 = smov %s5827_s13 }
 0x36f   : > { %p10_p5 = scmp.ge.s32.totalorder %s13_s14, 4   ;;  %s12099_s13 = smov %s12101_s15 }
 0x371   :  { %12 = sbr.rel (!%p10_p5) target bundleno = 2 (0x2), region = 75 }

</bundles_post_ra>
